<compile_context>
chip_gen: v5e
topology: v5e:2x2
jax: 0.10.0
libtpu: 0.0.40
codegen_flags: <defaults>
</compile_context>

<pallas_src>
import jax
import jax.numpy as jnp
from jax.experimental import pallas as pl
from jax.experimental.pallas import tpu as pltpu

C = 128  # lane-padded channel width used for every layer inside the kernel


def _make_fused_kernel(H, W):
    HW = H * W

    def conv3x3(src_ref, w_ref):
        # src_ref: (1, H+2, W+2, C) padded activation (VMEM); w_ref: (3, 3, C, C).
        acc = jnp.zeros((HW, C), jnp.float32)
        for dh in range(3):
            for dw in range(3):
                win = src_ref[:, dh:dh + H, dw:dw + W, :]          # (1, H, W, C)
                acc = acc + jnp.dot(win.reshape(HW, C), w_ref[dh, dw],
                                    preferred_element_type=jnp.float32)
        return acc

    def kernel(x_ref, w1_ref, b1_ref, w2_ref, b2_ref, w3_ref, b3_ref,
               out_ref, pad1, pad2, pad3):
        # In-kernel 'same' padding: zero halos (and padded lanes) once, then fill
        # each buffer's interior. Intermediates stay resident in VMEM.
        pad1[...] = jnp.zeros_like(pad1)
        pad2[...] = jnp.zeros_like(pad2)
        pad3[...] = jnp.zeros_like(pad3)

        pad1[:, 1:H + 1, 1:W + 1, :] = x_ref[...]

        h1 = jnp.maximum(conv3x3(pad1, w1_ref) + b1_ref[...], 0.0)   # relu
        pad2[:, 1:H + 1, 1:W + 1, :] = h1.reshape(1, H, W, C)

        h2 = jnp.maximum(conv3x3(pad2, w2_ref) + b2_ref[...], 0.0)   # relu
        pad3[:, 1:H + 1, 1:W + 1, :] = h2.reshape(1, H, W, C)

        y = jax.nn.sigmoid(conv3x3(pad3, w3_ref) + b3_ref[...])      # sigmoid
        out_ref[...] = y.reshape(1, HW, C)                           # lane-dense slab

    return kernel


def _fused_forward_nhwc(x_pad, w1p, b1p, w2p, b2p, w3p, b3p):
    """x_pad: (B, H, W, 128) NHWC with channels zero-padded to 128 lanes."""
    B, H, W, _ = x_pad.shape
    kernel = _make_fused_kernel(H, W)
    w_spec = pl.BlockSpec((3, 3, C, C), lambda b: (0, 0, 0, 0))
    b_spec = pl.BlockSpec((1, C), lambda b: (0, 0))
    pad_scratch = pltpu.VMEM((1, H + 2, W + 2, C), jnp.float32)
    return pl.pallas_call(
        kernel,
        out_shape=jax.ShapeDtypeStruct((B, H * W, C), jnp.float32),
        grid=(B,),
        in_specs=[pl.BlockSpec((1, H, W, C), lambda b: (b, 0, 0, 0)),
                  w_spec, b_spec, w_spec, b_spec, w_spec, b_spec],
        out_specs=pl.BlockSpec((1, H * W, C), lambda b: (b, 0, 0)),
        scratch_shapes=[pad_scratch, pad_scratch, pad_scratch],
        compiler_params=pltpu.CompilerParams(
            dimension_semantics=("parallel",)),
    )(x_pad, w1p, b1p, w2p, b2p, w3p, b3p)


def _prep_params(params):
    """Zero-pad HWIO weights / (1, cout) biases up to 128 in/out channels."""
    def pad_w(w):
        _, _, cin, cout = w.shape
        return jnp.pad(w, ((0, 0), (0, 0), (0, C - cin), (0, C - cout)))

    def pad_b(b):
        return jnp.pad(b, ((0, 0), (0, C - b.shape[-1])))

    (w1, b1), (w2, b2), (w3, b3) = params
    return pad_w(w1), pad_b(b1), pad_w(w2), pad_b(b2), pad_w(w3), pad_b(b3)


@jax.jit
def minesweeper_forward(x_nchw, params):
    """Matches MinesweeperNN.forward: relu(conv1) -> relu(conv2) -> sigmoid(conv3)."""
    B, cin, H, W = x_nchw.shape
    w1p, b1p, w2p, b2p, w3p, b3p = _prep_params(params)
    x = jnp.transpose(x_nchw, (0, 2, 3, 1))                        # NCHW -> NHWC
    x = jnp.pad(x, ((0, 0), (0, 0), (0, 0), (0, C - cin)))         # lane-pad channels
    out = _fused_forward_nhwc(x, w1p, b1p, w2p, b2p, w3p, b3p)     # (B, H*W, 128)
    return out[:, :, 0].reshape(B, 1, H, W)                        # cout=1, NCHW


def init_params(key, input_channels=3):
    """Deterministic init mirroring nn.Conv2d's U(-1/sqrt(fan_in), 1/sqrt(fan_in))."""
    def conv_init(k, cin, cout):
        kw, kb = jax.random.split(k)
        fan_in = cin * 3 * 3
        bound = 1.0 / (fan_in ** 0.5)
        w_oihw = jax.random.uniform(kw, (cout, cin, 3, 3), jnp.float32, -bound, bound)
        b = jax.random.uniform(kb, (1, cout), jnp.float32, -bound, bound)
        w_hwio = jnp.transpose(w_oihw, (2, 3, 1, 0))               # OIHW -> HWIO
        return w_hwio, b

    k1, k2, k3 = jax.random.split(key, 3)
    return (conv_init(k1, input_channels, 16),
            conv_init(k2, 16, 32),
            conv_init(k3, 32, 1))


def _reference_forward(x_nchw, params):
    """Pure-JAX reference using lax.conv_general_dilated (correctness check)."""
    (w1, b1), (w2, b2), (w3, b3) = params
    x = jnp.transpose(x_nchw, (0, 2, 3, 1))
    dn = jax.lax.conv_dimension_numbers(x.shape, w1.shape, ("NHWC", "HWIO", "NHWC"))

    def conv(x, w, b):
        return jax.lax.conv_general_dilated(
            x, w, window_strides=(1, 1), padding="SAME",
            dimension_numbers=dn) + b.reshape(1, 1, 1, -1)

    h = jnp.maximum(conv(x, w1, b1), 0.0)
    h = jnp.maximum(conv(h, w2, b2), 0.0)
    y = jax.nn.sigmoid(conv(h, w3, b3))
    return jnp.transpose(y, (0, 3, 1, 2))


if __name__ == "__main__":
    key = jax.random.PRNGKey(0)
    kx, kp = jax.random.split(key)

    # Small shapes consistent with the module: batch=2, 3 input channels, 16x16 board.
    x = jax.random.normal(kx, (2, 3, 16, 16), dtype=jnp.float32)   # NCHW, like PyTorch
    params = init_params(kp, input_channels=3)

    out = minesweeper_forward(x, params)
    out = jax.block_until_ready(out)
    assert out.shape == (2, 1, 16, 16), out.shape

    ref = jax.block_until_ready(_reference_forward(x, params))
    assert jnp.allclose(out, ref, atol=1e-5, rtol=1e-5), float(jnp.max(jnp.abs(out - ref)))

    print("KERNEL_OK")
</pallas_src>

<mosaic_0001>
module attributes {stable_mosaic.version = 11 : i64} {
  func.func @kernel(%arg0: i32, %arg1: memref<1x16x16x128xf32, #tpu.memory_space<vmem>>, %arg2: memref<3x3x128x128xf32, #tpu.memory_space<vmem>>, %arg3: memref<1x128xf32, #tpu.memory_space<vmem>>, %arg4: memref<3x3x128x128xf32, #tpu.memory_space<vmem>>, %arg5: memref<1x128xf32, #tpu.memory_space<vmem>>, %arg6: memref<3x3x128x128xf32, #tpu.memory_space<vmem>>, %arg7: memref<1x128xf32, #tpu.memory_space<vmem>>, %arg8: memref<1x256x128xf32, #tpu.memory_space<vmem>>, %arg9: memref<1x18x18x128xf32, #tpu.memory_space<vmem>>, %arg10: memref<1x18x18x128xf32, #tpu.memory_space<vmem>>, %arg11: memref<1x18x18x128xf32, #tpu.memory_space<vmem>>) attributes {dimension_semantics = [#tpu.dimension_semantics<parallel>], iteration_bounds = array<i64: 2>, scalar_prefetch = 0 : i64, scratch_operands = 3 : i64, tpu.core_type = #tpu.core_type<tc>, window_params = [{transform_indices = @transform_0, window_bounds = array<i64: 1, 16, 16, 128>}, {pipeline_mode = #tpu.pipeline_mode<synchronous>, transform_indices = @transform_1, window_bounds = array<i64: 3, 3, 128, 128>}, {pipeline_mode = #tpu.pipeline_mode<synchronous>, transform_indices = @transform_2, window_bounds = array<i64: 1, 128>}, {pipeline_mode = #tpu.pipeline_mode<synchronous>, transform_indices = @transform_3, window_bounds = array<i64: 3, 3, 128, 128>}, {pipeline_mode = #tpu.pipeline_mode<synchronous>, transform_indices = @transform_4, window_bounds = array<i64: 1, 128>}, {pipeline_mode = #tpu.pipeline_mode<synchronous>, transform_indices = @transform_5, window_bounds = array<i64: 3, 3, 128, 128>}, {pipeline_mode = #tpu.pipeline_mode<synchronous>, transform_indices = @transform_6, window_bounds = array<i64: 1, 128>}, {transform_indices = @transform_7, window_bounds = array<i64: 1, 256, 128>}]} {
    %cst = arith.constant 0.000000e+00 : f32
    %0 = vector.broadcast %cst : f32 to vector<1x18x18x128xf32>
    %c0 = arith.constant 0 : index
    %c0_0 = arith.constant 0 : index
    %c0_1 = arith.constant 0 : index
    %c0_2 = arith.constant 0 : index
    %1 = vector.load %arg9[%c0, %c0_0, %c0_1, %c0_2] : memref<1x18x18x128xf32, #tpu.memory_space<vmem>>, vector<1x18x18x128xf32>
    tpu.vector_store %arg9[%c0, %c0_0, %c0_1, %c0_2], %0 {strides = array<i32>} : memref<1x18x18x128xf32, #tpu.memory_space<vmem>>, vector<1x18x18x128xf32>,
    %cst_3 = arith.constant 0.000000e+00 : f32
    %2 = vector.broadcast %cst_3 : f32 to vector<1x18x18x128xf32>
    %c0_4 = arith.constant 0 : index
    %c0_5 = arith.constant 0 : index
    %c0_6 = arith.constant 0 : index
    %c0_7 = arith.constant 0 : index
    %3 = vector.load %arg10[%c0_4, %c0_5, %c0_6, %c0_7] : memref<1x18x18x128xf32, #tpu.memory_space<vmem>>, vector<1x18x18x128xf32>
    tpu.vector_store %arg10[%c0_4, %c0_5, %c0_6, %c0_7], %2 {strides = array<i32>} : memref<1x18x18x128xf32, #tpu.memory_space<vmem>>, vector<1x18x18x128xf32>,
    %cst_8 = arith.constant 0.000000e+00 : f32
    %4 = vector.broadcast %cst_8 : f32 to vector<1x18x18x128xf32>
    %c0_9 = arith.constant 0 : index
    %c0_10 = arith.constant 0 : index
    %c0_11 = arith.constant 0 : index
    %c0_12 = arith.constant 0 : index
    %5 = vector.load %arg11[%c0_9, %c0_10, %c0_11, %c0_12] : memref<1x18x18x128xf32, #tpu.memory_space<vmem>>, vector<1x18x18x128xf32>
    tpu.vector_store %arg11[%c0_9, %c0_10, %c0_11, %c0_12], %4 {strides = array<i32>} : memref<1x18x18x128xf32, #tpu.memory_space<vmem>>, vector<1x18x18x128xf32>,
    %c0_13 = arith.constant 0 : index
    %c0_14 = arith.constant 0 : index
    %c0_15 = arith.constant 0 : index
    %c0_16 = arith.constant 0 : index
    %6 = vector.load %arg1[%c0_13, %c0_14, %c0_15, %c0_16] : memref<1x16x16x128xf32, #tpu.memory_space<vmem>>, vector<1x16x16x128xf32>
    %c0_17 = arith.constant 0 : index
    %c1 = arith.constant 1 : index
    %c1_18 = arith.constant 1 : index
    %c0_19 = arith.constant 0 : index
    %7 = vector.load %arg9[%c0_17, %c1, %c1_18, %c0_19] : memref<1x18x18x128xf32, #tpu.memory_space<vmem>>, vector<1x16x16x128xf32>
    tpu.vector_store %arg9[%c0_17, %c1, %c1_18, %c0_19], %6 {strides = array<i32>} : memref<1x18x18x128xf32, #tpu.memory_space<vmem>>, vector<1x16x16x128xf32>,
    %cst_20 = arith.constant 0.000000e+00 : f32
    %8 = vector.broadcast %cst_20 : f32 to vector<256x128xf32>
    %c0_21 = arith.constant 0 : index
    %c0_22 = arith.constant 0 : index
    %c0_23 = arith.constant 0 : index
    %c0_24 = arith.constant 0 : index
    %9 = vector.load %arg9[%c0_21, %c0_22, %c0_23, %c0_24] : memref<1x18x18x128xf32, #tpu.memory_space<vmem>>, vector<1x16x16x128xf32>
    %10 = vector.shape_cast %9 : vector<1x16x16x128xf32> to vector<256x128xf32>
    %c0_25 = arith.constant 0 : index
    %c0_26 = arith.constant 0 : index
    %c0_27 = arith.constant 0 : index
    %c0_28 = arith.constant 0 : index
    %11 = vector.load %arg2[%c0_25, %c0_26, %c0_27, %c0_28] : memref<3x3x128x128xf32, #tpu.memory_space<vmem>>, vector<1x1x128x128xf32>
    %12 = vector.shape_cast %11 : vector<1x1x128x128xf32> to vector<128x128xf32>
    %cst_29 = arith.constant dense<0.000000e+00> : vector<256x128xf32>
    %13 = tpu.matmul %10, %12, %cst_29 {dimension_numbers = #tpu.dot_dimension_numbers<[1], [0], [0], [1], [0, 0, 1, 1], [], []>} : vector<256x128xf32>, vector<128x128xf32>, vector<256x128xf32> -> vector<256x128xf32>
    %14 = arith.addf %8, %13 : vector<256x128xf32>
    %c0_30 = arith.constant 0 : index
    %c0_31 = arith.constant 0 : index
    %c1_32 = arith.constant 1 : index
    %c0_33 = arith.constant 0 : index
    %15 = vector.load %arg9[%c0_30, %c0_31, %c1_32, %c0_33] : memref<1x18x18x128xf32, #tpu.memory_space<vmem>>, vector<1x16x16x128xf32>
    %16 = vector.shape_cast %15 : vector<1x16x16x128xf32> to vector<256x128xf32>
    %c0_34 = arith.constant 0 : index
    %c1_35 = arith.constant 1 : index
    %c0_36 = arith.constant 0 : index
    %c0_37 = arith.constant 0 : index
    %17 = vector.load %arg2[%c0_34, %c1_35, %c0_36, %c0_37] : memref<3x3x128x128xf32, #tpu.memory_space<vmem>>, vector<1x1x128x128xf32>
    %18 = vector.shape_cast %17 : vector<1x1x128x128xf32> to vector<128x128xf32>
    %cst_38 = arith.constant dense<0.000000e+00> : vector<256x128xf32>
    %19 = tpu.matmul %16, %18, %cst_38 {dimension_numbers = #tpu.dot_dimension_numbers<[1], [0], [0], [1], [0, 0, 1, 1], [], []>} : vector<256x128xf32>, vector<128x128xf32>, vector<256x128xf32> -> vector<256x128xf32>
    %20 = arith.addf %14, %19 : vector<256x128xf32>
    %c0_39 = arith.constant 0 : index
    %c0_40 = arith.constant 0 : index
    %c2 = arith.constant 2 : index
    %c0_41 = arith.constant 0 : index
    %21 = vector.load %arg9[%c0_39, %c0_40, %c2, %c0_41] : memref<1x18x18x128xf32, #tpu.memory_space<vmem>>, vector<1x16x16x128xf32>
    %22 = vector.shape_cast %21 : vector<1x16x16x128xf32> to vector<256x128xf32>
    %c0_42 = arith.constant 0 : index
    %c2_43 = arith.constant 2 : index
    %c0_44 = arith.constant 0 : index
    %c0_45 = arith.constant 0 : index
    %23 = vector.load %arg2[%c0_42, %c2_43, %c0_44, %c0_45] : memref<3x3x128x128xf32, #tpu.memory_space<vmem>>, vector<1x1x128x128xf32>
    %24 = vector.shape_cast %23 : vector<1x1x128x128xf32> to vector<128x128xf32>
    %cst_46 = arith.constant dense<0.000000e+00> : vector<256x128xf32>
    %25 = tpu.matmul %22, %24, %cst_46 {dimension_numbers = #tpu.dot_dimension_numbers<[1], [0], [0], [1], [0, 0, 1, 1], [], []>} : vector<256x128xf32>, vector<128x128xf32>, vector<256x128xf32> -> vector<256x128xf32>
    %26 = arith.addf %20, %25 : vector<256x128xf32>
    %c0_47 = arith.constant 0 : index
    %c1_48 = arith.constant 1 : index
    %c0_49 = arith.constant 0 : index
    %c0_50 = arith.constant 0 : index
    %27 = vector.load %arg9[%c0_47, %c1_48, %c0_49, %c0_50] : memref<1x18x18x128xf32, #tpu.memory_space<vmem>>, vector<1x16x16x128xf32>
    %28 = vector.shape_cast %27 : vector<1x16x16x128xf32> to vector<256x128xf32>
    %c1_51 = arith.constant 1 : index
    %c0_52 = arith.constant 0 : index
    %c0_53 = arith.constant 0 : index
    %c0_54 = arith.constant 0 : index
    %29 = vector.load %arg2[%c1_51, %c0_52, %c0_53, %c0_54] : memref<3x3x128x128xf32, #tpu.memory_space<vmem>>, vector<1x1x128x128xf32>
    %30 = vector.shape_cast %29 : vector<1x1x128x128xf32> to vector<128x128xf32>
    %cst_55 = arith.constant dense<0.000000e+00> : vector<256x128xf32>
    %31 = tpu.matmul %28, %30, %cst_55 {dimension_numbers = #tpu.dot_dimension_numbers<[1], [0], [0], [1], [0, 0, 1, 1], [], []>} : vector<256x128xf32>, vector<128x128xf32>, vector<256x128xf32> -> vector<256x128xf32>
    %32 = arith.addf %26, %31 : vector<256x128xf32>
    %c0_56 = arith.constant 0 : index
    %c1_57 = arith.constant 1 : index
    %c1_58 = arith.constant 1 : index
    %c0_59 = arith.constant 0 : index
    %33 = vector.load %arg9[%c0_56, %c1_57, %c1_58, %c0_59] : memref<1x18x18x128xf32, #tpu.memory_space<vmem>>, vector<1x16x16x128xf32>
    %34 = vector.shape_cast %33 : vector<1x16x16x128xf32> to vector<256x128xf32>
    %c1_60 = arith.constant 1 : index
    %c1_61 = arith.constant 1 : index
    %c0_62 = arith.constant 0 : index
    %c0_63 = arith.constant 0 : index
    %35 = vector.load %arg2[%c1_60, %c1_61, %c0_62, %c0_63] : memref<3x3x128x128xf32, #tpu.memory_space<vmem>>, vector<1x1x128x128xf32>
    %36 = vector.shape_cast %35 : vector<1x1x128x128xf32> to vector<128x128xf32>
    %cst_64 = arith.constant dense<0.000000e+00> : vector<256x128xf32>
    %37 = tpu.matmul %34, %36, %cst_64 {dimension_numbers = #tpu.dot_dimension_numbers<[1], [0], [0], [1], [0, 0, 1, 1], [], []>} : vector<256x128xf32>, vector<128x128xf32>, vector<256x128xf32> -> vector<256x128xf32>
    %38 = arith.addf %32, %37 : vector<256x128xf32>
    %c0_65 = arith.constant 0 : index
    %c1_66 = arith.constant 1 : index
    %c2_67 = arith.constant 2 : index
    %c0_68 = arith.constant 0 : index
    %39 = vector.load %arg9[%c0_65, %c1_66, %c2_67, %c0_68] : memref<1x18x18x128xf32, #tpu.memory_space<vmem>>, vector<1x16x16x128xf32>
    %40 = vector.shape_cast %39 : vector<1x16x16x128xf32> to vector<256x128xf32>
    %c1_69 = arith.constant 1 : index
    %c2_70 = arith.constant 2 : index
    %c0_71 = arith.constant 0 : index
    %c0_72 = arith.constant 0 : index
    %41 = vector.load %arg2[%c1_69, %c2_70, %c0_71, %c0_72] : memref<3x3x128x128xf32, #tpu.memory_space<vmem>>, vector<1x1x128x128xf32>
    %42 = vector.shape_cast %41 : vector<1x1x128x128xf32> to vector<128x128xf32>
    %cst_73 = arith.constant dense<0.000000e+00> : vector<256x128xf32>
    %43 = tpu.matmul %40, %42, %cst_73 {dimension_numbers = #tpu.dot_dimension_numbers<[1], [0], [0], [1], [0, 0, 1, 1], [], []>} : vector<256x128xf32>, vector<128x128xf32>, vector<256x128xf32> -> vector<256x128xf32>
    %44 = arith.addf %38, %43 : vector<256x128xf32>
    %c0_74 = arith.constant 0 : index
    %c2_75 = arith.constant 2 : index
    %c0_76 = arith.constant 0 : index
    %c0_77 = arith.constant 0 : index
    %45 = vector.load %arg9[%c0_74, %c2_75, %c0_76, %c0_77] : memref<1x18x18x128xf32, #tpu.memory_space<vmem>>, vector<1x16x16x128xf32>
    %46 = vector.shape_cast %45 : vector<1x16x16x128xf32> to vector<256x128xf32>
    %c2_78 = arith.constant 2 : index
    %c0_79 = arith.constant 0 : index
    %c0_80 = arith.constant 0 : index
    %c0_81 = arith.constant 0 : index
    %47 = vector.load %arg2[%c2_78, %c0_79, %c0_80, %c0_81] : memref<3x3x128x128xf32, #tpu.memory_space<vmem>>, vector<1x1x128x128xf32>
    %48 = vector.shape_cast %47 : vector<1x1x128x128xf32> to vector<128x128xf32>
    %cst_82 = arith.constant dense<0.000000e+00> : vector<256x128xf32>
    %49 = tpu.matmul %46, %48, %cst_82 {dimension_numbers = #tpu.dot_dimension_numbers<[1], [0], [0], [1], [0, 0, 1, 1], [], []>} : vector<256x128xf32>, vector<128x128xf32>, vector<256x128xf32> -> vector<256x128xf32>
    %50 = arith.addf %44, %49 : vector<256x128xf32>
    %c0_83 = arith.constant 0 : index
    %c2_84 = arith.constant 2 : index
    %c1_85 = arith.constant 1 : index
    %c0_86 = arith.constant 0 : index
    %51 = vector.load %arg9[%c0_83, %c2_84, %c1_85, %c0_86] : memref<1x18x18x128xf32, #tpu.memory_space<vmem>>, vector<1x16x16x128xf32>
    %52 = vector.shape_cast %51 : vector<1x16x16x128xf32> to vector<256x128xf32>
    %c2_87 = arith.constant 2 : index
    %c1_88 = arith.constant 1 : index
    %c0_89 = arith.constant 0 : index
    %c0_90 = arith.constant 0 : index
    %53 = vector.load %arg2[%c2_87, %c1_88, %c0_89, %c0_90] : memref<3x3x128x128xf32, #tpu.memory_space<vmem>>, vector<1x1x128x128xf32>
    %54 = vector.shape_cast %53 : vector<1x1x128x128xf32> to vector<128x128xf32>
    %cst_91 = arith.constant dense<0.000000e+00> : vector<256x128xf32>
    %55 = tpu.matmul %52, %54, %cst_91 {dimension_numbers = #tpu.dot_dimension_numbers<[1], [0], [0], [1], [0, 0, 1, 1], [], []>} : vector<256x128xf32>, vector<128x128xf32>, vector<256x128xf32> -> vector<256x128xf32>
    %56 = arith.addf %50, %55 : vector<256x128xf32>
    %c0_92 = arith.constant 0 : index
    %c2_93 = arith.constant 2 : index
    %c2_94 = arith.constant 2 : index
    %c0_95 = arith.constant 0 : index
    %57 = vector.load %arg9[%c0_92, %c2_93, %c2_94, %c0_95] : memref<1x18x18x128xf32, #tpu.memory_space<vmem>>, vector<1x16x16x128xf32>
    %58 = vector.shape_cast %57 : vector<1x16x16x128xf32> to vector<256x128xf32>
    %c2_96 = arith.constant 2 : index
    %c2_97 = arith.constant 2 : index
    %c0_98 = arith.constant 0 : index
    %c0_99 = arith.constant 0 : index
    %59 = vector.load %arg2[%c2_96, %c2_97, %c0_98, %c0_99] : memref<3x3x128x128xf32, #tpu.memory_space<vmem>>, vector<1x1x128x128xf32>
    %60 = vector.shape_cast %59 : vector<1x1x128x128xf32> to vector<128x128xf32>
    %cst_100 = arith.constant dense<0.000000e+00> : vector<256x128xf32>
    %61 = tpu.matmul %58, %60, %cst_100 {dimension_numbers = #tpu.dot_dimension_numbers<[1], [0], [0], [1], [0, 0, 1, 1], [], []>} : vector<256x128xf32>, vector<128x128xf32>, vector<256x128xf32> -> vector<256x128xf32>
    %62 = arith.addf %56, %61 : vector<256x128xf32>
    %c0_101 = arith.constant 0 : index
    %c0_102 = arith.constant 0 : index
    %63 = vector.load %arg3[%c0_101, %c0_102] : memref<1x128xf32, #tpu.memory_space<vmem>>, vector<1x128xf32>
    %64 = vector.broadcast %63 : vector<1x128xf32> to vector<256x128xf32>
    %65 = arith.addf %62, %64 : vector<256x128xf32>
    %cst_103 = arith.constant 0.000000e+00 : f32
    %66 = vector.broadcast %cst_103 : f32 to vector<256x128xf32>
    %67 = arith.maximumf %65, %66 : vector<256x128xf32>
    %68 = vector.shape_cast %67 : vector<256x128xf32> to vector<1x16x16x128xf32>
    %c0_104 = arith.constant 0 : index
    %c1_105 = arith.constant 1 : index
    %c1_106 = arith.constant 1 : index
    %c0_107 = arith.constant 0 : index
    %69 = vector.load %arg10[%c0_104, %c1_105, %c1_106, %c0_107] : memref<1x18x18x128xf32, #tpu.memory_space<vmem>>, vector<1x16x16x128xf32>
    tpu.vector_store %arg10[%c0_104, %c1_105, %c1_106, %c0_107], %68 {strides = array<i32>} : memref<1x18x18x128xf32, #tpu.memory_space<vmem>>, vector<1x16x16x128xf32>,
    %cst_108 = arith.constant 0.000000e+00 : f32
    %70 = vector.broadcast %cst_108 : f32 to vector<256x128xf32>
    %c0_109 = arith.constant 0 : index
    %c0_110 = arith.constant 0 : index
    %c0_111 = arith.constant 0 : index
    %c0_112 = arith.constant 0 : index
    %71 = vector.load %arg10[%c0_109, %c0_110, %c0_111, %c0_112] : memref<1x18x18x128xf32, #tpu.memory_space<vmem>>, vector<1x16x16x128xf32>
    %72 = vector.shape_cast %71 : vector<1x16x16x128xf32> to vector<256x128xf32>
    %c0_113 = arith.constant 0 : index
    %c0_114 = arith.constant 0 : index
    %c0_115 = arith.constant 0 : index
    %c0_116 = arith.constant 0 : index
    %73 = vector.load %arg4[%c0_113, %c0_114, %c0_115, %c0_116] : memref<3x3x128x128xf32, #tpu.memory_space<vmem>>, vector<1x1x128x128xf32>
    %74 = vector.shape_cast %73 : vector<1x1x128x128xf32> to vector<128x128xf32>
    %cst_117 = arith.constant dense<0.000000e+00> : vector<256x128xf32>
    %75 = tpu.matmul %72, %74, %cst_117 {dimension_numbers = #tpu.dot_dimension_numbers<[1], [0], [0], [1], [0, 0, 1, 1], [], []>} : vector<256x128xf32>, vector<128x128xf32>, vector<256x128xf32> -> vector<256x128xf32>
    %76 = arith.addf %70, %75 : vector<256x128xf32>
    %c0_118 = arith.constant 0 : index
    %c0_119 = arith.constant 0 : index
    %c1_120 = arith.constant 1 : index
    %c0_121 = arith.constant 0 : index
    %77 = vector.load %arg10[%c0_118, %c0_119, %c1_120, %c0_121] : memref<1x18x18x128xf32, #tpu.memory_space<vmem>>, vector<1x16x16x128xf32>
    %78 = vector.shape_cast %77 : vector<1x16x16x128xf32> to vector<256x128xf32>
    %c0_122 = arith.constant 0 : index
    %c1_123 = arith.constant 1 : index
    %c0_124 = arith.constant 0 : index
    %c0_125 = arith.constant 0 : index
    %79 = vector.load %arg4[%c0_122, %c1_123, %c0_124, %c0_125] : memref<3x3x128x128xf32, #tpu.memory_space<vmem>>, vector<1x1x128x128xf32>
    %80 = vector.shape_cast %79 : vector<1x1x128x128xf32> to vector<128x128xf32>
    %cst_126 = arith.constant dense<0.000000e+00> : vector<256x128xf32>
    %81 = tpu.matmul %78, %80, %cst_126 {dimension_numbers = #tpu.dot_dimension_numbers<[1], [0], [0], [1], [0, 0, 1, 1], [], []>} : vector<256x128xf32>, vector<128x128xf32>, vector<256x128xf32> -> vector<256x128xf32>
    %82 = arith.addf %76, %81 : vector<256x128xf32>
    %c0_127 = arith.constant 0 : index
    %c0_128 = arith.constant 0 : index
    %c2_129 = arith.constant 2 : index
    %c0_130 = arith.constant 0 : index
    %83 = vector.load %arg10[%c0_127, %c0_128, %c2_129, %c0_130] : memref<1x18x18x128xf32, #tpu.memory_space<vmem>>, vector<1x16x16x128xf32>
    %84 = vector.shape_cast %83 : vector<1x16x16x128xf32> to vector<256x128xf32>
    %c0_131 = arith.constant 0 : index
    %c2_132 = arith.constant 2 : index
    %c0_133 = arith.constant 0 : index
    %c0_134 = arith.constant 0 : index
    %85 = vector.load %arg4[%c0_131, %c2_132, %c0_133, %c0_134] : memref<3x3x128x128xf32, #tpu.memory_space<vmem>>, vector<1x1x128x128xf32>
    %86 = vector.shape_cast %85 : vector<1x1x128x128xf32> to vector<128x128xf32>
    %cst_135 = arith.constant dense<0.000000e+00> : vector<256x128xf32>
    %87 = tpu.matmul %84, %86, %cst_135 {dimension_numbers = #tpu.dot_dimension_numbers<[1], [0], [0], [1], [0, 0, 1, 1], [], []>} : vector<256x128xf32>, vector<128x128xf32>, vector<256x128xf32> -> vector<256x128xf32>
    %88 = arith.addf %82, %87 : vector<256x128xf32>
    %c0_136 = arith.constant 0 : index
    %c1_137 = arith.constant 1 : index
    %c0_138 = arith.constant 0 : index
    %c0_139 = arith.constant 0 : index
    %89 = vector.load %arg10[%c0_136, %c1_137, %c0_138, %c0_139] : memref<1x18x18x128xf32, #tpu.memory_space<vmem>>, vector<1x16x16x128xf32>
    %90 = vector.shape_cast %89 : vector<1x16x16x128xf32> to vector<256x128xf32>
    %c1_140 = arith.constant 1 : index
    %c0_141 = arith.constant 0 : index
    %c0_142 = arith.constant 0 : index
    %c0_143 = arith.constant 0 : index
    %91 = vector.load %arg4[%c1_140, %c0_141, %c0_142, %c0_143] : memref<3x3x128x128xf32, #tpu.memory_space<vmem>>, vector<1x1x128x128xf32>
    %92 = vector.shape_cast %91 : vector<1x1x128x128xf32> to vector<128x128xf32>
    %cst_144 = arith.constant dense<0.000000e+00> : vector<256x128xf32>
    %93 = tpu.matmul %90, %92, %cst_144 {dimension_numbers = #tpu.dot_dimension_numbers<[1], [0], [0], [1], [0, 0, 1, 1], [], []>} : vector<256x128xf32>, vector<128x128xf32>, vector<256x128xf32> -> vector<256x128xf32>
    %94 = arith.addf %88, %93 : vector<256x128xf32>
    %c0_145 = arith.constant 0 : index
    %c1_146 = arith.constant 1 : index
    %c1_147 = arith.constant 1 : index
    %c0_148 = arith.constant 0 : index
    %95 = vector.load %arg10[%c0_145, %c1_146, %c1_147, %c0_148] : memref<1x18x18x128xf32, #tpu.memory_space<vmem>>, vector<1x16x16x128xf32>
    %96 = vector.shape_cast %95 : vector<1x16x16x128xf32> to vector<256x128xf32>
    %c1_149 = arith.constant 1 : index
    %c1_150 = arith.constant 1 : index
    %c0_151 = arith.constant 0 : index
    %c0_152 = arith.constant 0 : index
    %97 = vector.load %arg4[%c1_149, %c1_150, %c0_151, %c0_152] : memref<3x3x128x128xf32, #tpu.memory_space<vmem>>, vector<1x1x128x128xf32>
    %98 = vector.shape_cast %97 : vector<1x1x128x128xf32> to vector<128x128xf32>
    %cst_153 = arith.constant dense<0.000000e+00> : vector<256x128xf32>
    %99 = tpu.matmul %96, %98, %cst_153 {dimension_numbers = #tpu.dot_dimension_numbers<[1], [0], [0], [1], [0, 0, 1, 1], [], []>} : vector<256x128xf32>, vector<128x128xf32>, vector<256x128xf32> -> vector<256x128xf32>
    %100 = arith.addf %94, %99 : vector<256x128xf32>
    %c0_154 = arith.constant 0 : index
    %c1_155 = arith.constant 1 : index
    %c2_156 = arith.constant 2 : index
    %c0_157 = arith.constant 0 : index
    %101 = vector.load %arg10[%c0_154, %c1_155, %c2_156, %c0_157] : memref<1x18x18x128xf32, #tpu.memory_space<vmem>>, vector<1x16x16x128xf32>
    %102 = vector.shape_cast %101 : vector<1x16x16x128xf32> to vector<256x128xf32>
    %c1_158 = arith.constant 1 : index
    %c2_159 = arith.constant 2 : index
    %c0_160 = arith.constant 0 : index
    %c0_161 = arith.constant 0 : index
    %103 = vector.load %arg4[%c1_158, %c2_159, %c0_160, %c0_161] : memref<3x3x128x128xf32, #tpu.memory_space<vmem>>, vector<1x1x128x128xf32>
    %104 = vector.shape_cast %103 : vector<1x1x128x128xf32> to vector<128x128xf32>
    %cst_162 = arith.constant dense<0.000000e+00> : vector<256x128xf32>
    %105 = tpu.matmul %102, %104, %cst_162 {dimension_numbers = #tpu.dot_dimension_numbers<[1], [0], [0], [1], [0, 0, 1, 1], [], []>} : vector<256x128xf32>, vector<128x128xf32>, vector<256x128xf32> -> vector<256x128xf32>
    %106 = arith.addf %100, %105 : vector<256x128xf32>
    %c0_163 = arith.constant 0 : index
    %c2_164 = arith.constant 2 : index
    %c0_165 = arith.constant 0 : index
    %c0_166 = arith.constant 0 : index
    %107 = vector.load %arg10[%c0_163, %c2_164, %c0_165, %c0_166] : memref<1x18x18x128xf32, #tpu.memory_space<vmem>>, vector<1x16x16x128xf32>
    %108 = vector.shape_cast %107 : vector<1x16x16x128xf32> to vector<256x128xf32>
    %c2_167 = arith.constant 2 : index
    %c0_168 = arith.constant 0 : index
    %c0_169 = arith.constant 0 : index
    %c0_170 = arith.constant 0 : index
    %109 = vector.load %arg4[%c2_167, %c0_168, %c0_169, %c0_170] : memref<3x3x128x128xf32, #tpu.memory_space<vmem>>, vector<1x1x128x128xf32>
    %110 = vector.shape_cast %109 : vector<1x1x128x128xf32> to vector<128x128xf32>
    %cst_171 = arith.constant dense<0.000000e+00> : vector<256x128xf32>
    %111 = tpu.matmul %108, %110, %cst_171 {dimension_numbers = #tpu.dot_dimension_numbers<[1], [0], [0], [1], [0, 0, 1, 1], [], []>} : vector<256x128xf32>, vector<128x128xf32>, vector<256x128xf32> -> vector<256x128xf32>
    %112 = arith.addf %106, %111 : vector<256x128xf32>
    %c0_172 = arith.constant 0 : index
    %c2_173 = arith.constant 2 : index
    %c1_174 = arith.constant 1 : index
    %c0_175 = arith.constant 0 : index
    %113 = vector.load %arg10[%c0_172, %c2_173, %c1_174, %c0_175] : memref<1x18x18x128xf32, #tpu.memory_space<vmem>>, vector<1x16x16x128xf32>
    %114 = vector.shape_cast %113 : vector<1x16x16x128xf32> to vector<256x128xf32>
    %c2_176 = arith.constant 2 : index
    %c1_177 = arith.constant 1 : index
    %c0_178 = arith.constant 0 : index
    %c0_179 = arith.constant 0 : index
    %115 = vector.load %arg4[%c2_176, %c1_177, %c0_178, %c0_179] : memref<3x3x128x128xf32, #tpu.memory_space<vmem>>, vector<1x1x128x128xf32>
    %116 = vector.shape_cast %115 : vector<1x1x128x128xf32> to vector<128x128xf32>
    %cst_180 = arith.constant dense<0.000000e+00> : vector<256x128xf32>
    %117 = tpu.matmul %114, %116, %cst_180 {dimension_numbers = #tpu.dot_dimension_numbers<[1], [0], [0], [1], [0, 0, 1, 1], [], []>} : vector<256x128xf32>, vector<128x128xf32>, vector<256x128xf32> -> vector<256x128xf32>
    %118 = arith.addf %112, %117 : vector<256x128xf32>
    %c0_181 = arith.constant 0 : index
    %c2_182 = arith.constant 2 : index
    %c2_183 = arith.constant 2 : index
    %c0_184 = arith.constant 0 : index
    %119 = vector.load %arg10[%c0_181, %c2_182, %c2_183, %c0_184] : memref<1x18x18x128xf32, #tpu.memory_space<vmem>>, vector<1x16x16x128xf32>
    %120 = vector.shape_cast %119 : vector<1x16x16x128xf32> to vector<256x128xf32>
    %c2_185 = arith.constant 2 : index
    %c2_186 = arith.constant 2 : index
    %c0_187 = arith.constant 0 : index
    %c0_188 = arith.constant 0 : index
    %121 = vector.load %arg4[%c2_185, %c2_186, %c0_187, %c0_188] : memref<3x3x128x128xf32, #tpu.memory_space<vmem>>, vector<1x1x128x128xf32>
    %122 = vector.shape_cast %121 : vector<1x1x128x128xf32> to vector<128x128xf32>
    %cst_189 = arith.constant dense<0.000000e+00> : vector<256x128xf32>
    %123 = tpu.matmul %120, %122, %cst_189 {dimension_numbers = #tpu.dot_dimension_numbers<[1], [0], [0], [1], [0, 0, 1, 1], [], []>} : vector<256x128xf32>, vector<128x128xf32>, vector<256x128xf32> -> vector<256x128xf32>
    %124 = arith.addf %118, %123 : vector<256x128xf32>
    %c0_190 = arith.constant 0 : index
    %c0_191 = arith.constant 0 : index
    %125 = vector.load %arg5[%c0_190, %c0_191] : memref<1x128xf32, #tpu.memory_space<vmem>>, vector<1x128xf32>
    %126 = vector.broadcast %125 : vector<1x128xf32> to vector<256x128xf32>
    %127 = arith.addf %124, %126 : vector<256x128xf32>
    %cst_192 = arith.constant 0.000000e+00 : f32
    %128 = vector.broadcast %cst_192 : f32 to vector<256x128xf32>
    %129 = arith.maximumf %127, %128 : vector<256x128xf32>
    %130 = vector.shape_cast %129 : vector<256x128xf32> to vector<1x16x16x128xf32>
    %c0_193 = arith.constant 0 : index
    %c1_194 = arith.constant 1 : index
    %c1_195 = arith.constant 1 : index
    %c0_196 = arith.constant 0 : index
    %131 = vector.load %arg11[%c0_193, %c1_194, %c1_195, %c0_196] : memref<1x18x18x128xf32, #tpu.memory_space<vmem>>, vector<1x16x16x128xf32>
    tpu.vector_store %arg11[%c0_193, %c1_194, %c1_195, %c0_196], %130 {strides = array<i32>} : memref<1x18x18x128xf32, #tpu.memory_space<vmem>>, vector<1x16x16x128xf32>,
    %cst_197 = arith.constant 0.000000e+00 : f32
    %132 = vector.broadcast %cst_197 : f32 to vector<256x128xf32>
    %c0_198 = arith.constant 0 : index
    %c0_199 = arith.constant 0 : index
    %c0_200 = arith.constant 0 : index
    %c0_201 = arith.constant 0 : index
    %133 = vector.load %arg11[%c0_198, %c0_199, %c0_200, %c0_201] : memref<1x18x18x128xf32, #tpu.memory_space<vmem>>, vector<1x16x16x128xf32>
    %134 = vector.shape_cast %133 : vector<1x16x16x128xf32> to vector<256x128xf32>
    %c0_202 = arith.constant 0 : index
    %c0_203 = arith.constant 0 : index
    %c0_204 = arith.constant 0 : index
    %c0_205 = arith.constant 0 : index
    %135 = vector.load %arg6[%c0_202, %c0_203, %c0_204, %c0_205] : memref<3x3x128x128xf32, #tpu.memory_space<vmem>>, vector<1x1x128x128xf32>
    %136 = vector.shape_cast %135 : vector<1x1x128x128xf32> to vector<128x128xf32>
    %cst_206 = arith.constant dense<0.000000e+00> : vector<256x128xf32>
    %137 = tpu.matmul %134, %136, %cst_206 {dimension_numbers = #tpu.dot_dimension_numbers<[1], [0], [0], [1], [0, 0, 1, 1], [], []>} : vector<256x128xf32>, vector<128x128xf32>, vector<256x128xf32> -> vector<256x128xf32>
    %138 = arith.addf %132, %137 : vector<256x128xf32>
    %c0_207 = arith.constant 0 : index
    %c0_208 = arith.constant 0 : index
    %c1_209 = arith.constant 1 : index
    %c0_210 = arith.constant 0 : index
    %139 = vector.load %arg11[%c0_207, %c0_208, %c1_209, %c0_210] : memref<1x18x18x128xf32, #tpu.memory_space<vmem>>, vector<1x16x16x128xf32>
    %140 = vector.shape_cast %139 : vector<1x16x16x128xf32> to vector<256x128xf32>
    %c0_211 = arith.constant 0 : index
    %c1_212 = arith.constant 1 : index
    %c0_213 = arith.constant 0 : index
    %c0_214 = arith.constant 0 : index
    %141 = vector.load %arg6[%c0_211, %c1_212, %c0_213, %c0_214] : memref<3x3x128x128xf32, #tpu.memory_space<vmem>>, vector<1x1x128x128xf32>
    %142 = vector.shape_cast %141 : vector<1x1x128x128xf32> to vector<128x128xf32>
    %cst_215 = arith.constant dense<0.000000e+00> : vector<256x128xf32>
    %143 = tpu.matmul %140, %142, %cst_215 {dimension_numbers = #tpu.dot_dimension_numbers<[1], [0], [0], [1], [0, 0, 1, 1], [], []>} : vector<256x128xf32>, vector<128x128xf32>, vector<256x128xf32> -> vector<256x128xf32>
    %144 = arith.addf %138, %143 : vector<256x128xf32>
    %c0_216 = arith.constant 0 : index
    %c0_217 = arith.constant 0 : index
    %c2_218 = arith.constant 2 : index
    %c0_219 = arith.constant 0 : index
    %145 = vector.load %arg11[%c0_216, %c0_217, %c2_218, %c0_219] : memref<1x18x18x128xf32, #tpu.memory_space<vmem>>, vector<1x16x16x128xf32>
    %146 = vector.shape_cast %145 : vector<1x16x16x128xf32> to vector<256x128xf32>
    %c0_220 = arith.constant 0 : index
    %c2_221 = arith.constant 2 : index
    %c0_222 = arith.constant 0 : index
    %c0_223 = arith.constant 0 : index
    %147 = vector.load %arg6[%c0_220, %c2_221, %c0_222, %c0_223] : memref<3x3x128x128xf32, #tpu.memory_space<vmem>>, vector<1x1x128x128xf32>
    %148 = vector.shape_cast %147 : vector<1x1x128x128xf32> to vector<128x128xf32>
    %cst_224 = arith.constant dense<0.000000e+00> : vector<256x128xf32>
    %149 = tpu.matmul %146, %148, %cst_224 {dimension_numbers = #tpu.dot_dimension_numbers<[1], [0], [0], [1], [0, 0, 1, 1], [], []>} : vector<256x128xf32>, vector<128x128xf32>, vector<256x128xf32> -> vector<256x128xf32>
    %150 = arith.addf %144, %149 : vector<256x128xf32>
    %c0_225 = arith.constant 0 : index
    %c1_226 = arith.constant 1 : index
    %c0_227 = arith.constant 0 : index
    %c0_228 = arith.constant 0 : index
    %151 = vector.load %arg11[%c0_225, %c1_226, %c0_227, %c0_228] : memref<1x18x18x128xf32, #tpu.memory_space<vmem>>, vector<1x16x16x128xf32>
    %152 = vector.shape_cast %151 : vector<1x16x16x128xf32> to vector<256x128xf32>
    %c1_229 = arith.constant 1 : index
    %c0_230 = arith.constant 0 : index
    %c0_231 = arith.constant 0 : index
    %c0_232 = arith.constant 0 : index
    %153 = vector.load %arg6[%c1_229, %c0_230, %c0_231, %c0_232] : memref<3x3x128x128xf32, #tpu.memory_space<vmem>>, vector<1x1x128x128xf32>
    %154 = vector.shape_cast %153 : vector<1x1x128x128xf32> to vector<128x128xf32>
    %cst_233 = arith.constant dense<0.000000e+00> : vector<256x128xf32>
    %155 = tpu.matmul %152, %154, %cst_233 {dimension_numbers = #tpu.dot_dimension_numbers<[1], [0], [0], [1], [0, 0, 1, 1], [], []>} : vector<256x128xf32>, vector<128x128xf32>, vector<256x128xf32> -> vector<256x128xf32>
    %156 = arith.addf %150, %155 : vector<256x128xf32>
    %c0_234 = arith.constant 0 : index
    %c1_235 = arith.constant 1 : index
    %c1_236 = arith.constant 1 : index
    %c0_237 = arith.constant 0 : index
    %157 = vector.load %arg11[%c0_234, %c1_235, %c1_236, %c0_237] : memref<1x18x18x128xf32, #tpu.memory_space<vmem>>, vector<1x16x16x128xf32>
    %158 = vector.shape_cast %157 : vector<1x16x16x128xf32> to vector<256x128xf32>
    %c1_238 = arith.constant 1 : index
    %c1_239 = arith.constant 1 : index
    %c0_240 = arith.constant 0 : index
    %c0_241 = arith.constant 0 : index
    %159 = vector.load %arg6[%c1_238, %c1_239, %c0_240, %c0_241] : memref<3x3x128x128xf32, #tpu.memory_space<vmem>>, vector<1x1x128x128xf32>
    %160 = vector.shape_cast %159 : vector<1x1x128x128xf32> to vector<128x128xf32>
    %cst_242 = arith.constant dense<0.000000e+00> : vector<256x128xf32>
    %161 = tpu.matmul %158, %160, %cst_242 {dimension_numbers = #tpu.dot_dimension_numbers<[1], [0], [0], [1], [0, 0, 1, 1], [], []>} : vector<256x128xf32>, vector<128x128xf32>, vector<256x128xf32> -> vector<256x128xf32>
    %162 = arith.addf %156, %161 : vector<256x128xf32>
    %c0_243 = arith.constant 0 : index
    %c1_244 = arith.constant 1 : index
    %c2_245 = arith.constant 2 : index
    %c0_246 = arith.constant 0 : index
    %163 = vector.load %arg11[%c0_243, %c1_244, %c2_245, %c0_246] : memref<1x18x18x128xf32, #tpu.memory_space<vmem>>, vector<1x16x16x128xf32>
    %164 = vector.shape_cast %163 : vector<1x16x16x128xf32> to vector<256x128xf32>
    %c1_247 = arith.constant 1 : index
    %c2_248 = arith.constant 2 : index
    %c0_249 = arith.constant 0 : index
    %c0_250 = arith.constant 0 : index
    %165 = vector.load %arg6[%c1_247, %c2_248, %c0_249, %c0_250] : memref<3x3x128x128xf32, #tpu.memory_space<vmem>>, vector<1x1x128x128xf32>
    %166 = vector.shape_cast %165 : vector<1x1x128x128xf32> to vector<128x128xf32>
    %cst_251 = arith.constant dense<0.000000e+00> : vector<256x128xf32>
    %167 = tpu.matmul %164, %166, %cst_251 {dimension_numbers = #tpu.dot_dimension_numbers<[1], [0], [0], [1], [0, 0, 1, 1], [], []>} : vector<256x128xf32>, vector<128x128xf32>, vector<256x128xf32> -> vector<256x128xf32>
    %168 = arith.addf %162, %167 : vector<256x128xf32>
    %c0_252 = arith.constant 0 : index
    %c2_253 = arith.constant 2 : index
    %c0_254 = arith.constant 0 : index
    %c0_255 = arith.constant 0 : index
    %169 = vector.load %arg11[%c0_252, %c2_253, %c0_254, %c0_255] : memref<1x18x18x128xf32, #tpu.memory_space<vmem>>, vector<1x16x16x128xf32>
    %170 = vector.shape_cast %169 : vector<1x16x16x128xf32> to vector<256x128xf32>
    %c2_256 = arith.constant 2 : index
    %c0_257 = arith.constant 0 : index
    %c0_258 = arith.constant 0 : index
    %c0_259 = arith.constant 0 : index
    %171 = vector.load %arg6[%c2_256, %c0_257, %c0_258, %c0_259] : memref<3x3x128x128xf32, #tpu.memory_space<vmem>>, vector<1x1x128x128xf32>
    %172 = vector.shape_cast %171 : vector<1x1x128x128xf32> to vector<128x128xf32>
    %cst_260 = arith.constant dense<0.000000e+00> : vector<256x128xf32>
    %173 = tpu.matmul %170, %172, %cst_260 {dimension_numbers = #tpu.dot_dimension_numbers<[1], [0], [0], [1], [0, 0, 1, 1], [], []>} : vector<256x128xf32>, vector<128x128xf32>, vector<256x128xf32> -> vector<256x128xf32>
    %174 = arith.addf %168, %173 : vector<256x128xf32>
    %c0_261 = arith.constant 0 : index
    %c2_262 = arith.constant 2 : index
    %c1_263 = arith.constant 1 : index
    %c0_264 = arith.constant 0 : index
    %175 = vector.load %arg11[%c0_261, %c2_262, %c1_263, %c0_264] : memref<1x18x18x128xf32, #tpu.memory_space<vmem>>, vector<1x16x16x128xf32>
    %176 = vector.shape_cast %175 : vector<1x16x16x128xf32> to vector<256x128xf32>
    %c2_265 = arith.constant 2 : index
    %c1_266 = arith.constant 1 : index
    %c0_267 = arith.constant 0 : index
    %c0_268 = arith.constant 0 : index
    %177 = vector.load %arg6[%c2_265, %c1_266, %c0_267, %c0_268] : memref<3x3x128x128xf32, #tpu.memory_space<vmem>>, vector<1x1x128x128xf32>
    %178 = vector.shape_cast %177 : vector<1x1x128x128xf32> to vector<128x128xf32>
    %cst_269 = arith.constant dense<0.000000e+00> : vector<256x128xf32>
    %179 = tpu.matmul %176, %178, %cst_269 {dimension_numbers = #tpu.dot_dimension_numbers<[1], [0], [0], [1], [0, 0, 1, 1], [], []>} : vector<256x128xf32>, vector<128x128xf32>, vector<256x128xf32> -> vector<256x128xf32>
    %180 = arith.addf %174, %179 : vector<256x128xf32>
    %c0_270 = arith.constant 0 : index
    %c2_271 = arith.constant 2 : index
    %c2_272 = arith.constant 2 : index
    %c0_273 = arith.constant 0 : index
    %181 = vector.load %arg11[%c0_270, %c2_271, %c2_272, %c0_273] : memref<1x18x18x128xf32, #tpu.memory_space<vmem>>, vector<1x16x16x128xf32>
    %182 = vector.shape_cast %181 : vector<1x16x16x128xf32> to vector<256x128xf32>
    %c2_274 = arith.constant 2 : index
    %c2_275 = arith.constant 2 : index
    %c0_276 = arith.constant 0 : index
    %c0_277 = arith.constant 0 : index
    %183 = vector.load %arg6[%c2_274, %c2_275, %c0_276, %c0_277] : memref<3x3x128x128xf32, #tpu.memory_space<vmem>>, vector<1x1x128x128xf32>
    %184 = vector.shape_cast %183 : vector<1x1x128x128xf32> to vector<128x128xf32>
    %cst_278 = arith.constant dense<0.000000e+00> : vector<256x128xf32>
    %185 = tpu.matmul %182, %184, %cst_278 {dimension_numbers = #tpu.dot_dimension_numbers<[1], [0], [0], [1], [0, 0, 1, 1], [], []>} : vector<256x128xf32>, vector<128x128xf32>, vector<256x128xf32> -> vector<256x128xf32>
    %186 = arith.addf %180, %185 : vector<256x128xf32>
    %c0_279 = arith.constant 0 : index
    %c0_280 = arith.constant 0 : index
    %187 = vector.load %arg7[%c0_279, %c0_280] : memref<1x128xf32, #tpu.memory_space<vmem>>, vector<1x128xf32>
    %188 = vector.broadcast %187 : vector<1x128xf32> to vector<256x128xf32>
    %189 = arith.addf %186, %188 : vector<256x128xf32>
    %190 = arith.negf %189 : vector<256x128xf32>
    %191 = math.exp %190 : vector<256x128xf32>
    %cst_281 = arith.constant 1.000000e+00 : f32
    %192 = vector.broadcast %cst_281 : f32 to vector<256x128xf32>
    %193 = arith.addf %192, %191 : vector<256x128xf32>
    %194 = arith.divf %192, %193 : vector<256x128xf32>
    %195 = vector.shape_cast %194 : vector<256x128xf32> to vector<1x256x128xf32>
    %c0_282 = arith.constant 0 : index
    %c0_283 = arith.constant 0 : index
    %c0_284 = arith.constant 0 : index
    %196 = vector.load %arg8[%c0_282, %c0_283, %c0_284] : memref<1x256x128xf32, #tpu.memory_space<vmem>>, vector<1x256x128xf32>
    tpu.vector_store %arg8[%c0_282, %c0_283, %c0_284], %195 {strides = array<i32>} : memref<1x256x128xf32, #tpu.memory_space<vmem>>, vector<1x256x128xf32>,
    return
  }
  func.func @transform_0(%arg0: i32) -> (i32, i32, i32, i32) {
    %c0_i32 = arith.constant 0 : i32
    %c0_i32_0 = arith.constant 0 : i32
    %c0_i32_1 = arith.constant 0 : i32
    %c0_i32_2 = arith.constant 0 : i32
    return %arg0, %c0_i32, %c0_i32_0, %c0_i32_1 : i32, i32, i32, i32
  }
  func.func @transform_1(%arg0: i32) -> (i32, i32, i32, i32) {
    %c0_i32 = arith.constant 0 : i32
    %c0_i32_0 = arith.constant 0 : i32
    %c0_i32_1 = arith.constant 0 : i32
    %c0_i32_2 = arith.constant 0 : i32
    %c0_i32_3 = arith.constant 0 : i32
    return %c0_i32, %c0_i32_0, %c0_i32_1, %c0_i32_2 : i32, i32, i32, i32
  }
  func.func @transform_2(%arg0: i32) -> (i32, i32) {
    %c0_i32 = arith.constant 0 : i32
    %c0_i32_0 = arith.constant 0 : i32
    %c0_i32_1 = arith.constant 0 : i32
    return %c0_i32, %c0_i32_0 : i32, i32
  }
  func.func @transform_3(%arg0: i32) -> (i32, i32, i32, i32) {
    %c0_i32 = arith.constant 0 : i32
    %c0_i32_0 = arith.constant 0 : i32
    %c0_i32_1 = arith.constant 0 : i32
    %c0_i32_2 = arith.constant 0 : i32
    %c0_i32_3 = arith.constant 0 : i32
    return %c0_i32, %c0_i32_0, %c0_i32_1, %c0_i32_2 : i32, i32, i32, i32
  }
  func.func @transform_4(%arg0: i32) -> (i32, i32) {
    %c0_i32 = arith.constant 0 : i32
    %c0_i32_0 = arith.constant 0 : i32
    %c0_i32_1 = arith.constant 0 : i32
    return %c0_i32, %c0_i32_0 : i32, i32
  }
  func.func @transform_5(%arg0: i32) -> (i32, i32, i32, i32) {
    %c0_i32 = arith.constant 0 : i32
    %c0_i32_0 = arith.constant 0 : i32
    %c0_i32_1 = arith.constant 0 : i32
    %c0_i32_2 = arith.constant 0 : i32
    %c0_i32_3 = arith.constant 0 : i32
    return %c0_i32, %c0_i32_0, %c0_i32_1, %c0_i32_2 : i32, i32, i32, i32
  }
  func.func @transform_6(%arg0: i32) -> (i32, i32) {
    %c0_i32 = arith.constant 0 : i32
    %c0_i32_0 = arith.constant 0 : i32
    %c0_i32_1 = arith.constant 0 : i32
    return %c0_i32, %c0_i32_0 : i32, i32
  }
  func.func @transform_7(%arg0: i32) -> (i32, i32, i32) {
    %c0_i32 = arith.constant 0 : i32
    %c0_i32_0 = arith.constant 0 : i32
    %c0_i32_1 = arith.constant 0 : i32
    return %arg0, %c0_i32, %c0_i32_0 : i32, i32, i32
  }
}

</mosaic_0001>

<bundles_post_ra>
// kernel: squeeze.1
= control target key start
LH: loop header
LB: loop body
LE: loop exit
PB: predicated region body
PF: predicated region fallthrough
CT: control target
= control target key end

     0   :  { %s144_s0 = inlined_call_operand.vmem [shape: f32[2,256], index: 0, kind: input, shape index: {}]   ;;  %s145_s1 = inlined_call_operand.hbm [shape: f32[2,1,16,16], index: 1, kind: output, shape index: {}]  }
   0x1   :  { %v73_v0 = vld [vmem:[%s144_s0 + $0x2] sm:$0x3]  ;;  %v9_v1 = vld [vmem:[%s144_s0] sm:$0x3] }
   0x2   :  { %8 = vst [vmem:[#allocation2 + $0x8] sm:$0x3] %v73_v0 }
   0x3   :  { %10 = vst [vmem:[#allocation2] sm:$0x3] %v9_v1 }
   0x4   :  { %2 = vsyncpa [#allocation1], 0  ;;  %s108_s0 = smov 112   ;;  %s109_s10 = smov 80   ;;  %vm12_vm0 = vcmask 130048  }
   0x5   :  { %s110_s11 = smov 48   ;;  %s111_s12 = smov 96  }
   0x6   :  { %s112_s13 = smov 64   ;;  %s113_s14 = smov 32  }
   0x7   :  { %s114_s15 = smov 16   ;;  %s115_s16 = smov [#allocation0]  }
   0x8   :  { %s64_s17 = sshll.u32 %s115_s16, 4  ;;  %s66_s1 = sshll.u32 %s145_s1, 4  ;;  %s65_s17 = int_to_ptr.vmem [resolvable:$true] %s64_s17  ;;  %s67_s1 = int_to_ptr.hbm [resolvable:$true] %s66_s1 }
   0x9   :  { %v15_v5 = vld [vmem:[#allocation2 + $0x8] sm:$0x3]  }
   0xa   :  { %v19_v2 = vld.sshfl [vmem:[#allocation2] sm:$0xff pattern:$0x99999180]   ;;  %18 = vst.msk [vmem:[#allocation0 + $0x8] ss:$16 sm:$0x3] %vm12_vm0, %v15_v5  }
   0xb   :  { %20 = vrot.lane.b32.xlu0 %v19_v2, %s108_s0  ;;  %32 = vrot.lane.b32.xlu1 %v19_v2, %s109_s10  ;;  %v11_v4 = vld [vmem:[#allocation2] sm:$0x3]  }
   0xc   :  { %44 = vrot.lane.b32.xlu2 %v19_v2, %s110_s11  ;;  %13 = vst.msk [vmem:[#allocation0] ss:$16 sm:$0x3] %vm12_vm0, %v11_v4  }
  0x13   :  { %26 = vrot.lane.b32.xlu0 %v19_v2, %s111_s12  ;;  %38 = vrot.lane.b32.xlu1 %v19_v2, %s112_s13 }
  0x14   :  { %50 = vrot.lane.b32.xlu2 %v19_v2, %s113_s14 }
  0x1b   :  { %56 = vrot.lane.b32.xlu0 %v19_v2, %s114_s15 }
  0x66   :  { %v45_v3 = vpop.permute.xlu2 %44  }
  0x67   :  { %48 = vst.msk [vmem:[#allocation0 + $0x5] ss:$8 sm:$0xf] %vm12_vm0, %v45_v3  }
  0x6e   :  { %v51_v6 = vpop.permute.xlu2 %50  }
  0x6f   :  { %54 = vst.msk [vmem:[#allocation0 + $0x6] ss:$8 sm:$0xf] %vm12_vm0, %v51_v6  }
  0x7d   :  { %v21_v7 = vpop.permute.xlu0 %20   ;;  %v33_v8 = vpop.permute.xlu1 %32  }
  0x7e   :  { %24 = vst.msk [vmem:[#allocation0 + $0x1] ss:$8 sm:$0xf] %vm12_vm0, %v21_v7  }
  0x7f   :  { %36 = vst.msk [vmem:[#allocation0 + $0x3] ss:$8 sm:$0xf] %vm12_vm0, %v33_v8  }
  0x85   :  { %v27_v9 = vpop.permute.xlu0 %26   ;;  %v39_v10 = vpop.permute.xlu1 %38  }
  0x86   :  { %30 = vst.msk [vmem:[#allocation0 + $0x2] ss:$8 sm:$0xf] %vm12_vm0, %v27_v9  }
  0x87   :  { %42 = vst.msk [vmem:[#allocation0 + $0x4] ss:$8 sm:$0xf] %vm12_vm0, %v39_v10  }
  0x8d   :  { %v57_v11 = vpop.permute.xlu0 %56  }
  0x8e   :  { %60 = vst.msk [vmem:[#allocation0 + $0x7] ss:$8 sm:$0xf] %vm12_vm0, %v57_v11  }
  0x8f   :  { %69 = dma.vmem_to_hbm [thread:$0]  %s65_s17, 512, %s67_s1, [#allocation1]  }
  0x90   :  { %106 = dma.done.wait [#allocation1], 512  }
  0x91   :  { %107 = vsyncadd [#allocation1], 4294966784 }
  0x92   :  { %72 = vsyncpa [#allocation1], 1 }

// kernel: minesweeper_forward.1
= control target key start
LH: loop header
LB: loop body
LE: loop exit
PB: predicated region body
PF: predicated region fallthrough
CT: control target
= control target key end

     0   :  { %s7157_s24 = smov 0   ;;  %s11547_s0 = inlined_call_operand.vmem [shape: f32[2,16,16,128], index: 0, kind: input, shape index: {}]   ;;  %s11548_s1 = inlined_call_operand.vmem [shape: f32[3,3,128,128], index: 1, kind: input, shape index: {}]   ;;  %s11549_s2 = inlined_call_operand.vmem [shape: f32[1,128], index: 2, kind: input, shape index: {}]   ;;  %s11550_s3 = inlined_call_operand.vmem [shape: f32[3,3,128,128], index: 3, kind: input, shape index: {}]   ;;  %s11551_s4 = inlined_call_operand.vmem [shape: f32[1,128], index: 4, kind: input, shape index: {}]   ;;  %s11552_s5 = inlined_call_operand.vmem [shape: f32[3,3,128,128], index: 5, kind: input, shape index: {}]   ;;  %s11553_s6 = inlined_call_operand.vmem [shape: f32[1,128], index: 6, kind: input, shape index: {}]   ;;  %s11554_s7 = inlined_call_operand.vmem [shape: f32[2,256,128], index: 7, kind: output, shape index: {}]  }
   0x1 LB: > { %s6485_s25 = sadd.s32 4294967295, %s7114_s24   ;;  %p6489_p0 = scmp.ge.s32.totalorder %s7114_s24, 1  ;;  %s7114_s24 = sphi %s7157_s24, %s17_s24  }
   0x2   : > { %p237_p1 = scmp.lt.s32.totalorder %s7114_s24, 3 }
   0x4   : > { %p238_p2 = pnand %p6489_p0, %p237_p1 }
   0x6   : > { %241 = sbr.rel (%p238_p2) target bundleno = 2257 (0x8d1), region = 48 }
   0xb   : > { %v6509_v0 = vld [vmem:[%s11548_s1 + $0xf8] sm:$0xff]  ;;  %v6508_v1 = vld [vmem:[%s11548_s1 + $0xf0] sm:$0xff]  ;;  %v7116_v4 = vmov 0.0   ;;  %v6507_v5 = vld [vmem:[%s11548_s1 + $0xe8] sm:$0xff]  ;;  %p7306_p3 = scmp.lt.s32.totalorder %s6485_s25, 1 }
   0xc   : > { %603 = vmatpush.msra.mxu0 %v6509_v0  ;;  %6914 = vmatpush.msra.mxu3 %v6509_v0  ;;  %v7174_v2 = vld [vmem:[%s11548_s1 + $0x178] sm:$0xff]  ;;  %v7179_v3 = vld [vmem:[%s11548_s1 + $0x170] sm:$0xff]  ;;  %279 = vst [vmem:[#allocation2] sm:$0xff] %v7116_v4  ;;  %v7195_v7 = vld [vmem:[%s11548_s1 + $0x168] sm:$0xff] }
   0xd   : > { %878 = vmatpush.msra.mxu2 %v7174_v2  ;;  %v7189_v6 = vld [vmem:[%s11548_s1 + $0x78] sm:$0xff]  ;;  %280 = vst [vmem:[#allocation2 + $0x8] sm:$0xff] %v7116_v4  ;;  %v7200_v8 = vld [vmem:[%s11548_s1 + $0x70] sm:$0xff]  ;;  %v6506_v9 = vld [vmem:[%s11548_s1 + $0xe0] sm:$0xff]  ;;  %s11884_s25 = smov (!%p7306_p3, %s6485_s25), 1 }
   0xe   : > { %604 = vmatpush.msra.mxu0 %v6508_v1  ;;  %6915 = vmatpush.msra.mxu3 %v6508_v1  ;;  %281 = vst [vmem:[#allocation2 + $0x10] sm:$0x3] %v7116_v4  ;;  %v7212_v10 = vld [vmem:[%s11548_s1 + $0x160] sm:$0xff]  ;;  %v7217_v11 = vld [vmem:[%s11548_s1 + $0x68] sm:$0xff]  ;;  %v6505_v12 = vld [vmem:[%s11548_s1 + $0xd8] sm:$0xff]  ;;  %s6912_s17 = sshll.u32 %s11884_s25, 8 }
   0xf   : > { %879 = vmatpush.msra.mxu2 %v7179_v3  ;;  %716 = vmatpush.msra.mxu1 %v7189_v6  ;;  %282 = vst [vmem:[#allocation2 + $0x18] sm:$0xff] %v7116_v4  ;;  %v7229_v13 = vld [vmem:[%s11548_s1 + $0x158] sm:$0xff]  ;;  %v7234_v14 = vld [vmem:[%s11548_s1 + $0x60] sm:$0xff]  ;;  %v6504_v15 = vld [vmem:[%s11548_s1 + $0xd0] sm:$0xff]  ;;  %s7409_s28 = scalar_lea.vmem %s11547_s0, %s6912_s17  ;;  %s11266_s11 = scalar_lea.vmem %s11554_s7, %s6912_s17 }
  0x10   : > { %605 = vmatpush.msra.mxu0 %v6507_v5  ;;  %6916 = vmatpush.msra.mxu3 %v6507_v5  ;;  %283 = vst [vmem:[#allocation2 + $0x20] sm:$0xff] %v7116_v4  ;;  %v7246_v16 = vld [vmem:[%s11548_s1 + $0x150] sm:$0xff]  ;;  %v7251_v17 = vld [vmem:[%s11548_s1 + $0x58] sm:$0xff]  ;;  %v6503_v18 = vld [vmem:[%s11548_s1 + $0xc8] sm:$0xff] }
  0x11   : > { %880 = vmatpush.msra.mxu2 %v7195_v7  ;;  %717 = vmatpush.msra.mxu1 %v7200_v8  ;;  %284 = vst [vmem:[#allocation2 + $0x28] sm:$0x3] %v7116_v4  ;;  %v7263_v19 = vld [vmem:[%s11548_s1 + $0x148] sm:$0xff]  ;;  %v7268_v20 = vld [vmem:[%s11548_s1 + $0x50] sm:$0xff]  ;;  %v6502_v21 = vld [vmem:[%s11548_s1 + $0xc0] sm:$0xff] }
  0x12   : > { %606 = vmatpush.msra.mxu0 %v6506_v9  ;;  %6917 = vmatpush.msra.mxu3 %v6506_v9  ;;  %285 = vst [vmem:[#allocation2 + $0x30] sm:$0xff] %v7116_v4  ;;  %v6501_v22 = vld [vmem:[%s11548_s1 + $0xb8] sm:$0xff]  ;;  %v7283_v23 = vld [vmem:[%s11548_s1 + $0x140] sm:$0xff]  ;;  %v7288_v24 = vld [vmem:[%s11548_s1 + $0x48] sm:$0xff] }
  0x13   : > { %881 = vmatpush.msra.mxu2 %v7212_v10  ;;  %718 = vmatpush.msra.mxu1 %v7217_v11  ;;  %286 = vst [vmem:[#allocation2 + $0x38] sm:$0xff] %v7116_v4  ;;  %v7296_v25 = vld [vmem:[%s11548_s1 + $0x138] sm:$0xff]  ;;  %v7301_v26 = vld [vmem:[%s11548_s1 + $0x40] sm:$0xff]  ;;  %v6500_v27 = vld [vmem:[%s11548_s1 + $0xb0] sm:$0xff] }
  0x14   : > { %607 = vmatpush.msra.mxu0 %v6505_v12  ;;  %6918 = vmatpush.msra.mxu3 %v6505_v12  ;;  %287 = vst [vmem:[#allocation2 + $0x40] sm:$0x3] %v7116_v4  ;;  %v7320_v28 = vld [vmem:[%s11548_s1 + $0x130] sm:$0xff]  ;;  %v7325_v29 = vld [vmem:[%s11548_s1 + $0x38] sm:$0xff]  ;;  %v6499_v30 = vld [vmem:[%s11548_s1 + $0xa8] sm:$0xff] }
  0x15   : > { %882 = vmatpush.msra.mxu2 %v7229_v13  ;;  %719 = vmatpush.msra.mxu1 %v7234_v14  ;;  %288 = vst [vmem:[#allocation2 + $0x48] sm:$0xff] %v7116_v4  ;;  %v7337_v31 = vld [vmem:[%s11548_s1 + $0x128] sm:$0xff]  ;;  %v7342_v32 = vld [vmem:[%s11548_s1 + $0x30] sm:$0xff]  ;;  %v6498_v33 = vld [vmem:[%s11548_s1 + $0xa0] sm:$0xff] }
  0x16   : > { %608 = vmatpush.msra.mxu0 %v6504_v15  ;;  %6919 = vmatpush.msra.mxu3 %v6504_v15  ;;  %289 = vst [vmem:[#allocation2 + $0x50] sm:$0xff] %v7116_v4  ;;  %v7360_v34 = vld [vmem:[%s11548_s1 + $0x120] sm:$0xff]  ;;  %v7365_v35 = vld [vmem:[%s11548_s1 + $0x28] sm:$0xff]  ;;  %v6497_v36 = vld [vmem:[%s11548_s1 + $0x98] sm:$0xff] }
  0x17   : > { %883 = vmatpush.msra.mxu2 %v7246_v16  ;;  %720 = vmatpush.msra.mxu1 %v7251_v17  ;;  %290 = vst [vmem:[#allocation2 + $0x58] sm:$0x3] %v7116_v4  ;;  %v7377_v37 = vld [vmem:[%s11548_s1 + $0x118] sm:$0xff]  ;;  %v7382_v38 = vld [vmem:[%s11548_s1 + $0x20] sm:$0xff]  ;;  %v6496_v39 = vld [vmem:[%s11548_s1 + $0x90] sm:$0xff] }
  0x18   : > { %609 = vmatpush.msra.mxu0 %v6503_v18  ;;  %6920 = vmatpush.msra.mxu3 %v6503_v18  ;;  %291 = vst [vmem:[#allocation2 + $0x60] sm:$0xff] %v7116_v4  ;;  %v7395_v40 = vld [vmem:[%s11548_s1 + $0x110] sm:$0xff]  ;;  %v6495_v41 = vld [vmem:[%s11548_s1 + $0x88] sm:$0xff]  ;;  %v6494_v42 = vld [vmem:[%s11548_s1 + $0x80] sm:$0xff] }
  0x19   : > { %884 = vmatpush.msra.mxu2 %v7263_v19  ;;  %721 = vmatpush.msra.mxu1 %v7268_v20  ;;  %292 = vst [vmem:[#allocation2 + $0x68] sm:$0xff] %v7116_v4  ;;  %v554_v43 = vld [vmem:[#allocation2 + $0x1] sm:$0xff]  ;;  %v7419_v44 = vld [vmem:[%s7409_s28 + $0xb0] sm:$0xff]  ;;  %v541_v45 = vld [vmem:[%s11548_s1 + $0x18] sm:$0xff] }
  0x1a   : > { %610 = vmatpush.msra.mxu0 %v6502_v21  ;;  %6921 = vmatpush.msra.mxu3 %v6502_v21  ;;  %293 = vst [vmem:[#allocation2 + $0x70] sm:$0x3] %v7116_v4  ;;  %v7486_v46 = vld [vmem:[%s11548_s1 + $0x108] sm:$0xff]  ;;  %v540_v47 = vld [vmem:[%s11548_s1 + $0x10] sm:$0xff]  ;;  %v7497_v48 = vld [vmem:[%s11548_s1 + $0x100] sm:$0xff] }
  0x1b   : > { %885 = vmatpush.msra.mxu2 %v7283_v23  ;;  %722 = vmatpush.msra.mxu1 %v7288_v24  ;;  %294 = vst [vmem:[#allocation2 + $0x78] sm:$0xff] %v7116_v4  ;;  %v829_v49 = vld [vmem:[#allocation2 + $0x2] sm:$0xff]  ;;  %v7512_v53 = vld [vmem:[%s7409_s28 + $0xb8] sm:$0xff]  ;;  %v830_v54 = vld [vmem:[#allocation2 + $0xa] sm:$0xff] }
  0x1c   : > { %611 = vmatpush.msra.mxu0 %v6501_v22  ;;  %6922 = vmatpush.msra.mxu3 %v6501_v22  ;;  %295 = vst [vmem:[#allocation2 + $0x80] sm:$0xff] %v7116_v4  ;;  %v539_v50 = vld [vmem:[%s11548_s1 + $0x8] sm:$0xff]  ;;  %v538_v51 = vld [vmem:[%s11548_s1] sm:$0xff]  ;;  %v6557_v56 = vld [vmem:[%s11548_s1 + $0x278] sm:$0xff] }
  0x1d   : > { %886 = vmatpush.msra.mxu2 %v7296_v25  ;;  %723 = vmatpush.msra.mxu1 %v7301_v26  ;;  %296 = vst [vmem:[#allocation2 + $0x88] sm:$0x3] %v7116_v4  ;;  %v555_v52 = vld [vmem:[#allocation2 + $0x9] sm:$0xff]  ;;  %v7528_v55 = vld [vmem:[%s7409_s28] sm:$0xff]  ;;  %v7634_v0 = vld [vmem:[%s7409_s28 + $0x18] sm:$0xff] }
  0x1e   : > { %612 = vmatpush.msra.mxu0 %v6500_v27  ;;  %6923 = vmatpush.msra.mxu3 %v6500_v27  ;;  %297 = vst [vmem:[#allocation2 + $0x90] sm:$0xff] %v7116_v4  ;;  %v465_v57 = vld [vmem:[%s7409_s28 + $0xc0] sm:$0xff]  ;;  %v7593_v58 = vld [vmem:[%s7409_s28 + $0x8] sm:$0xff]  ;;  %v6556_v59 = vld [vmem:[%s11548_s1 + $0x270] sm:$0xff] }
  0x1f   : > { %887 = vmatpush.msra.mxu2 %v7320_v28  ;;  %724 = vmatpush.msra.mxu1 %v7325_v29  ;;  %298 = vst [vmem:[#allocation2 + $0x98] sm:$0xff] %v7116_v4  ;;  %v466_v60 = vld [vmem:[%s7409_s28 + $0xc8] sm:$0xff]  ;;  %v7618_v61 = vld [vmem:[%s7409_s28 + $0x10] sm:$0xff]  ;;  %v468_v1 = vld [vmem:[%s7409_s28 + $0xd8] sm:$0xff] }
  0x20   : > { %613 = vmatpush.msra.mxu0 %v6499_v30  ;;  %6924 = vmatpush.msra.mxu3 %v6499_v30  ;;  %299 = vst [vmem:[#allocation2 + $0xa0] sm:$0x3] %v7116_v4  ;;  %v467_v62 = vld [vmem:[%s7409_s28 + $0xd0] sm:$0xff]  ;;  %v6555_v63 = vld [vmem:[%s11548_s1 + $0x268] sm:$0xff]  ;;  %v469_v5 = vld [vmem:[%s7409_s28 + $0xe0] sm:$0xff] }
  0x21   : > { %888 = vmatpush.msra.mxu2 %v7337_v31  ;;  %725 = vmatpush.msra.mxu1 %v7342_v32  ;;  %300 = vst [vmem:[#allocation2 + $0xa8] sm:$0xff] %v7116_v4  ;;  %v6553_v9 = vld [vmem:[%s11548_s1 + $0x258] sm:$0xff]  ;;  %v7678_v12 = vld [vmem:[%s7409_s28 + $0x30] sm:$0xff]  ;;  %v7703_v21 = vld [vmem:[%s7409_s28 + $0x40] sm:$0xff] }
  0x22   : > { %614 = vmatpush.msra.mxu0 %v6498_v33  ;;  %6925 = vmatpush.msra.mxu3 %v6498_v33  ;;  %301 = vst [vmem:[#allocation2 + $0xb0] sm:$0xff] %v7116_v4  ;;  %v7706_v22 = vld [vmem:[%s7409_s28 + $0x48] sm:$0xff]  ;;  %v7728_v30 = vld [vmem:[%s7409_s28 + $0x50] sm:$0xff] }
  0x23   : > { %889 = vmatpush.msra.mxu2 %v7360_v34  ;;  %726 = vmatpush.msra.mxu1 %v7365_v35  ;;  %302 = vst [vmem:[#allocation2 + $0xb8] sm:$0x3] %v7116_v4 }
  0x24   : > { %615 = vmatpush.msra.mxu0 %v6497_v36  ;;  %6926 = vmatpush.msra.mxu3 %v6497_v36  ;;  %303 = vst [vmem:[#allocation2 + $0xc0] sm:$0xff] %v7116_v4 }
  0x25   : > { %890 = vmatpush.msra.mxu2 %v7377_v37  ;;  %727 = vmatpush.msra.mxu1 %v7382_v38  ;;  %304 = vst [vmem:[#allocation2 + $0xc8] sm:$0xff] %v7116_v4 }
  0x26   : > { %616 = vmatpush.msra.mxu0 %v6496_v39  ;;  %6927 = vmatpush.msra.mxu3 %v6496_v39  ;;  %305 = vst [vmem:[#allocation2 + $0xd0] sm:$0x3] %v7116_v4 }
  0x27   : > { %891 = vmatpush.msra.mxu2 %v7395_v40  ;;  %306 = vst [vmem:[#allocation2 + $0xd8] sm:$0xff] %v7116_v4  ;;  %728 = vmatpush.msra.mxu1 %v541_v45 }
  0x28   : > { %617 = vmatpush.msra.mxu0 %v6495_v41  ;;  %6928 = vmatpush.msra.mxu3 %v6495_v41  ;;  %307 = vst [vmem:[#allocation2 + $0xe0] sm:$0xff] %v7116_v4  ;;  %v7759_v41 = vld [vmem:[%s7409_s28 + $0x68] sm:$0xff] }
  0x29   : > { %308 = vst [vmem:[#allocation2 + $0xe8] sm:$0x3] %v7116_v4  ;;  %892 = vmatpush.msra.mxu2 %v7486_v46  ;;  %729 = vmatpush.msra.mxu1 %v540_v47 }
  0x2a   : > { %618 = vmatpush.msra.mxu0 %v6494_v42  ;;  %6929 = vmatpush.msra.mxu3 %v6494_v42  ;;  %309 = vst [vmem:[#allocation2 + $0xf0] sm:$0xff] %v7116_v4 }
  0x2b   : > { %619 = vmatmul.f32.vlgmr.msra.gmra.mxu0 %v554_v43  ;;  %310 = vst [vmem:[#allocation2 + $0xf8] sm:$0xff] %v7116_v4  ;;  %691 = vmatmul.f32.vlgmr.msra.gmra.mxu3 %v7419_v44 }
  0x2c   : > { %311 = vst [vmem:[#allocation2 + $0x100] sm:$0x3] %v7116_v4  ;;  %6930 = vmatpush.msrb.mxu3 %v7189_v6  ;;  %893 = vmatpush.msra.mxu2 %v7497_v48  ;;  %v7659_v6 = vld [vmem:[%s7409_s28 + $0x28] sm:$0xff] }
  0x2d   : > { %312 = vst [vmem:[#allocation2 + $0x108] sm:$0xff] %v7116_v4  ;;  %894 = vmatmul.f32.vlgmr.msra.gmra.mxu2 %v829_v49  ;;  %730 = vmatpush.msra.mxu1 %v539_v50  ;;  %v7781_v49 = vld [vmem:[%s7409_s28 + $0x70] sm:$0xff] }
  0x2e   : > { %313 = vst [vmem:[#allocation2 + $0x110] sm:$0xff] %v7116_v4  ;;  %6931 = vmatpush.msrb.mxu3 %v7200_v8  ;;  %1266 = vmatpush.msrb.mxu0 %v6557_v56  ;;  %v470_v8 = vld [vmem:[%s7409_s28 + $0xe8] sm:$0xff] }
  0x2f   : > { %314 = vst [vmem:[#allocation2 + $0x118] sm:$0x3] %v7116_v4  ;;  %731 = vmatpush.msra.mxu1 %v538_v51  ;;  %v6547_v56 = vld [vmem:[%s11548_s1 + $0x228] sm:$0xff] }
  0x30   : > { %315 = vst [vmem:[#allocation2 + $0x120] sm:$0xff] %v7116_v4  ;;  %6932 = vmatpush.msrb.mxu3 %v7217_v11  ;;  %732 = vmatmul.f32.vlgmr.msra.gmra.mxu1 %v7116_v4 }
  0x31   : > { %316 = vst [vmem:[#allocation2 + $0x128] sm:$0xff] %v7116_v4  ;;  %1267 = vmatpush.msrb.mxu0 %v6556_v59 }
  0x32   : > { %317 = vst [vmem:[#allocation2 + $0x130] sm:$0x3] %v7116_v4  ;;  %6933 = vmatpush.msrb.mxu3 %v7234_v14  ;;  %v7684_v14 = vld [vmem:[%s7409_s28 + $0x38] sm:$0xff] }
  0x33   : > { %318 = vst [vmem:[#allocation2 + $0x138] sm:$0xff] %v7116_v4  ;;  %622 = vmatmul.f32.gmra.mxu0 %v555_v52  ;;  %694 = vmatmul.f32.gmra.mxu3 %v7512_v53 }
  0x34   : > { %319 = vst [vmem:[#allocation2 + $0x140] sm:$0xff] %v7116_v4  ;;  %6934 = vmatpush.msrb.mxu3 %v7251_v17  ;;  %1268 = vmatpush.msrb.mxu0 %v6555_v63  ;;  %v6552_v17 = vld [vmem:[%s11548_s1 + $0x250] sm:$0xff] }
  0x35   : > { %320 = vst [vmem:[#allocation2 + $0x148] sm:$0x3] %v7116_v4  ;;  %897 = vmatmul.f32.gmra.mxu2 %v830_v54 }
  0x36   : > { %321 = vst [vmem:[#allocation2 + $0x150] sm:$0xff] %v7116_v4  ;;  %6935 = vmatpush.msrb.mxu3 %v7268_v20 }
  0x37   : > { %322 = vst [vmem:[#allocation2 + $0x158] sm:$0xff] %v7116_v4 }
  0x38   : > { %323 = vst [vmem:[#allocation2 + $0x160] sm:$0x3] %v7116_v4  ;;  %6936 = vmatpush.msrb.mxu3 %v7288_v24  ;;  %735 = vmatmul.f32.gmra.mxu1 %v7116_v4  ;;  %v6551_v24 = vld [vmem:[%s11548_s1 + $0x248] sm:$0xff] }
  0x39   : > { %324 = vst [vmem:[#allocation2 + $0x168] sm:$0xff] %v7116_v4 }
  0x3a   : > { %325 = vst [vmem:[#allocation2 + $0x170] sm:$0xff] %v7116_v4  ;;  %6937 = vmatpush.msrb.mxu3 %v7301_v26 }
  0x3b   : > { %326 = vst [vmem:[#allocation2 + $0x178] sm:$0x3] %v7116_v4  ;;  %625 = vmatmul.f32.gmra.mxu0 %v7528_v55  ;;  %697 = vmatmul.f32.gmra.mxu3 %v465_v57 }
  0x3c   : > { %327 = vst [vmem:[#allocation2 + $0x180] sm:$0xff] %v7116_v4  ;;  %6938 = vmatpush.msrb.mxu3 %v7325_v29 }
  0x3d   : > { %328 = vst [vmem:[#allocation2 + $0x188] sm:$0xff] %v7116_v4 }
  0x3e   : > { %329 = vst [vmem:[#allocation2 + $0x190] sm:$0x3] %v7116_v4  ;;  %6939 = vmatpush.msrb.mxu3 %v7342_v32  ;;  %v6550_v32 = vld [vmem:[%s11548_s1 + $0x240] sm:$0xff] }
  0x3f   : > { %330 = vst [vmem:[#allocation2 + $0x198] sm:$0xff] %v7116_v4 }
  0x40   : > { %331 = vst [vmem:[#allocation2 + $0x1a0] sm:$0xff] %v7116_v4  ;;  %6940 = vmatpush.msrb.mxu3 %v7365_v35 }
  0x41   : > { %332 = vst [vmem:[#allocation2 + $0x1a8] sm:$0x3] %v7116_v4 }
  0x42   : > { %333 = vst [vmem:[#allocation3] sm:$0xff] %v7116_v4  ;;  %6941 = vmatpush.msrb.mxu3 %v7382_v38 }
  0x43   : > { %334 = vst [vmem:[#allocation3 + $0x8] sm:$0xff] %v7116_v4  ;;  %628 = vmatmul.f32.gmra.mxu0 %v7593_v58  ;;  %700 = vmatmul.f32.gmra.mxu3 %v466_v60 }
  0x44   : > { %335 = vst [vmem:[#allocation3 + $0x10] sm:$0x3] %v7116_v4  ;;  %6942 = vmatpush.msrb.mxu3 %v541_v45  ;;  %v6548_v45 = vld [vmem:[%s11548_s1 + $0x230] sm:$0xff] }
  0x45   : > { %336 = vst [vmem:[#allocation3 + $0x18] sm:$0xff] %v7116_v4 }
  0x46   : > { %337 = vst [vmem:[#allocation3 + $0x20] sm:$0xff] %v7116_v4  ;;  %6943 = vmatpush.msrb.mxu3 %v540_v47 }
  0x47   : > { %338 = vst [vmem:[#allocation3 + $0x28] sm:$0x3] %v7116_v4 }
  0x48   : > { %339 = vst [vmem:[#allocation3 + $0x30] sm:$0xff] %v7116_v4  ;;  %6944 = vmatpush.msrb.mxu3 %v539_v50  ;;  %v7784_v50 = vld [vmem:[%s7409_s28 + $0x78] sm:$0xff] }
  0x49   : > { %340 = vst [vmem:[#allocation3 + $0x38] sm:$0xff] %v7116_v4 }
  0x4a   : > { %341 = vst [vmem:[#allocation3 + $0x40] sm:$0x3] %v7116_v4  ;;  %6945 = vmatpush.msrb.mxu3 %v538_v51 }
  0x4b   : > { %342 = vst [vmem:[#allocation3 + $0x48] sm:$0xff] %v7116_v4  ;;  %631 = vmatmul.f32.gmra.mxu0 %v7618_v61  ;;  %703 = vmatmul.f32.gmra.mxu3 %v467_v62 }
  0x4c   : > { %343 = vst [vmem:[#allocation3 + $0x50] sm:$0xff] %v7116_v4  ;;  %6946 = vmatpush.msra.mxu3 %v7174_v2  ;;  %v7646_v2 = vld [vmem:[%s7409_s28 + $0x20] sm:$0xff] }
  0x4d   : > { %344 = vst [vmem:[#allocation3 + $0x58] sm:$0x3] %v7116_v4 }
  0x4e   : > { %345 = vst [vmem:[#allocation3 + $0x60] sm:$0xff] %v7116_v4  ;;  %6947 = vmatpush.msra.mxu3 %v7179_v3  ;;  %v6554_v3 = vld [vmem:[%s11548_s1 + $0x260] sm:$0xff] }
  0x4f   : > { %346 = vst [vmem:[#allocation3 + $0x68] sm:$0xff] %v7116_v4  ;;  %1269 = vmatpush.msrb.mxu0 %v6554_v3  ;;  %v6539_v3 = vld [vmem:[%s11548_s1 + $0x1e8] sm:$0xff] }
  0x50   : > { %347 = vst [vmem:[#allocation3 + $0x70] sm:$0x3] %v7116_v4  ;;  %6948 = vmatpush.msra.mxu3 %v7195_v7 }
  0x51   : > { %348 = vst [vmem:[#allocation3 + $0x78] sm:$0xff] %v7116_v4  ;;  %1270 = vmatpush.msrb.mxu0 %v6553_v9 }
  0x52   : > { %349 = vst [vmem:[#allocation3 + $0x80] sm:$0xff] %v7116_v4  ;;  %6949 = vmatpush.msra.mxu3 %v7212_v10 }
  0x53   : > { %350 = vst [vmem:[#allocation3 + $0x88] sm:$0x3] %v7116_v4  ;;  %634 = vmatmul.f32.gmra.mxu0 %v7634_v0  ;;  %706 = vmatmul.f32.gmra.mxu3 %v468_v1 }
  0x54   : > { %351 = vst [vmem:[#allocation3 + $0x90] sm:$0xff] %v7116_v4  ;;  %6950 = vmatpush.msra.mxu3 %v7229_v13  ;;  %1271 = vmatpush.msrb.mxu0 %v6552_v17  ;;  %v7829_v17 = vld [vmem:[%s7409_s28 + $0x88] sm:$0xff] }
  0x55   : > { %352 = vst [vmem:[#allocation3 + $0x98] sm:$0xff] %v7116_v4 }
  0x56   : > { %353 = vst [vmem:[#allocation3 + $0xa0] sm:$0x3] %v7116_v4  ;;  %6951 = vmatpush.msra.mxu3 %v7246_v16  ;;  %1272 = vmatpush.msrb.mxu0 %v6551_v24 }
  0x57   : > { %354 = vst [vmem:[#allocation3 + $0xa8] sm:$0xff] %v7116_v4 }
  0x58   : > { %355 = vst [vmem:[#allocation3 + $0xb0] sm:$0xff] %v7116_v4  ;;  %6952 = vmatpush.msra.mxu3 %v7263_v19  ;;  %1273 = vmatpush.msrb.mxu0 %v6550_v32  ;;  %v6537_v32 = vld [vmem:[%s11548_s1 + $0x1d8] sm:$0xff] }
  0x59   : > { %356 = vst [vmem:[#allocation3 + $0xb8] sm:$0x3] %v7116_v4 }
  0x5a   : > { %357 = vst [vmem:[#allocation3 + $0xc0] sm:$0xff] %v7116_v4  ;;  %6953 = vmatpush.msra.mxu3 %v7283_v23 }
  0x5b   : > { %358 = vst [vmem:[#allocation3 + $0xc8] sm:$0xff] %v7116_v4  ;;  %637 = vmatmul.f32.gmra.mxu0 %v7646_v2  ;;  %709 = vmatmul.f32.gmra.mxu3 %v469_v5 }
  0x5c   : > { %359 = vst [vmem:[#allocation3 + $0xd0] sm:$0x3] %v7116_v4  ;;  %6954 = vmatpush.msra.mxu3 %v7296_v25 }
  0x5d   : > { %360 = vst [vmem:[#allocation3 + $0xd8] sm:$0xff] %v7116_v4 }
  0x5e   : > { %361 = vst [vmem:[#allocation3 + $0xe0] sm:$0xff] %v7116_v4  ;;  %6955 = vmatpush.msra.mxu3 %v7320_v28 }
  0x5f   : > { %362 = vst [vmem:[#allocation3 + $0xe8] sm:$0x3] %v7116_v4 }
  0x60   : > { %363 = vst [vmem:[#allocation3 + $0xf0] sm:$0xff] %v7116_v4  ;;  %6956 = vmatpush.msra.mxu3 %v7337_v31  ;;  %v7731_v31 = vld [vmem:[%s7409_s28 + $0x58] sm:$0xff] }
  0x61   : > { %364 = vst [vmem:[#allocation3 + $0xf8] sm:$0xff] %v7116_v4 }
  0x62   : > { %365 = vst [vmem:[#allocation3 + $0x100] sm:$0x3] %v7116_v4  ;;  %6957 = vmatpush.msra.mxu3 %v7360_v34 }
  0x63   : > { %366 = vst [vmem:[#allocation3 + $0x108] sm:$0xff] %v7116_v4  ;;  %640 = vmatmul.f32.gmra.mxu0 %v7659_v6  ;;  %712 = vmatmul.f32.gmra.mxu3 %v470_v8 }
  0x64   : > { %367 = vst [vmem:[#allocation3 + $0x110] sm:$0xff] %v7116_v4  ;;  %6958 = vmatpush.msra.mxu3 %v7377_v37  ;;  %v6549_v37 = vld [vmem:[%s11548_s1 + $0x238] sm:$0xff] }
  0x65   : > { %368 = vst [vmem:[#allocation3 + $0x118] sm:$0x3] %v7116_v4  ;;  %1274 = vmatpush.msrb.mxu0 %v6549_v37 }
  0x66   : > { %369 = vst [vmem:[#allocation3 + $0x120] sm:$0xff] %v7116_v4  ;;  %6959 = vmatpush.msra.mxu3 %v7395_v40  ;;  %v7756_v40 = vld [vmem:[%s7409_s28 + $0x60] sm:$0xff] }
  0x67   : > { %370 = vst [vmem:[#allocation3 + $0x128] sm:$0xff] %v7116_v4  ;;  %1275 = vmatpush.msrb.mxu0 %v6548_v45  ;;  %v6536_v45 = vld [vmem:[%s11548_s1 + $0x1d0] sm:$0xff] }
  0x68   : > { %371 = vst [vmem:[#allocation3 + $0x130] sm:$0x3] %v7116_v4  ;;  %6960 = vmatpush.msra.mxu3 %v7486_v46 }
  0x69   : > { %372 = vst [vmem:[#allocation3 + $0x138] sm:$0xff] %v7116_v4  ;;  %1276 = vmatpush.msrb.mxu0 %v6547_v56  ;;  %v6535_v56 = vld [vmem:[%s11548_s1 + $0x1c8] sm:$0xff] }
  0x6a   : > { %373 = vst [vmem:[#allocation3 + $0x140] sm:$0xff] %v7116_v4  ;;  %6961 = vmatpush.msra.mxu3 %v7497_v48 }
  0x6b   : > { %374 = vst [vmem:[#allocation3 + $0x148] sm:$0x3] %v7116_v4  ;;  %643 = vmatmul.f32.gmra.mxu0 %v7678_v12 }
  0x6c   : > { %375 = vst [vmem:[#allocation3 + $0x150] sm:$0xff] %v7116_v4 }
  0x6d   : > { %376 = vst [vmem:[#allocation3 + $0x158] sm:$0xff] %v7116_v4 }
  0x6e   : > { %377 = vst [vmem:[#allocation3 + $0x160] sm:$0x3] %v7116_v4 }
  0x6f   : > { %378 = vst [vmem:[#allocation3 + $0x168] sm:$0xff] %v7116_v4 }
  0x70   : > { %379 = vst [vmem:[#allocation3 + $0x170] sm:$0xff] %v7116_v4 }
  0x71   : > { %380 = vst [vmem:[#allocation3 + $0x178] sm:$0x3] %v7116_v4 }
  0x72   : > { %381 = vst [vmem:[#allocation3 + $0x180] sm:$0xff] %v7116_v4 }
  0x73   : > { %382 = vst [vmem:[#allocation3 + $0x188] sm:$0xff] %v7116_v4  ;;  %646 = vmatmul.f32.gmra.mxu0 %v7684_v14 }
  0x74   : > { %383 = vst [vmem:[#allocation3 + $0x190] sm:$0x3] %v7116_v4 }
  0x75   : > { %384 = vst [vmem:[#allocation3 + $0x198] sm:$0xff] %v7116_v4 }
  0x76   : > { %385 = vst [vmem:[#allocation3 + $0x1a0] sm:$0xff] %v7116_v4 }
  0x77   : > { %386 = vst [vmem:[#allocation3 + $0x1a8] sm:$0x3] %v7116_v4 }
  0x78   : > { %387 = vst [vmem:[#allocation4] sm:$0xff] %v7116_v4 }
  0x79   : > { %388 = vst [vmem:[#allocation4 + $0x8] sm:$0xff] %v7116_v4 }
  0x7a   : > { %389 = vst [vmem:[#allocation4 + $0x10] sm:$0x3] %v7116_v4 }
  0x7b   : > { %390 = vst [vmem:[#allocation4 + $0x18] sm:$0xff] %v7116_v4  ;;  %649 = vmatmul.f32.gmra.mxu0 %v7703_v21 }
  0x7c   : > { %391 = vst [vmem:[#allocation4 + $0x20] sm:$0xff] %v7116_v4 }
  0x7d   : > { %392 = vst [vmem:[#allocation4 + $0x28] sm:$0x3] %v7116_v4 }
  0x7e   : > { %393 = vst [vmem:[#allocation4 + $0x30] sm:$0xff] %v7116_v4 }
  0x7f   : > { %394 = vst [vmem:[#allocation4 + $0x38] sm:$0xff] %v7116_v4 }
  0x80   : > { %395 = vst [vmem:[#allocation4 + $0x40] sm:$0x3] %v7116_v4 }
  0x81   : > { %396 = vst [vmem:[#allocation4 + $0x48] sm:$0xff] %v7116_v4 }
  0x82   : > { %397 = vst [vmem:[#allocation4 + $0x50] sm:$0xff] %v7116_v4 }
  0x83   : > { %398 = vst [vmem:[#allocation4 + $0x58] sm:$0x3] %v7116_v4  ;;  %652 = vmatmul.f32.gmra.mxu0 %v7706_v22 }
  0x84   : > { %399 = vst [vmem:[#allocation4 + $0x60] sm:$0xff] %v7116_v4 }
  0x85   : > { %400 = vst [vmem:[#allocation4 + $0x68] sm:$0xff] %v7116_v4 }
  0x86   : > { %401 = vst [vmem:[#allocation4 + $0x70] sm:$0x3] %v7116_v4 }
  0x87   : > { %402 = vst [vmem:[#allocation4 + $0x78] sm:$0xff] %v7116_v4 }
  0x88   : > { %403 = vst [vmem:[#allocation4 + $0x80] sm:$0xff] %v7116_v4 }
  0x89   : > { %404 = vst [vmem:[#allocation4 + $0x88] sm:$0x3] %v7116_v4 }
  0x8a   : > { %405 = vst [vmem:[#allocation4 + $0x90] sm:$0xff] %v7116_v4 }
  0x8b   : > { %406 = vst [vmem:[#allocation4 + $0x98] sm:$0xff] %v7116_v4  ;;  %655 = vmatmul.f32.gmra.mxu0 %v7728_v30 }
  0x8c   : > { %407 = vst [vmem:[#allocation4 + $0xa0] sm:$0x3] %v7116_v4 }
  0x8d   : > { %408 = vst [vmem:[#allocation4 + $0xa8] sm:$0xff] %v7116_v4 }
  0x8e   : > { %409 = vst [vmem:[#allocation4 + $0xb0] sm:$0xff] %v7116_v4 }
  0x8f   : > { %410 = vst [vmem:[#allocation4 + $0xb8] sm:$0x3] %v7116_v4 }
  0x90   : > { %411 = vst [vmem:[#allocation4 + $0xc0] sm:$0xff] %v7116_v4 }
  0x91   : > { %412 = vst [vmem:[#allocation4 + $0xc8] sm:$0xff] %v7116_v4 }
  0x92   : > { %413 = vst [vmem:[#allocation4 + $0xd0] sm:$0x3] %v7116_v4 }
  0x93   : > { %414 = vst [vmem:[#allocation4 + $0xd8] sm:$0xff] %v7116_v4  ;;  %658 = vmatmul.f32.gmra.mxu0 %v7731_v31 }
  0x94   : > { %415 = vst [vmem:[#allocation4 + $0xe0] sm:$0xff] %v7116_v4 }
  0x95   : > { %416 = vst [vmem:[#allocation4 + $0xe8] sm:$0x3] %v7116_v4 }
  0x96   : > { %417 = vst [vmem:[#allocation4 + $0xf0] sm:$0xff] %v7116_v4 }
  0x97   : > { %418 = vst [vmem:[#allocation4 + $0xf8] sm:$0xff] %v7116_v4 }
  0x98   : > { %419 = vst [vmem:[#allocation4 + $0x100] sm:$0x3] %v7116_v4 }
  0x99   : > { %420 = vst [vmem:[#allocation4 + $0x108] sm:$0xff] %v7116_v4 }
  0x9a   : > { %421 = vst [vmem:[#allocation4 + $0x110] sm:$0xff] %v7116_v4 }
  0x9b   : > { %422 = vst [vmem:[#allocation4 + $0x118] sm:$0x3] %v7116_v4  ;;  %661 = vmatmul.f32.gmra.mxu0 %v7756_v40 }
  0x9c   : > { %423 = vst [vmem:[#allocation4 + $0x120] sm:$0xff] %v7116_v4 }
  0x9d   : > { %424 = vst [vmem:[#allocation4 + $0x128] sm:$0xff] %v7116_v4 }
  0x9e   : > { %425 = vst [vmem:[#allocation4 + $0x130] sm:$0x3] %v7116_v4 }
  0x9f   : > { %426 = vst [vmem:[#allocation4 + $0x138] sm:$0xff] %v7116_v4 }
  0xa0   : > { %427 = vst [vmem:[#allocation4 + $0x140] sm:$0xff] %v7116_v4 }
  0xa1   : > { %428 = vst [vmem:[#allocation4 + $0x148] sm:$0x3] %v7116_v4 }
  0xa2   : > { %429 = vst [vmem:[#allocation4 + $0x150] sm:$0xff] %v7116_v4 }
  0xa3   : > { %430 = vst [vmem:[#allocation4 + $0x158] sm:$0xff] %v7116_v4  ;;  %664 = vmatmul.f32.gmra.mxu0 %v7759_v41 }
  0xa4   : > { %431 = vst [vmem:[#allocation4 + $0x160] sm:$0x3] %v7116_v4 }
  0xa5   : > { %432 = vst [vmem:[#allocation4 + $0x168] sm:$0xff] %v7116_v4 }
  0xa6   : > { %433 = vst [vmem:[#allocation4 + $0x170] sm:$0xff] %v7116_v4 }
  0xa7   : > { %434 = vst [vmem:[#allocation4 + $0x178] sm:$0x3] %v7116_v4 }
  0xa8   : > { %435 = vst [vmem:[#allocation4 + $0x180] sm:$0xff] %v7116_v4  ;;  %v7787_v51 = vpop.f32.mrf.mxu0 }
  0xa9   : > { %436 = vst [vmem:[#allocation4 + $0x188] sm:$0xff] %v7116_v4 }
  0xaa   : > { %437 = vst [vmem:[#allocation4 + $0x190] sm:$0x3] %v7116_v4 }
  0xab   : > { %438 = vst [vmem:[#allocation4 + $0x198] sm:$0xff] %v7116_v4  ;;  %667 = vmatmul.f32.gmra.mxu0 %v7781_v49 }
  0xac   : > { %439 = vst [vmem:[#allocation4 + $0x1a0] sm:$0xff] %v7116_v4 }
  0xad   : > { %440 = vst [vmem:[#allocation4 + $0x1a8] sm:$0x3] %v7116_v4 }
  0xae   : > { %496 = vst [vmem:[#allocation2 + $0x121] sm:$0xff] %v7419_v44  ;;  %v7794_v54 = vpop.f32.mrf.mxu3 }
  0xaf   : > { %497 = vst [vmem:[#allocation2 + $0x129] sm:$0xff] %v7512_v53  ;;  %v6541_v53 = vld [vmem:[%s11548_s1 + $0x1f8] sm:$0xff] }
  0xb0   : > { %474 = vst [vmem:[#allocation2 + $0x19] sm:$0xff] %v7528_v55  ;;  %v7812_v63 = vpop.f32.mrf.mxu0 }
  0xb1   : > { %498 = vst [vmem:[#allocation2 + $0x139] sm:$0xff] %v465_v57 }
  0xb2   : > { %475 = vst [vmem:[#allocation2 + $0x21] sm:$0xff] %v7593_v58 }
  0xb3   : > { %499 = vst [vmem:[#allocation2 + $0x141] sm:$0xff] %v466_v60  ;;  %v6540_v60 = vld [vmem:[%s11548_s1 + $0x1f0] sm:$0xff]  ;;  %670 = vmatmul.f32.gmra.mxu0 %v7784_v50 }
  0xb4   : > { %476 = vst [vmem:[#allocation2 + $0x31] sm:$0xff] %v7618_v61 }
  0xb5   : > { %500 = vst [vmem:[#allocation2 + $0x151] sm:$0xff] %v467_v62  ;;  %v530_v13 = vld [vmem:[#allocation2 + $0x120] sm:$0xff]  ;;  %v6573_v62 = vld [vmem:[%s11548_s1 + $0x2f8] sm:$0xff] }
  0xb6   : > { %477 = vst [vmem:[#allocation2 + $0x39] sm:$0xff] %v7634_v0  ;;  %804 = vmatmul.f32.vlgmr.msrb.gmra.mxu3 %v530_v13  ;;  %v531_v18 = vld [vmem:[#allocation2 + $0x128] sm:$0xff]  ;;  %1460 = vmatpush.msrb.mxu1 %v6573_v62  ;;  %v7826_v13 = vld [vmem:[%s7409_s28 + $0x80] sm:$0xff] }
  0xb7   : > { %v7656_v4 = vld [vmem:[#allocation2 + $0x18] sm:$0xff]  ;;  %501 = vst [vmem:[#allocation2 + $0x159] sm:$0xff] %v468_v1  ;;  %v853_v52 = vld [vmem:[#allocation2 + $0x122] sm:$0xff]  ;;  %1072 = vmatpush.msrb.mxu3 %v6541_v53  ;;  %v854_v1 = vld [vmem:[#allocation2 + $0x12a] sm:$0xff] }
  0xb8   : > { %738 = vmatmul.f32.gmra.mxu1 %v7656_v4  ;;  %478 = vst [vmem:[#allocation2 + $0x49] sm:$0xff] %v7646_v2  ;;  %v532_v23 = vld [vmem:[#allocation2 + $0x138] sm:$0xff]  ;;  %v7838_v24 = vpop.f32.mrf.mxu0 }
  0xb9   : > { %v7663_v7 = vld [vmem:[#allocation2 + $0x1a] sm:$0xff]  ;;  %502 = vst [vmem:[#allocation2 + $0x169] sm:$0xff] %v469_v5  ;;  %v7674_v11 = vld [vmem:[#allocation2 + $0x22] sm:$0xff]  ;;  %1073 = vmatpush.msrb.mxu3 %v6540_v60  ;;  %v7818_v5 = vpop.f32.mrf.mxu3 }
  0xba   : > { %900 = vmatmul.f32.gmra.mxu2 %v7663_v7  ;;  %479 = vst [vmem:[#allocation2 + $0x51] sm:$0xff] %v7659_v6  ;;  %v7672_v10 = vld [vmem:[#allocation2 + $0x20] sm:$0xff]  ;;  %v6545_v60 = vld [vmem:[%s11548_s1 + $0x218] sm:$0xff] }
  0xbb   : > { %503 = vst [vmem:[#allocation2 + $0x171] sm:$0xff] %v470_v8  ;;  %v7687_v15 = vld [vmem:[#allocation2 + $0x30] sm:$0xff]  ;;  %v533_v27 = vld [vmem:[#allocation2 + $0x140] sm:$0xff]  ;;  %1074 = vmatpush.msrb.mxu3 %v6539_v3  ;;  %673 = vmatmul.f32.gmra.mxu0 %v7826_v13  ;;  %v7876_v3 = vpop.f32.mrf.mxu1 }
  0xbc   : > { %480 = vst [vmem:[#allocation2 + $0x61] sm:$0xff] %v7678_v12  ;;  %v534_v33 = vld [vmem:[#allocation2 + $0x150] sm:$0xff]  ;;  %v856_v53 = vld [vmem:[#allocation2 + $0x142] sm:$0xff] }
  0xbd   : > { %481 = vst [vmem:[#allocation2 + $0x69] sm:$0xff] %v7684_v14  ;;  %v7689_v16 = vld [vmem:[#allocation2 + $0x32] sm:$0xff]  ;;  %v7699_v20 = vld [vmem:[#allocation2 + $0x3a] sm:$0xff] }
  0xbe   : > { %807 = vmatmul.f32.gmra.mxu3 %v531_v18  ;;  %v7697_v19 = vld [vmem:[#allocation2 + $0x38] sm:$0xff]  ;;  %482 = vst [vmem:[#allocation2 + $0x79] sm:$0xff] %v7703_v21  ;;  %v6538_v18 = vld [vmem:[%s11548_s1 + $0x1e0] sm:$0xff] }
  0xbf   : > { %483 = vst [vmem:[#allocation2 + $0x81] sm:$0xff] %v7706_v22  ;;  %v7715_v25 = vld [vmem:[#allocation2 + $0x48] sm:$0xff]  ;;  %v535_v36 = vld [vmem:[#allocation2 + $0x158] sm:$0xff]  ;;  %1075 = vmatpush.msrb.mxu3 %v6538_v18  ;;  %v7879_v18 = vld [vmem:[%s7409_s28 + $0x90] sm:$0xff] }
  0xc0   : > { %741 = vmatmul.f32.gmra.mxu1 %v7672_v10  ;;  %484 = vst [vmem:[#allocation2 + $0x91] sm:$0xff] %v7728_v30  ;;  %v536_v42 = vld [vmem:[#allocation2 + $0x168] sm:$0xff] }
  0xc1   : > { %v7717_v26 = vld [vmem:[#allocation2 + $0x4a] sm:$0xff]  ;;  %v7724_v29 = vld [vmem:[#allocation2 + $0x52] sm:$0xff]  ;;  %485 = vst [vmem:[#allocation2 + $0x99] sm:$0xff] %v7731_v31  ;;  %1076 = vmatpush.msrb.mxu3 %v6537_v32 }
  0xc2   : > { %903 = vmatmul.f32.gmra.mxu2 %v7674_v11  ;;  %v7722_v28 = vld [vmem:[#allocation2 + $0x50] sm:$0xff]  ;;  %486 = vst [vmem:[#allocation2 + $0xa9] sm:$0xff] %v7756_v40  ;;  %v6571_v32 = vld [vmem:[%s11548_s1 + $0x2e8] sm:$0xff] }
  0xc3   : > { %v7740_v34 = vld [vmem:[#allocation2 + $0x60] sm:$0xff]  ;;  %487 = vst [vmem:[#allocation2 + $0xb1] sm:$0xff] %v7759_v41  ;;  %v537_v46 = vld [vmem:[#allocation2 + $0x170] sm:$0xff]  ;;  %676 = vmatmul.f32.gmra.mxu0 %v7829_v17  ;;  %1077 = vmatpush.msrb.mxu3 %v6536_v45 }
  0xc4   : > { %v7742_v35 = vld [vmem:[#allocation2 + $0x62] sm:$0xff]  ;;  %v7752_v39 = vld [vmem:[#allocation2 + $0x6a] sm:$0xff]  ;;  %11593 = vst [vmem:[#allocation5_spill] sm:$0xff] %v7781_v49 }
  0xc5   : > { %v7750_v38 = vld [vmem:[#allocation2 + $0x68] sm:$0xff]  ;;  %v7765_v43 = vld [vmem:[#allocation2 + $0x78] sm:$0xff]  ;;  %11594 = vst [vmem:[#allocation6_spill] sm:$0xff] %v7784_v50  ;;  %1078 = vmatpush.msrb.mxu3 %v6535_v56 }
  0xc6   : > { %810 = vmatmul.f32.gmra.mxu3 %v532_v23  ;;  %v7767_v44 = vld [vmem:[#allocation2 + $0x7a] sm:$0xff]  ;;  %v7777_v48 = vld [vmem:[#allocation2 + $0x82] sm:$0xff]  ;;  %11595 = vst [vmem:[#allocation7_spill] sm:$0xff] %v7787_v51 }
  0xc7   : > { %v7775_v47 = vld [vmem:[#allocation2 + $0x80] sm:$0xff]  ;;  %488 = vst [vmem:[#allocation2 + $0xc1] sm:$0xff] %v7781_v49  ;;  %v7800_v57 = vld [vmem:[#allocation2 + $0x90] sm:$0xff]  ;;  %v6533_v56 = vld [vmem:[%s11548_s1 + $0x1b8] sm:$0xff] }
  0xc8   : > { %744 = vmatmul.f32.gmra.mxu1 %v7687_v15  ;;  %489 = vst [vmem:[#allocation2 + $0xc9] sm:$0xff] %v7784_v50  ;;  %v7802_v59 = vld [vmem:[#allocation2 + $0x92] sm:$0xff]  ;;  %v7822_v9 = vld [vmem:[#allocation2 + $0x9a] sm:$0xff] }
  0xc9   : > { %11596 = vst [vmem:[#allocation8_spill] sm:$0xff] %v7802_v59  ;;  %v7820_v8 = vld [vmem:[#allocation2 + $0x98] sm:$0xff]  ;;  %v6546_v23 = vld [vmem:[%s11548_s1 + $0x220] sm:$0xff]  ;;  %v7851_v37 = vld [vmem:[#allocation2 + $0xa8] sm:$0xff] }
  0xca   : > { %906 = vmatmul.f32.gmra.mxu2 %v7689_v16  ;;  %11597 = vst [vmem:[#allocation9_spill] sm:$0xff] %v7812_v63  ;;  %1277 = vmatpush.msrb.mxu0 %v6546_v23  ;;  %v7882_v23 = vld [vmem:[%s7409_s28 + $0x98] sm:$0xff] }
  0xcb   : > { %11598 = vst [vmem:[#allocation10_spill] sm:$0xff] %v7822_v9  ;;  %679 = vmatmul.f32.gmra.mxu0 %v7879_v18  ;;  %v858_v63 = vld [vmem:[#allocation2 + $0x15a] sm:$0xff] }
  0xcc   : > { %11599 = vst [vmem:[#allocation11_spill] sm:$0xff] %v7826_v13  ;;  %1278 = vmatpush.msrb.mxu0 %v6545_v60 }
  0xcd   : > { %11600 = vst [vmem:[#allocation12_spill] sm:$0xff] %v7829_v17 }
  0xce   : > { %813 = vmatmul.f32.gmra.mxu3 %v533_v27  ;;  %490 = vst [vmem:[#allocation2 + $0xd9] sm:$0xff] %v7826_v13  ;;  %v855_v27 = vld [vmem:[#allocation2 + $0x13a] sm:$0xff] }
  0xcf   : > { %491 = vst [vmem:[#allocation2 + $0xe1] sm:$0xff] %v7829_v17  ;;  %v7896_v45 = vld [vmem:[#allocation2 + $0xc0] sm:$0xff]  ;;  %v7918_v17 = vpop.f32.mrf.mxu1 }
  0xd0   : > { %747 = vmatmul.f32.gmra.mxu1 %v7697_v19  ;;  %11603 = vst [vmem:[#allocation15_spill] sm:$0xff] %v7876_v3  ;;  %v6530_v13 = vld [vmem:[%s11548_s1 + $0x1a0] sm:$0xff] }
  0xd1   : > { %11604 = vst [vmem:[#allocation16_spill] sm:$0xff] %v7879_v18 }
  0xd2   : > { %909 = vmatmul.f32.gmra.mxu2 %v7699_v20  ;;  %11605 = vst [vmem:[#allocation17_spill] sm:$0xff] %v7882_v23 }
  0xd3   : > { %492 = vst [vmem:[#allocation2 + $0xf1] sm:$0xff] %v7879_v18  ;;  %v7906_v18 = vpop.f32.mrf.mxu2  ;;  %682 = vmatmul.f32.gmra.mxu0 %v7882_v23 }
  0xd4   : > { %493 = vst [vmem:[#allocation2 + $0xf9] sm:$0xff] %v7882_v23 }
  0xd5   : > { %11607 = vst [vmem:[#allocation19_spill] sm:$0xff] %v7906_v18  ;;  %v7946_v18 = vld [vmem:[%s7409_s28 + $0xa8] sm:$0xff]  ;;  %v7965_v51 = vld [vmem:[#allocation2 + $0xd8] sm:$0xff] }
  0xd6   : > { %816 = vmatmul.f32.gmra.mxu3 %v534_v33  ;;  %v6572_v33 = vld [vmem:[%s11548_s1 + $0x2f0] sm:$0xff]  ;;  %11608 = vst [vmem:[#allocation20_spill] sm:$0xff] %v7918_v17  ;;  %v7978_v50 = vld [vmem:[#allocation2 + $0xda] sm:$0xff] }
  0xd7   : > { %1461 = vmatpush.msrb.mxu1 %v6572_v33  ;;  %v7936_v17 = vld [vmem:[#allocation2 + $0xca] sm:$0xff]  ;;  %11612 = vst [vmem:[#allocation24_spill] sm:$0xff] %v7946_v18 }
  0xd8   : > { %750 = vmatmul.f32.gmra.mxu1 %v7715_v25  ;;  %11610 = vst [vmem:[#allocation22_spill] sm:$0xff] %v7936_v17 }
  0xd9   : > { %1462 = vmatpush.msrb.mxu1 %v6571_v32  ;;  %v6544_v32 = vld [vmem:[%s11548_s1 + $0x210] sm:$0xff]  ;;  %495 = vst [vmem:[#allocation2 + $0x111] sm:$0xff] %v7946_v18 }
  0xda   : > { %912 = vmatmul.f32.gmra.mxu2 %v7717_v26  ;;  %1279 = vmatpush.msrb.mxu0 %v6544_v32  ;;  %v6588_v32 = vld [vmem:[%s11548_s1 + $0x370] sm:$0xff]  ;;  %11614 = vst [vmem:[#allocation26_spill] sm:$0xff] %v7965_v51 }
  0xdb   : > { %11615 = vst [vmem:[#allocation27_spill] sm:$0xff] %v7978_v50 }
  0xde   : > { %819 = vmatmul.f32.gmra.mxu3 %v535_v36  ;;  %v7849_v36 = vpop.f32.mrf.mxu3 }
  0xe0   : > { %753 = vmatmul.f32.gmra.mxu1 %v7722_v28 }
  0xe2   : > { %915 = vmatmul.f32.gmra.mxu2 %v7724_v29 }
  0xe6   : > { %822 = vmatmul.f32.gmra.mxu3 %v536_v42  ;;  %v7853_v42 = vld [vmem:[#allocation2 + $0xaa] sm:$0xff]  ;;  %v7871_v62 = vpop.f32.mrf.mxu3 }
  0xe7   : > { %11601 = vst [vmem:[#allocation13_spill] sm:$0xff] %v7853_v42 }
  0xe8   : > { %756 = vmatmul.f32.gmra.mxu1 %v7740_v34 }
  0xea   : > { %918 = vmatmul.f32.gmra.mxu2 %v7742_v35 }
  0xee   : > { %825 = vmatmul.f32.gmra.mxu3 %v537_v46  ;;  %v7860_v46 = vpop.f32.mrf.mxu0  ;;  %v7901_v60 = vpop.f32.mrf.mxu3 }
  0xf0   : > { %759 = vmatmul.f32.gmra.mxu1 %v7750_v38 }
  0xf2   : > { %921 = vmatmul.f32.gmra.mxu2 %v7752_v39 }
  0xf6   : > { %966 = vmatmul.f32.vlgmr.msra.gmra.mxu3 %v853_v52  ;;  %v7863_v52 = vld [vmem:[#allocation2 + $0xb0] sm:$0xff]  ;;  %v7891_v33 = vpop.f32.mrf.mxu0  ;;  %v7934_v23 = vpop.f32.mrf.mxu3 }
  0xf8   : > { %762 = vmatmul.f32.gmra.mxu1 %v7765_v43 }
  0xfa   : > { %924 = vmatmul.f32.gmra.mxu2 %v7767_v44 }
  0xfe   : > { %969 = vmatmul.f32.gmra.mxu3 %v854_v1  ;;  %v7873_v1 = vld [vmem:[#allocation2 + $0xb2] sm:$0xff] }
  0xff   : > { %11602 = vst [vmem:[#allocation14_spill] sm:$0xff] %v7873_v1 }
 0x100   : > { %765 = vmatmul.f32.gmra.mxu1 %v7775_v47 }
 0x102   : > { %927 = vmatmul.f32.gmra.mxu2 %v7777_v48 }
 0x106   : > { %972 = vmatmul.f32.gmra.mxu3 %v855_v27  ;;  %v6534_v27 = vld [vmem:[%s11548_s1 + $0x1c0] sm:$0xff] }
 0x107   : > { %1079 = vmatpush.msrb.mxu3 %v6534_v27  ;;  %v6532_v27 = vld [vmem:[%s11548_s1 + $0x1b0] sm:$0xff] }
 0x108   : > { %768 = vmatmul.f32.gmra.mxu1 %v7800_v57 }
 0x109   : > { %1080 = vmatpush.msrb.mxu3 %v6533_v56  ;;  %v6589_v56 = vld [vmem:[%s11548_s1 + $0x378] sm:$0xff] }
 0x10a   : > { %930 = vmatmul.f32.gmra.mxu2 %v7802_v59  ;;  %v6580_v59 = vld [vmem:[%s11548_s1 + $0x330] sm:$0xff] }
 0x10b   : > { %1081 = vmatpush.msrb.mxu3 %v6532_v27  ;;  %1655 = vmatpush.msrb.mxu2 %v6589_v56  ;;  %v6570_v27 = vld [vmem:[%s11548_s1 + $0x2e0] sm:$0xff] }
 0x10c   : > { %1463 = vmatpush.msrb.mxu1 %v6570_v27  ;;  %v7943_v56 = vld [vmem:[%s7409_s28 + $0xa0] sm:$0xff]  ;;  %v7959_v27 = vpop.f32.mrf.mxu2 }
 0x10d   : > { %1656 = vmatpush.msrb.mxu2 %v6588_v32  ;;  %11611 = vst [vmem:[#allocation23_spill] sm:$0xff] %v7943_v56  ;;  %685 = vmatmul.f32.gmra.mxu0 %v7943_v56  ;;  %v6585_v32 = vld [vmem:[%s11548_s1 + $0x358] sm:$0xff] }
 0x10e   : > { %975 = vmatmul.f32.gmra.mxu3 %v856_v53  ;;  %v857_v53 = vld [vmem:[#allocation2 + $0x152] sm:$0xff]  ;;  %494 = vst [vmem:[#allocation2 + $0x109] sm:$0xff] %v7943_v56 }
 0x10f   : > { %11613 = vst [vmem:[#allocation25_spill] sm:$0xff] %v7959_v27  ;;  %v6529_v56 = vld [vmem:[%s11548_s1 + $0x198] sm:$0xff]  ;;  %v7976_v27 = vpop.f32.mrf.mxu3 }
 0x110   : > { %771 = vmatmul.f32.gmra.mxu1 %v7820_v8 }
 0x112   : > { %933 = vmatmul.f32.gmra.mxu2 %v7822_v9  ;;  %v859_v9 = vld [vmem:[#allocation2 + $0x16a] sm:$0xff] }
 0x115   : > { %688 = vmatmul.f32.gmra.mxu0 %v7946_v18  ;;  %v6566_v18 = vld [vmem:[%s11548_s1 + $0x2c0] sm:$0xff] }
 0x116   : > { %978 = vmatmul.f32.gmra.mxu3 %v857_v53  ;;  %v7915_v53 = vpop.f32.mrf.mxu0 }
 0x117   : > { %v8020_v49 = vpop.f32.mrf.mxu3 }
 0x118   : > { %774 = vmatmul.f32.gmra.mxu1 %v7851_v37 }
 0x11a   : > { %936 = vmatmul.f32.gmra.mxu2 %v7853_v42  ;;  %v6531_v42 = vld [vmem:[%s11548_s1 + $0x1a8] sm:$0xff] }
 0x11b   : > { %1082 = vmatpush.msrb.mxu3 %v6531_v42  ;;  %v6586_v42 = vld [vmem:[%s11548_s1 + $0x360] sm:$0xff] }
 0x11d   : > { %1083 = vmatpush.msrb.mxu3 %v6530_v13  ;;  %v6543_v13 = vld [vmem:[%s11548_s1 + $0x208] sm:$0xff] }
 0x11e   : > { %981 = vmatmul.f32.gmra.mxu3 %v858_v63  ;;  %v6587_v63 = vld [vmem:[%s11548_s1 + $0x368] sm:$0xff]  ;;  %v7952_v3 = vpop.f32.mrf.mxu0  ;;  %1280 = vmatpush.msrb.mxu0 %v6543_v13  ;;  %v6568_v13 = vld [vmem:[%s11548_s1 + $0x2d0] sm:$0xff] }
 0x11f   : > { %1657 = vmatpush.msrb.mxu2 %v6587_v63  ;;  %v6584_v63 = vld [vmem:[%s11548_s1 + $0x350] sm:$0xff]  ;;  %1084 = vmatpush.msrb.mxu3 %v6529_v56 }
 0x120   : > { %777 = vmatmul.f32.gmra.mxu1 %v7863_v52  ;;  %v6528_v56 = vld [vmem:[%s11548_s1 + $0x190] sm:$0xff] }
 0x121   : > { %1658 = vmatpush.msrb.mxu2 %v6586_v42  ;;  %v6583_v42 = vld [vmem:[%s11548_s1 + $0x348] sm:$0xff]  ;;  %1085 = vmatpush.msrb.mxu3 %v6528_v56 }
 0x122   : > { %939 = vmatmul.f32.gmra.mxu2 %v7873_v1  ;;  %v7903_v1 = vld [vmem:[#allocation2 + $0xc2] sm:$0xff] }
 0x123   : > { %11606 = vst [vmem:[#allocation18_spill] sm:$0xff] %v7903_v1  ;;  %1659 = vmatpush.msrb.mxu2 %v6585_v32 }
 0x125   : > { %1660 = vmatpush.msrb.mxu2 %v6584_v63  ;;  %v6582_v63 = vld [vmem:[%s11548_s1 + $0x340] sm:$0xff] }
 0x126   : > { %984 = vmatmul.f32.gmra.mxu3 %v859_v9  ;;  %v6569_v9 = vld [vmem:[%s11548_s1 + $0x2d8] sm:$0xff]  ;;  %v7992_v32 = vpop.f32.mrf.mxu0 }
 0x127   : > { %1464 = vmatpush.msrb.mxu1 %v6569_v9  ;;  %1661 = vmatpush.msrb.mxu2 %v6583_v42  ;;  %v860_v42 = vld [vmem:[#allocation2 + $0x172] sm:$0xff] }
 0x128   : > { %780 = vmatmul.f32.gmra.mxu1 %v7896_v45 }
 0x129   : > { %1465 = vmatpush.msrb.mxu1 %v6568_v13  ;;  %1662 = vmatpush.msrb.mxu2 %v6582_v63  ;;  %v6527_v13 = vld [vmem:[%s11548_s1 + $0x188] sm:$0xff] }
 0x12a   : > { %942 = vmatmul.f32.gmra.mxu2 %v7903_v1  ;;  %v7923_v1 = vld [vmem:[#allocation2 + $0xc8] sm:$0xff]  ;;  %1086 = vmatpush.msrb.mxu3 %v6527_v13 }
 0x12b   : > { %11609 = vst [vmem:[#allocation21_spill] sm:$0xff] %v7923_v1  ;;  %v8022_v63 = vld [vmem:[#allocation2 + $0xe2] sm:$0xff] }
 0x12c   : > { %11618 = vst [vmem:[#allocation30_spill] sm:$0xff] %v8022_v63 }
 0x12e   : > { %987 = vmatmul.f32.gmra.mxu3 %v860_v42  ;;  %v6542_v42 = vld [vmem:[%s11548_s1 + $0x200] sm:$0xff]  ;;  %v8039_v13 = vpop.f32.mrf.mxu0 }
 0x12f   : > { %1281 = vmatpush.msrb.mxu0 %v6542_v42  ;;  %v6576_v42 = vld [vmem:[%s11548_s1 + $0x310] sm:$0xff] }
 0x130   : > { %783 = vmatmul.f32.gmra.mxu1 %v7923_v1  ;;  %1282 = vmatmul.f32.vlgmr.msrb.gmra.mxu0 %v7528_v55  ;;  %v6561_v55 = vld [vmem:[%s11548_s1 + $0x298] sm:$0xff] }
 0x132   : > { %945 = vmatmul.f32.gmra.mxu2 %v7936_v17 }
 0x135   : > { %v739_v17 = vpop.f32.mrf.mxu1 }
 0x136   : > { %v740_v1 = vadd.f32 %v739_v17, %v7838_v24  ;;  %v6567_v17 = vld [vmem:[%s11548_s1 + $0x2c8] sm:$0xff]  ;;  %v6581_v24 = vld [vmem:[%s11548_s1 + $0x338] sm:$0xff] }
 0x137   : > { %1466 = vmatpush.msrb.mxu1 %v6567_v17  ;;  %1663 = vmatpush.msrb.mxu2 %v6581_v24  ;;  %v6579_v17 = vld [vmem:[%s11548_s1 + $0x328] sm:$0xff]  ;;  %v6526_v24 = vld [vmem:[%s11548_s1 + $0x180] sm:$0xff] }
 0x138   : > { %786 = vmatmul.f32.gmra.mxu1 %v7965_v51  ;;  %v8007_v51 = vld [vmem:[#allocation2 + $0xe0] sm:$0xff]  ;;  %1087 = vmatpush.msrb.mxu3 %v6526_v24 }
 0x139   : > { %11616 = vst [vmem:[#allocation28_spill] sm:$0xff] %v8007_v51  ;;  %1467 = vmatpush.msrb.mxu1 %v6566_v18  ;;  %1664 = vmatpush.msrb.mxu2 %v6580_v59  ;;  %v6563_v59 = vld [vmem:[%s11548_s1 + $0x2a8] sm:$0xff]  ;;  %v6562_v24 = vld [vmem:[%s11548_s1 + $0x2a0] sm:$0xff] }
 0x13a   : > { %948 = vmatmul.f32.gmra.mxu2 %v7978_v50  ;;  %1088 = vmatmul.f32.vlgmr.msrb.gmra.mxu3 %v7656_v4 }
 0x13b   : > { %1665 = vmatpush.msrb.mxu2 %v6579_v17  ;;  %v6605_v17 = vld [vmem:[%s11548_s1 + $0x3f8] sm:$0xff]  ;;  %1285 = vmatmul.f32.gmra.mxu0 %v7593_v58 }
 0x13c   : > { %1849 = vmatpush.msra.mxu3 %v6605_v17  ;;  %v6559_v17 = vld [vmem:[%s11548_s1 + $0x288] sm:$0xff] }
 0x13d   : > { %v901_v9 = vpop.f32.mrf.mxu2  ;;  %v742_v50 = vpop.f32.mrf.mxu1 }
 0x13e   : > { %v8009_v56 = vadd.f32 %v901_v9, %v740_v1  ;;  %v6565_v1 = vld [vmem:[%s11548_s1 + $0x2b8] sm:$0xff]  ;;  %v743_v9 = vadd.f32 %v742_v50, %v7860_v46  ;;  %v6578_v50 = vld [vmem:[%s11548_s1 + $0x320] sm:$0xff] }
 0x13f   : > { %1468 = vmatpush.msrb.mxu1 %v6565_v1  ;;  %v6577_v46 = vld [vmem:[%s11548_s1 + $0x318] sm:$0xff]  ;;  %1666 = vmatpush.msrb.mxu2 %v6578_v50 }
 0x140   : > { %11617 = vst [vmem:[#allocation29_spill] sm:$0xff] %v8009_v56  ;;  %789 = vmatmul.f32.gmra.mxu1 %v8007_v51  ;;  %v6564_v56 = vld [vmem:[%s11548_s1 + $0x2b0] sm:$0xff] }
 0x141   : > { %v8053_v51 = vld [vmem:[#allocation2 + $0xf0] sm:$0xff]  ;;  %1469 = vmatpush.msrb.mxu1 %v6564_v56  ;;  %v805_v56 = vpop.f32.mrf.mxu3  ;;  %1667 = vmatpush.msrb.mxu2 %v6577_v46  ;;  %v8082_v46 = vpop.f32.mrf.mxu0 }
 0x142   : > { %951 = vmatmul.f32.gmra.mxu2 %v8022_v63  ;;  %v8068_v50 = vld [vmem:[#allocation2 + $0xf2] sm:$0xff]  ;;  %v8071_v4 = vadd.f32 %v805_v56, %v7794_v54  ;;  %1091 = vmatmul.f32.gmra.mxu3 %v7672_v10 }
 0x143   : > { %11619 = vst [vmem:[#allocation31_spill] sm:$0xff] %v8068_v50  ;;  %1470 = vmatpush.msrb.mxu1 %v6563_v59  ;;  %1668 = vmatpush.msrb.mxu2 %v6576_v42  ;;  %v6560_v54 = vld [vmem:[%s11548_s1 + $0x290] sm:$0xff]  ;;  %v8093_v56 = vld [vmem:[#allocation2 + $0xf8] sm:$0xff] }
 0x144   : > { %1288 = vmatmul.f32.gmra.mxu0 %v7618_v61 }
 0x145   : > { %v904_v18 = vpop.f32.mrf.mxu2  ;;  %v745_v63 = vpop.f32.mrf.mxu1  ;;  %1471 = vmatpush.msrb.mxu1 %v6562_v24 }
 0x146   : > { %v8055_v1 = vadd.f32 %v904_v18, %v743_v9  ;;  %v6575_v9 = vld [vmem:[%s11548_s1 + $0x308] sm:$0xff]  ;;  %v746_v59 = vadd.f32 %v745_v63, %v7891_v33  ;;  %v6574_v18 = vld [vmem:[%s11548_s1 + $0x300] sm:$0xff]  ;;  %v6621_v63 = vld [vmem:[%s11548_s1 + $0x478] sm:$0xff] }
 0x147   : > { %1472 = vmatpush.msrb.mxu1 %v6561_v55  ;;  %1669 = vmatpush.msrb.mxu2 %v6575_v9  ;;  %v6558_v55 = vld [vmem:[%s11548_s1 + $0x280] sm:$0xff] }
 0x148   : > { %792 = vmatmul.f32.gmra.mxu1 %v8053_v51  ;;  %v8105_v9 = vld [vmem:[#allocation2 + $0xfa] sm:$0xff]  ;;  %2043 = vmatpush.msra.mxu0 %v6621_v63 }
 0x149   : > { %1473 = vmatpush.msrb.mxu1 %v6560_v54  ;;  %1670 = vmatpush.msrb.mxu2 %v6574_v18  ;;  %v808_v54 = vpop.f32.mrf.mxu3  ;;  %v8113_v10 = vpop.f32.mrf.mxu0 }
 0x14a   : > { %954 = vmatmul.f32.gmra.mxu2 %v8068_v50  ;;  %v8115_v50 = vld [vmem:[#allocation2 + $0x108] sm:$0xff]  ;;  %1094 = vmatmul.f32.gmra.mxu3 %v7687_v15 }
 0x14b   : > { %1474 = vmatpush.msrb.mxu1 %v6559_v17  ;;  %v8124_v17 = vld [vmem:[#allocation2 + $0x10a] sm:$0xff] }
 0x14c   : > { %11621 = vst [vmem:[#allocation33_spill] sm:$0xff] %v8124_v17  ;;  %1291 = vmatmul.f32.gmra.mxu0 %v7634_v0 }
 0x14d   : > { %v907_v24 = vpop.f32.mrf.mxu2  ;;  %v748_v42 = vpop.f32.mrf.mxu1  ;;  %1475 = vmatpush.msrb.mxu1 %v6558_v55 }
 0x14e   : > { %v8095_v33 = vadd.f32 %v907_v24, %v746_v59  ;;  %v8109_v59 = vadd.f32 %v808_v54, %v7818_v5  ;;  %v749_v58 = vadd.f32 %v748_v42, %v7915_v53  ;;  %v6604_v5 = vld [vmem:[%s11548_s1 + $0x3f0] sm:$0xff] }
 0x14f   : > { %1850 = vmatpush.msra.mxu3 %v6604_v5  ;;  %v8143_v5 = vld [vmem:[#allocation2 + $0x112] sm:$0xff] }
 0x150   : > { %11620 = vst [vmem:[#allocation32_spill] sm:$0xff] %v8095_v33  ;;  %795 = vmatmul.f32.gmra.mxu1 %v8093_v56 }
 0x151   : > { %v811_v53 = vpop.f32.mrf.mxu3  ;;  %v8132_v55 = vpop.f32.mrf.mxu0 }
 0x152   : > { %957 = vmatmul.f32.gmra.mxu2 %v8105_v9  ;;  %v8128_v42 = vadd.f32 %v811_v53, %v7849_v36  ;;  %1097 = vmatmul.f32.gmra.mxu3 %v7697_v19  ;;  %v6620_v36 = vld [vmem:[%s11548_s1 + $0x470] sm:$0xff] }
 0x153   : > { %2044 = vmatpush.msra.mxu0 %v6620_v36  ;;  %v6603_v36 = vld [vmem:[%s11548_s1 + $0x3e8] sm:$0xff] }
 0x154   : > { %1294 = vmatmul.f32.gmra.mxu0 %v7646_v2  ;;  %1851 = vmatpush.msra.mxu3 %v6603_v36 }
 0x155   : > { %v910_v18 = vpop.f32.mrf.mxu2  ;;  %v751_v24 = vpop.f32.mrf.mxu1 }
 0x156   : > { %v8117_v33 = vadd.f32 %v910_v18, %v749_v58  ;;  %v752_v63 = vadd.f32 %v751_v24, %v7952_v3  ;;  %v8134_v58 = vld [vmem:[#allocation2 + $0x110] sm:$0xff] }
 0x158   : > { %798 = vmatmul.f32.gmra.mxu1 %v8115_v50 }
 0x159   : > { %v814_v3 = vpop.f32.mrf.mxu3 }
 0x15a   : > { %960 = vmatmul.f32.gmra.mxu2 %v8124_v17  ;;  %v8147_v24 = vadd.f32 %v814_v3, %v7871_v62  ;;  %1100 = vmatmul.f32.gmra.mxu3 %v7715_v25 }
 0x15c   : > { %1297 = vmatmul.f32.gmra.mxu0 %v7659_v6 }
 0x15d   : > { %v913_v61 = vpop.f32.mrf.mxu2  ;;  %v754_v54 = vpop.f32.mrf.mxu1 }
 0x15e   : > { %v8136_v18 = vadd.f32 %v913_v61, %v752_v63  ;;  %v755_v53 = vadd.f32 %v754_v54, %v7992_v32  ;;  %v8151_v63 = vpop.f32.mrf.mxu0 }
 0x160   : > { %801 = vmatmul.f32.gmra.mxu1 %v8134_v58 }
 0x161   : > { %v817_v62 = vpop.f32.mrf.mxu3 }
 0x162   : > { %963 = vmatmul.f32.gmra.mxu2 %v8143_v5  ;;  %v8162_v32 = vadd.f32 %v817_v62, %v7901_v60  ;;  %1103 = vmatmul.f32.gmra.mxu3 %v7722_v28 }
 0x164   : > { %1300 = vmatmul.f32.gmra.mxu0 %v7678_v12  ;;  %v6618_v12 = vld [vmem:[%s11548_s1 + $0x460] sm:$0xff] }
 0x165   : > { %v916_v0 = vpop.f32.mrf.mxu2  ;;  %v757_v61 = vpop.f32.mrf.mxu1 }
 0x166   : > { %v8153_v17 = vadd.f32 %v916_v0, %v755_v53  ;;  %v758_v54 = vadd.f32 %v757_v61, %v8039_v13  ;;  %v8166_v3 = vpop.f32.mrf.mxu0 }
 0x168   : > { %1476 = vmatmul.f32.vlgmr.msrb.gmra.mxu1 %v7663_v7  ;;  %v6619_v7 = vld [vmem:[%s11548_s1 + $0x468] sm:$0xff] }
 0x169   : > { %2045 = vmatpush.msra.mxu0 %v6619_v7  ;;  %v820_v60 = vpop.f32.mrf.mxu3 }
 0x16a   : > { %1671 = vmatmul.f32.vlgmr.msrb.gmra.mxu2 %v7687_v15  ;;  %v8177_v15 = vadd.f32 %v820_v60, %v7934_v23  ;;  %1106 = vmatmul.f32.gmra.mxu3 %v7740_v34 }
 0x16b   : > { %2046 = vmatpush.msra.mxu0 %v6618_v12 }
 0x16c   : > { %1303 = vmatmul.f32.gmra.mxu0 %v7684_v14  ;;  %v6601_v14 = vld [vmem:[%s11548_s1 + $0x3d8] sm:$0xff] }
 0x16d   : > { %v919_v53 = vpop.f32.mrf.mxu2  ;;  %v760_v0 = vpop.f32.mrf.mxu1 }
 0x16e   : > { %v8168_v2 = vadd.f32 %v919_v53, %v758_v54  ;;  %v761_v13 = vadd.f32 %v760_v0, %v8082_v46  ;;  %v8181_v61 = vpop.f32.mrf.mxu0 }
 0x170   : > { %1479 = vmatmul.f32.gmra.mxu1 %v7674_v11  ;;  %v6602_v11 = vld [vmem:[%s11548_s1 + $0x3e0] sm:$0xff] }
 0x171   : > { %1852 = vmatpush.msra.mxu3 %v6602_v11  ;;  %v823_v23 = vpop.f32.mrf.mxu3 }
 0x172   : > { %1674 = vmatmul.f32.gmra.mxu2 %v7697_v19  ;;  %v8192_v19 = vadd.f32 %v823_v23, %v7976_v27  ;;  %1109 = vmatmul.f32.gmra.mxu3 %v7750_v38 }
 0x173   : > { %1853 = vmatpush.msra.mxu3 %v6601_v14 }
 0x174   : > { %1306 = vmatmul.f32.gmra.mxu0 %v7703_v21  ;;  %v6617_v21 = vld [vmem:[%s11548_s1 + $0x458] sm:$0xff] }
 0x175   : > { %v922_v36 = vpop.f32.mrf.mxu2  ;;  %v763_v62 = vpop.f32.mrf.mxu1  ;;  %2047 = vmatpush.msra.mxu0 %v6617_v21 }
 0x176   : > { %v8183_v6 = vadd.f32 %v922_v36, %v761_v13  ;;  %v764_v46 = vadd.f32 %v763_v62, %v8113_v10  ;;  %v665_v54 = vpop.f32.mrf.mxu0 }
 0x178   : > { %1482 = vmatmul.f32.gmra.mxu1 %v7689_v16 }
 0x179   : > { %v826_v16 = vpop.f32.mrf.mxu3 }
 0x17a   : > { %1677 = vmatmul.f32.gmra.mxu2 %v7715_v25  ;;  %v8205_v27 = vadd.f32 %v826_v16, %v8020_v49  ;;  %1112 = vmatmul.f32.gmra.mxu3 %v7765_v43 }
 0x17c   : > { %1309 = vmatmul.f32.gmra.mxu0 %v7706_v22  ;;  %v6600_v22 = vld [vmem:[%s11548_s1 + $0x3d0] sm:$0xff] }
 0x17d   : > { %v925_v53 = vpop.f32.mrf.mxu2  ;;  %v766_v0 = vpop.f32.mrf.mxu1  ;;  %1854 = vmatpush.msra.mxu3 %v6600_v22 }
 0x17e   : > { %v8196_v7 = vadd.f32 %v925_v53, %v764_v46  ;;  %v767_v25 = vadd.f32 %v766_v0, %v8132_v55  ;;  %v668_v10 = vpop.f32.mrf.mxu0 }
 0x180   : > { %1485 = vmatmul.f32.gmra.mxu1 %v7699_v20 }
 0x181   : > { %v967_v20 = vpop.f32.mrf.mxu3 }
 0x182   : > { %1680 = vmatmul.f32.gmra.mxu2 %v7722_v28  ;;  %v8218_v49 = vadd.f32 %v967_v20, %v8071_v4  ;;  %1115 = vmatmul.f32.gmra.mxu3 %v7775_v47 }
 0x184   : > { %1312 = vmatmul.f32.gmra.mxu0 %v7728_v30  ;;  %v6616_v30 = vld [vmem:[%s11548_s1 + $0x450] sm:$0xff] }
 0x185   : > { %v928_v60 = vpop.f32.mrf.mxu2  ;;  %v769_v13 = vpop.f32.mrf.mxu1  ;;  %2048 = vmatpush.msra.mxu0 %v6616_v30 }
 0x186   : > { %v8209_v36 = vadd.f32 %v928_v60, %v767_v25  ;;  %v770_v28 = vadd.f32 %v769_v13, %v8151_v63  ;;  %v671_v55 = vpop.f32.mrf.mxu0 }
 0x188   : > { %1488 = vmatmul.f32.gmra.mxu1 %v7717_v26 }
 0x189   : > { %v970_v26 = vpop.f32.mrf.mxu3 }
 0x18a   : > { %1683 = vmatmul.f32.gmra.mxu2 %v7740_v34  ;;  %v8231_v4 = vadd.f32 %v970_v26, %v8109_v59  ;;  %1118 = vmatmul.f32.gmra.mxu3 %v7800_v57 }
 0x18c   : > { %1315 = vmatmul.f32.gmra.mxu0 %v7731_v31  ;;  %v6599_v31 = vld [vmem:[%s11548_s1 + $0x3c8] sm:$0xff] }
 0x18d   : > { %v931_v62 = vpop.f32.mrf.mxu2  ;;  %v772_v11 = vpop.f32.mrf.mxu1  ;;  %1855 = vmatpush.msra.mxu3 %v6599_v31 }
 0x18e   : > { %v8222_v23 = vadd.f32 %v931_v62, %v770_v28  ;;  %v773_v34 = vadd.f32 %v772_v11, %v8166_v3  ;;  %v674_v63 = vpop.f32.mrf.mxu0 }
 0x190   : > { %1491 = vmatmul.f32.gmra.mxu1 %v7724_v29 }
 0x191   : > { %v973_v29 = vpop.f32.mrf.mxu3 }
 0x192   : > { %1686 = vmatmul.f32.gmra.mxu2 %v7750_v38  ;;  %v8244_v59 = vadd.f32 %v973_v29, %v8128_v42  ;;  %1121 = vmatmul.f32.gmra.mxu3 %v7820_v8 }
 0x194   : > { %1318 = vmatmul.f32.gmra.mxu0 %v7756_v40  ;;  %v6615_v40 = vld [vmem:[%s11548_s1 + $0x448] sm:$0xff] }
 0x195   : > { %v934_v46 = vpop.f32.mrf.mxu2  ;;  %v775_v53 = vpop.f32.mrf.mxu1  ;;  %2049 = vmatpush.msra.mxu0 %v6615_v40 }
 0x196   : > { %v8235_v0 = vadd.f32 %v934_v46, %v773_v34  ;;  %v776_v38 = vadd.f32 %v775_v53, %v8181_v61  ;;  %v677_v3 = vpop.f32.mrf.mxu0 }
 0x198   : > { %1494 = vmatmul.f32.gmra.mxu1 %v7742_v35 }
 0x199   : > { %v976_v35 = vpop.f32.mrf.mxu3 }
 0x19a   : > { %1689 = vmatmul.f32.gmra.mxu2 %v7765_v43  ;;  %v8258_v43 = vadd.f32 %v976_v35, %v8147_v24  ;;  %1124 = vmatmul.f32.gmra.mxu3 %v7851_v37 }
 0x19c   : > { %1321 = vmatmul.f32.gmra.mxu0 %v7759_v41  ;;  %v11622_v41 = vld [vmem:[#allocation5_spill] sm:$0xff] }
 0x19d   : > { %v937_v12 = vpop.f32.mrf.mxu2  ;;  %v778_v16 = vpop.f32.mrf.mxu1 }
 0x19e   : > { %v8248_v25 = vadd.f32 %v937_v12, %v776_v38  ;;  %v779_v42 = vadd.f32 %v778_v16, %v665_v54  ;;  %v8260_v61 = vpop.f32.mrf.mxu0  ;;  %v11624_v38 = vld [vmem:[#allocation21_spill] sm:$0xff]  ;;  %v11625_v12 = vld [vmem:[#allocation6_spill] sm:$0xff]  ;;  %v6614_v16 = vld [vmem:[%s11548_s1 + $0x440] sm:$0xff] }
 0x19f   : > { %2050 = vmatpush.msra.mxu0 %v6614_v16 }
 0x1a0   : > { %1497 = vmatmul.f32.gmra.mxu1 %v7752_v39 }
 0x1a1   : > { %v979_v39 = vpop.f32.mrf.mxu3 }
 0x1a2   : > { %1692 = vmatmul.f32.gmra.mxu2 %v7775_v47  ;;  %v8272_v24 = vadd.f32 %v979_v39, %v8162_v32  ;;  %1127 = vmatmul.f32.gmra.mxu3 %v7863_v52 }
 0x1a4   : > { %1324 = vmatmul.f32.gmra.mxu0 %v11622_v41  ;;  %v6613_v41 = vld [vmem:[%s11548_s1 + $0x438] sm:$0xff] }
 0x1a5   : > { %v940_v60 = vpop.f32.mrf.mxu2  ;;  %v781_v13 = vpop.f32.mrf.mxu1  ;;  %2051 = vmatpush.msra.mxu0 %v6613_v41 }
 0x1a6   : > { %v8262_v14 = vadd.f32 %v940_v60, %v779_v42  ;;  %v782_v47 = vadd.f32 %v781_v13, %v668_v10  ;;  %v8274_v54 = vpop.f32.mrf.mxu0  ;;  %v11627_v42 = vld [vmem:[#allocation7_spill] sm:$0xff] }
 0x1a7   : > { %v11628_v60 = vld [vmem:[#allocation15_spill] sm:$0xff] }
 0x1a8   : > { %1500 = vmatmul.f32.gmra.mxu1 %v7767_v44  ;;  %v734_v13 = vadd.f32 %v11628_v60, %v11627_v42 }
 0x1a9   : > { %v982_v44 = vpop.f32.mrf.mxu3 }
 0x1aa   : > { %1695 = vmatmul.f32.gmra.mxu2 %v7800_v57  ;;  %v8286_v32 = vadd.f32 %v982_v44, %v8177_v15  ;;  %1130 = vmatmul.f32.gmra.mxu3 %v7896_v45  ;;  %v11632_v44 = vld [vmem:[#allocation13_spill] sm:$0xff] }
 0x1ac   : > { %1327 = vmatmul.f32.gmra.mxu0 %v11625_v12 }
 0x1ad   : > { %v943_v20 = vpop.f32.mrf.mxu2  ;;  %v784_v28 = vpop.f32.mrf.mxu1 }
 0x1ae   : > { %v8276_v62 = vadd.f32 %v943_v20, %v782_v47  ;;  %v785_v57 = vadd.f32 %v784_v28, %v671_v55  ;;  %v8288_v10 = vpop.f32.mrf.mxu0  ;;  %v11623_v55 = vld [vmem:[#allocation8_spill] sm:$0xff]  ;;  %v11629_v20 = vld [vmem:[#allocation26_spill] sm:$0xff]  ;;  %v11630_v28 = vld [vmem:[#allocation11_spill] sm:$0xff] }
 0x1b0   : > { %1503 = vmatmul.f32.gmra.mxu1 %v7777_v48  ;;  %v6598_v48 = vld [vmem:[%s11548_s1 + $0x3c0] sm:$0xff] }
 0x1b1   : > { %1856 = vmatpush.msra.mxu3 %v6598_v48 }
 0x1b2   : > { %1698 = vmatmul.f32.gmra.mxu2 %v7820_v8  ;;  %v985_v8 = vpop.f32.mrf.mxu3  ;;  %1133 = vmatmul.f32.gmra.mxu3 %v11624_v38 }
 0x1b3   : > { %v8300_v34 = vadd.f32 %v985_v8, %v8192_v19  ;;  %v11634_v8 = vld [vmem:[#allocation20_spill] sm:$0xff] }
 0x1b4   : > { %1330 = vmatmul.f32.gmra.mxu0 %v11630_v28 }
 0x1b5   : > { %v946_v11 = vpop.f32.mrf.mxu2  ;;  %v787_v21 = vpop.f32.mrf.mxu1 }
 0x1b6   : > { %v8290_v26 = vadd.f32 %v946_v11, %v785_v57  ;;  %v788_v15 = vadd.f32 %v787_v21, %v674_v63  ;;  %v8302_v46 = vpop.f32.mrf.mxu0  ;;  %v11626_v63 = vld [vmem:[#allocation10_spill] sm:$0xff] }
 0x1b8   : > { %1506 = vmatmul.f32.gmra.mxu1 %v11623_v55  ;;  %v11633_v55 = vld [vmem:[#allocation9_spill] sm:$0xff] }
 0x1ba   : > { %1701 = vmatmul.f32.gmra.mxu2 %v7851_v37  ;;  %v988_v37 = vpop.f32.mrf.mxu3  ;;  %1136 = vmatmul.f32.gmra.mxu3 %v11629_v20 }
 0x1bb   : > { %v8314_v30 = vadd.f32 %v988_v37, %v8205_v27  ;;  %v11631_v27 = vld [vmem:[#allocation19_spill] sm:$0xff] }
 0x1bc   : > { %v991_v40 = vadd.f32 %v11631_v27, %v734_v13  ;;  %v11639_v27 = vld [vmem:[#allocation16_spill] sm:$0xff] }
 0x1bd   : > { %v949_v53 = vpop.f32.mrf.mxu2  ;;  %v790_v22 = vpop.f32.mrf.mxu1 }
 0x1be   : > { %v8304_v29 = vadd.f32 %v949_v53, %v788_v15  ;;  %v791_v19 = vadd.f32 %v790_v22, %v677_v3  ;;  %v1283_v35 = vpop.f32.mrf.mxu0  ;;  %v6597_v3 = vld [vmem:[%s11548_s1 + $0x3b8] sm:$0xff]  ;;  %v737_v15 = vadd.f32 %v11634_v8, %v11633_v55 }
 0x1bf   : > { %1857 = vmatpush.msra.mxu3 %v6597_v3 }
 0x1c0   : > { %1509 = vmatmul.f32.gmra.mxu1 %v11626_v63  ;;  %v11635_v63 = vld [vmem:[#allocation28_spill] sm:$0xff] }
 0x1c2   : > { %1704 = vmatmul.f32.gmra.mxu2 %v7863_v52  ;;  %v6637_v52 = vld [vmem:[%s11550_s3 + $0xf8] sm:$0xff]  ;;  %v1089_v57 = vpop.f32.mrf.mxu3  ;;  %1139 = vmatmul.f32.gmra.mxu3 %v11635_v63 }
 0x1c3   : > { %2386 = vmatpush.msra.mxu1 %v6637_v52  ;;  %v1185_v21 = vadd.f32 %v1089_v57, %v991_v40  ;;  %v11641_v57 = vld [vmem:[#allocation29_spill] sm:$0xff] }
 0x1c5   : > { %v952_v31 = vpop.f32.mrf.mxu2  ;;  %v793_v39 = vpop.f32.mrf.mxu1  ;;  %v1379_v53 = vadd.f32 %v1283_v35, %v1185_v21  ;;  %v6596_v35 = vld [vmem:[%s11548_s1 + $0x3b0] sm:$0xff] }
 0x1c6   : > { %v8318_v47 = vadd.f32 %v952_v31, %v791_v19  ;;  %v794_v11 = vadd.f32 %v793_v39, %v8260_v61  ;;  %v1286_v48 = vpop.f32.mrf.mxu0  ;;  %v11636_v61 = vld [vmem:[#allocation12_spill] sm:$0xff]  ;;  %v11638_v19 = vld [vmem:[#allocation14_spill] sm:$0xff]  ;;  %1858 = vmatpush.msra.mxu3 %v6596_v35  ;;  %v6612_v21 = vld [vmem:[%s11548_s1 + $0x430] sm:$0xff] }
 0x1c7   : > { %1333 = vmatmul.f32.gmra.mxu0 %v11636_v61  ;;  %v11644_v35 = vld [vmem:[#allocation23_spill] sm:$0xff] }
 0x1c8   : > { %1512 = vmatmul.f32.gmra.mxu1 %v11632_v44  ;;  %2052 = vmatpush.msra.mxu0 %v6612_v21  ;;  %v11648_v21 = vld [vmem:[#allocation30_spill] sm:$0xff] }
 0x1ca   : > { %1707 = vmatmul.f32.gmra.mxu2 %v7896_v45  ;;  %v11637_v45 = vld [vmem:[#allocation25_spill] sm:$0xff]  ;;  %v1092_v42 = vpop.f32.mrf.mxu3  ;;  %1142 = vmatmul.f32.gmra.mxu3 %v8053_v51 }
 0x1cb   : > { %v992_v37 = vadd.f32 %v11637_v45, %v737_v15  ;;  %v6595_v45 = vld [vmem:[%s11548_s1 + $0x3a8] sm:$0xff] }
 0x1cc   : > { %1859 = vmatpush.msra.mxu3 %v6595_v45 }
 0x1cd   : > { %v955_v22 = vpop.f32.mrf.mxu2  ;;  %v796_v12 = vpop.f32.mrf.mxu1  ;;  %v1186_v13 = vadd.f32 %v1092_v42, %v992_v37 }
 0x1ce   : > { %v8337_v16 = vadd.f32 %v955_v22, %v794_v11  ;;  %v797_v60 = vadd.f32 %v796_v12, %v8274_v54  ;;  %v1289_v31 = vpop.f32.mrf.mxu0  ;;  %v6636_v54 = vld [vmem:[%s11550_s3 + $0xf0] sm:$0xff] }
 0x1cf   : > { %v1380_v39 = vadd.f32 %v1286_v48, %v1186_v13  ;;  %1336 = vmatmul.f32.gmra.mxu0 %v11639_v27  ;;  %2387 = vmatpush.msra.mxu1 %v6636_v54  ;;  %v11642_v22 = vld [vmem:[#allocation17_spill] sm:$0xff]  ;;  %v6611_v27 = vld [vmem:[%s11548_s1 + $0x428] sm:$0xff] }
 0x1d0   : > { %1515 = vmatmul.f32.gmra.mxu1 %v11638_v19  ;;  %2053 = vmatpush.msra.mxu0 %v6611_v27  ;;  %v6593_v27 = vld [vmem:[%s11548_s1 + $0x398] sm:$0xff] }
 0x1d2   : > { %1710 = vmatmul.f32.gmra.mxu2 %v11624_v38  ;;  %v11640_v38 = vld [vmem:[#allocation18_spill] sm:$0xff]  ;;  %v1095_v40 = vpop.f32.mrf.mxu3  ;;  %1145 = vmatmul.f32.gmra.mxu3 %v8093_v56 }
 0x1d3   : > { %v1187_v11 = vadd.f32 %v1095_v40, %v11641_v57 }
 0x1d5   : > { %v958_v28 = vpop.f32.mrf.mxu2  ;;  %v799_v3 = vpop.f32.mrf.mxu1  ;;  %v1381_v48 = vadd.f32 %v1289_v31, %v1187_v11  ;;  %v11647_v11 = vld [vmem:[#allocation24_spill] sm:$0xff] }
 0x1d6   : > { %v8348_v52 = vadd.f32 %v958_v28, %v797_v60  ;;  %v800_v44 = vadd.f32 %v799_v3, %v8288_v10  ;;  %v1292_v41 = vpop.f32.mrf.mxu0  ;;  %v11643_v10 = vld [vmem:[#allocation22_spill] sm:$0xff]  ;;  %v11646_v28 = vld [vmem:[#allocation32_spill] sm:$0xff] }
 0x1d7   : > { %1339 = vmatmul.f32.gmra.mxu0 %v11642_v22  ;;  %v8396_v22 = vld [vmem:[#allocation2 + $0x121] sm:$0xff] }
 0x1d8   : > { %1518 = vmatmul.f32.gmra.mxu1 %v11640_v38 }
 0x1da   : > { %1713 = vmatmul.f32.gmra.mxu2 %v11629_v20  ;;  %v1098_v20 = vpop.f32.mrf.mxu3  ;;  %1148 = vmatmul.f32.gmra.mxu3 %v8115_v50 }
 0x1db   : > { %v1188_v61 = vadd.f32 %v1098_v20, %v8055_v1  ;;  %v11645_v1 = vld [vmem:[#allocation27_spill] sm:$0xff] }
 0x1dd   : > { %v961_v55 = vpop.f32.mrf.mxu2  ;;  %v802_v8 = vpop.f32.mrf.mxu1  ;;  %v1382_v19 = vadd.f32 %v1292_v41, %v1188_v61  ;;  %v1626_v61 = vld [vmem:[#allocation2 + $0x120] sm:$0xff] }
 0x1de   : > { %v8362_v15 = vadd.f32 %v961_v55, %v800_v44  ;;  %v803_v12 = vadd.f32 %v802_v8, %v8302_v46  ;;  %v1295_v37 = vpop.f32.mrf.mxu0  ;;  %v6635_v46 = vld [vmem:[%s11550_s3 + $0xe8] sm:$0xff]  ;;  %v6594_v55 = vld [vmem:[%s11548_s1 + $0x3a0] sm:$0xff] }
 0x1df   : > { %1342 = vmatmul.f32.gmra.mxu0 %v11644_v35  ;;  %2388 = vmatpush.msra.mxu1 %v6635_v46  ;;  %v8410_v46 = vld [vmem:[#allocation2 + $0x129] sm:$0xff] }
 0x1e0   : > { %1521 = vmatmul.f32.gmra.mxu1 %v11643_v10  ;;  %1860 = vmatpush.msra.mxu3 %v6594_v55  ;;  %v6609_v55 = vld [vmem:[%s11548_s1 + $0x418] sm:$0xff] }
 0x1e2   : > { %1716 = vmatmul.f32.gmra.mxu2 %v11635_v63  ;;  %v1101_v63 = vpop.f32.mrf.mxu3  ;;  %1151 = vmatmul.f32.gmra.mxu3 %v8134_v58 }
 0x1e3   : > { %v1189_v3 = vadd.f32 %v1101_v63, %v11646_v28  ;;  %v1627_v28 = vld [vmem:[#allocation2 + $0x128] sm:$0xff]  ;;  %1861 = vmatpush.msra.mxu3 %v6593_v27 }
 0x1e5   : > { %v964_v42 = vpop.f32.mrf.mxu2  ;;  %v1477_v60 = vpop.f32.mrf.mxu1  ;;  %v1383_v38 = vadd.f32 %v1295_v37, %v1189_v3 }
 0x1e6   : > { %v8373_v13 = vadd.f32 %v964_v42, %v803_v12  ;;  %v1573_v31 = vadd.f32 %v1477_v60, %v1379_v53  ;;  %v1298_v54 = vpop.f32.mrf.mxu0  ;;  %v6610_v60 = vld [vmem:[%s11548_s1 + $0x420] sm:$0xff] }
 0x1e7   : > { %1345 = vmatmul.f32.gmra.mxu0 %v11647_v11 }
 0x1e8   : > { %1524 = vmatmul.f32.gmra.mxu1 %v11645_v1  ;;  %2054 = vmatpush.msra.mxu0 %v6610_v60 }
 0x1ea   : > { %1719 = vmatmul.f32.gmra.mxu2 %v8053_v51  ;;  %v1104_v51 = vpop.f32.mrf.mxu3  ;;  %1154 = vmatmul.f32.gmra.mxu3 %v1626_v61 }
 0x1eb   : > { %v1190_v41 = vadd.f32 %v1104_v51, %v8117_v33  ;;  %v11649_v33 = vld [vmem:[#allocation31_spill] sm:$0xff]  ;;  %v1628_v51 = vld [vmem:[#allocation2 + $0x138] sm:$0xff]  ;;  %2055 = vmatpush.msra.mxu0 %v6609_v55 }
 0x1ed   : > { %v1672_v40 = vpop.f32.mrf.mxu2  ;;  %v1480_v44 = vpop.f32.mrf.mxu1  ;;  %v1384_v10 = vadd.f32 %v1298_v54, %v1190_v41 }
 0x1ee   : > { %v8386_v57 = vadd.f32 %v1672_v40, %v1573_v31  ;;  %v1574_v53 = vadd.f32 %v1480_v44, %v1380_v39  ;;  %v1301_v8 = vpop.f32.mrf.mxu0  ;;  %v8423_v40 = vld [vmem:[#allocation2 + $0x139] sm:$0xff] }
 0x1ef   : > { %1348 = vmatmul.f32.gmra.mxu0 %v8396_v22 }
 0x1f0   : > { %1527 = vmatmul.f32.gmra.mxu1 %v11648_v21 }
 0x1f2   : > { %1722 = vmatmul.f32.gmra.mxu2 %v8093_v56  ;;  %v6634_v56 = vld [vmem:[%s11550_s3 + $0xe0] sm:$0xff]  ;;  %v1107_v39 = vpop.f32.mrf.mxu3  ;;  %1157 = vmatmul.f32.gmra.mxu3 %v1627_v28 }
 0x1f3   : > { %2389 = vmatpush.msra.mxu1 %v6634_v56  ;;  %v1191_v42 = vadd.f32 %v1107_v39, %v8136_v18  ;;  %v1629_v39 = vld [vmem:[#allocation2 + $0x140] sm:$0xff] }
 0x1f5   : > { %v1675_v20 = vpop.f32.mrf.mxu2  ;;  %v1483_v12 = vpop.f32.mrf.mxu1  ;;  %v8412_v1 = vadd.f32 %v1301_v8, %v1191_v42  ;;  %v6592_v42 = vld [vmem:[%s11548_s1 + $0x390] sm:$0xff] }
 0x1f6   : > { %v8398_v45 = vadd.f32 %v1675_v20, %v1574_v53  ;;  %v1575_v37 = vadd.f32 %v1483_v12, %v1381_v48  ;;  %v1304_v35 = vpop.f32.mrf.mxu0  ;;  %v8438_v20 = vld [vmem:[#allocation2 + $0x141] sm:$0xff]  ;;  %1862 = vmatpush.msra.mxu3 %v6592_v42 }
 0x1f7   : > { %1351 = vmatmul.f32.gmra.mxu0 %v8410_v46  ;;  %v8488_v42 = vld [vmem:[#allocation2 + $0x13a] sm:$0xff] }
 0x1f8   : > { %1530 = vmatmul.f32.gmra.mxu1 %v11649_v33 }
 0x1fa   : > { %1725 = vmatmul.f32.gmra.mxu2 %v8115_v50  ;;  %v1110_v50 = vpop.f32.mrf.mxu3  ;;  %1160 = vmatmul.f32.gmra.mxu3 %v1628_v51 }
 0x1fb   : > { %v1192_v48 = vadd.f32 %v1110_v50, %v8153_v17  ;;  %v6633_v17 = vld [vmem:[%s11550_s3 + $0xd8] sm:$0xff] }
 0x1fc   : > { %2390 = vmatpush.msra.mxu1 %v6633_v17 }
 0x1fd   : > { %v1678_v63 = vpop.f32.mrf.mxu2  ;;  %v1486_v31 = vpop.f32.mrf.mxu1  ;;  %v8425_v44 = vadd.f32 %v1304_v35, %v1192_v48  ;;  %v8450_v35 = vld [vmem:[#allocation2 + $0x151] sm:$0xff] }
 0x1fe   : > { %v8414_v3 = vadd.f32 %v1678_v63, %v1575_v37  ;;  %v1576_v18 = vadd.f32 %v1486_v31, %v1382_v19  ;;  %v1307_v54 = vpop.f32.mrf.mxu0 }
 0x1ff   : > { %1354 = vmatmul.f32.gmra.mxu0 %v8423_v40 }
 0x200   : > { %1533 = vmatmul.f32.gmra.mxu1 %v8105_v9 }
 0x202   : > { %1728 = vmatmul.f32.gmra.mxu2 %v8134_v58  ;;  %v11650_v58 = vld [vmem:[#allocation33_spill] sm:$0xff]  ;;  %v1113_v19 = vpop.f32.mrf.mxu3  ;;  %1163 = vmatmul.f32.gmra.mxu3 %v1629_v39 }
 0x203   : > { %v1193_v41 = vadd.f32 %v1113_v19, %v8168_v2  ;;  %v8472_v19 = vld [vmem:[#allocation2 + $0x12a] sm:$0xff] }
 0x205   : > { %v1681_v11 = vpop.f32.mrf.mxu2  ;;  %v1489_v21 = vpop.f32.mrf.mxu1  ;;  %v8440_v12 = vadd.f32 %v1307_v54, %v1193_v41  ;;  %v6608_v54 = vld [vmem:[%s11548_s1 + $0x410] sm:$0xff] }
 0x206   : > { %v8427_v9 = vadd.f32 %v1681_v11, %v1576_v18  ;;  %v1577_v53 = vadd.f32 %v1489_v21, %v1383_v38  ;;  %v1310_v8 = vpop.f32.mrf.mxu0  ;;  %v8454_v18 = vld [vmem:[#allocation2 + $0x122] sm:$0xff]  ;;  %v8468_v21 = vld [vmem:[#allocation2 + $0x159] sm:$0xff]  ;;  %2056 = vmatpush.msra.mxu0 %v6608_v54 }
 0x207   : > { %1357 = vmatmul.f32.gmra.mxu0 %v8438_v20  ;;  %v8506_v54 = vld [vmem:[#allocation2 + $0x142] sm:$0xff] }
 0x208   : > { %1536 = vmatmul.f32.gmra.mxu1 %v11650_v58 }
 0x20a   : > { %1731 = vmatmul.f32.gmra.mxu2 %v1626_v61  ;;  %v1116_v2 = vpop.f32.mrf.mxu3 }
 0x20b   : > { %v1194_v61 = vadd.f32 %v1116_v2, %v8183_v6  ;;  %v6632_v6 = vld [vmem:[%s11550_s3 + $0xd0] sm:$0xff] }
 0x20c   : > { %2391 = vmatpush.msra.mxu1 %v6632_v6  ;;  %v471_v2 = vld [vmem:[%s7409_s28 + $0xf0] sm:$0xff] }
 0x20d   : > { %v1684_v56 = vpop.f32.mrf.mxu2  ;;  %v1492_v33 = vpop.f32.mrf.mxu1  ;;  %v8452_v63 = vadd.f32 %v1310_v8, %v1194_v61  ;;  %v6591_v8 = vld [vmem:[%s11548_s1 + $0x388] sm:$0xff]  ;;  %504 = vst [vmem:[#allocation2 + $0x181] sm:$0xff] %v471_v2 }
 0x20e   : > { %v8442_v37 = vadd.f32 %v1684_v56, %v1577_v53  ;;  %v1578_v38 = vadd.f32 %v1492_v33, %v1384_v10  ;;  %v1313_v60 = vpop.f32.mrf.mxu0  ;;  %v1631_v53 = vld [vmem:[#allocation2 + $0x158] sm:$0xff]  ;;  %v8483_v33 = vld [vmem:[#allocation2 + $0x169] sm:$0xff]  ;;  %1863 = vmatpush.msra.mxu3 %v6591_v8  ;;  %v6630_v8 = vld [vmem:[%s11550_s3 + $0xc0] sm:$0xff] }
 0x20f   : > { %1360 = vmatmul.f32.gmra.mxu0 %v8450_v35 }
 0x210   : > { %1539 = vmatmul.f32.gmra.mxu1 %v8143_v5  ;;  %v1630_v5 = vld [vmem:[#allocation2 + $0x150] sm:$0xff] }
 0x211   : > { %1166 = vmatmul.f32.gmra.mxu3 %v1630_v5 }
 0x212   : > { %1734 = vmatmul.f32.gmra.mxu2 %v1627_v28  ;;  %v1119_v10 = vpop.f32.mrf.mxu3 }
 0x213   : > { %v1195_v27 = vadd.f32 %v1119_v10, %v8196_v7  ;;  %v8501_v10 = vld [vmem:[#allocation2 + $0x171] sm:$0xff] }
 0x215   : > { %v1687_v31 = vpop.f32.mrf.mxu2  ;;  %v1495_v50 = vpop.f32.mrf.mxu1  ;;  %v8470_v17 = vadd.f32 %v1313_v60, %v1195_v27 }
 0x216   : > { %v8456_v48 = vadd.f32 %v1687_v31, %v1578_v38  ;;  %v1579_v28 = vadd.f32 %v1495_v50, %v8412_v1  ;;  %v1316_v11 = vpop.f32.mrf.mxu0  ;;  %v6607_v50 = vld [vmem:[%s11548_s1 + $0x408] sm:$0xff] }
 0x217   : > { %1363 = vmatmul.f32.gmra.mxu0 %v8468_v21 }
 0x218   : > { %1542 = vmatmul.f32.gmra.mxu1 %v8454_v18  ;;  %2057 = vmatpush.msra.mxu0 %v6607_v50 }
 0x219   : > { %1169 = vmatmul.f32.gmra.mxu3 %v1631_v53 }
 0x21a   : > { %1737 = vmatmul.f32.gmra.mxu2 %v1628_v51  ;;  %v1122_v1 = vpop.f32.mrf.mxu3 }
 0x21b   : > { %v1196_v55 = vadd.f32 %v1122_v1, %v8209_v36  ;;  %v6631_v36 = vld [vmem:[%s11550_s3 + $0xc8] sm:$0xff] }
 0x21c   : > { %2392 = vmatpush.msra.mxu1 %v6631_v36 }
 0x21d   : > { %v1690_v58 = vpop.f32.mrf.mxu2  ;;  %v1498_v7 = vpop.f32.mrf.mxu1  ;;  %v8486_v38 = vadd.f32 %v1316_v11, %v1196_v55  ;;  %v1633_v11 = vld [vmem:[#allocation2 + $0x170] sm:$0xff]  ;;  %v1634_v55 = vld [vmem:[#allocation2 + $0x180] sm:$0xff] }
 0x21e   : > { %v8474_v51 = vadd.f32 %v1690_v58, %v1579_v28  ;;  %v1580_v41 = vadd.f32 %v1498_v7, %v8425_v44  ;;  %v1319_v56 = vpop.f32.mrf.mxu0  ;;  %v472_v28 = vld [vmem:[%s7409_s28 + $0xf8] sm:$0xff]  ;;  %v6590_v58 = vld [vmem:[%s11548_s1 + $0x380] sm:$0xff]  ;;  %2393 = vmatpush.msra.mxu1 %v6630_v8 }
 0x21f   : > { %1366 = vmatmul.f32.gmra.mxu0 %v8483_v33  ;;  %505 = vst [vmem:[#allocation2 + $0x189] sm:$0xff] %v472_v28  ;;  %1864 = vmatpush.msra.mxu3 %v6590_v58  ;;  %v8537_v58 = vld [vmem:[#allocation2 + $0x16a] sm:$0xff]  ;;  %v1801_v8 = vld [vmem:[#allocation2 + $0x39] sm:$0xff] }
 0x220   : > { %1545 = vmatmul.f32.gmra.mxu1 %v8472_v19 }
 0x222   : > { %1740 = vmatmul.f32.gmra.mxu2 %v1629_v39  ;;  %v1632_v39 = vld [vmem:[#allocation2 + $0x168] sm:$0xff]  ;;  %v1125_v60 = vpop.f32.mrf.mxu3 }
 0x223   : > { %1172 = vmatmul.f32.gmra.mxu3 %v1632_v39  ;;  %v1197_v31 = vadd.f32 %v1125_v60, %v8222_v23 }
 0x225   : > { %v1693_v61 = vpop.f32.mrf.mxu2  ;;  %v8504_v27 = vadd.f32 %v1319_v56, %v1197_v31  ;;  %v6606_v56 = vld [vmem:[%s11548_s1 + $0x400] sm:$0xff] }
 0x226   : > { %v8490_v44 = vadd.f32 %v1693_v61, %v1580_v41  ;;  %v1322_v6 = vpop.f32.mrf.mxu0  ;;  %v8516_v41 = vld [vmem:[#allocation2 + $0x152] sm:$0xff]  ;;  %2058 = vmatpush.msra.mxu0 %v6606_v56  ;;  %v1635_v60 = vld [vmem:[#allocation2 + $0x188] sm:$0xff] }
 0x227   : > { %1369 = vmatmul.f32.gmra.mxu0 %v8501_v10  ;;  %v8546_v56 = vld [vmem:[#allocation2 + $0x172] sm:$0xff] }
 0x228   : > { %1548 = vmatmul.f32.gmra.mxu1 %v8488_v42 }
 0x22a   : > { %1743 = vmatmul.f32.gmra.mxu2 %v1630_v5  ;;  %v1128_v23 = vpop.f32.mrf.mxu3 }
 0x22b   : > { %1175 = vmatmul.f32.gmra.mxu3 %v1633_v11  ;;  %v1198_v5 = vadd.f32 %v1128_v23, %v8235_v0  ;;  %v1994_v23 = vld [vmem:[#allocation2 + $0x32] sm:$0xff] }
 0x22d   : > { %v8514_v1 = vadd.f32 %v1322_v6, %v1198_v5  ;;  %v1800_v6 = vld [vmem:[#allocation2 + $0x31] sm:$0xff] }
 0x22e   : > { %v1325_v7 = vpop.f32.mrf.mxu0 }
 0x22f   : > { %11651 = vst [vmem:[#allocation5_spill] sm:$0xff] %v8514_v1  ;;  %1372 = vmatmul.f32.gmra.mxu0 %v471_v2  ;;  %v8528_v2 = vld [vmem:[#allocation2 + $0x15a] sm:$0xff] }
 0x230   : > { %1551 = vmatmul.f32.gmra.mxu1 %v8506_v54 }
 0x232   : > { %1746 = vmatmul.f32.gmra.mxu2 %v1631_v53  ;;  %v1131_v0 = vpop.f32.mrf.mxu3 }
 0x233   : > { %1178 = vmatmul.f32.gmra.mxu3 %v1634_v55  ;;  %v1199_v53 = vadd.f32 %v1131_v0, %v8248_v25  ;;  %v2336_v25 = vld [vmem:[%s11550_s3 + $0x78] sm:$0xff] }
 0x234   : > { %2499 = vmatpush.msra.mxu2 %v2336_v25  ;;  %v1995_v0 = vld [vmem:[#allocation2 + $0x3a] sm:$0xff]  ;;  %v1802_v25 = vld [vmem:[#allocation2 + $0x49] sm:$0xff] }
 0x235   : > { %v8526_v36 = vadd.f32 %v1325_v7, %v1199_v53 }
 0x236   : > { %v1328_v61 = vpop.f32.mrf.mxu0 }
 0x237   : > { %11652 = vst [vmem:[#allocation8_spill] sm:$0xff] %v8526_v36  ;;  %1375 = vmatmul.f32.gmra.mxu0 %v472_v28  ;;  %v6629_v28 = vld [vmem:[%s11550_s3 + $0xb8] sm:$0xff] }
 0x238   : > { %1554 = vmatmul.f32.gmra.mxu1 %v8516_v41 }
 0x239   : > { %2394 = vmatpush.msra.mxu1 %v6629_v28  ;;  %v6628_v28 = vld [vmem:[%s11550_s3 + $0xb0] sm:$0xff] }
 0x23a   : > { %1749 = vmatmul.f32.gmra.mxu2 %v1632_v39  ;;  %v1134_v31 = vpop.f32.mrf.mxu3 }
 0x23b   : > { %1181 = vmatmul.f32.gmra.mxu3 %v1635_v60  ;;  %v1200_v39 = vadd.f32 %v1134_v31, %v8262_v14  ;;  %v8552_v31 = vpop.f32.mrf.mxu1  ;;  %2395 = vmatpush.msra.mxu1 %v6628_v28  ;;  %v1804_v28 = vld [vmem:[#allocation2 + $0x61] sm:$0xff] }
 0x23d   : > { %v8535_v5 = vadd.f32 %v1328_v61, %v1200_v39  ;;  %v2335_v61 = vld [vmem:[%s11550_s3 + $0x70] sm:$0xff] }
 0x23e   : > { %v1331_v50 = vpop.f32.mrf.mxu0  ;;  %2500 = vmatpush.msra.mxu2 %v2335_v61 }
 0x23f   : > { %11653 = vst [vmem:[#allocation21_spill] sm:$0xff] %v8535_v5  ;;  %2059 = vmatmul.f32.vlgmr.msra.gmra.mxu0 %v1994_v23  ;;  %v8557_v23 = vld [vmem:[#allocation2 + $0x182] sm:$0xff] }
 0x240   : > { %1557 = vmatmul.f32.gmra.mxu1 %v8528_v2 }
 0x242   : > { %1752 = vmatmul.f32.gmra.mxu2 %v1633_v11  ;;  %v1137_v14 = vpop.f32.mrf.mxu3 }
 0x243   : > { %1865 = vmatmul.f32.vlgmr.msra.gmra.mxu3 %v1800_v6  ;;  %v1201_v11 = vadd.f32 %v1137_v14, %v8276_v62 }
 0x245   : > { %v8544_v53 = vadd.f32 %v1331_v50, %v1201_v11  ;;  %v1996_v50 = vld [vmem:[#allocation2 + $0x4a] sm:$0xff]  ;;  %v8567_v11 = vpop.f32.mrf.mxu1 }
 0x246   : > { %v1334_v7 = vpop.f32.mrf.mxu0 }
 0x247   : > { %11654 = vst [vmem:[#allocation6_spill] sm:$0xff] %v8544_v53  ;;  %2062 = vmatmul.f32.gmra.mxu0 %v1995_v0  ;;  %v1997_v0 = vld [vmem:[#allocation2 + $0x52] sm:$0xff]  ;;  %v1999_v53 = vld [vmem:[#allocation2 + $0x6a] sm:$0xff] }
 0x248   : > { %1560 = vmatmul.f32.gmra.mxu1 %v8537_v58 }
 0x24a   : > { %1755 = vmatmul.f32.gmra.mxu2 %v1634_v55  ;;  %v1140_v55 = vpop.f32.mrf.mxu3 }
 0x24b   : > { %1868 = vmatmul.f32.gmra.mxu3 %v1801_v8  ;;  %v1202_v62 = vadd.f32 %v1140_v55, %v8290_v26  ;;  %v1803_v8 = vld [vmem:[#allocation2 + $0x51] sm:$0xff]  ;;  %v8571_v55 = vpop.f32.mrf.mxu2 }
 0x24d   : > { %v8555_v6 = vadd.f32 %v1334_v7, %v1202_v62  ;;  %v8573_v62 = vld [vmem:[#allocation2 + $0x18a] sm:$0xff] }
 0x24e   : > { %v1337_v39 = vpop.f32.mrf.mxu0  ;;  %11657 = vst [vmem:[#allocation15_spill] sm:$0xff] %v8573_v62 }
 0x24f   : > { %11655 = vst [vmem:[#allocation10_spill] sm:$0xff] %v8555_v6  ;;  %2065 = vmatmul.f32.gmra.mxu0 %v1996_v50 }
 0x250   : > { %1563 = vmatmul.f32.gmra.mxu1 %v8546_v56 }
 0x252   : > { %1758 = vmatmul.f32.gmra.mxu2 %v1635_v60  ;;  %v1143_v14 = vpop.f32.mrf.mxu3  ;;  %v8563_v60 = vld [vmem:[#allocation2] sm:$0xff] }
 0x253   : > { %1871 = vmatmul.f32.gmra.mxu3 %v1802_v25  ;;  %v1203_v26 = vadd.f32 %v1143_v14, %v8304_v29  ;;  %v2334_v25 = vld [vmem:[%s11550_s3 + $0x68] sm:$0xff] }
 0x254   : > { %2501 = vmatpush.msra.mxu2 %v2334_v25  ;;  %v1998_v14 = vld [vmem:[#allocation2 + $0x62] sm:$0xff] }
 0x255   : > { %v8569_v61 = vadd.f32 %v1337_v39, %v1203_v26 }
 0x256   : > { %v1340_v7 = vpop.f32.mrf.mxu0 }
 0x257   : > { %11656 = vst [vmem:[#allocation7_spill] sm:$0xff] %v8569_v61  ;;  %2068 = vmatmul.f32.gmra.mxu0 %v1997_v0  ;;  %v8583_v61 = vpop.f32.mrf.mxu1  ;;  %v8588_v0 = vpop.f32.mrf.mxu2 }
 0x258   : > { %1566 = vmatmul.f32.gmra.mxu1 %v8557_v23 }
 0x25a   : > { %1761 = vmatmul.f32.gmra.mxu2 %v8563_v60  ;;  %v1146_v29 = vpop.f32.mrf.mxu3 }
 0x25b   : > { %1874 = vmatmul.f32.gmra.mxu3 %v1803_v8  ;;  %v1204_v50 = vadd.f32 %v1146_v29, %v8318_v47  ;;  %v6627_v8 = vld [vmem:[%s11550_s3 + $0xa8] sm:$0xff] }
 0x25c   : > { %2396 = vmatpush.msra.mxu1 %v6627_v8  ;;  %v1805_v29 = vld [vmem:[#allocation2 + $0x69] sm:$0xff] }
 0x25d   : > { %v8581_v26 = vadd.f32 %v1340_v7, %v1204_v50  ;;  %v2333_v7 = vld [vmem:[%s11550_s3 + $0x60] sm:$0xff] }
 0x25e   : > { %v1343_v39 = vpop.f32.mrf.mxu0  ;;  %2502 = vmatpush.msra.mxu2 %v2333_v7 }
 0x25f   : > { %11658 = vst [vmem:[#allocation26_spill] sm:$0xff] %v8581_v26  ;;  %2071 = vmatmul.f32.gmra.mxu0 %v1998_v14  ;;  %v8596_v50 = vpop.f32.mrf.mxu1  ;;  %v2000_v26 = vld [vmem:[#allocation2 + $0x7a] sm:$0xff] }
 0x260   : > { %1569 = vmatmul.f32.gmra.mxu1 %v8573_v62 }
 0x262   : > { %1764 = vmatmul.f32.gmra.mxu2 %v8563_v60  ;;  %v1149_v25 = vpop.f32.mrf.mxu3 }
 0x263   : > { %1877 = vmatmul.f32.gmra.mxu3 %v1804_v28  ;;  %v1205_v6 = vadd.f32 %v1149_v25, %v8337_v16  ;;  %v8598_v28 = vpop.f32.mrf.mxu2  ;;  %v1806_v25 = vld [vmem:[#allocation2 + $0x79] sm:$0xff] }
 0x265   : > { %v8591_v5 = vadd.f32 %v1343_v39, %v1205_v6 }
 0x266   : > { %v1346_v47 = vpop.f32.mrf.mxu0 }
 0x267   : > { %11659 = vst [vmem:[#allocation11_spill] sm:$0xff] %v8591_v5  ;;  %2074 = vmatmul.f32.gmra.mxu0 %v1999_v53  ;;  %v6626_v53 = vld [vmem:[%s11550_s3 + $0xa0] sm:$0xff]  ;;  %v8606_v6 = vpop.f32.mrf.mxu1 }
 0x268   : > { %2397 = vmatpush.msra.mxu1 %v6626_v53  ;;  %v2001_v5 = vld [vmem:[#allocation2 + $0x82] sm:$0xff]  ;;  %v1808_v53 = vld [vmem:[#allocation2 + $0x91] sm:$0xff] }
 0x26a   : > { %v1152_v14 = vpop.f32.mrf.mxu3 }
 0x26b   : > { %1880 = vmatmul.f32.gmra.mxu3 %v1805_v29  ;;  %v1206_v8 = vadd.f32 %v1152_v14, %v8348_v52  ;;  %v8609_v7 = vpop.f32.mrf.mxu2  ;;  %v1807_v14 = vld [vmem:[#allocation2 + $0x81] sm:$0xff] }
 0x26d   : > { %v8601_v36 = vadd.f32 %v1346_v47, %v1206_v8 }
 0x26e   : > { %v1349_v16 = vpop.f32.mrf.mxu0 }
 0x26f   : > { %11660 = vst [vmem:[#allocation19_spill] sm:$0xff] %v8601_v36  ;;  %2077 = vmatmul.f32.gmra.mxu0 %v2000_v26  ;;  %v2332_v26 = vld [vmem:[%s11550_s3 + $0x58] sm:$0xff] }
 0x270   : > { %2503 = vmatpush.msra.mxu2 %v2332_v26  ;;  %v2003_v26 = vld [vmem:[#allocation2 + $0x9a] sm:$0xff] }
 0x272   : > { %v1155_v39 = vpop.f32.mrf.mxu3 }
 0x273   : > { %1883 = vmatmul.f32.gmra.mxu3 %v1806_v25  ;;  %v1207_v29 = vadd.f32 %v1155_v39, %v8362_v15  ;;  %v8617_v25 = vpop.f32.mrf.mxu1  ;;  %v2002_v39 = vld [vmem:[#allocation2 + $0x92] sm:$0xff]  ;;  %v8621_v1 = vpop.f32.mrf.mxu2 }
 0x275   : > { %v8611_v62 = vadd.f32 %v1349_v16, %v1207_v29 }
 0x276   : > { %v1352_v52 = vpop.f32.mrf.mxu0 }
 0x277   : > { %11661 = vst [vmem:[#allocation13_spill] sm:$0xff] %v8611_v62  ;;  %2080 = vmatmul.f32.gmra.mxu0 %v2001_v5  ;;  %v6625_v5 = vld [vmem:[%s11550_s3 + $0x98] sm:$0xff] }
 0x278   : > { %2398 = vmatpush.msra.mxu1 %v6625_v5  ;;  %v1810_v5 = vld [vmem:[#allocation2 + $0xa9] sm:$0xff] }
 0x27a   : > { %v1158_v47 = vpop.f32.mrf.mxu3 }
 0x27b   : > { %1886 = vmatmul.f32.gmra.mxu3 %v1807_v14  ;;  %v1208_v8 = vadd.f32 %v1158_v47, %v8373_v13  ;;  %v1809_v14 = vld [vmem:[#allocation2 + $0x99] sm:$0xff]  ;;  %v8629_v62 = vpop.f32.mrf.mxu1 }
 0x27c   : > { %11664 = vst [vmem:[#allocation28_spill] sm:$0xff] %v8629_v62 }
 0x27d   : > { %v8619_v36 = vadd.f32 %v1352_v52, %v1208_v8  ;;  %v2331_v52 = vld [vmem:[%s11550_s3 + $0x50] sm:$0xff]  ;;  %v8634_v8 = vpop.f32.mrf.mxu2 }
 0x27e   : > { %v1355_v15 = vpop.f32.mrf.mxu0  ;;  %2504 = vmatpush.msra.mxu2 %v2331_v52 }
 0x27f   : > { %11662 = vst [vmem:[#allocation9_spill] sm:$0xff] %v8619_v36  ;;  %2083 = vmatmul.f32.gmra.mxu0 %v2002_v39 }
 0x282   : > { %v1161_v16 = vpop.f32.mrf.mxu3 }
 0x283   : > { %1889 = vmatmul.f32.gmra.mxu3 %v1808_v53  ;;  %v1209_v29 = vadd.f32 %v1161_v16, %v8218_v49  ;;  %v2004_v16 = vld [vmem:[#allocation2 + $0xaa] sm:$0xff] }
 0x285   : > { %v8627_v47 = vadd.f32 %v1355_v15, %v1209_v29  ;;  %v6624_v15 = vld [vmem:[%s11550_s3 + $0x90] sm:$0xff]  ;;  %v8642_v29 = vpop.f32.mrf.mxu1 }
 0x286   : > { %v1358_v13 = vpop.f32.mrf.mxu0  ;;  %11666 = vst [vmem:[#allocation25_spill] sm:$0xff] %v8642_v29  ;;  %2399 = vmatpush.msra.mxu1 %v6624_v15 }
 0x287   : > { %11663 = vst [vmem:[#allocation20_spill] sm:$0xff] %v8627_v47  ;;  %2086 = vmatmul.f32.gmra.mxu0 %v2003_v26  ;;  %v2005_v47 = vld [vmem:[#allocation2 + $0xb2] sm:$0xff] }
 0x28a   : > { %v1164_v53 = vpop.f32.mrf.mxu3 }
 0x28b   : > { %1892 = vmatmul.f32.gmra.mxu3 %v1809_v14  ;;  %v1210_v39 = vadd.f32 %v1164_v53, %v8231_v4  ;;  %v8644_v14 = vpop.f32.mrf.mxu2  ;;  %v1811_v53 = vld [vmem:[#allocation2 + $0xb1] sm:$0xff] }
 0x28d   : > { %v8637_v36 = vadd.f32 %v1358_v13, %v1210_v39  ;;  %v2330_v13 = vld [vmem:[%s11550_s3 + $0x48] sm:$0xff]  ;;  %v8652_v39 = vpop.f32.mrf.mxu1 }
 0x28e   : > { %v1361_v49 = vpop.f32.mrf.mxu0  ;;  %2505 = vmatpush.msra.mxu2 %v2330_v13 }
 0x28f   : > { %11665 = vst [vmem:[#allocation12_spill] sm:$0xff] %v8637_v36  ;;  %2089 = vmatmul.f32.gmra.mxu0 %v2004_v16  ;;  %v2006_v36 = vld [vmem:[#allocation2 + $0xc2] sm:$0xff] }
 0x293   : > { %1895 = vmatmul.f32.gmra.mxu3 %v1810_v5  ;;  %v8655_v15 = vpop.f32.mrf.mxu2 }
 0x294   : > { %v1167_v26 = vpop.f32.mrf.mxu3 }
 0x295   : > { %v1211_v52 = vadd.f32 %v1167_v26, %v8244_v59  ;;  %v1812_v26 = vld [vmem:[#allocation2 + $0xc1] sm:$0xff] }
 0x296   : > { %v1364_v4 = vpop.f32.mrf.mxu0 }
 0x297   : > { %v8647_v62 = vadd.f32 %v1361_v49, %v1211_v52  ;;  %2092 = vmatmul.f32.gmra.mxu0 %v2005_v47  ;;  %v6623_v47 = vld [vmem:[%s11550_s3 + $0x88] sm:$0xff] }
 0x298   : > { %2400 = vmatpush.msra.mxu1 %v6623_v47  ;;  %v2326_v47 = vld [vmem:[%s11550_s3 + $0x28] sm:$0xff] }
 0x299   : > { %11667 = vst [vmem:[#allocation14_spill] sm:$0xff] %v8647_v62 }
 0x29b   : > { %1898 = vmatmul.f32.gmra.mxu3 %v1811_v53  ;;  %v8666_v53 = vpop.f32.mrf.mxu1 }
 0x29c   : > { %v1170_v5 = vpop.f32.mrf.mxu3 }
 0x29d   : > { %v1212_v16 = vadd.f32 %v1170_v5, %v8258_v43  ;;  %v2329_v43 = vld [vmem:[%s11550_s3 + $0x40] sm:$0xff]  ;;  %v1813_v5 = vld [vmem:[#allocation2 + $0xc9] sm:$0xff] }
 0x29e   : > { %v1367_v59 = vpop.f32.mrf.mxu0  ;;  %2506 = vmatpush.msra.mxu2 %v2329_v43 }
 0x29f   : > { %v8657_v29 = vadd.f32 %v1364_v4, %v1212_v16  ;;  %2095 = vmatmul.f32.gmra.mxu0 %v2006_v36  ;;  %v2007_v4 = vld [vmem:[#allocation2 + $0xca] sm:$0xff]  ;;  %v2328_v36 = vld [vmem:[%s11550_s3 + $0x38] sm:$0xff] }
 0x2a0   : > { %2507 = vmatpush.msra.mxu2 %v2328_v36 }
 0x2a1   : > { %11668 = vst [vmem:[#allocation16_spill] sm:$0xff] %v8657_v29  ;;  %v2337_v29 = vld [vmem:[#allocation3 + $0x1] sm:$0xff] }
 0x2a3   : > { %1901 = vmatmul.f32.gmra.mxu3 %v1812_v26  ;;  %v8673_v26 = vpop.f32.mrf.mxu2 }
 0x2a6   : > { %v1173_v49 = vpop.f32.mrf.mxu3  ;;  %v1370_v13 = vpop.f32.mrf.mxu0 }
 0x2a7   : > { %v1213_v52 = vadd.f32 %v1173_v49, %v8272_v24  ;;  %2098 = vmatmul.f32.gmra.mxu0 %v2007_v4  ;;  %v2327_v24 = vld [vmem:[%s11550_s3 + $0x30] sm:$0xff]  ;;  %v2008_v4 = vld [vmem:[#allocation2 + $0xda] sm:$0xff] }
 0x2a8   : > { %2508 = vmatpush.msra.mxu2 %v2327_v24  ;;  %v2324_v24 = vld [vmem:[%s11550_s3 + $0x18] sm:$0xff] }
 0x2a9   : > { %v8668_v16 = vadd.f32 %v1367_v59, %v1213_v52  ;;  %v2325_v52 = vld [vmem:[%s11550_s3 + $0x20] sm:$0xff] }
 0x2aa   : > { %2509 = vmatpush.msra.mxu2 %v2326_v47 }
 0x2ab   : > { %11669 = vst [vmem:[#allocation18_spill] sm:$0xff] %v8668_v16  ;;  %1904 = vmatmul.f32.gmra.mxu3 %v1813_v5  ;;  %v1814_v5 = vld [vmem:[#allocation2 + $0xd9] sm:$0xff]  ;;  %v8690_v16 = vpop.f32.mrf.mxu1  ;;  %v8695_v47 = vpop.f32.mrf.mxu2 }
 0x2ac   : > { %2510 = vmatpush.msra.mxu2 %v2325_v52 }
 0x2ae   : > { %v1176_v59 = vpop.f32.mrf.mxu3  ;;  %v1373_v43 = vpop.f32.mrf.mxu0  ;;  %2511 = vmatpush.msra.mxu2 %v2324_v24  ;;  %v1815_v24 = vld [vmem:[#allocation2 + $0xe1] sm:$0xff] }
 0x2af   : > { %v1214_v49 = vadd.f32 %v1176_v59, %v8286_v32  ;;  %2101 = vmatmul.f32.gmra.mxu0 %v2008_v4  ;;  %v6622_v32 = vld [vmem:[%s11550_s3 + $0x80] sm:$0xff]  ;;  %v2322_v59 = vld [vmem:[%s11550_s3 + $0x8] sm:$0xff] }
 0x2b0   : > { %2401 = vmatpush.msra.mxu1 %v6622_v32  ;;  %v2009_v32 = vld [vmem:[#allocation2 + $0xe2] sm:$0xff] }
 0x2b1   : > { %v8685_v36 = vadd.f32 %v1370_v13, %v1214_v49  ;;  %v2323_v13 = vld [vmem:[%s11550_s3 + $0x10] sm:$0xff]  ;;  %2402 = vmatmul.f32.vlgmr.msra.gmra.mxu1 %v2337_v29 }
 0x2b2   : > { %2512 = vmatpush.msra.mxu2 %v2323_v13  ;;  %v6653_v13 = vld [vmem:[%s11550_s3 + $0x178] sm:$0xff] }
 0x2b3   : > { %11670 = vst [vmem:[#allocation29_spill] sm:$0xff] %v8685_v36  ;;  %1907 = vmatmul.f32.gmra.mxu3 %v1814_v5  ;;  %v2321_v5 = vld [vmem:[%s11550_s3] sm:$0xff] }
 0x2b4   : > { %2513 = vmatpush.msra.mxu2 %v2322_v59  ;;  %2661 = vmatpush.msrb.mxu3 %v6653_v13  ;;  %v8715_v59 = vpop.f32.mrf.mxu2  ;;  %v6684_v13 = vld [vmem:[%s11550_s3 + $0x270] sm:$0xff] }
 0x2b6   : > { %v1179_v49 = vpop.f32.mrf.mxu3  ;;  %v1376_v4 = vpop.f32.mrf.mxu0  ;;  %2514 = vmatpush.msra.mxu2 %v2321_v5  ;;  %v2010_v5 = vld [vmem:[#allocation2 + $0xf2] sm:$0xff] }
 0x2b7   : > { %v1215_v52 = vadd.f32 %v1179_v49, %v8300_v34  ;;  %2515 = vmatmul.f32.vlgmr.msra.gmra.mxu2 %v8563_v60  ;;  %2104 = vmatmul.f32.gmra.mxu0 %v2009_v32  ;;  %v8713_v34 = vpop.f32.mrf.mxu1  ;;  %v6685_v32 = vld [vmem:[%s11550_s3 + $0x278] sm:$0xff] }
 0x2b8   : > { %11672 = vst [vmem:[#allocation22_spill] sm:$0xff] %v8713_v34  ;;  %3049 = vmatpush.msrb.mxu1 %v6685_v32 }
 0x2b9   : > { %v8707_v36 = vadd.f32 %v1373_v43, %v1215_v52  ;;  %v1816_v52 = vld [vmem:[#allocation2 + $0xf1] sm:$0xff] }
 0x2ba   : > { %3050 = vmatpush.msrb.mxu1 %v6684_v13  ;;  %v6650_v13 = vld [vmem:[%s11550_s3 + $0x160] sm:$0xff] }
 0x2bb   : > { %11671 = vst [vmem:[#allocation17_spill] sm:$0xff] %v8707_v36  ;;  %1910 = vmatmul.f32.gmra.mxu3 %v1815_v24  ;;  %v6669_v24 = vld [vmem:[%s11550_s3 + $0x1f8] sm:$0xff] }
 0x2bc   : > { %2855 = vmatpush.msrb.mxu0 %v6669_v24  ;;  %v6667_v24 = vld [vmem:[%s11550_s3 + $0x1e8] sm:$0xff]  ;;  %v8750_v32 = vpop.f32.mrf.mxu2 }
 0x2bd   : > { %11675 = vst [vmem:[#allocation32_spill] sm:$0xff] %v8750_v32  ;;  %v6683_v32 = vld [vmem:[%s11550_s3 + $0x268] sm:$0xff] }
 0x2be   : > { %v1182_v49 = vpop.f32.mrf.mxu3  ;;  %v2060_v43 = vpop.f32.mrf.mxu0  ;;  %3051 = vmatpush.msrb.mxu1 %v6683_v32 }
 0x2bf   : > { %v1216_v62 = vadd.f32 %v1182_v49, %v8314_v30  ;;  %2518 = vmatmul.f32.gmra.mxu2 %v8563_v60  ;;  %2107 = vmatmul.f32.gmra.mxu0 %v2010_v5  ;;  %v6652_v30 = vld [vmem:[%s11550_s3 + $0x170] sm:$0xff]  ;;  %v8730_v29 = vpop.f32.mrf.mxu1  ;;  %v6651_v5 = vld [vmem:[%s11550_s3 + $0x168] sm:$0xff] }
 0x2c0   : > { %2662 = vmatpush.msrb.mxu3 %v6652_v30  ;;  %11674 = vst [vmem:[#allocation27_spill] sm:$0xff] %v8730_v29 }
 0x2c1   : > { %v8718_v36 = vadd.f32 %v1376_v4, %v1216_v62  ;;  %v2338_v62 = vld [vmem:[#allocation3 + $0x9] sm:$0xff]  ;;  %v6668_v4 = vld [vmem:[%s11550_s3 + $0x1f0] sm:$0xff] }
 0x2c2   : > { %2405 = vmatmul.f32.gmra.mxu1 %v2338_v62  ;;  %2856 = vmatpush.msrb.mxu0 %v6668_v4 }
 0x2c3   : > { %11673 = vst [vmem:[#allocation23_spill] sm:$0xff] %v8718_v36  ;;  %1913 = vmatmul.f32.gmra.mxu3 %v1816_v52  ;;  %v8742_v52 = vld [vmem:[%s11549_s2] ss:$0 sm:$0xff] }
 0x2c4   : > { %v1817_v36 = vld [vmem:[#allocation2 + $0xf9] sm:$0xff]  ;;  %2663 = vmatpush.msrb.mxu3 %v6651_v5  ;;  %2857 = vmatpush.msrb.mxu0 %v6667_v24  ;;  %v1818_v5 = vld [vmem:[#allocation2 + $0x109] sm:$0xff] }
 0x2c6   : > { %v1866_v60 = vpop.f32.mrf.mxu3  ;;  %v2063_v30 = vpop.f32.mrf.mxu0  ;;  %2664 = vmatpush.msrb.mxu3 %v6650_v13  ;;  %v2013_v13 = vld [vmem:[#allocation2 + $0x112] sm:$0xff] }
 0x2c7   : > { %v1962_v49 = vadd.f32 %v1866_v60, %v8386_v57  ;;  %v2011_v57 = vld [vmem:[#allocation2 + $0xfa] sm:$0xff] }
 0x2c8   : > { %2110 = vmatmul.f32.gmra.mxu0 %v2011_v57  ;;  %v8762_v57 = vpop.f32.mrf.mxu2 }
 0x2c9   : > { %v2156_v60 = vadd.f32 %v2060_v43, %v1962_v49  ;;  %v8760_v43 = vpop.f32.mrf.mxu1 }
 0x2ca   : > { %11676 = vst [vmem:[#allocation24_spill] sm:$0xff] %v8760_v43 }
 0x2cb   : > { %v2192_v62 = vadd.f32 %v8742_v52, %v2156_v60  ;;  %1916 = vmatmul.f32.gmra.mxu3 %v1817_v36  ;;  %v2012_v36 = vld [vmem:[#allocation2 + $0x10a] sm:$0xff] }
 0x2cd   : > { %v2224_v4 = vmax.f32 %v2192_v62, 0.0 }
 0x2ce   : > { %v1869_v29 = vpop.f32.mrf.mxu3  ;;  %v2066_v49 = vpop.f32.mrf.mxu0 }
 0x2cf   : > { %2257 = vst [vmem:[#allocation3 + $0x19] sm:$0xff] %v2224_v4  ;;  %v1963_v34 = vadd.f32 %v1869_v29, %v8398_v45  ;;  %2408 = vmatmul.f32.gmra.mxu1 %v2224_v4 }
 0x2d0   : > { %2113 = vmatmul.f32.gmra.mxu0 %v2012_v36 }
 0x2d1   : > { %v2157_v24 = vadd.f32 %v2063_v30, %v1963_v34  ;;  %v6666_v34 = vld [vmem:[%s11550_s3 + $0x1e0] sm:$0xff]  ;;  %v1819_v30 = vld [vmem:[#allocation2 + $0x111] sm:$0xff]  ;;  %v8772_v36 = vpop.f32.mrf.mxu1 }
 0x2d2   : > { %2858 = vmatpush.msrb.mxu0 %v6666_v34  ;;  %11677 = vst [vmem:[#allocation30_spill] sm:$0xff] %v8772_v36 }
 0x2d3   : > { %v2193_v45 = vadd.f32 %v8742_v52, %v2157_v24  ;;  %1919 = vmatmul.f32.gmra.mxu3 %v1818_v5 }
 0x2d5   : > { %v2225_v29 = vmax.f32 %v2193_v45, 0.0  ;;  %v8775_v45 = vpop.f32.mrf.mxu2 }
 0x2d6   : > { %v1872_v60 = vpop.f32.mrf.mxu3  ;;  %v8765_v62 = vld [vmem:[#allocation3 + $0x18] sm:$0xff]  ;;  %v2069_v32 = vpop.f32.mrf.mxu0 }
 0x2d7   : > { %2258 = vst [vmem:[#allocation3 + $0x21] sm:$0xff] %v2225_v29  ;;  %v1964_v4 = vadd.f32 %v1872_v60, %v8414_v3  ;;  %2521 = vmatmul.f32.gmra.mxu2 %v8765_v62  ;;  %2411 = vmatmul.f32.gmra.mxu1 %v2225_v29 }
 0x2d8   : > { %2116 = vmatmul.f32.gmra.mxu0 %v2013_v13 }
 0x2d9   : > { %v2158_v5 = vadd.f32 %v2066_v49, %v1964_v4  ;;  %v6682_v49 = vld [vmem:[%s11550_s3 + $0x260] sm:$0xff]  ;;  %v6649_v4 = vld [vmem:[%s11550_s3 + $0x158] sm:$0xff] }
 0x2da   : > { %3052 = vmatpush.msrb.mxu1 %v6682_v49  ;;  %2665 = vmatpush.msrb.mxu3 %v6649_v4 }
 0x2db   : > { %v2194_v24 = vadd.f32 %v8742_v52, %v2158_v5  ;;  %1922 = vmatmul.f32.gmra.mxu3 %v1819_v30 }
 0x2dd   : > { %v2226_v3 = vmax.f32 %v2194_v24, 0.0  ;;  %v8792_v24 = vpop.f32.mrf.mxu2 }
 0x2de   : > { %v1875_v60 = vpop.f32.mrf.mxu3  ;;  %v8777_v29 = vld [vmem:[#allocation3 + $0x20] sm:$0xff]  ;;  %v2072_v34 = vpop.f32.mrf.mxu0 }
 0x2df   : > { %2259 = vst [vmem:[#allocation3 + $0x31] sm:$0xff] %v2226_v3  ;;  %v1965_v43 = vadd.f32 %v1875_v60, %v8427_v9  ;;  %2524 = vmatmul.f32.gmra.mxu2 %v8777_v29  ;;  %2414 = vmatmul.f32.gmra.mxu1 %v2226_v3  ;;  %v8790_v9 = vpop.f32.mrf.mxu1 }
 0x2e0   : > { %2119 = vmatmul.f32.gmra.mxu0 %v8454_v18 }
 0x2e1   : > { %v2159_v30 = vadd.f32 %v2069_v32, %v1965_v43 }
 0x2e3   : > { %v2195_v13 = vadd.f32 %v8742_v52, %v2159_v30  ;;  %1925 = vmatmul.f32.gmra.mxu3 %v8396_v22  ;;  %v6665_v22 = vld [vmem:[%s11550_s3 + $0x1d8] sm:$0xff] }
 0x2e4   : > { %2859 = vmatpush.msrb.mxu0 %v6665_v22 }
 0x2e5   : > { %v2227_v5 = vmax.f32 %v2195_v13, 0.0 }
 0x2e6   : > { %v1878_v3 = vpop.f32.mrf.mxu3  ;;  %v8794_v60 = vld [vmem:[#allocation3 + $0x30] sm:$0xff]  ;;  %v2075_v43 = vpop.f32.mrf.mxu0 }
 0x2e7   : > { %2260 = vst [vmem:[#allocation3 + $0x39] sm:$0xff] %v2227_v5  ;;  %v1966_v36 = vadd.f32 %v1878_v3, %v8442_v37  ;;  %2527 = vmatmul.f32.gmra.mxu2 %v8794_v60  ;;  %2417 = vmatmul.f32.gmra.mxu1 %v2227_v5  ;;  %v8804_v4 = vpop.f32.mrf.mxu1 }
 0x2e8   : > { %2122 = vmatmul.f32.gmra.mxu0 %v8472_v19  ;;  %v8816_v19 = vpop.f32.mrf.mxu2 }
 0x2e9   : > { %v2160_v18 = vadd.f32 %v2072_v34, %v1966_v36  ;;  %v6681_v36 = vld [vmem:[%s11550_s3 + $0x258] sm:$0xff] }
 0x2ea   : > { %3053 = vmatpush.msrb.mxu1 %v6681_v36 }
 0x2eb   : > { %v2196_v32 = vadd.f32 %v8742_v52, %v2160_v18  ;;  %1928 = vmatmul.f32.gmra.mxu3 %v8410_v46  ;;  %v6648_v46 = vld [vmem:[%s11550_s3 + $0x150] sm:$0xff] }
 0x2ec   : > { %2666 = vmatpush.msrb.mxu3 %v6648_v46 }
 0x2ed   : > { %v2228_v49 = vmax.f32 %v2196_v32, 0.0 }
 0x2ee   : > { %v1881_v37 = vpop.f32.mrf.mxu3  ;;  %v8806_v30 = vld [vmem:[#allocation3 + $0x38] sm:$0xff]  ;;  %v2078_v34 = vpop.f32.mrf.mxu0 }
 0x2ef   : > { %2261 = vst [vmem:[#allocation3 + $0x49] sm:$0xff] %v2228_v49  ;;  %v1967_v13 = vadd.f32 %v1881_v37, %v8456_v48  ;;  %2530 = vmatmul.f32.gmra.mxu2 %v8806_v30  ;;  %2420 = vmatmul.f32.gmra.mxu1 %v2228_v49  ;;  %v8828_v49 = vpop.f32.mrf.mxu1 }
 0x2f0   : > { %2125 = vmatmul.f32.gmra.mxu0 %v8488_v42  ;;  %v8830_v42 = vpop.f32.mrf.mxu2 }
 0x2f1   : > { %v2161_v5 = vadd.f32 %v2075_v43, %v1967_v13  ;;  %v6664_v43 = vld [vmem:[%s11550_s3 + $0x1d0] sm:$0xff] }
 0x2f2   : > { %2860 = vmatpush.msrb.mxu0 %v6664_v43 }
 0x2f3   : > { %v2197_v3 = vadd.f32 %v8742_v52, %v2161_v5  ;;  %1931 = vmatmul.f32.gmra.mxu3 %v8423_v40 }
 0x2f5   : > { %v2229_v48 = vmax.f32 %v2197_v3, 0.0 }
 0x2f6   : > { %v1884_v22 = vpop.f32.mrf.mxu3  ;;  %v8821_v18 = vld [vmem:[#allocation3 + $0x48] sm:$0xff]  ;;  %v2081_v37 = vpop.f32.mrf.mxu0 }
 0x2f7   : > { %2262 = vst [vmem:[#allocation3 + $0x51] sm:$0xff] %v2229_v48  ;;  %v1968_v32 = vadd.f32 %v1884_v22, %v8474_v51  ;;  %2533 = vmatmul.f32.gmra.mxu2 %v8821_v18  ;;  %2423 = vmatmul.f32.gmra.mxu1 %v2229_v48  ;;  %v8847_v22 = vpop.f32.mrf.mxu1 }
 0x2f8   : > { %2128 = vmatmul.f32.gmra.mxu0 %v8506_v54  ;;  %v1581_v54 = vadd.f32 %v8552_v31, %v8440_v12  ;;  %v6663_v12 = vld [vmem:[%s11550_s3 + $0x1c8] sm:$0xff] }
 0x2f9   : > { %v2162_v40 = vadd.f32 %v2078_v34, %v1968_v32  ;;  %v6680_v34 = vld [vmem:[%s11550_s3 + $0x250] sm:$0xff]  ;;  %v8852_v32 = vpop.f32.mrf.mxu2  ;;  %2861 = vmatpush.msrb.mxu0 %v6663_v12 }
 0x2fa   : > { %3054 = vmatpush.msrb.mxu1 %v6680_v34  ;;  %v1776_v43 = vadd.f32 %v8571_v55, %v1581_v54 }
 0x2fb   : > { %v2198_v13 = vadd.f32 %v8742_v52, %v2162_v40  ;;  %1934 = vmatmul.f32.gmra.mxu3 %v8438_v20  ;;  %v6647_v20 = vld [vmem:[%s11550_s3 + $0x148] sm:$0xff] }
 0x2fc   : > { %2667 = vmatpush.msrb.mxu3 %v6647_v20 }
 0x2fd   : > { %v2230_v51 = vmax.f32 %v2198_v13, 0.0 }
 0x2fe   : > { %v1887_v36 = vpop.f32.mrf.mxu3  ;;  %v8835_v46 = vld [vmem:[#allocation3 + $0x50] sm:$0xff]  ;;  %v2084_v3 = vpop.f32.mrf.mxu0 }
 0x2ff   : > { %2263 = vst [vmem:[#allocation3 + $0x61] sm:$0xff] %v2230_v51  ;;  %v1969_v5 = vadd.f32 %v1887_v36, %v8490_v44  ;;  %2536 = vmatmul.f32.gmra.mxu2 %v8835_v46  ;;  %2426 = vmatmul.f32.gmra.mxu1 %v2230_v51 }
 0x300   : > { %2131 = vmatmul.f32.gmra.mxu0 %v8516_v41  ;;  %v1582_v41 = vadd.f32 %v8567_v11, %v8452_v63  ;;  %v6679_v63 = vld [vmem:[%s11550_s3 + $0x248] sm:$0xff]  ;;  %v1583_v11 = vadd.f32 %v8583_v61, %v8470_v17  ;;  %v6662_v17 = vld [vmem:[%s11550_s3 + $0x1c0] sm:$0xff]  ;;  %v6645_v61 = vld [vmem:[%s11550_s3 + $0x138] sm:$0xff] }
 0x301   : > { %v2163_v48 = vadd.f32 %v2081_v37, %v1969_v5  ;;  %v8866_v37 = vpop.f32.mrf.mxu1  ;;  %v8869_v20 = vpop.f32.mrf.mxu2  ;;  %3055 = vmatpush.msrb.mxu1 %v6679_v63  ;;  %2862 = vmatpush.msrb.mxu0 %v6662_v17 }
 0x302   : > { %v1777_v5 = vadd.f32 %v8588_v0, %v1582_v41 }
 0x303   : > { %v2199_v44 = vadd.f32 %v8742_v52, %v2163_v48  ;;  %1937 = vmatmul.f32.gmra.mxu3 %v8450_v35 }
 0x305   : > { %v2231_v40 = vmax.f32 %v2199_v44, 0.0 }
 0x306   : > { %v1890_v13 = vpop.f32.mrf.mxu3  ;;  %v8855_v51 = vld [vmem:[#allocation3 + $0x60] sm:$0xff]  ;;  %v2087_v35 = vpop.f32.mrf.mxu0 }
 0x307   : > { %2264 = vst [vmem:[#allocation3 + $0x69] sm:$0xff] %v2231_v40  ;;  %v1970_v36 = vadd.f32 %v1890_v13, %v1776_v43  ;;  %2539 = vmatmul.f32.gmra.mxu2 %v8855_v51  ;;  %2429 = vmatmul.f32.gmra.mxu1 %v2231_v40  ;;  %v1778_v43 = vadd.f32 %v8598_v28, %v1583_v11  ;;  %v6661_v28 = vld [vmem:[%s11550_s3 + $0x1b8] sm:$0xff]  ;;  %v6659_v11 = vld [vmem:[%s11550_s3 + $0x1a8] sm:$0xff] }
 0x308   : > { %2134 = vmatmul.f32.gmra.mxu0 %v8528_v2 }
 0x309   : > { %v2164_v31 = vadd.f32 %v2084_v3, %v1970_v36  ;;  %v8886_v13 = vpop.f32.mrf.mxu1  ;;  %2863 = vmatpush.msrb.mxu0 %v6661_v28 }
 0x30b   : > { %v2200_v55 = vadd.f32 %v8742_v52, %v2164_v31  ;;  %1940 = vmatmul.f32.gmra.mxu3 %v8468_v21  ;;  %v6646_v21 = vld [vmem:[%s11550_s3 + $0x140] sm:$0xff] }
 0x30c   : > { %2668 = vmatpush.msrb.mxu3 %v6646_v21  ;;  %v1828_v21 = vld [vmem:[#allocation2 + $0x181] sm:$0xff] }
 0x30d   : > { %v2232_v34 = vmax.f32 %v2200_v55, 0.0 }
 0x30e   : > { %v1893_v54 = vpop.f32.mrf.mxu3  ;;  %v8871_v48 = vld [vmem:[#allocation3 + $0x68] sm:$0xff]  ;;  %v2090_v2 = vpop.f32.mrf.mxu0  ;;  %2669 = vmatpush.msrb.mxu3 %v6645_v61 }
 0x30f   : > { %2265 = vst [vmem:[#allocation3 + $0x79] sm:$0xff] %v2232_v34  ;;  %v1971_v44 = vadd.f32 %v1893_v54, %v1777_v5  ;;  %2542 = vmatmul.f32.gmra.mxu2 %v8871_v48  ;;  %2432 = vmatmul.f32.gmra.mxu1 %v2232_v34 }
 0x310   : > { %2137 = vmatmul.f32.gmra.mxu0 %v8537_v58 }
 0x311   : > { %v2165_v0 = vadd.f32 %v2087_v35, %v1971_v44  ;;  %v1584_v35 = vadd.f32 %v8596_v50, %v8486_v38  ;;  %v6644_v38 = vld [vmem:[%s11550_s3 + $0x130] sm:$0xff]  ;;  %v8920_v50 = vpop.f32.mrf.mxu1 }
 0x312   : > { %2670 = vmatpush.msrb.mxu3 %v6644_v38 }
 0x313   : > { %v2201_v3 = vadd.f32 %v8742_v52, %v2165_v0  ;;  %1943 = vmatmul.f32.gmra.mxu3 %v8483_v33  ;;  %v8894_v33 = vpop.f32.mrf.mxu2  ;;  %v1779_v5 = vadd.f32 %v8609_v7, %v1584_v35  ;;  %v1585_v0 = vadd.f32 %v8606_v6, %v8504_v27  ;;  %v6641_v27 = vld [vmem:[%s11550_s3 + $0x118] sm:$0xff]  ;;  %v6640_v35 = vld [vmem:[%s11550_s3 + $0x110] sm:$0xff] }
 0x314   : > { %v6657_v6 = vld [vmem:[%s11550_s3 + $0x198] sm:$0xff] }
 0x315   : > { %v2233_v40 = vmax.f32 %v2201_v3, 0.0  ;;  %v1780_v17 = vadd.f32 %v8621_v1, %v1585_v0  ;;  %v6639_v1 = vld [vmem:[%s11550_s3 + $0x108] sm:$0xff] }
 0x316   : > { %v1896_v36 = vpop.f32.mrf.mxu3  ;;  %v8888_v12 = vld [vmem:[#allocation3 + $0x78] sm:$0xff]  ;;  %v2093_v58 = vpop.f32.mrf.mxu0 }
 0x317   : > { %2266 = vst [vmem:[#allocation3 + $0x81] sm:$0xff] %v2233_v40  ;;  %v1972_v41 = vadd.f32 %v1896_v36, %v1778_v43  ;;  %2545 = vmatmul.f32.gmra.mxu2 %v8888_v12  ;;  %2435 = vmatmul.f32.gmra.mxu1 %v2233_v40  ;;  %v6642_v43 = vld [vmem:[%s11550_s3 + $0x120] sm:$0xff] }
 0x318   : > { %2140 = vmatmul.f32.gmra.mxu0 %v8546_v56  ;;  %v6678_v56 = vld [vmem:[%s11550_s3 + $0x240] sm:$0xff] }
 0x319   : > { %v2166_v31 = vadd.f32 %v2090_v2, %v1972_v41  ;;  %v6643_v2 = vld [vmem:[%s11550_s3 + $0x128] sm:$0xff]  ;;  %3056 = vmatpush.msrb.mxu1 %v6678_v56  ;;  %v6658_v40 = vld [vmem:[%s11550_s3 + $0x1a0] sm:$0xff] }
 0x31a   : > { %2671 = vmatpush.msrb.mxu3 %v6643_v2  ;;  %v6654_v56 = vld [vmem:[%s11550_s3 + $0x180] sm:$0xff]  ;;  %v6701_v2 = vld [vmem:[%s11550_s3 + $0x2f8] sm:$0xff] }
 0x31b   : > { %v2202_v55 = vadd.f32 %v8742_v52, %v2166_v31  ;;  %1946 = vmatmul.f32.gmra.mxu3 %v8501_v10  ;;  %v6660_v10 = vld [vmem:[%s11550_s3 + $0x1b0] sm:$0xff]  ;;  %v8936_v36 = vpop.f32.mrf.mxu2  ;;  %3243 = vmatpush.msrb.mxu2 %v6701_v2  ;;  %v1831_v2 = vld [vmem:[#allocation2 + $0x1a1] sm:$0xff] }
 0x31c   : > { %2864 = vmatpush.msrb.mxu0 %v6660_v10  ;;  %2672 = vmatpush.msrb.mxu3 %v6642_v43  ;;  %v6656_v31 = vld [vmem:[%s11550_s3 + $0x190] sm:$0xff]  ;;  %v6638_v10 = vld [vmem:[%s11550_s3 + $0x100] sm:$0xff] }
 0x31d   : > { %v2234_v34 = vmax.f32 %v2202_v55, 0.0 }
 0x31e   : > { %v1899_v54 = vpop.f32.mrf.mxu3  ;;  %v8908_v44 = vld [vmem:[#allocation3 + $0x80] sm:$0xff]  ;;  %v2096_v7 = vpop.f32.mrf.mxu0  ;;  %2865 = vmatpush.msrb.mxu0 %v6659_v11  ;;  %2673 = vmatpush.msrb.mxu3 %v6641_v27  ;;  %v6677_v27 = vld [vmem:[%s11550_s3 + $0x238] sm:$0xff] }
 0x31f   : > { %2267 = vst [vmem:[#allocation3 + $0x91] sm:$0xff] %v2234_v34  ;;  %v1973_v63 = vadd.f32 %v1899_v54, %v1779_v5  ;;  %2548 = vmatmul.f32.gmra.mxu2 %v8908_v44  ;;  %2438 = vmatmul.f32.gmra.mxu1 %v2234_v34  ;;  %v1829_v5 = vld [vmem:[#allocation2 + $0x189] sm:$0xff] }
 0x320   : > { %2143 = vmatmul.f32.gmra.mxu0 %v8557_v23  ;;  %2674 = vmatpush.msrb.mxu3 %v6640_v35  ;;  %v6655_v34 = vld [vmem:[%s11550_s3 + $0x188] sm:$0xff]  ;;  %v11678_v54 = vld [vmem:[#allocation5_spill] sm:$0xff] }
 0x321   : > { %v2167_v3 = vadd.f32 %v2093_v58, %v1973_v63  ;;  %2866 = vmatpush.msrb.mxu0 %v6658_v40  ;;  %v1586_v63 = vadd.f32 %v8617_v25, %v11678_v54  ;;  %v11679_v25 = vld [vmem:[#allocation15_spill] sm:$0xff]  ;;  %3057 = vmatpush.msrb.mxu1 %v6677_v27 }
 0x322   : > { %2675 = vmatpush.msrb.mxu3 %v6639_v1 }
 0x323   : > { %v2203_v41 = vadd.f32 %v8742_v52, %v2167_v3  ;;  %1949 = vmatmul.f32.gmra.mxu3 %v1828_v21  ;;  %2867 = vmatpush.msrb.mxu0 %v6657_v6  ;;  %v8970_v21 = vpop.f32.mrf.mxu1  ;;  %v1781_v0 = vadd.f32 %v8634_v8, %v1586_v63  ;;  %v11681_v8 = vld [vmem:[#allocation28_spill] sm:$0xff] }
 0x324   : > { %2676 = vmatpush.msrb.mxu3 %v6638_v10 }
 0x325   : > { %v2235_v58 = vmax.f32 %v2203_v41, 0.0  ;;  %2868 = vmatpush.msrb.mxu0 %v6656_v31 }
 0x326   : > { %v1902_v61 = vpop.f32.mrf.mxu3  ;;  %v8947_v28 = vld [vmem:[#allocation3 + $0x90] sm:$0xff]  ;;  %v2099_v55 = vpop.f32.mrf.mxu0 }
 0x327   : > { %2268 = vst [vmem:[#allocation3 + $0x99] sm:$0xff] %v2235_v58  ;;  %v1974_v23 = vadd.f32 %v1902_v61, %v1780_v17  ;;  %2551 = vmatmul.f32.gmra.mxu2 %v8947_v28  ;;  %2441 = vmatmul.f32.gmra.mxu1 %v2235_v58  ;;  %v1830_v17 = vld [vmem:[#allocation2 + $0x199] sm:$0xff]  ;;  %v11680_v61 = vld [vmem:[#allocation8_spill] sm:$0xff] }
 0x328   : > { %2869 = vmatpush.msrb.mxu0 %v6655_v34  ;;  %v2024_v58 = vld [vmem:[#allocation2 + $0x19a] sm:$0xff] }
 0x329   : > { %v2168_v38 = vadd.f32 %v2096_v7, %v1974_v23  ;;  %2146 = vmatmul.f32.gmra.mxu0 %v11679_v25  ;;  %v8977_v7 = vpop.f32.mrf.mxu2  ;;  %v1587_v23 = vadd.f32 %v11681_v8, %v11680_v61  ;;  %v11683_v25 = vld [vmem:[#allocation25_spill] sm:$0xff] }
 0x32a   : > { %2870 = vmatpush.msrb.mxu0 %v6654_v56 }
 0x32b   : > { %v2204_v11 = vadd.f32 %v8742_v52, %v2168_v38  ;;  %1952 = vmatmul.f32.gmra.mxu3 %v1829_v5  ;;  %v8989_v1 = vpop.f32.mrf.mxu1  ;;  %v1782_v5 = vadd.f32 %v8644_v14, %v1587_v23  ;;  %v11682_v14 = vld [vmem:[#allocation21_spill] sm:$0xff] }
 0x32d   : > { %v2236_v3 = vmax.f32 %v2204_v11, 0.0  ;;  %v2025_v11 = vld [vmem:[#allocation2 + $0x1a2] sm:$0xff] }
 0x32e   : > { %v1905_v43 = vpop.f32.mrf.mxu3  ;;  %v8980_v40 = vld [vmem:[#allocation3 + $0x98] sm:$0xff]  ;;  %v2102_v6 = vpop.f32.mrf.mxu0 }
 0x32f   : > { %2269 = vst [vmem:[#allocation3 + $0xa9] sm:$0xff] %v2236_v3  ;;  %v1975_v41 = vadd.f32 %v1905_v43, %v1781_v0  ;;  %2554 = vmatmul.f32.gmra.mxu2 %v8980_v40  ;;  %2444 = vmatmul.f32.gmra.mxu1 %v2236_v3  ;;  %v1588_v0 = vadd.f32 %v11683_v25, %v11682_v14 }
 0x331   : > { %v2169_v35 = vadd.f32 %v2099_v55, %v1975_v41  ;;  %2149 = vmatmul.f32.gmra.mxu0 %v2024_v58  ;;  %v8992_v54 = vpop.f32.mrf.mxu2  ;;  %v6700_v55 = vld [vmem:[%s11550_s3 + $0x2f0] sm:$0xff]  ;;  %v1783_v27 = vadd.f32 %v8655_v15, %v1588_v0  ;;  %v2613_v0 = vld [vmem:[#allocation3 + $0xa] sm:$0xff] }
 0x332   : > { %3244 = vmatpush.msrb.mxu2 %v6700_v55 }
 0x333   : > { %v2205_v31 = vadd.f32 %v8742_v52, %v2169_v35  ;;  %1955 = vmatmul.f32.gmra.mxu3 %v1830_v17  ;;  %v9003_v41 = vpop.f32.mrf.mxu1 }
 0x335   : > { %v2237_v34 = vmax.f32 %v2205_v31, 0.0  ;;  %v2612_v31 = vld [vmem:[#allocation3 + $0x2] sm:$0xff] }
 0x336   : > { %v1908_v63 = vpop.f32.mrf.mxu3  ;;  %v8994_v38 = vld [vmem:[#allocation3 + $0xa8] sm:$0xff]  ;;  %v2105_v56 = vpop.f32.mrf.mxu0 }
 0x337   : > { %2270 = vst [vmem:[#allocation3 + $0xb1] sm:$0xff] %v2237_v34  ;;  %v1976_v10 = vadd.f32 %v1908_v63, %v1782_v5  ;;  %2557 = vmatmul.f32.gmra.mxu2 %v8994_v38  ;;  %2447 = vmatmul.f32.gmra.mxu1 %v2237_v34  ;;  %v11684_v5 = vld [vmem:[#allocation6_spill] sm:$0xff] }
 0x338   : > { %v1589_v15 = vadd.f32 %v8652_v39, %v11684_v5  ;;  %v6699_v39 = vld [vmem:[%s11550_s3 + $0x2e8] sm:$0xff] }
 0x339   : > { %v2170_v3 = vadd.f32 %v2102_v6, %v1976_v10  ;;  %2152 = vmatmul.f32.gmra.mxu0 %v2025_v11  ;;  %v6676_v6 = vld [vmem:[%s11550_s3 + $0x230] sm:$0xff]  ;;  %v9012_v23 = vpop.f32.mrf.mxu2  ;;  %3245 = vmatpush.msrb.mxu2 %v6699_v39 }
 0x33a   : > { %3058 = vmatpush.msrb.mxu1 %v6676_v6  ;;  %v1784_v55 = vadd.f32 %v8673_v26, %v1589_v15  ;;  %v11686_v15 = vld [vmem:[#allocation7_spill] sm:$0xff] }
 0x33b   : > { %v2206_v43 = vadd.f32 %v8742_v52, %v2170_v3  ;;  %1958 = vmatmul.f32.gmra.mxu3 %v1831_v2  ;;  %v11685_v3 = vld [vmem:[#allocation10_spill] sm:$0xff] }
 0x33c   : > { %v1590_v26 = vadd.f32 %v8666_v53, %v11685_v3  ;;  %v6675_v53 = vld [vmem:[%s11550_s3 + $0x228] sm:$0xff] }
 0x33d   : > { %v2238_v17 = vmax.f32 %v2206_v43, 0.0  ;;  %3059 = vmatpush.msrb.mxu1 %v6675_v53  ;;  %v11689_v53 = vld [vmem:[#allocation32_spill] sm:$0xff] }
 0x33e   : > { %v1911_v58 = vpop.f32.mrf.mxu3  ;;  %v9006_v61 = vld [vmem:[#allocation3 + $0xb0] sm:$0xff]  ;;  %v2108_v35 = vpop.f32.mrf.mxu0 }
 0x33f   : > { %2271 = vst [vmem:[#allocation3 + $0xc1] sm:$0xff] %v2238_v17  ;;  %v1977_v8 = vadd.f32 %v1911_v58, %v1783_v27  ;;  %2560 = vmatmul.f32.gmra.mxu2 %v9006_v61  ;;  %2450 = vmatmul.f32.gmra.mxu1 %v2238_v17  ;;  %v9018_v10 = vpop.f32.mrf.mxu1  ;;  %v1785_v58 = vadd.f32 %v8695_v47, %v1590_v26  ;;  %v11687_v26 = vld [vmem:[#allocation26_spill] sm:$0xff] }
 0x341   : > { %v2171_v34 = vadd.f32 %v2105_v56, %v1977_v8  ;;  %2871 = vmatmul.f32.vlgmr.msrb.gmra.mxu0 %v8765_v62  ;;  %v9027_v56 = vpop.f32.mrf.mxu2 }
 0x343   : > { %v2207_v63 = vadd.f32 %v8742_v52, %v2171_v34  ;;  %2677 = vmatmul.f32.vlgmr.msrb.gmra.mxu3 %v2612_v31 }
 0x345   : > { %v2239_v2 = vmax.f32 %v2207_v63, 0.0  ;;  %v9044_v63 = vld [vmem:[#allocation3 + $0x1a] sm:$0xff] }
 0x346   : > { %v1914_v11 = vpop.f32.mrf.mxu3  ;;  %v9021_v14 = vld [vmem:[#allocation3 + $0xc0] sm:$0xff]  ;;  %v2111_v62 = vpop.f32.mrf.mxu0 }
 0x347   : > { %2272 = vst [vmem:[#allocation3 + $0xc9] sm:$0xff] %v2239_v2  ;;  %v1978_v25 = vadd.f32 %v1914_v11, %v1784_v55  ;;  %2563 = vmatmul.f32.gmra.mxu2 %v9021_v14  ;;  %2453 = vmatmul.f32.gmra.mxu1 %v2239_v2 }
 0x349   : > { %v2172_v43 = vadd.f32 %v2108_v35, %v1978_v25  ;;  %2874 = vmatmul.f32.gmra.mxu0 %v8777_v29  ;;  %v1591_v29 = vadd.f32 %v8690_v16, %v11686_v15  ;;  %v9042_v47 = vpop.f32.mrf.mxu2 }
 0x34b   : > { %v2208_v27 = vadd.f32 %v8742_v52, %v2172_v43  ;;  %2680 = vmatmul.f32.gmra.mxu3 %v2613_v0  ;;  %v1786_v11 = vadd.f32 %v8715_v59, %v1591_v29 }
 0x34c   : > { %v2409_v17 = vpop.f32.mrf.mxu1 }
 0x34d   : > { %v2240_v8 = vmax.f32 %v2208_v27, 0.0 }
 0x34e   : > { %v1917_v6 = vpop.f32.mrf.mxu3  ;;  %v9034_v31 = vld [vmem:[#allocation3 + $0xc8] sm:$0xff]  ;;  %v2114_v35 = vpop.f32.mrf.mxu0 }
 0x34f   : > { %2273 = vst [vmem:[#allocation3 + $0xd9] sm:$0xff] %v2240_v8  ;;  %v1979_v5 = vadd.f32 %v1917_v6, %v1785_v58  ;;  %2566 = vmatmul.f32.gmra.mxu2 %v9034_v31  ;;  %2456 = vmatmul.f32.gmra.mxu1 %v2240_v8  ;;  %v9058_v58 = vld [vmem:[#allocation3 + $0x22] sm:$0xff] }
 0x351   : > { %v2173_v34 = vadd.f32 %v2111_v62, %v1979_v5  ;;  %2877 = vmatmul.f32.gmra.mxu0 %v8794_v60  ;;  %v6698_v62 = vld [vmem:[%s11550_s3 + $0x2e0] sm:$0xff]  ;;  %v11688_v60 = vld [vmem:[#allocation22_spill] sm:$0xff] }
 0x352   : > { %3246 = vmatpush.msrb.mxu2 %v6698_v62  ;;  %v1592_v43 = vadd.f32 %v11688_v60, %v11687_v26  ;;  %v9074_v26 = vld [vmem:[#allocation3 + $0x32] sm:$0xff] }
 0x353   : > { %v2209_v55 = vadd.f32 %v8742_v52, %v2173_v34  ;;  %2683 = vmatmul.f32.gmra.mxu3 %v9044_v63 }
 0x354   : > { %v2412_v2 = vpop.f32.mrf.mxu1  ;;  %v1787_v15 = vadd.f32 %v11689_v53, %v1592_v43 }
 0x355   : > { %v2241_v25 = vmax.f32 %v2209_v55, 0.0 }
 0x356   : > { %v1920_v39 = vpop.f32.mrf.mxu3  ;;  %v9050_v0 = vld [vmem:[#allocation3 + $0xd8] sm:$0xff]  ;;  %v2117_v3 = vpop.f32.mrf.mxu0 }
 0x357   : > { %2274 = vst [vmem:[#allocation3 + $0xe1] sm:$0xff] %v2241_v25  ;;  %v1980_v16 = vadd.f32 %v1920_v39, %v1786_v11  ;;  %2569 = vmatmul.f32.gmra.mxu2 %v9050_v0  ;;  %2459 = vmatmul.f32.gmra.mxu1 %v2241_v25  ;;  %v11690_v25 = vld [vmem:[#allocation11_spill] sm:$0xff] }
 0x359   : > { %v2174_v27 = vadd.f32 %v2114_v35, %v1980_v16  ;;  %2880 = vmatmul.f32.gmra.mxu0 %v8806_v30  ;;  %v11691_v30 = vld [vmem:[#allocation27_spill] sm:$0xff] }
 0x35a   : > { %v2522_v59 = vpop.f32.mrf.mxu2  ;;  %v1593_v39 = vadd.f32 %v11691_v30, %v11690_v25  ;;  %v9090_v25 = vld [vmem:[#allocation3 + $0x3a] sm:$0xff] }
 0x35b   : > { %v2210_v8 = vadd.f32 %v8742_v52, %v2174_v27  ;;  %v9061_v6 = vadd.f32 %v2522_v59, %v2409_v17  ;;  %2686 = vmatmul.f32.gmra.mxu3 %v9058_v58  ;;  %v6674_v17 = vld [vmem:[%s11550_s3 + $0x220] sm:$0xff] }
 0x35c   : > { %v2415_v5 = vpop.f32.mrf.mxu1  ;;  %3060 = vmatpush.msrb.mxu1 %v6674_v17  ;;  %v1788_v59 = vadd.f32 %v8762_v57, %v1593_v39 }
 0x35d   : > { %v2242_v29 = vmax.f32 %v2210_v8, 0.0 }
 0x35e   : > { %v1923_v34 = vpop.f32.mrf.mxu3  ;;  %v9066_v55 = vld [vmem:[#allocation3 + $0xe0] sm:$0xff]  ;;  %v2120_v11 = vpop.f32.mrf.mxu0 }
 0x35f   : > { %2275 = vst [vmem:[#allocation3 + $0xf1] sm:$0xff] %v2242_v29  ;;  %v1981_v35 = vadd.f32 %v1923_v34, %v1787_v15  ;;  %2572 = vmatmul.f32.gmra.mxu2 %v9066_v55  ;;  %2462 = vmatmul.f32.gmra.mxu1 %v2242_v29  ;;  %v11692_v34 = vld [vmem:[#allocation19_spill] sm:$0xff] }
 0x361   : > { %v2175_v16 = vadd.f32 %v2117_v3, %v1981_v35  ;;  %2883 = vmatmul.f32.gmra.mxu0 %v8821_v18  ;;  %v11693_v18 = vld [vmem:[#allocation24_spill] sm:$0xff] }
 0x362   : > { %v2525_v62 = vpop.f32.mrf.mxu2  ;;  %v1594_v35 = vadd.f32 %v11693_v18, %v11692_v34  ;;  %v9106_v18 = vld [vmem:[#allocation3 + $0x4a] sm:$0xff] }
 0x363   : > { %v2211_v60 = vadd.f32 %v8742_v52, %v2175_v16  ;;  %v9077_v43 = vadd.f32 %v2525_v62, %v2412_v2  ;;  %2689 = vmatmul.f32.gmra.mxu3 %v9074_v26  ;;  %v6697_v2 = vld [vmem:[%s11550_s3 + $0x2d8] sm:$0xff] }
 0x364   : > { %v2418_v27 = vpop.f32.mrf.mxu1  ;;  %3247 = vmatpush.msrb.mxu2 %v6697_v2  ;;  %v1789_v62 = vadd.f32 %v8775_v45, %v1594_v35 }
 0x365   : > { %v2243_v8 = vmax.f32 %v2211_v60, 0.0 }
 0x366   : > { %v1926_v53 = vpop.f32.mrf.mxu3  ;;  %v9082_v15 = vld [vmem:[#allocation3 + $0xf0] sm:$0xff]  ;;  %v2123_v29 = vpop.f32.mrf.mxu0 }
 0x367   : > { %2276 = vst [vmem:[#allocation3 + $0xf9] sm:$0xff] %v2243_v8  ;;  %v1982_v3 = vadd.f32 %v1926_v53, %v1788_v59  ;;  %2575 = vmatmul.f32.gmra.mxu2 %v9082_v15  ;;  %2465 = vmatmul.f32.gmra.mxu1 %v2243_v8 }
 0x369   : > { %v2176_v17 = vadd.f32 %v2120_v11, %v1982_v3  ;;  %2886 = vmatmul.f32.gmra.mxu0 %v8835_v46  ;;  %v11694_v3 = vld [vmem:[#allocation13_spill] sm:$0xff]  ;;  %v11695_v46 = vld [vmem:[#allocation30_spill] sm:$0xff] }
 0x36a   : > { %v2528_v57 = vpop.f32.mrf.mxu2  ;;  %v1595_v2 = vadd.f32 %v11695_v46, %v11694_v3  ;;  %v9122_v46 = vld [vmem:[#allocation3 + $0x52] sm:$0xff] }
 0x36b   : > { %v2212_v30 = vadd.f32 %v8742_v52, %v2176_v17  ;;  %v9093_v39 = vadd.f32 %v2528_v57, %v2415_v5  ;;  %2692 = vmatmul.f32.gmra.mxu3 %v9090_v25  ;;  %v6673_v5 = vld [vmem:[%s11550_s3 + $0x218] sm:$0xff] }
 0x36c   : > { %v2421_v16 = vpop.f32.mrf.mxu1  ;;  %3061 = vmatpush.msrb.mxu1 %v6673_v5  ;;  %v11696_v5 = vld [vmem:[#allocation9_spill] sm:$0xff] }
 0x36d   : > { %v2244_v60 = vmax.f32 %v2212_v30, 0.0  ;;  %v1790_v30 = vadd.f32 %v8792_v24, %v1595_v2 }
 0x36e   : > { %v1929_v59 = vpop.f32.mrf.mxu3  ;;  %v9098_v8 = vld [vmem:[#allocation3 + $0xf8] sm:$0xff]  ;;  %v2126_v53 = vpop.f32.mrf.mxu0 }
 0x36f   : > { %2277 = vst [vmem:[#allocation3 + $0x109] sm:$0xff] %v2244_v60  ;;  %v1983_v11 = vadd.f32 %v1929_v59, %v1789_v62  ;;  %2578 = vmatmul.f32.gmra.mxu2 %v9098_v8  ;;  %2468 = vmatmul.f32.gmra.mxu1 %v2244_v60 }
 0x371   : > { %v2177_v34 = vadd.f32 %v2123_v29, %v1983_v11  ;;  %2889 = vmatmul.f32.gmra.mxu0 %v8855_v51  ;;  %v1596_v51 = vadd.f32 %v8790_v9, %v11696_v5  ;;  %v9138_v5 = vld [vmem:[#allocation3 + $0x62] sm:$0xff] }
 0x372   : > { %v2531_v45 = vpop.f32.mrf.mxu2 }
 0x373   : > { %v2213_v35 = vadd.f32 %v8742_v52, %v2177_v34  ;;  %v9109_v17 = vadd.f32 %v2531_v45, %v2418_v27  ;;  %2695 = vmatmul.f32.gmra.mxu3 %v9106_v18  ;;  %v6696_v27 = vld [vmem:[%s11550_s3 + $0x2d0] sm:$0xff] }
 0x374   : > { %v2424_v57 = vpop.f32.mrf.mxu1  ;;  %3248 = vmatpush.msrb.mxu2 %v6696_v27 }
 0x375   : > { %v2245_v62 = vmax.f32 %v2213_v35, 0.0  ;;  %v1791_v35 = vadd.f32 %v8816_v19, %v1596_v51 }
 0x376   : > { %v1932_v60 = vpop.f32.mrf.mxu3  ;;  %v9114_v59 = vld [vmem:[#allocation3 + $0x108] sm:$0xff]  ;;  %v2129_v11 = vpop.f32.mrf.mxu0 }
 0x377   : > { %2278 = vst [vmem:[#allocation3 + $0x111] sm:$0xff] %v2245_v62  ;;  %v1984_v29 = vadd.f32 %v1932_v60, %v1790_v30  ;;  %2581 = vmatmul.f32.gmra.mxu2 %v9114_v59  ;;  %2471 = vmatmul.f32.gmra.mxu1 %v2245_v62 }
 0x379   : > { %v2178_v3 = vadd.f32 %v2126_v53, %v1984_v29  ;;  %2892 = vmatmul.f32.gmra.mxu0 %v8871_v48  ;;  %v11697_v29 = vld [vmem:[#allocation20_spill] sm:$0xff] }
 0x37a   : > { %v2534_v24 = vpop.f32.mrf.mxu2  ;;  %v1597_v48 = vadd.f32 %v8804_v4, %v11697_v29  ;;  %v9154_v29 = vld [vmem:[#allocation3 + $0x6a] sm:$0xff] }
 0x37b   : > { %v2214_v2 = vadd.f32 %v8742_v52, %v2178_v3  ;;  %v9125_v34 = vadd.f32 %v2534_v24, %v2421_v16  ;;  %2698 = vmatmul.f32.gmra.mxu3 %v9122_v46  ;;  %v6672_v16 = vld [vmem:[%s11550_s3 + $0x210] sm:$0xff] }
 0x37c   : > { %v2427_v45 = vpop.f32.mrf.mxu1  ;;  %3062 = vmatpush.msrb.mxu1 %v6672_v16 }
 0x37d   : > { %v2246_v30 = vmax.f32 %v2214_v2, 0.0  ;;  %v1792_v2 = vadd.f32 %v8830_v42, %v1597_v48 }
 0x37e   : > { %v1935_v62 = vpop.f32.mrf.mxu3  ;;  %v9130_v60 = vld [vmem:[#allocation3 + $0x110] sm:$0xff]  ;;  %v2132_v53 = vpop.f32.mrf.mxu0 }
 0x37f   : > { %2279 = vst [vmem:[#allocation3 + $0x121] sm:$0xff] %v2246_v30  ;;  %v1985_v9 = vadd.f32 %v1935_v62, %v1791_v35  ;;  %2584 = vmatmul.f32.gmra.mxu2 %v9130_v60  ;;  %2474 = vmatmul.f32.gmra.mxu1 %v2246_v30 }
 0x381   : > { %v2179_v27 = vadd.f32 %v2129_v11, %v1985_v9  ;;  %2895 = vmatmul.f32.gmra.mxu0 %v8888_v12  ;;  %v11698_v9 = vld [vmem:[#allocation12_spill] sm:$0xff] }
 0x382   : > { %v2537_v19 = vpop.f32.mrf.mxu2  ;;  %v1598_v12 = vadd.f32 %v8828_v49, %v11698_v9  ;;  %v9175_v9 = vld [vmem:[%s11549_s2] ss:$0 sm:$0xff] }
 0x383   : > { %v2215_v51 = vadd.f32 %v8742_v52, %v2179_v27  ;;  %v9141_v3 = vadd.f32 %v2537_v19, %v2424_v57  ;;  %2701 = vmatmul.f32.gmra.mxu3 %v9138_v5  ;;  %v6695_v57 = vld [vmem:[%s11550_s3 + $0x2c8] sm:$0xff] }
 0x384   : > { %v2430_v24 = vpop.f32.mrf.mxu1  ;;  %3249 = vmatpush.msrb.mxu2 %v6695_v57  ;;  %v9170_v57 = vld [vmem:[#allocation3 + $0x7a] sm:$0xff] }
 0x385   : > { %v2247_v35 = vmax.f32 %v2215_v51, 0.0  ;;  %v1793_v51 = vadd.f32 %v8852_v32, %v1598_v12 }
 0x386   : > { %v1938_v30 = vpop.f32.mrf.mxu3  ;;  %v9146_v62 = vld [vmem:[#allocation3 + $0x120] sm:$0xff]  ;;  %v2135_v11 = vpop.f32.mrf.mxu0 }
 0x387   : > { %2280 = vst [vmem:[#allocation3 + $0x129] sm:$0xff] %v2247_v35  ;;  %v1986_v4 = vadd.f32 %v1938_v30, %v1792_v2  ;;  %2587 = vmatmul.f32.gmra.mxu2 %v9146_v62  ;;  %2477 = vmatmul.f32.gmra.mxu1 %v2247_v35 }
 0x389   : > { %v2180_v16 = vadd.f32 %v2132_v53, %v1986_v4  ;;  %2898 = vmatmul.f32.gmra.mxu0 %v8908_v44  ;;  %v11699_v53 = vld [vmem:[#allocation14_spill] sm:$0xff] }
 0x38a   : > { %v2540_v42 = vpop.f32.mrf.mxu2  ;;  %v1599_v44 = vadd.f32 %v8847_v22, %v11699_v53  ;;  %v9191_v53 = vld [vmem:[#allocation3 + $0x82] sm:$0xff] }
 0x38b   : > { %v2216_v48 = vadd.f32 %v8742_v52, %v2180_v16  ;;  %v9157_v27 = vadd.f32 %v2540_v42, %v2427_v45  ;;  %2704 = vmatmul.f32.gmra.mxu3 %v9154_v29  ;;  %v6671_v52 = vld [vmem:[%s11550_s3 + $0x208] sm:$0xff] }
 0x38c   : > { %v2433_v19 = vpop.f32.mrf.mxu1  ;;  %3063 = vmatpush.msrb.mxu1 %v6671_v52  ;;  %v1794_v22 = vadd.f32 %v8869_v20, %v1599_v44 }
 0x38d   : > { %v2248_v2 = vmax.f32 %v2216_v48, 0.0 }
 0x38e   : > { %v1941_v35 = vpop.f32.mrf.mxu3  ;;  %v9162_v30 = vld [vmem:[#allocation3 + $0x128] sm:$0xff]  ;;  %v2138_v45 = vpop.f32.mrf.mxu0 }
 0x38f   : > { %2281 = vst [vmem:[#allocation3 + $0x139] sm:$0xff] %v2248_v2  ;;  %v1987_v49 = vadd.f32 %v1941_v35, %v1793_v51  ;;  %2590 = vmatmul.f32.gmra.mxu2 %v9162_v30  ;;  %2480 = vmatmul.f32.gmra.mxu1 %v2248_v2 }
 0x391   : > { %v2181_v4 = vadd.f32 %v2135_v11, %v1987_v49  ;;  %2901 = vmatmul.f32.gmra.mxu0 %v8947_v28  ;;  %v11700_v49 = vld [vmem:[#allocation16_spill] sm:$0xff] }
 0x392   : > { %v2543_v32 = vpop.f32.mrf.mxu2  ;;  %v1600_v28 = vadd.f32 %v8866_v37, %v11700_v49 }
 0x393   : > { %v2217_v12 = vadd.f32 %v9175_v9, %v2181_v4  ;;  %v9178_v16 = vadd.f32 %v2543_v32, %v2430_v24  ;;  %2707 = vmatmul.f32.gmra.mxu3 %v9170_v57  ;;  %v6694_v24 = vld [vmem:[%s11550_s3 + $0x2c0] sm:$0xff] }
 0x394   : > { %v2436_v42 = vpop.f32.mrf.mxu1  ;;  %3250 = vmatpush.msrb.mxu2 %v6694_v24  ;;  %v11701_v24 = vld [vmem:[#allocation18_spill] sm:$0xff] }
 0x395   : > { %v2249_v11 = vmax.f32 %v2217_v12, 0.0  ;;  %v1795_v12 = vadd.f32 %v8894_v33, %v1600_v28  ;;  %v6692_v33 = vld [vmem:[%s11550_s3 + $0x2b0] sm:$0xff]  ;;  %v1601_v49 = vadd.f32 %v8886_v13, %v11701_v24 }
 0x396   : > { %v1944_v48 = vpop.f32.mrf.mxu3  ;;  %v9183_v51 = vld [vmem:[#allocation3 + $0x138] sm:$0xff]  ;;  %v2141_v35 = vpop.f32.mrf.mxu0 }
 0x397   : > { %2282 = vst [vmem:[#allocation3 + $0x141] sm:$0xff] %v2249_v11  ;;  %v1988_v2 = vadd.f32 %v1944_v48, %v1794_v22  ;;  %2593 = vmatmul.f32.gmra.mxu2 %v9183_v51  ;;  %2483 = vmatmul.f32.gmra.mxu1 %v2249_v11  ;;  %v1796_v13 = vadd.f32 %v8936_v36, %v1601_v49  ;;  %v6733_v36 = vld [vmem:[%s11550_s3 + $0x3f8] sm:$0xff] }
 0x398   : > { %3632 = vmatpush.msra.mxu0 %v6733_v36 }
 0x399   : > { %v2182_v52 = vadd.f32 %v2138_v45, %v1988_v2  ;;  %2904 = vmatmul.f32.gmra.mxu0 %v8980_v40  ;;  %v6693_v40 = vld [vmem:[%s11550_s3 + $0x2b8] sm:$0xff] }
 0x39a   : > { %v2546_v20 = vpop.f32.mrf.mxu2  ;;  %3251 = vmatpush.msrb.mxu2 %v6693_v40  ;;  %v6717_v2 = vld [vmem:[%s11550_s3 + $0x378] sm:$0xff] }
 0x39b   : > { %v2218_v44 = vadd.f32 %v9175_v9, %v2182_v52  ;;  %v9194_v4 = vadd.f32 %v2546_v20, %v2433_v19  ;;  %2710 = vmatmul.f32.gmra.mxu3 %v9191_v53  ;;  %v6670_v19 = vld [vmem:[%s11550_s3 + $0x200] sm:$0xff]  ;;  %v6691_v52 = vld [vmem:[%s11550_s3 + $0x2a8] sm:$0xff] }
 0x39c   : > { %v2439_v32 = vpop.f32.mrf.mxu1  ;;  %3064 = vmatpush.msrb.mxu1 %v6670_v19  ;;  %3438 = vmatpush.msra.mxu3 %v6717_v2  ;;  %v11702_v2 = vld [vmem:[#allocation29_spill] sm:$0xff] }
 0x39d   : > { %v2250_v22 = vmax.f32 %v2218_v44, 0.0  ;;  %v9219_v44 = vld [vmem:[#allocation3 + $0x92] sm:$0xff]  ;;  %3252 = vmatpush.msrb.mxu2 %v6692_v33  ;;  %v1602_v24 = vadd.f32 %v8920_v50, %v11702_v2 }
 0x39e   : > { %v1947_v11 = vpop.f32.mrf.mxu3  ;;  %v9199_v48 = vld [vmem:[#allocation3 + $0x140] sm:$0xff]  ;;  %v2144_v45 = vpop.f32.mrf.mxu0  ;;  %v6687_v50 = vld [vmem:[%s11550_s3 + $0x288] sm:$0xff] }
 0x39f   : > { %2283 = vst [vmem:[#allocation3 + $0x151] sm:$0xff] %v2250_v22  ;;  %v1989_v37 = vadd.f32 %v1947_v11, %v1795_v12  ;;  %2596 = vmatmul.f32.gmra.mxu2 %v9199_v48  ;;  %2486 = vmatmul.f32.gmra.mxu1 %v2250_v22 }
 0x3a0   : > { %3253 = vmatpush.msrb.mxu2 %v6691_v52  ;;  %v6749_v52 = vld [vmem:[%s11550_s3 + $0x478] sm:$0xff] }
 0x3a1   : > { %v2183_v28 = vadd.f32 %v2141_v35, %v1989_v37  ;;  %2907 = vmatmul.f32.gmra.mxu0 %v8994_v38  ;;  %v6689_v38 = vld [vmem:[%s11550_s3 + $0x298] sm:$0xff]  ;;  %3826 = vmatpush.msra.mxu1 %v6749_v52 }
 0x3a2   : > { %v2549_v20 = vpop.f32.mrf.mxu2  ;;  %v9269_v52 = vld [vmem:[#allocation3 + $0xaa] sm:$0xff] }
 0x3a3   : > { %v2219_v12 = vadd.f32 %v9175_v9, %v2183_v28  ;;  %v9222_v22 = vadd.f32 %v2549_v20, %v2436_v42  ;;  %2713 = vmatmul.f32.gmra.mxu3 %v9219_v44  ;;  %v6690_v42 = vld [vmem:[%s11550_s3 + $0x2a0] sm:$0xff]  ;;  %v6688_v28 = vld [vmem:[%s11550_s3 + $0x290] sm:$0xff] }
 0x3a4   : > { %v2442_v11 = vpop.f32.mrf.mxu1  ;;  %3254 = vmatpush.msrb.mxu2 %v6690_v42 }
 0x3a5   : > { %v2251_v35 = vmax.f32 %v2219_v12, 0.0  ;;  %v9247_v12 = vld [vmem:[#allocation3 + $0x9a] sm:$0xff] }
 0x3a6   : > { %v1950_v37 = vpop.f32.mrf.mxu3  ;;  %v9227_v19 = vld [vmem:[#allocation3 + $0x150] sm:$0xff]  ;;  %v2147_v33 = vpop.f32.mrf.mxu0  ;;  %3255 = vmatpush.msrb.mxu2 %v6689_v38 }
 0x3a7   : > { %2284 = vst [vmem:[#allocation3 + $0x159] sm:$0xff] %v2251_v35  ;;  %v1990_v40 = vadd.f32 %v1950_v37, %v1796_v13  ;;  %2599 = vmatmul.f32.gmra.mxu2 %v9227_v19  ;;  %2489 = vmatmul.f32.gmra.mxu1 %v2251_v35 }
 0x3a8   : > { %3256 = vmatpush.msrb.mxu2 %v6688_v28 }
 0x3a9   : > { %v2184_v49 = vadd.f32 %v2144_v45, %v1990_v40  ;;  %2910 = vmatmul.f32.gmra.mxu0 %v9006_v61  ;;  %v6716_v45 = vld [vmem:[%s11550_s3 + $0x370] sm:$0xff]  ;;  %v1797_v40 = vadd.f32 %v8977_v7, %v1602_v24 }
 0x3aa   : > { %v2552_v20 = vpop.f32.mrf.mxu2  ;;  %3439 = vmatpush.msra.mxu3 %v6716_v45  ;;  %3257 = vmatpush.msrb.mxu2 %v6687_v50  ;;  %v6732_v50 = vld [vmem:[%s11550_s3 + $0x3f0] sm:$0xff] }
 0x3ab   : > { %v2220_v13 = vadd.f32 %v9175_v9, %v2184_v49  ;;  %v9250_v35 = vadd.f32 %v2552_v20, %v2439_v32  ;;  %2716 = vmatmul.f32.gmra.mxu3 %v9247_v12  ;;  %v6686_v32 = vld [vmem:[%s11550_s3 + $0x280] sm:$0xff]  ;;  %v11703_v49 = vld [vmem:[#allocation17_spill] sm:$0xff]  ;;  %3633 = vmatpush.msra.mxu0 %v6732_v50 }
 0x3ac   : > { %v2445_v37 = vpop.f32.mrf.mxu1  ;;  %3258 = vmatpush.msrb.mxu2 %v6686_v32  ;;  %v1603_v28 = vadd.f32 %v8970_v21, %v11703_v49 }
 0x3ad   : > { %v2252_v42 = vmax.f32 %v2220_v13, 0.0 }
 0x3ae   : > { %v1953_v38 = vpop.f32.mrf.mxu3  ;;  %v9264_v61 = vld [vmem:[#allocation3 + $0x158] sm:$0xff]  ;;  %v2150_v2 = vpop.f32.mrf.mxu0  ;;  %v1798_v21 = vadd.f32 %v8992_v54, %v1603_v28 }
 0x3af   : > { %2285 = vst [vmem:[#allocation3 + $0x169] sm:$0xff] %v2252_v42  ;;  %v1991_v36 = vadd.f32 %v1953_v38, %v1797_v40  ;;  %2602 = vmatmul.f32.gmra.mxu2 %v9264_v61  ;;  %2492 = vmatmul.f32.gmra.mxu1 %v2252_v42  ;;  %v11704_v38 = vld [vmem:[#allocation23_spill] sm:$0xff] }
 0x3b0   : > { %v9288_v28 = vld [vmem:[#allocation3 + $0xb2] sm:$0xff] }
 0x3b1   : > { %v2185_v7 = vadd.f32 %v2147_v33, %v1991_v36  ;;  %2913 = vmatmul.f32.gmra.mxu0 %v9021_v14  ;;  %v6748_v14 = vld [vmem:[%s11550_s3 + $0x470] sm:$0xff]  ;;  %v1604_v36 = vadd.f32 %v8989_v1, %v11704_v38 }
 0x3b2   : > { %v2555_v24 = vpop.f32.mrf.mxu2  ;;  %3827 = vmatpush.msra.mxu1 %v6748_v14  ;;  %v9302_v38 = vld [vmem:[#allocation3 + $0xc2] sm:$0xff] }
 0x3b3   : > { %v2221_v20 = vadd.f32 %v9175_v9, %v2185_v7  ;;  %v9272_v13 = vadd.f32 %v2555_v24, %v2442_v11  ;;  %2719 = vmatmul.f32.gmra.mxu3 %v9269_v52  ;;  %v1799_v1 = vadd.f32 %v9012_v23, %v1604_v36  ;;  %v6731_v23 = vld [vmem:[%s11550_s3 + $0x3e8] sm:$0xff] }
 0x3b4   : > { %v2448_v45 = vpop.f32.mrf.mxu1  ;;  %3634 = vmatpush.msra.mxu0 %v6731_v23  ;;  %v9337_v23 = vld [vmem:[#allocation3 + $0xda] sm:$0xff] }
 0x3b5   : > { %v2253_v33 = vmax.f32 %v2221_v20, 0.0  ;;  %v6715_v20 = vld [vmem:[%s11550_s3 + $0x368] sm:$0xff] }
 0x3b6   : > { %v1956_v40 = vpop.f32.mrf.mxu3  ;;  %v9280_v42 = vld [vmem:[#allocation3 + $0x168] sm:$0xff]  ;;  %v2153_v11 = vpop.f32.mrf.mxu0  ;;  %3440 = vmatpush.msra.mxu3 %v6715_v20 }
 0x3b7   : > { %2286 = vst [vmem:[#allocation3 + $0x171] sm:$0xff] %v2253_v33  ;;  %v1992_v32 = vadd.f32 %v1956_v40, %v1798_v21  ;;  %2605 = vmatmul.f32.gmra.mxu2 %v9280_v42  ;;  %2495 = vmatmul.f32.gmra.mxu1 %v2253_v33  ;;  %v3000_v40 = vld [vmem:[#allocation3 + $0x19] sm:$0xff] }
 0x3b9   : > { %v2186_v49 = vadd.f32 %v2150_v2, %v1992_v32  ;;  %2916 = vmatmul.f32.gmra.mxu0 %v9034_v31 }
 0x3ba   : > { %v2558_v54 = vpop.f32.mrf.mxu2 }
 0x3bb   : > { %v2222_v7 = vadd.f32 %v9175_v9, %v2186_v49  ;;  %v9291_v24 = vadd.f32 %v2558_v54, %v2445_v37  ;;  %2722 = vmatmul.f32.gmra.mxu3 %v9288_v28 }
 0x3bc   : > { %v2451_v50 = vpop.f32.mrf.mxu1 }
 0x3bd   : > { %v2254_v2 = vmax.f32 %v2222_v7, 0.0 }
 0x3be   : > { %v1959_v21 = vpop.f32.mrf.mxu3  ;;  %v9299_v33 = vld [vmem:[#allocation3 + $0x170] sm:$0xff]  ;;  %v2872_v32 = vpop.f32.mrf.mxu0 }
 0x3bf   : > { %2287 = vst [vmem:[#allocation3 + $0x181] sm:$0xff] %v2254_v2  ;;  %v1993_v37 = vadd.f32 %v1959_v21, %v1799_v1  ;;  %2608 = vmatmul.f32.gmra.mxu2 %v9299_v33  ;;  %3065 = vmatmul.f32.vlgmr.msrb.gmra.mxu1 %v3000_v40  ;;  %v3001_v1 = vld [vmem:[#allocation3 + $0x21] sm:$0xff]  ;;  %v9320_v40 = vld [vmem:[#allocation3 + $0xca] sm:$0xff] }
 0x3c1   : > { %v2187_v31 = vadd.f32 %v2153_v11, %v1993_v37  ;;  %2919 = vmatmul.f32.gmra.mxu0 %v9050_v0  ;;  %v2517_v11 = vadd.f32 %v9027_v56, %v9003_v41  ;;  %v6747_v0 = vld [vmem:[%s11550_s3 + $0x468] sm:$0xff]  ;;  %v6714_v56 = vld [vmem:[%s11550_s3 + $0x360] sm:$0xff]  ;;  %v2520_v37 = vadd.f32 %v9042_v47, %v9018_v10 }
 0x3c2   : > { %v2561_v14 = vpop.f32.mrf.mxu2  ;;  %3828 = vmatpush.msra.mxu1 %v6747_v0  ;;  %3441 = vmatpush.msra.mxu3 %v6714_v56  ;;  %v6730_v10 = vld [vmem:[%s11550_s3 + $0x3e0] sm:$0xff]  ;;  %v9356_v0 = vld [vmem:[#allocation3 + $0xe2] sm:$0xff] }
 0x3c3   : > { %v2223_v49 = vadd.f32 %v9175_v9, %v2187_v31  ;;  %v9305_v54 = vadd.f32 %v2561_v14, %v2448_v45  ;;  %2725 = vmatmul.f32.gmra.mxu3 %v9302_v38  ;;  %v9331_v31 = vld [vmem:[#allocation3 + $0x31] sm:$0xff]  ;;  %3635 = vmatpush.msra.mxu0 %v6730_v10  ;;  %v9365_v56 = vld [vmem:[#allocation3 + $0x49] sm:$0xff] }
 0x3c4   : > { %v2454_v36 = vpop.f32.mrf.mxu1  ;;  %v9381_v10 = vld [vmem:[#allocation3 + $0x51] sm:$0xff] }
 0x3c5   : > { %v2255_v7 = vmax.f32 %v2223_v49, 0.0 }
 0x3c6   : > { %v2678_v20 = vpop.f32.mrf.mxu3  ;;  %v2875_v45 = vpop.f32.mrf.mxu0 }
 0x3c7   : > { %2288 = vst [vmem:[#allocation3 + $0x189] sm:$0xff] %v2255_v7  ;;  %v2774_v9 = vadd.f32 %v2678_v20, %v2517_v11  ;;  %3259 = vmatmul.f32.vlgmr.msrb.gmra.mxu2 %v9044_v63  ;;  %3068 = vmatmul.f32.gmra.mxu1 %v3001_v1  ;;  %v9346_v7 = vld [vmem:[#allocation3 + $0x39] sm:$0xff] }
 0x3c9   : > { %v9318_v2 = vadd.f32 %v2872_v32, %v2774_v9  ;;  %2922 = vmatmul.f32.gmra.mxu0 %v9066_v55 }
 0x3ca   : > { %v2564_v21 = vpop.f32.mrf.mxu2 }
 0x3cb   : > { %v9322_v41 = vadd.f32 %v2564_v21, %v2451_v50  ;;  %2728 = vmatmul.f32.gmra.mxu3 %v9320_v40 }
 0x3cc   : > { %v2457_v63 = vpop.f32.mrf.mxu1 }
 0x3ce   : > { %v2681_v32 = vpop.f32.mrf.mxu3  ;;  %v2878_v50 = vpop.f32.mrf.mxu0 }
 0x3cf   : > { %v2775_v14 = vadd.f32 %v2681_v32, %v2520_v37  ;;  %3262 = vmatmul.f32.gmra.mxu2 %v9058_v58  ;;  %3071 = vmatmul.f32.gmra.mxu1 %v9331_v31 }
 0x3d1   : > { %v9335_v49 = vadd.f32 %v2875_v45, %v2775_v14  ;;  %2925 = vmatmul.f32.gmra.mxu0 %v9082_v15 }
 0x3d2   : > { %v2567_v55 = vpop.f32.mrf.mxu2 }
 0x3d3   : > { %v9339_v11 = vadd.f32 %v2567_v55, %v2454_v36  ;;  %2731 = vmatmul.f32.gmra.mxu3 %v9337_v23  ;;  %v6746_v36 = vld [vmem:[%s11550_s3 + $0x460] sm:$0xff] }
 0x3d4   : > { %v2460_v47 = vpop.f32.mrf.mxu1  ;;  %3829 = vmatpush.msra.mxu1 %v6746_v36 }
 0x3d6   : > { %v2684_v58 = vpop.f32.mrf.mxu3  ;;  %v2881_v15 = vpop.f32.mrf.mxu0 }
 0x3d7   : > { %v2776_v20 = vadd.f32 %v2684_v58, %v9061_v6  ;;  %3265 = vmatmul.f32.gmra.mxu2 %v9074_v26  ;;  %3074 = vmatmul.f32.gmra.mxu1 %v9346_v7  ;;  %v6713_v6 = vld [vmem:[%s11550_s3 + $0x358] sm:$0xff] }
 0x3d8   : > { %3442 = vmatpush.msra.mxu3 %v6713_v6 }
 0x3d9   : > { %v9354_v1 = vadd.f32 %v2878_v50, %v2776_v20  ;;  %2928 = vmatmul.f32.gmra.mxu0 %v9098_v8  ;;  %v9372_v8 = vld [vmem:[#allocation3 + $0xf2] sm:$0xff] }
 0x3da   : > { %v2570_v9 = vpop.f32.mrf.mxu2 }
 0x3db   : > { %v9358_v45 = vadd.f32 %v2570_v9, %v2457_v63  ;;  %2734 = vmatmul.f32.gmra.mxu3 %v9356_v0 }
 0x3dc   : > { %v2463_v26 = vpop.f32.mrf.mxu1 }
 0x3de   : > { %v2687_v21 = vpop.f32.mrf.mxu3  ;;  %v2884_v63 = vpop.f32.mrf.mxu0 }
 0x3df   : > { %v2777_v37 = vadd.f32 %v2687_v21, %v9077_v43  ;;  %3268 = vmatmul.f32.gmra.mxu2 %v9090_v25  ;;  %3077 = vmatmul.f32.gmra.mxu1 %v9365_v56  ;;  %v6729_v43 = vld [vmem:[%s11550_s3 + $0x3d8] sm:$0xff] }
 0x3e0   : > { %3636 = vmatpush.msra.mxu0 %v6729_v43  ;;  %v9400_v21 = vld [vmem:[#allocation3 + $0x61] sm:$0xff] }
 0x3e1   : > { %v9370_v32 = vadd.f32 %v2881_v15, %v2777_v37  ;;  %2931 = vmatmul.f32.gmra.mxu0 %v9114_v59  ;;  %v9391_v15 = vld [vmem:[#allocation3 + $0xfa] sm:$0xff] }
 0x3e2   : > { %v2573_v14 = vpop.f32.mrf.mxu2 }
 0x3e3   : > { %v9374_v50 = vadd.f32 %v2573_v14, %v2460_v47  ;;  %2737 = vmatmul.f32.gmra.mxu3 %v9372_v8  ;;  %v6745_v47 = vld [vmem:[%s11550_s3 + $0x458] sm:$0xff] }
 0x3e4   : > { %v2466_v55 = vpop.f32.mrf.mxu1  ;;  %3830 = vmatpush.msra.mxu1 %v6745_v47 }
 0x3e6   : > { %v2690_v25 = vpop.f32.mrf.mxu3  ;;  %v2887_v59 = vpop.f32.mrf.mxu0 }
 0x3e7   : > { %v2778_v58 = vadd.f32 %v2690_v25, %v9093_v39  ;;  %3271 = vmatmul.f32.gmra.mxu2 %v9106_v18  ;;  %3080 = vmatmul.f32.gmra.mxu1 %v9381_v10  ;;  %v6712_v39 = vld [vmem:[%s11550_s3 + $0x350] sm:$0xff] }
 0x3e8   : > { %3443 = vmatpush.msra.mxu3 %v6712_v39  ;;  %v9426_v39 = vld [vmem:[#allocation3 + $0x112] sm:$0xff] }
 0x3e9   : > { %v9389_v20 = vadd.f32 %v2884_v63, %v2778_v58  ;;  %2934 = vmatmul.f32.gmra.mxu0 %v9130_v60  ;;  %v9407_v60 = vld [vmem:[#allocation3 + $0x10a] sm:$0xff] }
 0x3ea   : > { %v2576_v36 = vpop.f32.mrf.mxu2  ;;  %v9416_v58 = vld [vmem:[#allocation3 + $0x69] sm:$0xff] }
 0x3eb   : > { %v9393_v9 = vadd.f32 %v2576_v36, %v2463_v26  ;;  %2740 = vmatmul.f32.gmra.mxu3 %v9391_v15 }
 0x3ec   : > { %v2469_v18 = vpop.f32.mrf.mxu1 }
 0x3ee   : > { %v2693_v6 = vpop.f32.mrf.mxu3  ;;  %v2890_v26 = vpop.f32.mrf.mxu0 }
 0x3ef   : > { %v2779_v37 = vadd.f32 %v2693_v6, %v9109_v17  ;;  %3274 = vmatmul.f32.gmra.mxu2 %v9122_v46  ;;  %3083 = vmatmul.f32.gmra.mxu1 %v9400_v21  ;;  %v6728_v17 = vld [vmem:[%s11550_s3 + $0x3d0] sm:$0xff] }
 0x3f0   : > { %3637 = vmatpush.msra.mxu0 %v6728_v17 }
 0x3f1   : > { %v9405_v63 = vadd.f32 %v2887_v59, %v2779_v37  ;;  %2937 = vmatmul.f32.gmra.mxu0 %v9146_v62 }
 0x3f2   : > { %v2579_v14 = vpop.f32.mrf.mxu2 }
 0x3f3   : > { %v9409_v43 = vadd.f32 %v2579_v14, %v2466_v55  ;;  %2743 = vmatmul.f32.gmra.mxu3 %v9407_v60  ;;  %v6744_v55 = vld [vmem:[%s11550_s3 + $0x450] sm:$0xff] }
 0x3f4   : > { %v2472_v25 = vpop.f32.mrf.mxu1  ;;  %3831 = vmatpush.msra.mxu1 %v6744_v55  ;;  %v9435_v14 = vld [vmem:[#allocation3 + $0x79] sm:$0xff] }
 0x3f6   : > { %v2696_v46 = vpop.f32.mrf.mxu3  ;;  %v2893_v62 = vpop.f32.mrf.mxu0 }
 0x3f7   : > { %v2780_v47 = vadd.f32 %v2696_v46, %v9125_v34  ;;  %3277 = vmatmul.f32.gmra.mxu2 %v9138_v5  ;;  %3086 = vmatmul.f32.gmra.mxu1 %v9416_v58  ;;  %v6711_v34 = vld [vmem:[%s11550_s3 + $0x348] sm:$0xff] }
 0x3f8   : > { %3444 = vmatpush.msra.mxu3 %v6711_v34 }
 0x3f9   : > { %v9424_v59 = vadd.f32 %v2890_v26, %v2780_v47  ;;  %2940 = vmatmul.f32.gmra.mxu0 %v9162_v30  ;;  %v9442_v30 = vld [vmem:[#allocation3 + $0x122] sm:$0xff] }
 0x3fa   : > { %v2582_v36 = vpop.f32.mrf.mxu2 }
 0x3fb   : > { %v9428_v6 = vadd.f32 %v2582_v36, %v2469_v18  ;;  %2746 = vmatmul.f32.gmra.mxu3 %v9426_v39  ;;  %v9451_v36 = vld [vmem:[#allocation3 + $0x81] sm:$0xff] }
 0x3fc   : > { %v2475_v5 = vpop.f32.mrf.mxu1 }
 0x3fe   : > { %v2699_v37 = vpop.f32.mrf.mxu3  ;;  %v2896_v18 = vpop.f32.mrf.mxu0 }
 0x3ff   : > { %v2781_v26 = vadd.f32 %v2699_v37, %v9141_v3  ;;  %3280 = vmatmul.f32.gmra.mxu2 %v9154_v29  ;;  %3089 = vmatmul.f32.gmra.mxu1 %v9435_v14  ;;  %v6727_v3 = vld [vmem:[%s11550_s3 + $0x3c8] sm:$0xff] }
 0x400   : > { %3638 = vmatpush.msra.mxu0 %v6727_v3 }
 0x401   : > { %v9440_v17 = vadd.f32 %v2893_v62, %v2781_v26  ;;  %2943 = vmatmul.f32.gmra.mxu0 %v9183_v51  ;;  %v9461_v26 = vld [vmem:[#allocation3 + $0x12a] sm:$0xff] }
 0x402   : > { %v2585_v46 = vpop.f32.mrf.mxu2 }
 0x403   : > { %v9444_v47 = vadd.f32 %v2585_v46, %v2472_v25  ;;  %2749 = vmatmul.f32.gmra.mxu3 %v9442_v30  ;;  %v6743_v25 = vld [vmem:[%s11550_s3 + $0x448] sm:$0xff] }
 0x404   : > { %v2478_v55 = vpop.f32.mrf.mxu1  ;;  %3832 = vmatpush.msra.mxu1 %v6743_v25 }
 0x406   : > { %v2702_v29 = vpop.f32.mrf.mxu3  ;;  %v2899_v51 = vpop.f32.mrf.mxu0 }
 0x407   : > { %v2782_v62 = vadd.f32 %v2702_v29, %v9157_v27  ;;  %3283 = vmatmul.f32.gmra.mxu2 %v9170_v57  ;;  %3092 = vmatmul.f32.gmra.mxu1 %v9451_v36  ;;  %v6710_v27 = vld [vmem:[%s11550_s3 + $0x340] sm:$0xff] }
 0x408   : > { %3445 = vmatpush.msra.mxu3 %v6710_v27  ;;  %v9470_v29 = vld [vmem:[#allocation3 + $0x91] sm:$0xff] }
 0x409   : > { %v9459_v34 = vadd.f32 %v2896_v18, %v2782_v62  ;;  %2946 = vmatmul.f32.gmra.mxu0 %v9199_v48  ;;  %v9477_v48 = vld [vmem:[#allocation3 + $0x13a] sm:$0xff] }
 0x40a   : > { %v2588_v37 = vpop.f32.mrf.mxu2 }
 0x40b   : > { %11705 = vst [vmem:[#allocation31_spill] sm:$0xff] %v9459_v34  ;;  %v9463_v46 = vadd.f32 %v2588_v37, %v2475_v5  ;;  %2752 = vmatmul.f32.gmra.mxu3 %v9461_v26 }
 0x40c   : > { %v2481_v57 = vpop.f32.mrf.mxu1 }
 0x40e   : > { %v2705_v3 = vpop.f32.mrf.mxu3  ;;  %v2902_v5 = vpop.f32.mrf.mxu0 }
 0x40f   : > { %v2783_v18 = vadd.f32 %v2705_v3, %v9178_v16  ;;  %3286 = vmatmul.f32.gmra.mxu2 %v9191_v53  ;;  %3095 = vmatmul.f32.gmra.mxu1 %v9470_v29  ;;  %v6726_v16 = vld [vmem:[%s11550_s3 + $0x3c0] sm:$0xff]  ;;  %v6709_v53 = vld [vmem:[%s11550_s3 + $0x338] sm:$0xff]  ;;  %v9492_v3 = vld [vmem:[#allocation3 + $0x99] sm:$0xff] }
 0x410   : > { %3639 = vmatpush.msra.mxu0 %v6726_v16  ;;  %3446 = vmatpush.msra.mxu3 %v6709_v53  ;;  %v6742_v16 = vld [vmem:[%s11550_s3 + $0x440] sm:$0xff] }
 0x411   : > { %v9475_v62 = vadd.f32 %v2899_v51, %v2783_v18  ;;  %2949 = vmatmul.f32.gmra.mxu0 %v9227_v19  ;;  %v6725_v51 = vld [vmem:[%s11550_s3 + $0x3b8] sm:$0xff]  ;;  %v6708_v18 = vld [vmem:[%s11550_s3 + $0x330] sm:$0xff]  ;;  %3833 = vmatpush.msra.mxu1 %v6742_v16 }
 0x412   : > { %v2591_v25 = vpop.f32.mrf.mxu2  ;;  %3640 = vmatpush.msra.mxu0 %v6725_v51  ;;  %3447 = vmatpush.msra.mxu3 %v6708_v18  ;;  %v6706_v18 = vld [vmem:[%s11550_s3 + $0x320] sm:$0xff] }
 0x413   : > { %11706 = vst [vmem:[#allocation33_spill] sm:$0xff] %v9475_v62  ;;  %v9479_v37 = vadd.f32 %v2591_v25, %v2478_v55  ;;  %2755 = vmatmul.f32.gmra.mxu3 %v9477_v48  ;;  %v6724_v25 = vld [vmem:[%s11550_s3 + $0x3b0] sm:$0xff]  ;;  %v9532_v16 = vld [vmem:[#allocation3 + $0xa9] sm:$0xff] }
 0x414   : > { %v2484_v27 = vpop.f32.mrf.mxu1  ;;  %3641 = vmatpush.msra.mxu0 %v6724_v25  ;;  %v9514_v62 = vld [vmem:[#allocation3 + $0x142] sm:$0xff] }
 0x416   : > { %v2708_v55 = vpop.f32.mrf.mxu3  ;;  %v2905_v53 = vpop.f32.mrf.mxu0 }
 0x417   : > { %v2784_v19 = vadd.f32 %v2708_v55, %v9194_v4  ;;  %3289 = vmatmul.f32.gmra.mxu2 %v9219_v44  ;;  %3098 = vmatmul.f32.gmra.mxu1 %v9492_v3  ;;  %v6707_v4 = vld [vmem:[%s11550_s3 + $0x328] sm:$0xff] }
 0x418   : > { %v6723_v44 = vld [vmem:[%s11550_s3 + $0x3a8] sm:$0xff]  ;;  %3448 = vmatpush.msra.mxu3 %v6707_v4 }
 0x419   : > { %v9512_v51 = vadd.f32 %v2902_v5, %v2784_v19  ;;  %3642 = vmatpush.msra.mxu0 %v6723_v44  ;;  %v6722_v5 = vld [vmem:[%s11550_s3 + $0x3a0] sm:$0xff]  ;;  %v6705_v19 = vld [vmem:[%s11550_s3 + $0x318] sm:$0xff]  ;;  %v6704_v44 = vld [vmem:[%s11550_s3 + $0x310] sm:$0xff] }
 0x41a   : > { %v2594_v55 = vpop.f32.mrf.mxu2  ;;  %2952 = vmatmul.f32.gmra.mxu0 %v9264_v61  ;;  %3449 = vmatpush.msra.mxu3 %v6706_v18 }
 0x41b   : > { %11707 = vst [vmem:[#allocation5_spill] sm:$0xff] %v9512_v51  ;;  %v9516_v34 = vadd.f32 %v2594_v55, %v2481_v57  ;;  %2758 = vmatmul.f32.gmra.mxu3 %v9514_v62  ;;  %3643 = vmatpush.msra.mxu0 %v6722_v5  ;;  %v6721_v57 = vld [vmem:[%s11550_s3 + $0x398] sm:$0xff]  ;;  %v6720_v55 = vld [vmem:[%s11550_s3 + $0x390] sm:$0xff]  ;;  %v6703_v5 = vld [vmem:[%s11550_s3 + $0x308] sm:$0xff] }
 0x41c   : > { %v2487_v25 = vpop.f32.mrf.mxu1  ;;  %3450 = vmatpush.msra.mxu3 %v6705_v19 }
 0x41d   : > { %3644 = vmatpush.msra.mxu0 %v6721_v57  ;;  %v9551_v57 = vld [vmem:[#allocation3 + $0x152] sm:$0xff] }
 0x41e   : > { %v2711_v61 = vpop.f32.mrf.mxu3  ;;  %v2908_v18 = vpop.f32.mrf.mxu0  ;;  %3451 = vmatpush.msra.mxu3 %v6704_v44  ;;  %v6702_v44 = vld [vmem:[%s11550_s3 + $0x300] sm:$0xff] }
 0x41f   : > { %v2785_v4 = vadd.f32 %v2711_v61, %v9222_v22  ;;  %3292 = vmatmul.f32.gmra.mxu2 %v9247_v12  ;;  %3101 = vmatmul.f32.gmra.mxu1 %v9532_v16  ;;  %v6719_v22 = vld [vmem:[%s11550_s3 + $0x388] sm:$0xff] }
 0x420   : > { %3645 = vmatpush.msra.mxu0 %v6720_v55  ;;  %3452 = vmatpush.msra.mxu3 %v6703_v5  ;;  %v9566_v5 = vld [vmem:[#allocation3 + $0xb1] sm:$0xff] }
 0x421   : > { %v9549_v12 = vadd.f32 %v2905_v53, %v2785_v4  ;;  %v6718_v53 = vld [vmem:[%s11550_s3 + $0x380] sm:$0xff]  ;;  %v6765_v4 = vld [vmem:[%s11552_s5 + $0xf8] sm:$0xff] }
 0x422   : > { %v2597_v19 = vpop.f32.mrf.mxu2  ;;  %3646 = vmatpush.msra.mxu0 %v6719_v22  ;;  %3453 = vmatpush.msra.mxu3 %v6702_v44  ;;  %v6741_v22 = vld [vmem:[%s11550_s3 + $0x438] sm:$0xff] }
 0x423   : > { %11708 = vst [vmem:[#allocation15_spill] sm:$0xff] %v9549_v12  ;;  %v9553_v61 = vadd.f32 %v2597_v19, %v2484_v27  ;;  %2761 = vmatmul.f32.gmra.mxu3 %v9551_v57  ;;  %2955 = vmatmul.f32.gmra.mxu0 %v9280_v42 }
 0x424   : > { %v2490_v55 = vpop.f32.mrf.mxu1  ;;  %3647 = vmatpush.msra.mxu0 %v6718_v53  ;;  %4169 = vmatpush.msra.mxu2 %v6765_v4  ;;  %v9576_v53 = vld [vmem:[#allocation3 + $0x15a] sm:$0xff] }
 0x425   : > { %3834 = vmatpush.msra.mxu1 %v6741_v22 }
 0x426   : > { %v2714_v27 = vpop.f32.mrf.mxu3  ;;  %v2911_v19 = vpop.f32.mrf.mxu0 }
 0x427   : > { %v2786_v42 = vadd.f32 %v2714_v27, %v9250_v35  ;;  %3295 = vmatmul.f32.gmra.mxu2 %v9269_v52  ;;  %3104 = vmatmul.f32.gmra.mxu1 %v9566_v5  ;;  %v9582_v27 = vld [vmem:[#allocation3 + $0xc1] sm:$0xff] }
 0x429   : > { %v9574_v12 = vadd.f32 %v2908_v18, %v2786_v42 }
 0x42a   : > { %v2600_v44 = vpop.f32.mrf.mxu2 }
 0x42b   : > { %11709 = vst [vmem:[#allocation8_spill] sm:$0xff] %v9574_v12  ;;  %v9578_v4 = vadd.f32 %v2600_v44, %v2487_v25  ;;  %2764 = vmatmul.f32.gmra.mxu3 %v9576_v53  ;;  %2958 = vmatmul.f32.gmra.mxu0 %v9299_v33  ;;  %v9589_v25 = vld [vmem:[#allocation3 + $0x16a] sm:$0xff]  ;;  %v2836_v44 = vld [vmem:[#allocation3 + $0x180] sm:$0xff] }
 0x42c   : > { %v2493_v35 = vpop.f32.mrf.mxu1 }
 0x42e   : > { %v2717_v52 = vpop.f32.mrf.mxu3  ;;  %v2914_v18 = vpop.f32.mrf.mxu0 }
 0x42f   : > { %v2787_v51 = vadd.f32 %v2717_v52, %v9272_v13  ;;  %3298 = vmatmul.f32.gmra.mxu2 %v9288_v28  ;;  %3107 = vmatmul.f32.gmra.mxu1 %v9582_v27  ;;  %v6764_v13 = vld [vmem:[%s11552_s5 + $0xf0] sm:$0xff]  ;;  %v9597_v52 = vld [vmem:[#allocation3 + $0xc9] sm:$0xff] }
 0x430   : > { %4170 = vmatpush.msra.mxu2 %v6764_v13  ;;  %11712 = vst [vmem:[#allocation25_spill] sm:$0xff] %v9597_v52  ;;  %v2837_v13 = vld [vmem:[#allocation3 + $0x188] sm:$0xff] }
 0x431   : > { %v9587_v42 = vadd.f32 %v2911_v19, %v2787_v51 }
 0x432   : > { %v2603_v22 = vpop.f32.mrf.mxu2 }
 0x433   : > { %11710 = vst [vmem:[#allocation28_spill] sm:$0xff] %v9587_v42  ;;  %v9591_v12 = vadd.f32 %v2603_v22, %v2490_v55  ;;  %2767 = vmatmul.f32.gmra.mxu3 %v9589_v25  ;;  %2961 = vmatmul.f32.gmra.mxu0 %v2836_v44  ;;  %v6740_v55 = vld [vmem:[%s11550_s3 + $0x430] sm:$0xff]  ;;  %v9607_v42 = vld [vmem:[#allocation3 + $0x172] sm:$0xff] }
 0x434   : > { %v2496_v33 = vpop.f32.mrf.mxu1  ;;  %3835 = vmatpush.msra.mxu1 %v6740_v55 }
 0x435   : > { %11711 = vst [vmem:[#allocation21_spill] sm:$0xff] %v9591_v12 }
 0x436   : > { %v2720_v28 = vpop.f32.mrf.mxu3  ;;  %v2917_v19 = vpop.f32.mrf.mxu0 }
 0x437   : > { %v2788_v51 = vadd.f32 %v2720_v28, %v9291_v24  ;;  %3301 = vmatmul.f32.gmra.mxu2 %v9302_v38  ;;  %3110 = vmatmul.f32.gmra.mxu1 %v9597_v52  ;;  %v9612_v28 = vld [vmem:[#allocation3 + $0xd9] sm:$0xff] }
 0x439   : > { %v9605_v22 = vadd.f32 %v2914_v18, %v2788_v51 }
 0x43a   : > { %v2606_v44 = vpop.f32.mrf.mxu2 }
 0x43b   : > { %11713 = vst [vmem:[#allocation6_spill] sm:$0xff] %v9605_v22  ;;  %v9609_v12 = vadd.f32 %v2606_v44, %v2493_v35  ;;  %2770 = vmatmul.f32.gmra.mxu3 %v9607_v42  ;;  %2964 = vmatmul.f32.gmra.mxu0 %v2837_v13  ;;  %v3389_v22 = vld [vmem:[#allocation3 + $0x30] sm:$0xff]  ;;  %v6763_v44 = vld [vmem:[%s11552_s5 + $0xe8] sm:$0xff] }
 0x43c   : > { %v3066_v24 = vpop.f32.mrf.mxu1  ;;  %4171 = vmatpush.msra.mxu2 %v6763_v44 }
 0x43e   : > { %v2723_v38 = vpop.f32.mrf.mxu3  ;;  %v2920_v18 = vpop.f32.mrf.mxu0 }
 0x43f   : > { %v2789_v52 = vadd.f32 %v2723_v38, %v9305_v54  ;;  %3304 = vmatmul.f32.gmra.mxu2 %v9320_v40  ;;  %3113 = vmatmul.f32.gmra.mxu1 %v9612_v28  ;;  %v9625_v40 = vld [vmem:[#allocation3 + $0xe1] sm:$0xff] }
 0x441   : > { %v9617_v51 = vadd.f32 %v2917_v19, %v2789_v52  ;;  %v3162_v52 = vadd.f32 %v3066_v24, %v9318_v2 }
 0x442   : > { %v2609_v55 = vpop.f32.mrf.mxu2 }
 0x443   : > { %11714 = vst [vmem:[#allocation10_spill] sm:$0xff] %v9617_v51  ;;  %v9619_v35 = vadd.f32 %v2609_v55, %v2496_v33  ;;  %3454 = vmatmul.f32.vlgmr.msra.gmra.mxu3 %v3389_v22  ;;  %3648 = vmatmul.f32.vlgmr.msra.gmra.mxu0 %v9331_v31  ;;  %v6739_v33 = vld [vmem:[%s11550_s3 + $0x428] sm:$0xff] }
 0x444   : > { %v3069_v13 = vpop.f32.mrf.mxu1  ;;  %3836 = vmatpush.msra.mxu1 %v6739_v33  ;;  %v3390_v55 = vld [vmem:[#allocation3 + $0x38] sm:$0xff]  ;;  %v3391_v33 = vld [vmem:[#allocation3 + $0x48] sm:$0xff] }
 0x445   : > { %v3163_v24 = vadd.f32 %v3069_v13, %v9335_v49 }
 0x446   : > { %v2726_v54 = vpop.f32.mrf.mxu3  ;;  %v2923_v31 = vpop.f32.mrf.mxu0 }
 0x447   : > { %v2790_v38 = vadd.f32 %v2726_v54, %v9322_v41  ;;  %3307 = vmatmul.f32.gmra.mxu2 %v9337_v23  ;;  %3116 = vmatmul.f32.gmra.mxu1 %v9625_v40  ;;  %v9639_v54 = vld [vmem:[#allocation3 + $0xf1] sm:$0xff] }
 0x449   : > { %v9634_v19 = vadd.f32 %v2920_v18, %v2790_v38 }
 0x44a   : > { %v3260_v22 = vpop.f32.mrf.mxu2 }
 0x44b   : > { %11715 = vst [vmem:[#allocation7_spill] sm:$0xff] %v9634_v19  ;;  %v9636_v44 = vadd.f32 %v3260_v22, %v3162_v52  ;;  %3457 = vmatmul.f32.gmra.mxu3 %v3390_v55  ;;  %3651 = vmatmul.f32.gmra.mxu0 %v9346_v7  ;;  %v9653_v22 = vld [vmem:[#allocation3 + $0xf9] sm:$0xff] }
 0x44c   : > { %v3072_v41 = vpop.f32.mrf.mxu1  ;;  %v3793_v19 = vld [vmem:[#allocation3 + $0xf2] sm:$0xff] }
 0x44d   : > { %v3164_v13 = vadd.f32 %v3072_v41, %v9354_v1 }
 0x44e   : > { %v2729_v23 = vpop.f32.mrf.mxu3  ;;  %v2926_v2 = vpop.f32.mrf.mxu0 }
 0x44f   : > { %v2791_v51 = vadd.f32 %v2729_v23, %v9339_v11  ;;  %3310 = vmatmul.f32.gmra.mxu2 %v9356_v0  ;;  %3119 = vmatmul.f32.gmra.mxu1 %v9639_v54  ;;  %v6762_v11 = vld [vmem:[%s11552_s5 + $0xe0] sm:$0xff] }
 0x450   : > { %4172 = vmatpush.msra.mxu2 %v6762_v11  ;;  %v3392_v23 = vld [vmem:[#allocation3 + $0x50] sm:$0xff] }
 0x451   : > { %v9645_v18 = vadd.f32 %v2923_v31, %v2791_v51  ;;  %v6738_v51 = vld [vmem:[%s11550_s3 + $0x420] sm:$0xff] }
 0x452   : > { %v3263_v38 = vpop.f32.mrf.mxu2  ;;  %3837 = vmatpush.msra.mxu1 %v6738_v51  ;;  %v9681_v51 = vld [vmem:[#allocation3 + $0x111] sm:$0xff] }
 0x453   : > { %11716 = vst [vmem:[#allocation26_spill] sm:$0xff] %v9645_v18  ;;  %v9647_v52 = vadd.f32 %v3263_v38, %v3163_v24  ;;  %3460 = vmatmul.f32.gmra.mxu3 %v3391_v33  ;;  %3654 = vmatmul.f32.gmra.mxu0 %v9365_v56  ;;  %v9667_v38 = vld [vmem:[#allocation3 + $0x109] sm:$0xff] }
 0x454   : > { %v3075_v7 = vpop.f32.mrf.mxu1 }
 0x455   : > { %v3165_v41 = vadd.f32 %v3075_v7, %v9370_v32  ;;  %v6737_v7 = vld [vmem:[%s11550_s3 + $0x418] sm:$0xff] }
 0x456   : > { %v2732_v0 = vpop.f32.mrf.mxu3  ;;  %v2929_v56 = vpop.f32.mrf.mxu0  ;;  %3838 = vmatpush.msra.mxu1 %v6737_v7 }
 0x457   : > { %v2792_v49 = vadd.f32 %v2732_v0, %v9358_v45  ;;  %3313 = vmatmul.f32.gmra.mxu2 %v9372_v8  ;;  %3122 = vmatmul.f32.gmra.mxu1 %v9653_v22  ;;  %v3393_v0 = vld [vmem:[#allocation3 + $0x60] sm:$0xff] }
 0x459   : > { %v9662_v31 = vadd.f32 %v2926_v2, %v2792_v49 }
 0x45a   : > { %v3266_v55 = vpop.f32.mrf.mxu2 }
 0x45b   : > { %11717 = vst [vmem:[#allocation22_spill] sm:$0xff] %v9662_v31  ;;  %v9664_v24 = vadd.f32 %v3266_v55, %v3164_v13  ;;  %3463 = vmatmul.f32.gmra.mxu3 %v3392_v23  ;;  %3657 = vmatmul.f32.gmra.mxu0 %v9381_v10  ;;  %v3394_v23 = vld [vmem:[#allocation3 + $0x68] sm:$0xff]  ;;  %v4120_v31 = vld [vmem:[#allocation4 + $0x1] sm:$0xff] }
 0x45c   : > { %v3078_v45 = vpop.f32.mrf.mxu1 }
 0x45e   : > { %v2735_v8 = vpop.f32.mrf.mxu3  ;;  %v2932_v1 = vpop.f32.mrf.mxu0 }
 0x45f   : > { %v2793_v33 = vadd.f32 %v2735_v8, %v9374_v50  ;;  %3316 = vmatmul.f32.gmra.mxu2 %v9391_v15  ;;  %3125 = vmatmul.f32.gmra.mxu1 %v9667_v38  ;;  %v6761_v50 = vld [vmem:[%s11552_s5 + $0xd8] sm:$0xff] }
 0x460   : > { %4173 = vmatpush.msra.mxu2 %v6761_v50 }
 0x461   : > { %v9673_v2 = vadd.f32 %v2929_v56, %v2793_v33  ;;  %v3166_v56 = vadd.f32 %v3078_v45, %v9389_v20  ;;  %v9695_v33 = vld [vmem:[#allocation3 + $0x121] sm:$0xff] }
 0x462   : > { %v3269_v11 = vpop.f32.mrf.mxu2 }
 0x463   : > { %11718 = vst [vmem:[#allocation32_spill] sm:$0xff] %v9673_v2  ;;  %v9675_v49 = vadd.f32 %v3269_v11, %v3165_v41  ;;  %3466 = vmatmul.f32.gmra.mxu3 %v3393_v0  ;;  %3660 = vmatmul.f32.gmra.mxu0 %v9400_v21  ;;  %v3395_v0 = vld [vmem:[#allocation3 + $0x78] sm:$0xff] }
 0x464   : > { %v3081_v10 = vpop.f32.mrf.mxu1 }
 0x465   : > { %v3167_v45 = vadd.f32 %v3081_v10, %v9405_v63  ;;  %v6736_v10 = vld [vmem:[%s11550_s3 + $0x410] sm:$0xff] }
 0x466   : > { %v2738_v15 = vpop.f32.mrf.mxu3  ;;  %v2935_v21 = vpop.f32.mrf.mxu0  ;;  %3839 = vmatpush.msra.mxu1 %v6736_v10 }
 0x467   : > { %v2794_v32 = vadd.f32 %v2738_v15, %v9393_v9  ;;  %3319 = vmatmul.f32.gmra.mxu2 %v9407_v60  ;;  %3128 = vmatmul.f32.gmra.mxu1 %v9681_v51  ;;  %v9709_v15 = vld [vmem:[#allocation3 + $0x129] sm:$0xff] }
 0x469   : > { %v9690_v13 = vadd.f32 %v2932_v1, %v2794_v32 }
 0x46a   : > { %v3272_v55 = vpop.f32.mrf.mxu2 }
 0x46b   : > { %11719 = vst [vmem:[#allocation11_spill] sm:$0xff] %v9690_v13  ;;  %v9692_v8 = vadd.f32 %v3272_v55, %v3166_v56  ;;  %3469 = vmatmul.f32.gmra.mxu3 %v3394_v23  ;;  %3663 = vmatmul.f32.gmra.mxu0 %v9416_v58  ;;  %v3396_v56 = vld [vmem:[#allocation3 + $0x80] sm:$0xff] }
 0x46c   : > { %v3084_v9 = vpop.f32.mrf.mxu1  ;;  %v9725_v23 = vld [vmem:[#allocation3 + $0x139] sm:$0xff] }
 0x46d   : > { %v3168_v32 = vadd.f32 %v3084_v9, %v9424_v59 }
 0x46e   : > { %v2741_v60 = vpop.f32.mrf.mxu3  ;;  %v2938_v20 = vpop.f32.mrf.mxu0 }
 0x46f   : > { %v2795_v41 = vadd.f32 %v2741_v60, %v9409_v43  ;;  %3322 = vmatmul.f32.gmra.mxu2 %v9426_v39  ;;  %3131 = vmatmul.f32.gmra.mxu1 %v9695_v33  ;;  %v6760_v43 = vld [vmem:[%s11552_s5 + $0xd0] sm:$0xff] }
 0x470   : > { %4174 = vmatpush.msra.mxu2 %v6760_v43 }
 0x471   : > { %v9701_v1 = vadd.f32 %v2935_v21, %v2795_v41 }
 0x472   : > { %v3275_v11 = vpop.f32.mrf.mxu2 }
 0x473   : > { %11720 = vst [vmem:[#allocation27_spill] sm:$0xff] %v9701_v1  ;;  %v9703_v50 = vadd.f32 %v3275_v11, %v3167_v45  ;;  %3472 = vmatmul.f32.gmra.mxu3 %v3395_v0  ;;  %3666 = vmatmul.f32.gmra.mxu0 %v9435_v14  ;;  %v3397_v45 = vld [vmem:[#allocation3 + $0x90] sm:$0xff]  ;;  %v9741_v0 = vld [vmem:[#allocation3 + $0x141] sm:$0xff]  ;;  %v3414_v1 = vld [vmem:[#allocation3 + $0x158] sm:$0xff] }
 0x474   : > { %v3087_v58 = vpop.f32.mrf.mxu1 }
 0x475   : > { %v3169_v9 = vadd.f32 %v3087_v58, %v9440_v17 }
 0x476   : > { %v2744_v39 = vpop.f32.mrf.mxu3  ;;  %v2941_v14 = vpop.f32.mrf.mxu0 }
 0x477   : > { %v2796_v63 = vadd.f32 %v2744_v39, %v9428_v6  ;;  %3325 = vmatmul.f32.gmra.mxu2 %v9442_v30  ;;  %3134 = vmatmul.f32.gmra.mxu1 %v9709_v15  ;;  %v3398_v39 = vld [vmem:[#allocation3 + $0x98] sm:$0xff] }
 0x479   : > { %v9718_v7 = vadd.f32 %v2938_v20, %v2796_v63 }
 0x47a   : > { %v3278_v21 = vpop.f32.mrf.mxu2 }
 0x47b   : > { %11721 = vst [vmem:[#allocation19_spill] sm:$0xff] %v9718_v7  ;;  %v9720_v55 = vadd.f32 %v3278_v21, %v3168_v32  ;;  %3475 = vmatmul.f32.gmra.mxu3 %v3396_v56  ;;  %3669 = vmatmul.f32.gmra.mxu0 %v9451_v36  ;;  %v3399_v21 = vld [vmem:[#allocation3 + $0xa8] sm:$0xff]  ;;  %v3413_v7 = vld [vmem:[#allocation3 + $0x150] sm:$0xff] }
 0x47c   : > { %v9723_v6 = vpop.f32.mrf.mxu1 }
 0x47e   : > { %v2747_v30 = vpop.f32.mrf.mxu3  ;;  %v2944_v59 = vpop.f32.mrf.mxu0 }
 0x47f   : > { %v2797_v60 = vadd.f32 %v2747_v30, %v9444_v47  ;;  %3328 = vmatmul.f32.gmra.mxu2 %v9461_v26  ;;  %3137 = vmatmul.f32.gmra.mxu1 %v9725_v23  ;;  %v6759_v47 = vld [vmem:[%s11552_s5 + $0xc8] sm:$0xff] }
 0x480   : > { %4175 = vmatpush.msra.mxu2 %v6759_v47 }
 0x481   : > { %v9731_v41 = vadd.f32 %v2941_v14, %v2797_v60 }
 0x482   : > { %v3281_v20 = vpop.f32.mrf.mxu2 }
 0x483   : > { %11722 = vst [vmem:[#allocation24_spill] sm:$0xff] %v9731_v41  ;;  %v9733_v11 = vadd.f32 %v3281_v20, %v3169_v9  ;;  %3478 = vmatmul.f32.gmra.mxu3 %v3397_v45  ;;  %3672 = vmatmul.f32.gmra.mxu0 %v9470_v29  ;;  %v6735_v29 = vld [vmem:[%s11550_s3 + $0x408] sm:$0xff]  ;;  %v3400_v9 = vld [vmem:[#allocation3 + $0xb0] sm:$0xff]  ;;  %v3412_v41 = vld [vmem:[#allocation3 + $0x140] sm:$0xff] }
 0x484   : > { %v9739_v36 = vpop.f32.mrf.mxu1  ;;  %3840 = vmatpush.msra.mxu1 %v6735_v29 }
 0x486   : > { %v2750_v26 = vpop.f32.mrf.mxu3  ;;  %v2947_v43 = vpop.f32.mrf.mxu0 }
 0x487   : > { %v2798_v17 = vadd.f32 %v2750_v26, %v9463_v46  ;;  %3331 = vmatmul.f32.gmra.mxu2 %v9477_v48  ;;  %3140 = vmatmul.f32.gmra.mxu1 %v9741_v0  ;;  %v9754_v46 = vld [vmem:[#allocation3 + $0x151] sm:$0xff] }
 0x489   : > { %v9749_v58 = vadd.f32 %v2944_v59, %v2798_v17  ;;  %v3401_v17 = vld [vmem:[#allocation3 + $0xc0] sm:$0xff] }
 0x48b   : > { %11723 = vst [vmem:[#allocation13_spill] sm:$0xff] %v9749_v58  ;;  %3481 = vmatmul.f32.gmra.mxu3 %v3398_v39  ;;  %3675 = vmatmul.f32.gmra.mxu0 %v9492_v3  ;;  %v6758_v3 = vld [vmem:[%s11552_s5 + $0xc0] sm:$0xff] }
 0x48c   : > { %v9752_v63 = vpop.f32.mrf.mxu1  ;;  %4176 = vmatpush.msra.mxu2 %v6758_v3  ;;  %v9803_v3 = vld [vmem:[#allocation3 + $0x181] sm:$0xff] }
 0x48e   : > { %v2753_v10 = vpop.f32.mrf.mxu3  ;;  %v2950_v14 = vpop.f32.mrf.mxu0 }
 0x48f   : > { %v2799_v48 = vadd.f32 %v2753_v10, %v9479_v37  ;;  %3334 = vmatmul.f32.gmra.mxu2 %v9514_v62  ;;  %3143 = vmatmul.f32.gmra.mxu1 %v9754_v46  ;;  %v9767_v37 = vld [vmem:[#allocation3 + $0x159] sm:$0xff] }
 0x491   : > { %v9759_v32 = vadd.f32 %v2947_v43, %v2799_v48  ;;  %v11728_v48 = vld [vmem:[#allocation25_spill] sm:$0xff] }
 0x493   : > { %11724 = vst [vmem:[#allocation30_spill] sm:$0xff] %v9759_v32  ;;  %3484 = vmatmul.f32.gmra.mxu3 %v3399_v21  ;;  %3678 = vmatmul.f32.gmra.mxu0 %v9532_v16  ;;  %v6734_v16 = vld [vmem:[%s11550_s3 + $0x400] sm:$0xff]  ;;  %v3784_v32 = vld [vmem:[#allocation3 + $0x82] sm:$0xff] }
 0x494   : > { %v9765_v56 = vpop.f32.mrf.mxu1  ;;  %3841 = vmatpush.msra.mxu1 %v6734_v16  ;;  %v3403_v16 = vld [vmem:[#allocation3 + $0xd8] sm:$0xff] }
 0x496   : > { %v2756_v30 = vpop.f32.mrf.mxu3 }
 0x497   : > { %v2800_v62 = vadd.f32 %v2756_v30, %v9516_v34  ;;  %3337 = vmatmul.f32.gmra.mxu2 %v9551_v57  ;;  %3146 = vmatmul.f32.gmra.mxu1 %v9767_v37  ;;  %v2953_v60 = vpop.f32.mrf.mxu0  ;;  %v9780_v34 = vld [vmem:[#allocation3 + $0x169] sm:$0xff]  ;;  %v11729_v30 = vld [vmem:[#allocation21_spill] sm:$0xff] }
 0x499   : > { %v9775_v59 = vadd.f32 %v2950_v14, %v2800_v62 }
 0x49b   : > { %11725 = vst [vmem:[#allocation9_spill] sm:$0xff] %v9775_v59  ;;  %3487 = vmatmul.f32.gmra.mxu3 %v3400_v9  ;;  %3681 = vmatmul.f32.gmra.mxu0 %v9566_v5  ;;  %v6757_v5 = vld [vmem:[%s11552_s5 + $0xb8] sm:$0xff] }
 0x49c   : > { %v9778_v20 = vpop.f32.mrf.mxu1  ;;  %4177 = vmatpush.msra.mxu2 %v6757_v5 }
 0x49e   : > { %v2759_v45 = vpop.f32.mrf.mxu3 }
 0x49f   : > { %v2801_v57 = vadd.f32 %v2759_v45, %v9553_v61  ;;  %3340 = vmatmul.f32.gmra.mxu2 %v9576_v53  ;;  %3149 = vmatmul.f32.gmra.mxu1 %v9780_v34  ;;  %v9793_v61 = vld [vmem:[#allocation3 + $0x171] sm:$0xff] }
 0x4a0   : > { %v2956_v47 = vpop.f32.mrf.mxu0 }
 0x4a1   : > { %v9785_v26 = vadd.f32 %v2953_v60, %v2801_v57  ;;  %v6756_v60 = vld [vmem:[%s11552_s5 + $0xb0] sm:$0xff] }
 0x4a2   : > { %4178 = vmatpush.msra.mxu2 %v6756_v60  ;;  %v3224_v57 = vld [vmem:[#allocation3 + $0x182] sm:$0xff] }
 0x4a3   : > { %11726 = vst [vmem:[#allocation20_spill] sm:$0xff] %v9785_v26  ;;  %3490 = vmatmul.f32.gmra.mxu3 %v3401_v17  ;;  %3684 = vmatmul.f32.gmra.mxu0 %v9582_v27  ;;  %v3402_v27 = vld [vmem:[#allocation3 + $0xc8] sm:$0xff]  ;;  %v3783_v26 = vld [vmem:[#allocation3 + $0x7a] sm:$0xff] }
 0x4a4   : > { %v9791_v29 = vpop.f32.mrf.mxu1 }
 0x4a6   : > { %v2762_v43 = vpop.f32.mrf.mxu3 }
 0x4a7   : > { %v2802_v53 = vadd.f32 %v2762_v43, %v9578_v4  ;;  %3343 = vmatmul.f32.gmra.mxu2 %v9589_v25  ;;  %3152 = vmatmul.f32.gmra.mxu1 %v9793_v61 }
 0x4a8   : > { %v2959_v39 = vpop.f32.mrf.mxu0 }
 0x4a9   : > { %v9798_v10 = vadd.f32 %v2956_v47, %v2802_v53  ;;  %v9816_v47 = vld [vmem:[#allocation3 + $0x189] sm:$0xff] }
 0x4ab   : > { %11727 = vst [vmem:[#allocation12_spill] sm:$0xff] %v9798_v10  ;;  %3493 = vmatmul.f32.gmra.mxu3 %v3402_v27  ;;  %3687 = vmatmul.f32.gmra.mxu0 %v11728_v48  ;;  %v3777_v27 = vld [vmem:[#allocation3 + $0x32] sm:$0xff] }
 0x4ac   : > { %v9801_v14 = vpop.f32.mrf.mxu1 }
 0x4ae   : > { %v2765_v21 = vpop.f32.mrf.mxu3 }
 0x4af   : > { %v2803_v62 = vadd.f32 %v2765_v21, %v11729_v30  ;;  %3346 = vmatmul.f32.gmra.mxu2 %v9607_v42  ;;  %3155 = vmatmul.f32.gmra.mxu1 %v9803_v3  ;;  %v3405_v30 = vld [vmem:[#allocation3 + $0xf0] sm:$0xff] }
 0x4b0   : > { %v2962_v4 = vpop.f32.mrf.mxu0 }
 0x4b1   : > { %v9808_v25 = vadd.f32 %v2959_v39, %v2803_v62  ;;  %v3225_v39 = vld [vmem:[#allocation3 + $0x18a] sm:$0xff] }
 0x4b3   : > { %11730 = vst [vmem:[#allocation14_spill] sm:$0xff] %v9808_v25  ;;  %3496 = vmatmul.f32.gmra.mxu3 %v3403_v16  ;;  %3690 = vmatmul.f32.gmra.mxu0 %v9612_v28  ;;  %v3404_v28 = vld [vmem:[#allocation3 + $0xe0] sm:$0xff]  ;;  %v3410_v25 = vld [vmem:[#allocation3 + $0x128] sm:$0xff] }
 0x4b4   : > { %v9814_v9 = vpop.f32.mrf.mxu1  ;;  %v3778_v16 = vld [vmem:[#allocation3 + $0x3a] sm:$0xff] }
 0x4b6   : > { %v2768_v45 = vpop.f32.mrf.mxu3 }
 0x4b7   : > { %v2804_v42 = vadd.f32 %v2768_v45, %v9609_v12  ;;  %3349 = vmatmul.f32.gmra.mxu2 %v3224_v57  ;;  %3158 = vmatmul.f32.gmra.mxu1 %v9816_v47  ;;  %v3406_v45 = vld [vmem:[#allocation3 + $0xf8] sm:$0xff] }
 0x4b8   : > { %v2965_v17 = vpop.f32.mrf.mxu0 }
 0x4b9   : > { %v9820_v5 = vadd.f32 %v2962_v4, %v2804_v42  ;;  %v9836_v4 = vpop.f32.mrf.mxu2  ;;  %v3779_v42 = vld [vmem:[#allocation3 + $0x4a] sm:$0xff] }
 0x4bb   : > { %11731 = vst [vmem:[#allocation16_spill] sm:$0xff] %v9820_v5  ;;  %3499 = vmatmul.f32.gmra.mxu3 %v3404_v28  ;;  %3693 = vmatmul.f32.gmra.mxu0 %v9625_v40  ;;  %v6755_v40 = vld [vmem:[%s11552_s5 + $0xa8] sm:$0xff]  ;;  %v3782_v5 = vld [vmem:[#allocation3 + $0x6a] sm:$0xff] }
 0x4bc   : > { %v9823_v43 = vpop.f32.mrf.mxu1  ;;  %4179 = vmatpush.msra.mxu2 %v6755_v40 }
 0x4bd   : > { %11732 = vst [vmem:[#allocation18_spill] sm:$0xff] %v9823_v43  ;;  %v7104_v43 = vld [vmem:[#allocation2] sm:$0xff] }
 0x4be   : > { %v2771_v53 = vpop.f32.mrf.mxu3 }
 0x4bf   : > { %v2805_v48 = vadd.f32 %v2771_v53, %v9619_v35  ;;  %3352 = vmatmul.f32.gmra.mxu2 %v3225_v39  ;;  %3842 = vmatmul.f32.vlgmr.msra.gmra.mxu1 %v3777_v27  ;;  %v3407_v53 = vld [vmem:[#allocation3 + $0x108] sm:$0xff]  ;;  %v6754_v39 = vld [vmem:[%s11552_s5 + $0xa0] sm:$0xff] }
 0x4c0   : > { %v9826_v12 = vpop.f32.mrf.mxu0  ;;  %4180 = vmatpush.msra.mxu2 %v6754_v39  ;;  %v3409_v39 = vld [vmem:[#allocation3 + $0x120] sm:$0xff] }
 0x4c1   : > { %v9828_v21 = vadd.f32 %v2965_v17, %v2805_v48  ;;  %v9847_v17 = vpop.f32.mrf.mxu2  ;;  %v3780_v48 = vld [vmem:[#allocation3 + $0x52] sm:$0xff] }
 0x4c3   : > { %11733 = vst [vmem:[#allocation29_spill] sm:$0xff] %v9828_v21  ;;  %3502 = vmatmul.f32.gmra.mxu3 %v3405_v30  ;;  %3696 = vmatmul.f32.gmra.mxu0 %v9639_v54 }
 0x4c4   : > { %v9834_v62 = vpop.f32.mrf.mxu1 }
 0x4c5   : > { %11734 = vst [vmem:[#allocation17_spill] sm:$0xff] %v9834_v62 }
 0x4c6   : > { %v9838_v35 = vpop.f32.mrf.mxu3 }
 0x4c7   : > { %3845 = vmatmul.f32.gmra.mxu1 %v3778_v16  ;;  %v3408_v16 = vld [vmem:[#allocation3 + $0x110] sm:$0xff] }
 0x4c8   : > { %v9840_v60 = vpop.f32.mrf.mxu0 }
 0x4c9   : > { %v9861_v40 = vpop.f32.mrf.mxu2 }
 0x4cb   : > { %3505 = vmatmul.f32.gmra.mxu3 %v3406_v45  ;;  %3699 = vmatmul.f32.gmra.mxu0 %v9653_v22 }
 0x4cc   : > { %v9843_v54 = vpop.f32.mrf.mxu1 }
 0x4cd   : > { %11735 = vst [vmem:[#allocation23_spill] sm:$0xff] %v9843_v54  ;;  %v4104_v54 = vld [vmem:[%s11552_s5] sm:$0xff] }
 0x4ce   : > { %v9845_v57 = vpop.f32.mrf.mxu3 }
 0x4cf   : > { %3848 = vmatmul.f32.gmra.mxu1 %v3779_v42  ;;  %v3781_v42 = vld [vmem:[#allocation3 + $0x62] sm:$0xff] }
 0x4d0   : > { %v9849_v28 = vpop.f32.mrf.mxu0 }
 0x4d1   : > { %v9870_v21 = vpop.f32.mrf.mxu2 }
 0x4d3   : > { %3508 = vmatmul.f32.gmra.mxu3 %v3407_v53  ;;  %3702 = vmatmul.f32.gmra.mxu0 %v9667_v38 }
 0x4d4   : > { %v9855_v27 = vpop.f32.mrf.mxu1 }
 0x4d5   : > { %11736 = vst [vmem:[#allocation25_spill] sm:$0xff] %v9855_v27  ;;  %v3788_v27 = vld [vmem:[#allocation3 + $0xb2] sm:$0xff] }
 0x4d6   : > { %v9857_v22 = vpop.f32.mrf.mxu3 }
 0x4d7   : > { %3851 = vmatmul.f32.gmra.mxu1 %v3780_v48  ;;  %v6753_v48 = vld [vmem:[%s11552_s5 + $0x98] sm:$0xff] }
 0x4d8   : > { %v9859_v30 = vpop.f32.mrf.mxu0  ;;  %4181 = vmatpush.msra.mxu2 %v6753_v48  ;;  %v3411_v48 = vld [vmem:[#allocation3 + $0x138] sm:$0xff] }
 0x4db   : > { %3511 = vmatmul.f32.gmra.mxu3 %v3408_v16  ;;  %3705 = vmatmul.f32.gmra.mxu0 %v9681_v51 }
 0x4dc   : > { %v9864_v38 = vpop.f32.mrf.mxu1 }
 0x4dd   : > { %11737 = vst [vmem:[#allocation21_spill] sm:$0xff] %v9864_v38  ;;  %v6780_v38 = vld [vmem:[%s11552_s5 + $0x170] sm:$0xff] }
 0x4de   : > { %v9866_v45 = vpop.f32.mrf.mxu3 }
 0x4df   : > { %3854 = vmatmul.f32.gmra.mxu1 %v3781_v42 }
 0x4e0   : > { %v9868_v53 = vpop.f32.mrf.mxu0 }
 0x4e3   : > { %3514 = vmatmul.f32.gmra.mxu3 %v3409_v39  ;;  %3708 = vmatmul.f32.gmra.mxu0 %v9695_v33  ;;  %v9885_v33 = vpop.f32.mrf.mxu2 }
 0x4e4   : > { %v9876_v16 = vpop.f32.mrf.mxu1 }
 0x4e5   : > { %11738 = vst [vmem:[#allocation34_spill] sm:$0xff] %v9876_v16  ;;  %v4117_v16 = vld [vmem:[%s11552_s5 + $0x68] sm:$0xff] }
 0x4e6   : > { %v9878_v51 = vpop.f32.mrf.mxu3 }
 0x4e7   : > { %3857 = vmatmul.f32.gmra.mxu1 %v3782_v5 }
 0x4e8   : > { %v9880_v42 = vpop.f32.mrf.mxu0 }
 0x4eb   : > { %3517 = vmatmul.f32.gmra.mxu3 %v3410_v25  ;;  %3711 = vmatmul.f32.gmra.mxu0 %v9709_v15  ;;  %v6752_v25 = vld [vmem:[%s11552_s5 + $0x90] sm:$0xff]  ;;  %v9899_v58 = vpop.f32.mrf.mxu2 }
 0x4ec   : > { %v9883_v39 = vpop.f32.mrf.mxu1  ;;  %4182 = vmatpush.msra.mxu2 %v6752_v25 }
 0x4ed   : > { %11739 = vst [vmem:[#allocation35_spill] sm:$0xff] %v9883_v39  ;;  %v3785_v39 = vld [vmem:[#allocation3 + $0x92] sm:$0xff] }
 0x4ee   : > { %v9887_v10 = vpop.f32.mrf.mxu3 }
 0x4ef   : > { %3860 = vmatmul.f32.gmra.mxu1 %v3783_v26 }
 0x4f0   : > { %v9889_v59 = vpop.f32.mrf.mxu0 }
 0x4f3   : > { %3520 = vmatmul.f32.gmra.mxu3 %v3411_v48  ;;  %3714 = vmatmul.f32.gmra.mxu0 %v9725_v23  ;;  %v9910_v25 = vpop.f32.mrf.mxu2 }
 0x4f4   : > { %v9895_v5 = vpop.f32.mrf.mxu1 }
 0x4f5   : > { %11740 = vst [vmem:[#allocation36_spill] sm:$0xff] %v9895_v5 }
 0x4f6   : > { %v9897_v15 = vpop.f32.mrf.mxu3 }
 0x4f7   : > { %3863 = vmatmul.f32.gmra.mxu1 %v3784_v32 }
 0x4f8   : > { %v9901_v26 = vpop.f32.mrf.mxu0 }
 0x4fb   : > { %3523 = vmatmul.f32.gmra.mxu3 %v3412_v41  ;;  %3717 = vmatmul.f32.gmra.mxu0 %v9741_v0  ;;  %v6751_v41 = vld [vmem:[%s11552_s5 + $0x88] sm:$0xff]  ;;  %v4119_v0 = vld [vmem:[%s11552_s5 + $0x78] sm:$0xff] }
 0x4fc   : > { %v9904_v23 = vpop.f32.mrf.mxu1  ;;  %4183 = vmatpush.msra.mxu2 %v6751_v41  ;;  %4282 = vmatpush.msrb.mxu3 %v4119_v0  ;;  %v4115_v41 = vld [vmem:[%s11552_s5 + $0x58] sm:$0xff] }
 0x4fd   : > { %11741 = vst [vmem:[#allocation37_spill] sm:$0xff] %v9904_v23  ;;  %v3786_v23 = vld [vmem:[#allocation3 + $0x9a] sm:$0xff]  ;;  %v6781_v0 = vld [vmem:[%s11552_s5 + $0x178] sm:$0xff] }
 0x4fe   : > { %v9906_v48 = vpop.f32.mrf.mxu3  ;;  %4444 = vmatpush.msrb.mxu0 %v6781_v0  ;;  %v3415_v0 = vld [vmem:[#allocation3 + $0x168] sm:$0xff] }
 0x4ff   : > { %3866 = vmatmul.f32.gmra.mxu1 %v3785_v39 }
 0x500   : > { %v9908_v5 = vpop.f32.mrf.mxu0  ;;  %4445 = vmatpush.msrb.mxu0 %v6780_v38  ;;  %v6778_v38 = vld [vmem:[%s11552_s5 + $0x160] sm:$0xff] }
 0x503   : > { %3526 = vmatmul.f32.gmra.mxu3 %v3413_v7  ;;  %3720 = vmatmul.f32.gmra.mxu0 %v9754_v46  ;;  %v4118_v7 = vld [vmem:[%s11552_s5 + $0x70] sm:$0xff] }
 0x504   : > { %v9919_v32 = vpop.f32.mrf.mxu1  ;;  %4283 = vmatpush.msrb.mxu3 %v4118_v7 }
 0x505   : > { %11742 = vst [vmem:[#allocation38_spill] sm:$0xff] %v9919_v32  ;;  %v9931_v32 = vpop.f32.mrf.mxu2 }
 0x506   : > { %v9921_v39 = vpop.f32.mrf.mxu3  ;;  %4284 = vmatpush.msrb.mxu3 %v4117_v16  ;;  %11743 = vst [vmem:[#allocation39_spill] sm:$0xff] %v9931_v32 }
 0x507   : > { %3869 = vmatmul.f32.gmra.mxu1 %v3786_v23  ;;  %v4116_v23 = vld [vmem:[%s11552_s5 + $0x60] sm:$0xff] }
 0x508   : > { %v9926_v46 = vpop.f32.mrf.mxu0  ;;  %4285 = vmatpush.msrb.mxu3 %v4116_v23  ;;  %v4113_v23 = vld [vmem:[%s11552_s5 + $0x48] sm:$0xff] }
 0x50a   : > { %4286 = vmatpush.msrb.mxu3 %v4115_v41  ;;  %v6779_v41 = vld [vmem:[%s11552_s5 + $0x168] sm:$0xff] }
 0x50b   : > { %3529 = vmatmul.f32.gmra.mxu3 %v3414_v1  ;;  %3723 = vmatmul.f32.gmra.mxu0 %v9767_v37  ;;  %v3787_v1 = vld [vmem:[#allocation3 + $0xaa] sm:$0xff]  ;;  %v4114_v37 = vld [vmem:[%s11552_s5 + $0x50] sm:$0xff] }
 0x50c   : > { %v9943_v7 = vpop.f32.mrf.mxu1  ;;  %4287 = vmatpush.msrb.mxu3 %v4114_v37  ;;  %4446 = vmatpush.msrb.mxu0 %v6779_v41  ;;  %v6750_v37 = vld [vmem:[%s11552_s5 + $0x80] sm:$0xff] }
 0x50d   : > { %11744 = vst [vmem:[#allocation40_spill] sm:$0xff] %v9943_v7  ;;  %v9979_v41 = vpop.f32.mrf.mxu2  ;;  %4184 = vmatpush.msra.mxu2 %v6750_v37  ;;  %v4109_v37 = vld [vmem:[%s11552_s5 + $0x28] sm:$0xff] }
 0x50e   : > { %v9945_v16 = vpop.f32.mrf.mxu3  ;;  %4288 = vmatpush.msrb.mxu3 %v4113_v23  ;;  %4447 = vmatpush.msrb.mxu0 %v6778_v38  ;;  %v6777_v23 = vld [vmem:[%s11552_s5 + $0x158] sm:$0xff]  ;;  %11746 = vst [vmem:[#allocation42_spill] sm:$0xff] %v9979_v41  ;;  %v6776_v38 = vld [vmem:[%s11552_s5 + $0x150] sm:$0xff] }
 0x50f   : > { %3872 = vmatmul.f32.gmra.mxu1 %v3787_v1  ;;  %v4112_v1 = vld [vmem:[%s11552_s5 + $0x40] sm:$0xff]  ;;  %4185 = vmatmul.f32.vlgmr.msra.gmra.mxu2 %v4120_v31  ;;  %v6767_v31 = vld [vmem:[%s11552_s5 + $0x108] sm:$0xff] }
 0x510   : > { %v9953_v13 = vpop.f32.mrf.mxu0  ;;  %4289 = vmatpush.msrb.mxu3 %v4112_v1  ;;  %4448 = vmatpush.msrb.mxu0 %v6777_v23  ;;  %v4110_v1 = vld [vmem:[%s11552_s5 + $0x30] sm:$0xff]  ;;  %v4108_v23 = vld [vmem:[%s11552_s5 + $0x20] sm:$0xff] }
 0x512   : > { %4449 = vmatpush.msrb.mxu0 %v6776_v38 }
 0x513   : > { %3532 = vmatmul.f32.gmra.mxu3 %v3415_v0  ;;  %3726 = vmatmul.f32.gmra.mxu0 %v9780_v34  ;;  %v4111_v34 = vld [vmem:[%s11552_s5 + $0x38] sm:$0xff] }
 0x514   : > { %v9971_v7 = vpop.f32.mrf.mxu1  ;;  %4290 = vmatpush.msrb.mxu3 %v4111_v34  ;;  %v3416_v34 = vld [vmem:[#allocation3 + $0x170] sm:$0xff] }
 0x515   : > { %11745 = vst [vmem:[#allocation41_spill] sm:$0xff] %v9971_v7  ;;  %v10014_v2 = vpop.f32.mrf.mxu2 }
 0x516   : > { %v9981_v0 = vpop.f32.mrf.mxu3  ;;  %4291 = vmatpush.msrb.mxu3 %v4110_v1  ;;  %v6774_v1 = vld [vmem:[%s11552_s5 + $0x140] sm:$0xff]  ;;  %11748 = vst [vmem:[#allocation44_spill] sm:$0xff] %v10014_v2 }
 0x517   : > { %3875 = vmatmul.f32.gmra.mxu1 %v3788_v27  ;;  %v6775_v27 = vld [vmem:[%s11552_s5 + $0x148] sm:$0xff] }
 0x518   : > { %v9989_v7 = vpop.f32.mrf.mxu0  ;;  %4292 = vmatpush.msrb.mxu3 %v4109_v37  ;;  %4450 = vmatpush.msrb.mxu0 %v6775_v27  ;;  %v4107_v37 = vld [vmem:[%s11552_s5 + $0x18] sm:$0xff] }
 0x51a   : > { %4293 = vmatpush.msrb.mxu3 %v4108_v23  ;;  %4451 = vmatpush.msrb.mxu0 %v6774_v1  ;;  %v4106_v23 = vld [vmem:[%s11552_s5 + $0x10] sm:$0xff] }
 0x51b   : > { %3535 = vmatmul.f32.gmra.mxu3 %v3416_v34  ;;  %3729 = vmatmul.f32.gmra.mxu0 %v9793_v61  ;;  %v6773_v61 = vld [vmem:[%s11552_s5 + $0x138] sm:$0xff]  ;;  %v6772_v1 = vld [vmem:[%s11552_s5 + $0x130] sm:$0xff] }
 0x51c   : > { %v10004_v38 = vpop.f32.mrf.mxu1  ;;  %v3789_v34 = vld [vmem:[#allocation3 + $0xc2] sm:$0xff]  ;;  %4294 = vmatpush.msrb.mxu3 %v4107_v37  ;;  %4452 = vmatpush.msrb.mxu0 %v6773_v61  ;;  %v4105_v37 = vld [vmem:[%s11552_s5 + $0x8] sm:$0xff] }
 0x51d   : > { %11747 = vst [vmem:[#allocation43_spill] sm:$0xff] %v10004_v38  ;;  %v6771_v61 = vld [vmem:[%s11552_s5 + $0x128] sm:$0xff]  ;;  %v10058_v2 = vpop.f32.mrf.mxu2 }
 0x51e   : > { %v10012_v27 = vpop.f32.mrf.mxu3  ;;  %4295 = vmatpush.msrb.mxu3 %v4106_v23  ;;  %4453 = vmatpush.msrb.mxu0 %v6772_v1  ;;  %v6770_v23 = vld [vmem:[%s11552_s5 + $0x120] sm:$0xff]  ;;  %11750 = vst [vmem:[#allocation46_spill] sm:$0xff] %v10058_v2  ;;  %v3613_v2 = vld [vmem:[#allocation3 + $0x199] sm:$0xff] }
 0x51f   : > { %3878 = vmatmul.f32.gmra.mxu1 %v3789_v34  ;;  %v3417_v34 = vld [vmem:[#allocation3 + $0x180] sm:$0xff] }
 0x520   : > { %v10022_v38 = vpop.f32.mrf.mxu0  ;;  %4296 = vmatpush.msrb.mxu3 %v4105_v37  ;;  %4454 = vmatpush.msrb.mxu0 %v6771_v61  ;;  %v6813_v37 = vld [vmem:[%s11552_s5 + $0x278] sm:$0xff] }
 0x521   : > { %4832 = vmatpush.msrb.mxu2 %v6813_v37  ;;  %v6766_v37 = vld [vmem:[%s11552_s5 + $0x100] sm:$0xff] }
 0x522   : > { %4297 = vmatpush.msrb.mxu3 %v4104_v54  ;;  %4455 = vmatpush.msrb.mxu0 %v6770_v23  ;;  %v6768_v54 = vld [vmem:[%s11552_s5 + $0x110] sm:$0xff]  ;;  %v6797_v23 = vld [vmem:[%s11552_s5 + $0x1f8] sm:$0xff] }
 0x523   : > { %3538 = vmatmul.f32.gmra.mxu3 %v3417_v34  ;;  %3732 = vmatmul.f32.gmra.mxu0 %v9803_v3  ;;  %v6769_v3 = vld [vmem:[%s11552_s5 + $0x118] sm:$0xff] }
 0x524   : > { %v10037_v1 = vpop.f32.mrf.mxu1  ;;  %v3790_v34 = vld [vmem:[#allocation3 + $0xca] sm:$0xff]  ;;  %4456 = vmatpush.msrb.mxu0 %v6769_v3  ;;  %4638 = vmatpush.msrb.mxu1 %v6797_v23  ;;  %v3791_v23 = vld [vmem:[#allocation3 + $0xda] sm:$0xff] }
 0x525   : > { %11749 = vst [vmem:[#allocation45_spill] sm:$0xff] %v10037_v1  ;;  %v3418_v3 = vld [vmem:[#allocation3 + $0x188] sm:$0xff]  ;;  %v10070_v41 = vpop.f32.mrf.mxu2 }
 0x526   : > { %v10045_v61 = vpop.f32.mrf.mxu3  ;;  %4457 = vmatpush.msrb.mxu0 %v6768_v54  ;;  %11752 = vst [vmem:[#allocation48_spill] sm:$0xff] %v10070_v41 }
 0x527   : > { %3881 = vmatmul.f32.gmra.mxu1 %v3790_v34  ;;  %v4121_v34 = vld [vmem:[#allocation4 + $0x9] sm:$0xff] }
 0x528   : > { %v10053_v1 = vpop.f32.mrf.mxu0  ;;  %4458 = vmatpush.msrb.mxu0 %v6767_v31  ;;  %4188 = vmatmul.f32.gmra.mxu2 %v4121_v34  ;;  %v3551_v34 = vadd.f32 %v9838_v35, %v9636_v44 }
 0x52a   : > { %4459 = vmatpush.msrb.mxu0 %v6766_v37 }
 0x52b   : > { %3541 = vmatmul.f32.gmra.mxu3 %v3418_v3  ;;  %3735 = vmatmul.f32.gmra.mxu0 %v9816_v47  ;;  %v6812_v47 = vld [vmem:[%s11552_s5 + $0x270] sm:$0xff] }
 0x52c   : > { %v10064_v62 = vpop.f32.mrf.mxu1  ;;  %4833 = vmatpush.msrb.mxu2 %v6812_v47  ;;  %v3792_v3 = vld [vmem:[#allocation3 + $0xe2] sm:$0xff]  ;;  %v10090_v47 = vld [vmem:[%s11551_s4] ss:$0 sm:$0xff] }
 0x52d   : > { %11751 = vst [vmem:[#allocation47_spill] sm:$0xff] %v10064_v62  ;;  %v10092_v44 = vpop.f32.mrf.mxu2 }
 0x52e   : > { %v10066_v54 = vpop.f32.mrf.mxu3  ;;  %11755 = vst [vmem:[#allocation51_spill] sm:$0xff] %v10092_v44 }
 0x52f   : > { %3884 = vmatmul.f32.gmra.mxu1 %v3791_v23  ;;  %v6796_v23 = vld [vmem:[%s11552_s5 + $0x1f0] sm:$0xff] }
 0x530   : > { %v10068_v18 = vpop.f32.mrf.mxu0  ;;  %4639 = vmatpush.msrb.mxu1 %v6796_v23 }
 0x533   : > { %3544 = vmatmul.f32.gmra.mxu3 %v7104_v43  ;;  %3738 = vmatmul.f32.gmra.mxu0 %v3613_v2  ;;  %v3614_v2 = vld [vmem:[#allocation3 + $0x1a1] sm:$0xff] }
 0x534   : > { %v10075_v31 = vpop.f32.mrf.mxu1 }
 0x535   : > { %11753 = vst [vmem:[#allocation49_spill] sm:$0xff] %v10075_v31  ;;  %v3745_v31 = vadd.f32 %v9826_v12, %v3551_v34  ;;  %v4395_v12 = vld [vmem:[#allocation4 + $0x2] sm:$0xff] }
 0x536   : > { %v10077_v37 = vpop.f32.mrf.mxu3 }
 0x537   : > { %3887 = vmatmul.f32.gmra.mxu1 %v3792_v3 }
 0x538   : > { %v10084_v62 = vpop.f32.mrf.mxu0 }
 0x539   : > { %11754 = vst [vmem:[#allocation50_spill] sm:$0xff] %v10084_v62  ;;  %v3552_v62 = vadd.f32 %v9845_v57, %v9647_v52  ;;  %v3553_v57 = vadd.f32 %v9857_v22, %v9664_v24 }
 0x53b   : > { %3547 = vmatmul.f32.gmra.mxu3 %v7104_v43  ;;  %3741 = vmatmul.f32.gmra.mxu0 %v3614_v2  ;;  %v3746_v32 = vadd.f32 %v9840_v60, %v3552_v62  ;;  %v6795_v62 = vld [vmem:[%s11552_s5 + $0x1e8] sm:$0xff] }
 0x53c   : > { %v3843_v41 = vpop.f32.mrf.mxu1  ;;  %4640 = vmatpush.msrb.mxu1 %v6795_v62 }
 0x53d   : > { %v3939_v35 = vadd.f32 %v3843_v41, %v3745_v31  ;;  %v6811_v41 = vld [vmem:[%s11552_s5 + $0x268] sm:$0xff] }
 0x53e   : > { %v10094_v3 = vpop.f32.mrf.mxu3  ;;  %4834 = vmatpush.msrb.mxu2 %v6811_v41 }
 0x53f   : > { %v3975_v23 = vadd.f32 %v10090_v47, %v3939_v35  ;;  %3890 = vmatmul.f32.gmra.mxu1 %v3793_v19  ;;  %v3794_v19 = vld [vmem:[#allocation3 + $0xfa] sm:$0xff]  ;;  %v10109_v35 = vpop.f32.mrf.mxu2 }
 0x540   : > { %v10099_v2 = vpop.f32.mrf.mxu0  ;;  %11756 = vst [vmem:[#allocation52_spill] sm:$0xff] %v10109_v35 }
 0x541   : > { %v4007_v34 = vmax.f32 %v3975_v23, 0.0 }
 0x543   : > { %4298 = vmatmul.f32.vlgmr.msrb.gmra.mxu3 %v7104_v43  ;;  %4040 = vst [vmem:[#allocation4 + $0x19] sm:$0xff] %v4007_v34  ;;  %4460 = vmatmul.f32.vlgmr.msrb.gmra.mxu0 %v4395_v12  ;;  %v4396_v12 = vld [vmem:[#allocation4 + $0xa] sm:$0xff] }
 0x544   : > { %v3846_v31 = vpop.f32.mrf.mxu1  ;;  %4191 = vmatmul.f32.gmra.mxu2 %v4007_v34  ;;  %v3747_v34 = vadd.f32 %v9849_v28, %v3553_v57 }
 0x545   : > { %v3940_v44 = vadd.f32 %v3846_v31, %v3746_v32  ;;  %v3554_v31 = vadd.f32 %v9866_v45, %v9675_v49  ;;  %v6810_v49 = vld [vmem:[%s11552_s5 + $0x260] sm:$0xff] }
 0x546   : > { %v10105_v52 = vpop.f32.mrf.mxu3  ;;  %4835 = vmatpush.msrb.mxu2 %v6810_v49 }
 0x547   : > { %v3976_v23 = vadd.f32 %v10090_v47, %v3940_v44  ;;  %3893 = vmatmul.f32.gmra.mxu1 %v3794_v19  ;;  %v3795_v44 = vld [vmem:[#allocation3 + $0x10a] sm:$0xff]  ;;  %v3748_v57 = vadd.f32 %v9859_v30, %v3554_v31 }
 0x548   : > { %v10115_v60 = vpop.f32.mrf.mxu0  ;;  %v6794_v30 = vld [vmem:[%s11552_s5 + $0x1e0] sm:$0xff] }
 0x549   : > { %v4008_v32 = vmax.f32 %v3976_v23, 0.0  ;;  %v10125_v23 = vpop.f32.mrf.mxu2  ;;  %4641 = vmatpush.msrb.mxu1 %v6794_v30 }
 0x54a   : > { %v10127_v62 = vld [vmem:[#allocation4 + $0x18] sm:$0xff] }
 0x54b   : > { %4301 = vmatmul.f32.gmra.mxu3 %v7104_v43  ;;  %4041 = vst [vmem:[#allocation4 + $0x21] sm:$0xff] %v4008_v32  ;;  %4463 = vmatmul.f32.gmra.mxu0 %v4396_v12 }
 0x54c   : > { %v3849_v24 = vpop.f32.mrf.mxu1  ;;  %4194 = vmatmul.f32.gmra.mxu2 %v4008_v32 }
 0x54d   : > { %v3941_v22 = vadd.f32 %v3849_v24, %v3747_v34  ;;  %v3796_v34 = vld [vmem:[#allocation3 + $0x112] sm:$0xff]  ;;  %v3555_v24 = vadd.f32 %v9878_v51, %v9692_v8 }
 0x54e   : > { %v10118_v41 = vpop.f32.mrf.mxu3 }
 0x54f   : > { %v3977_v19 = vadd.f32 %v10090_v47, %v3941_v22  ;;  %3896 = vmatmul.f32.gmra.mxu1 %v3795_v44  ;;  %v3749_v8 = vadd.f32 %v9868_v53, %v3555_v24  ;;  %v6809_v24 = vld [vmem:[%s11552_s5 + $0x258] sm:$0xff] }
 0x550   : > { %v10123_v35 = vpop.f32.mrf.mxu0  ;;  %4836 = vmatpush.msrb.mxu2 %v6809_v24 }
 0x551   : > { %v4009_v43 = vmax.f32 %v3977_v19, 0.0 }
 0x552   : > { %v4397_v28 = vld [vmem:[#allocation4 + $0x1a] sm:$0xff] }
 0x553   : > { %4304 = vmatmul.f32.gmra.mxu3 %v10127_v62  ;;  %4042 = vst [vmem:[#allocation4 + $0x31] sm:$0xff] %v4009_v43  ;;  %4466 = vmatmul.f32.gmra.mxu0 %v4397_v28  ;;  %v10144_v19 = vld [vmem:[#allocation4 + $0x20] sm:$0xff]  ;;  %v10146_v28 = vpop.f32.mrf.mxu2 }
 0x554   : > { %v3852_v45 = vpop.f32.mrf.mxu1  ;;  %4197 = vmatmul.f32.gmra.mxu2 %v4009_v43  ;;  %v4398_v43 = vld [vmem:[#allocation4 + $0x22] sm:$0xff]  ;;  %11757 = vst [vmem:[#allocation53_spill] sm:$0xff] %v10146_v28 }
 0x555   : > { %v3942_v12 = vadd.f32 %v3852_v45, %v3748_v57  ;;  %v3797_v45 = vld [vmem:[#allocation3 + $0x122] sm:$0xff] }
 0x556   : > { %v10134_v32 = vpop.f32.mrf.mxu3 }
 0x557   : > { %v3978_v22 = vadd.f32 %v10090_v47, %v3942_v12  ;;  %3899 = vmatmul.f32.gmra.mxu1 %v3796_v34  ;;  %v3556_v12 = vadd.f32 %v9887_v10, %v9703_v50 }
 0x558   : > { %v10142_v44 = vpop.f32.mrf.mxu0 }
 0x559   : > { %v4010_v31 = vmax.f32 %v3978_v22, 0.0  ;;  %v3750_v53 = vadd.f32 %v9880_v42, %v3556_v12  ;;  %v6793_v42 = vld [vmem:[%s11552_s5 + $0x1d8] sm:$0xff] }
 0x55a   : > { %v10157_v28 = vld [vmem:[#allocation4 + $0x30] sm:$0xff]  ;;  %4642 = vmatpush.msrb.mxu1 %v6793_v42 }
 0x55b   : > { %4307 = vmatmul.f32.gmra.mxu3 %v10144_v19  ;;  %4043 = vst [vmem:[#allocation4 + $0x39] sm:$0xff] %v4010_v31  ;;  %4469 = vmatmul.f32.gmra.mxu0 %v4398_v43  ;;  %v10164_v10 = vpop.f32.mrf.mxu2 }
 0x55c   : > { %v3855_v51 = vpop.f32.mrf.mxu1  ;;  %4200 = vmatmul.f32.gmra.mxu2 %v4010_v31  ;;  %11758 = vst [vmem:[#allocation54_spill] sm:$0xff] %v10164_v10 }
 0x55d   : > { %v3943_v57 = vadd.f32 %v3855_v51, %v3749_v8  ;;  %v3798_v51 = vld [vmem:[#allocation3 + $0x12a] sm:$0xff] }
 0x55e   : > { %v10150_v49 = vpop.f32.mrf.mxu3 }
 0x55f   : > { %v3979_v34 = vadd.f32 %v10090_v47, %v3943_v57  ;;  %3902 = vmatmul.f32.gmra.mxu1 %v3797_v45  ;;  %v3557_v57 = vadd.f32 %v9897_v15, %v9720_v55 }
 0x560   : > { %v10155_v22 = vpop.f32.mrf.mxu0 }
 0x561   : > { %v4011_v30 = vmax.f32 %v3979_v34, 0.0  ;;  %v3751_v55 = vadd.f32 %v9889_v59, %v3557_v57  ;;  %v11760_v57 = vld [vmem:[#allocation31_spill] sm:$0xff] }
 0x562   : > { %v4399_v43 = vld [vmem:[#allocation4 + $0x32] sm:$0xff] }
 0x563   : > { %4310 = vmatmul.f32.gmra.mxu3 %v10157_v28  ;;  %4044 = vst [vmem:[#allocation4 + $0x49] sm:$0xff] %v4011_v30  ;;  %4472 = vmatmul.f32.gmra.mxu0 %v4399_v43  ;;  %v4400_v43 = vld [vmem:[#allocation4 + $0x3a] sm:$0xff] }
 0x564   : > { %v3858_v50 = vpop.f32.mrf.mxu1  ;;  %4203 = vmatmul.f32.gmra.mxu2 %v4011_v30  ;;  %v10176_v30 = vld [vmem:[#allocation4 + $0x38] sm:$0xff] }
 0x565   : > { %v3944_v31 = vadd.f32 %v3858_v50, %v3750_v53  ;;  %v3799_v50 = vld [vmem:[#allocation3 + $0x13a] sm:$0xff] }
 0x566   : > { %v10166_v8 = vpop.f32.mrf.mxu3 }
 0x567   : > { %v3980_v45 = vadd.f32 %v10090_v47, %v3944_v31  ;;  %3905 = vmatmul.f32.gmra.mxu1 %v3798_v51  ;;  %v3558_v31 = vadd.f32 %v9906_v48, %v9733_v11  ;;  %v10184_v51 = vpop.f32.mrf.mxu2  ;;  %v6808_v48 = vld [vmem:[%s11552_s5 + $0x250] sm:$0xff] }
 0x568   : > { %v10174_v12 = vpop.f32.mrf.mxu0  ;;  %11759 = vst [vmem:[#allocation55_spill] sm:$0xff] %v10184_v51  ;;  %4837 = vmatpush.msrb.mxu2 %v6808_v48 }
 0x569   : > { %v4012_v34 = vmax.f32 %v3980_v45, 0.0  ;;  %v3752_v11 = vadd.f32 %v9901_v26, %v3558_v31  ;;  %v6792_v26 = vld [vmem:[%s11552_s5 + $0x1d0] sm:$0xff] }
 0x56a   : > { %4643 = vmatpush.msrb.mxu1 %v6792_v26 }
 0x56b   : > { %4313 = vmatmul.f32.gmra.mxu3 %v10176_v30  ;;  %4045 = vst [vmem:[#allocation4 + $0x51] sm:$0xff] %v4012_v34  ;;  %4475 = vmatmul.f32.gmra.mxu0 %v4400_v43  ;;  %v10189_v43 = vld [vmem:[#allocation4 + $0x48] sm:$0xff] }
 0x56c   : > { %v3861_v15 = vpop.f32.mrf.mxu1  ;;  %4206 = vmatmul.f32.gmra.mxu2 %v4012_v34  ;;  %v3170_v34 = vadd.f32 %v9723_v6, %v11760_v57 }
 0x56d   : > { %v3945_v53 = vadd.f32 %v3861_v15, %v3751_v55 }
 0x56e   : > { %v10180_v24 = vpop.f32.mrf.mxu3  ;;  %v3364_v15 = vadd.f32 %v9836_v4, %v3170_v34 }
 0x56f   : > { %v3981_v45 = vadd.f32 %v10090_v47, %v3945_v53  ;;  %3908 = vmatmul.f32.gmra.mxu1 %v3799_v50 }
 0x570   : > { %v10187_v42 = vpop.f32.mrf.mxu0  ;;  %v3559_v6 = vadd.f32 %v9921_v39, %v3364_v15 }
 0x571   : > { %v4013_v10 = vmax.f32 %v3981_v45, 0.0  ;;  %v3800_v45 = vld [vmem:[#allocation3 + $0x142] sm:$0xff] }
 0x572   : > { %v4401_v59 = vld [vmem:[#allocation4 + $0x4a] sm:$0xff]  ;;  %v4402_v34 = vld [vmem:[#allocation4 + $0x52] sm:$0xff]  ;;  %v3753_v39 = vadd.f32 %v9908_v5, %v3559_v6 }
 0x573   : > { %4316 = vmatmul.f32.gmra.mxu3 %v10189_v43  ;;  %4046 = vst [vmem:[#allocation4 + $0x61] sm:$0xff] %v4013_v10  ;;  %4478 = vmatmul.f32.gmra.mxu0 %v4401_v59  ;;  %v10210_v59 = vld [vmem:[#allocation4 + $0x50] sm:$0xff] }
 0x574   : > { %v3864_v55 = vpop.f32.mrf.mxu1  ;;  %4209 = vmatmul.f32.gmra.mxu2 %v4013_v10  ;;  %v10208_v10 = vpop.f32.mrf.mxu2  ;;  %v11763_v5 = vld [vmem:[#allocation5_spill] sm:$0xff] }
 0x575   : > { %v3946_v53 = vadd.f32 %v3864_v55, %v3752_v11  ;;  %11761 = vst [vmem:[#allocation31_spill] sm:$0xff] %v10208_v10  ;;  %v11762_v11 = vld [vmem:[#allocation33_spill] sm:$0xff]  ;;  %v3172_v6 = vadd.f32 %v9752_v63, %v11763_v5 }
 0x576   : > { %v10199_v50 = vpop.f32.mrf.mxu3  ;;  %v3171_v48 = vadd.f32 %v9739_v36, %v11762_v11  ;;  %v3802_v63 = vld [vmem:[#allocation3 + $0x15a] sm:$0xff] }
 0x577   : > { %v3982_v57 = vadd.f32 %v10090_v47, %v3946_v53  ;;  %3911 = vmatmul.f32.gmra.mxu1 %v3800_v45 }
 0x578   : > { %v10206_v31 = vpop.f32.mrf.mxu0  ;;  %v3365_v15 = vadd.f32 %v9847_v17, %v3171_v48 }
 0x579   : > { %v4014_v4 = vmax.f32 %v3982_v57, 0.0  ;;  %v3801_v57 = vld [vmem:[#allocation3 + $0x152] sm:$0xff] }
 0x57a   : > { %v3560_v26 = vadd.f32 %v9945_v16, %v3365_v15  ;;  %v10223_v51 = vld [vmem:[#allocation4 + $0x60] sm:$0xff]  ;;  %v6807_v16 = vld [vmem:[%s11552_s5 + $0x248] sm:$0xff] }
 0x57b   : > { %4319 = vmatmul.f32.gmra.mxu3 %v10210_v59  ;;  %4047 = vst [vmem:[#allocation4 + $0x69] sm:$0xff] %v4014_v4  ;;  %4481 = vmatmul.f32.gmra.mxu0 %v4402_v34 }
 0x57c   : > { %v3867_v55 = vpop.f32.mrf.mxu1  ;;  %4212 = vmatmul.f32.gmra.mxu2 %v4014_v4  ;;  %v10227_v4 = vpop.f32.mrf.mxu2  ;;  %v3754_v17 = vadd.f32 %v9926_v46, %v3560_v26  ;;  %v6791_v46 = vld [vmem:[%s11552_s5 + $0x1c8] sm:$0xff] }
 0x57d   : > { %v3947_v53 = vadd.f32 %v3867_v55, %v3753_v39  ;;  %4838 = vmatpush.msrb.mxu2 %v6807_v16  ;;  %4644 = vmatpush.msrb.mxu1 %v6791_v46 }
 0x57e   : > { %v10217_v45 = vpop.f32.mrf.mxu3 }
 0x57f   : > { %v3983_v10 = vadd.f32 %v10090_v47, %v3947_v53  ;;  %3914 = vmatmul.f32.gmra.mxu1 %v3801_v57 }
 0x580   : > { %v10221_v36 = vpop.f32.mrf.mxu0 }
 0x581   : > { %v4015_v11 = vmax.f32 %v3983_v10, 0.0  ;;  %v3366_v10 = vadd.f32 %v9861_v40, %v3172_v6 }
 0x582   : > { %v4403_v34 = vld [vmem:[#allocation4 + $0x62] sm:$0xff]  ;;  %v4404_v40 = vld [vmem:[#allocation4 + $0x6a] sm:$0xff] }
 0x583   : > { %4322 = vmatmul.f32.gmra.mxu3 %v10223_v51  ;;  %4048 = vst [vmem:[#allocation4 + $0x79] sm:$0xff] %v4015_v11  ;;  %4484 = vmatmul.f32.gmra.mxu0 %v4403_v34  ;;  %v3561_v15 = vadd.f32 %v9981_v0, %v3366_v10  ;;  %v11764_v34 = vld [vmem:[#allocation15_spill] sm:$0xff] }
 0x584   : > { %v3870_v48 = vpop.f32.mrf.mxu1  ;;  %4215 = vmatmul.f32.gmra.mxu2 %v4015_v11  ;;  %v10244_v11 = vld [vmem:[#allocation4 + $0x68] sm:$0xff]  ;;  %v3173_v5 = vadd.f32 %v9765_v56, %v11764_v34  ;;  %v10251_v16 = vpop.f32.mrf.mxu2 }
 0x585   : > { %v3948_v39 = vadd.f32 %v3870_v48, %v3754_v17  ;;  %v3755_v0 = vadd.f32 %v9953_v13, %v3561_v15  ;;  %v11765_v15 = vld [vmem:[#allocation8_spill] sm:$0xff] }
 0x586   : > { %v10235_v55 = vpop.f32.mrf.mxu3  ;;  %v3367_v17 = vadd.f32 %v9870_v21, %v3173_v5  ;;  %v3174_v21 = vadd.f32 %v9778_v20, %v11765_v15  ;;  %v11766_v15 = vld [vmem:[#allocation28_spill] sm:$0xff] }
 0x587   : > { %v3984_v53 = vadd.f32 %v10090_v47, %v3948_v39  ;;  %3917 = vmatmul.f32.gmra.mxu1 %v3802_v63  ;;  %v3803_v39 = vld [vmem:[#allocation3 + $0x16a] sm:$0xff] }
 0x588   : > { %v10242_v57 = vpop.f32.mrf.mxu0  ;;  %v3562_v63 = vadd.f32 %v10012_v27, %v3367_v17  ;;  %v6806_v27 = vld [vmem:[%s11552_s5 + $0x240] sm:$0xff]  ;;  %v3368_v5 = vadd.f32 %v9885_v33, %v3174_v21  ;;  %v3175_v21 = vadd.f32 %v9791_v29, %v11766_v15  ;;  %v11768_v15 = vld [vmem:[#allocation6_spill] sm:$0xff] }
 0x589   : > { %v4016_v26 = vmax.f32 %v3984_v53, 0.0  ;;  %4839 = vmatpush.msrb.mxu2 %v6806_v27  ;;  %v3804_v17 = vld [vmem:[#allocation3 + $0x172] sm:$0xff] }
 0x58a   : > { %v3563_v20 = vadd.f32 %v10045_v61, %v3368_v5  ;;  %v6788_v61 = vld [vmem:[%s11552_s5 + $0x1b0] sm:$0xff]  ;;  %v6787_v27 = vld [vmem:[%s11552_s5 + $0x1a8] sm:$0xff]  ;;  %v3369_v5 = vadd.f32 %v9899_v58, %v3175_v21  ;;  %v3176_v21 = vadd.f32 %v9801_v14, %v11768_v15 }
 0x58b   : > { %4325 = vmatmul.f32.gmra.mxu3 %v10244_v11  ;;  %4049 = vst [vmem:[#allocation4 + $0x81] sm:$0xff] %v4016_v26  ;;  %4487 = vmatmul.f32.gmra.mxu0 %v4404_v40  ;;  %v10259_v40 = vld [vmem:[#allocation4 + $0x78] sm:$0xff] }
 0x58c   : > { %v3873_v6 = vpop.f32.mrf.mxu1  ;;  %4218 = vmatmul.f32.gmra.mxu2 %v4016_v26  ;;  %v3756_v26 = vadd.f32 %v9989_v7, %v3562_v63  ;;  %v6790_v7 = vld [vmem:[%s11552_s5 + $0x1c0] sm:$0xff]  ;;  %v3564_v29 = vadd.f32 %v10066_v54, %v3369_v5  ;;  %v6784_v54 = vld [vmem:[%s11552_s5 + $0x190] sm:$0xff] }
 0x58d   : > { %v3949_v48 = vadd.f32 %v3873_v6, %v3755_v0  ;;  %4645 = vmatpush.msrb.mxu1 %v6790_v7 }
 0x58e   : > { %v10253_v10 = vpop.f32.mrf.mxu3 }
 0x58f   : > { %v3985_v56 = vadd.f32 %v10090_v47, %v3949_v48  ;;  %3920 = vmatmul.f32.gmra.mxu1 %v3803_v39  ;;  %v10272_v48 = vpop.f32.mrf.mxu2 }
 0x590   : > { %v10257_v53 = vpop.f32.mrf.mxu0 }
 0x591   : > { %v4017_v46 = vmax.f32 %v3985_v56, 0.0  ;;  %v6789_v56 = vld [vmem:[%s11552_s5 + $0x1b8] sm:$0xff] }
 0x592   : > { %v4405_v13 = vld [vmem:[#allocation4 + $0x7a] sm:$0xff]  ;;  %4646 = vmatpush.msrb.mxu1 %v6789_v56 }
 0x593   : > { %4328 = vmatmul.f32.gmra.mxu3 %v10259_v40  ;;  %4050 = vst [vmem:[#allocation4 + $0x91] sm:$0xff] %v4017_v46  ;;  %4490 = vmatmul.f32.gmra.mxu0 %v4405_v13  ;;  %v4406_v13 = vld [vmem:[#allocation4 + $0x82] sm:$0xff]  ;;  %v6785_v56 = vld [vmem:[%s11552_s5 + $0x198] sm:$0xff] }
 0x594   : > { %v3876_v34 = vpop.f32.mrf.mxu1  ;;  %4221 = vmatmul.f32.gmra.mxu2 %v4017_v46  ;;  %v10286_v46 = vld [vmem:[#allocation4 + $0x80] sm:$0xff]  ;;  %4647 = vmatpush.msrb.mxu1 %v6788_v61 }
 0x595   : > { %v3950_v0 = vadd.f32 %v3876_v34, %v3756_v26  ;;  %v3757_v26 = vadd.f32 %v10022_v38, %v3563_v20  ;;  %v6786_v38 = vld [vmem:[%s11552_s5 + $0x1a0] sm:$0xff] }
 0x596   : > { %v10269_v6 = vpop.f32.mrf.mxu3  ;;  %4648 = vmatpush.msrb.mxu1 %v6787_v27  ;;  %v6805_v27 = vld [vmem:[%s11552_s5 + $0x238] sm:$0xff] }
 0x597   : > { %v3986_v39 = vadd.f32 %v10090_v47, %v3950_v0  ;;  %3923 = vmatmul.f32.gmra.mxu1 %v3804_v17  ;;  %4840 = vmatpush.msrb.mxu2 %v6805_v27  ;;  %v3807_v27 = vld [vmem:[#allocation3 + $0x19a] sm:$0xff] }
 0x598   : > { %v10278_v63 = vpop.f32.mrf.mxu0  ;;  %4649 = vmatpush.msrb.mxu1 %v6786_v38  ;;  %v6782_v38 = vld [vmem:[%s11552_s5 + $0x180] sm:$0xff] }
 0x599   : > { %v4018_v33 = vmax.f32 %v3986_v39, 0.0  ;;  %v3805_v39 = vld [vmem:[#allocation3 + $0x182] sm:$0xff] }
 0x59a   : > { %v10313_v61 = vld [vmem:[#allocation4 + $0x90] sm:$0xff]  ;;  %4650 = vmatpush.msrb.mxu1 %v6785_v56 }
 0x59b   : > { %4331 = vmatmul.f32.gmra.mxu3 %v10286_v46  ;;  %4051 = vst [vmem:[#allocation4 + $0x99] sm:$0xff] %v4018_v33  ;;  %4493 = vmatmul.f32.gmra.mxu0 %v4406_v13 }
 0x59c   : > { %v3879_v34 = vpop.f32.mrf.mxu1  ;;  %4224 = vmatmul.f32.gmra.mxu2 %v4018_v33  ;;  %v10305_v33 = vpop.f32.mrf.mxu2  ;;  %4651 = vmatpush.msrb.mxu1 %v6784_v54 }
 0x59d   : > { %v3951_v0 = vadd.f32 %v3879_v34, %v3757_v26  ;;  %11767 = vst [vmem:[#allocation33_spill] sm:$0xff] %v10305_v33  ;;  %v3758_v26 = vadd.f32 %v10053_v1, %v3564_v29  ;;  %v6783_v34 = vld [vmem:[%s11552_s5 + $0x188] sm:$0xff]  ;;  %v11779_v33 = vld [vmem:[#allocation26_spill] sm:$0xff] }
 0x59e   : > { %v10296_v17 = vpop.f32.mrf.mxu3  ;;  %4652 = vmatpush.msrb.mxu1 %v6783_v34  ;;  %v11772_v34 = vld [vmem:[#allocation39_spill] sm:$0xff] }
 0x59f   : > { %v3987_v7 = vadd.f32 %v10090_v47, %v3951_v0  ;;  %3926 = vmatmul.f32.gmra.mxu1 %v3805_v39  ;;  %v3370_v0 = vadd.f32 %v9910_v25, %v3176_v21 }
 0x5a0   : > { %v10303_v20 = vpop.f32.mrf.mxu0  ;;  %4653 = vmatpush.msrb.mxu1 %v6782_v38 }
 0x5a1   : > { %v4019_v58 = vmax.f32 %v3987_v7, 0.0  ;;  %v3806_v7 = vld [vmem:[#allocation3 + $0x18a] sm:$0xff]  ;;  %v3565_v1 = vadd.f32 %v10077_v37, %v3370_v0 }
 0x5a2   : > { %v4407_v13 = vld [vmem:[#allocation4 + $0x92] sm:$0xff]  ;;  %v4408_v54 = vld [vmem:[#allocation4 + $0x9a] sm:$0xff] }
 0x5a3   : > { %4334 = vmatmul.f32.gmra.mxu3 %v10313_v61  ;;  %4052 = vst [vmem:[#allocation4 + $0xa9] sm:$0xff] %v4019_v58  ;;  %4496 = vmatmul.f32.gmra.mxu0 %v4407_v13  ;;  %v10335_v25 = vld [vmem:[#allocation4 + $0x98] sm:$0xff]  ;;  %v3759_v37 = vadd.f32 %v10068_v18, %v3565_v1  ;;  %v11774_v18 = vld [vmem:[#allocation7_spill] sm:$0xff] }
 0x5a4   : > { %v3882_v5 = vpop.f32.mrf.mxu1  ;;  %4227 = vmatmul.f32.gmra.mxu2 %v4019_v58  ;;  %v11770_v13 = vld [vmem:[#allocation10_spill] sm:$0xff]  ;;  %v10339_v21 = vpop.f32.mrf.mxu2 }
 0x5a5   : > { %v3952_v14 = vadd.f32 %v3882_v5, %v3758_v26  ;;  %v3177_v15 = vadd.f32 %v9814_v9, %v11770_v13  ;;  %11771 = vst [vmem:[#allocation15_spill] sm:$0xff] %v10339_v21  ;;  %v11775_v1 = vld [vmem:[#allocation18_spill] sm:$0xff] }
 0x5a6   : > { %v10326_v39 = vpop.f32.mrf.mxu3  ;;  %v3178_v21 = vadd.f32 %v11775_v1, %v11774_v18 }
 0x5a7   : > { %v3988_v29 = vadd.f32 %v10090_v47, %v3952_v14  ;;  %3929 = vmatmul.f32.gmra.mxu1 %v3806_v7  ;;  %v3371_v5 = vadd.f32 %v11772_v34, %v3177_v15  ;;  %v11777_v34 = vld [vmem:[#allocation42_spill] sm:$0xff] }
 0x5a8   : > { %v10333_v56 = vpop.f32.mrf.mxu0 }
 0x5a9   : > { %11769 = vst [vmem:[#allocation5_spill] sm:$0xff] %v10333_v56  ;;  %v4020_v58 = vmax.f32 %v3988_v29, 0.0  ;;  %v3566_v7 = vadd.f32 %v10094_v3, %v3371_v5  ;;  %v6804_v3 = vld [vmem:[%s11552_s5 + $0x230] sm:$0xff]  ;;  %v3372_v5 = vadd.f32 %v11777_v34, %v3178_v21 }
 0x5aa   : > { %v10350_v13 = vld [vmem:[#allocation4 + $0xa8] sm:$0xff]  ;;  %4841 = vmatpush.msrb.mxu2 %v6804_v3  ;;  %v11780_v56 = vld [vmem:[#allocation17_spill] sm:$0xff] }
 0x5ab   : > { %4337 = vmatmul.f32.gmra.mxu3 %v10335_v25  ;;  %4053 = vst [vmem:[#allocation4 + $0xb1] sm:$0xff] %v4020_v58  ;;  %4499 = vmatmul.f32.gmra.mxu0 %v4408_v54  ;;  %v3567_v18 = vadd.f32 %v10105_v52, %v3372_v5  ;;  %v11781_v52 = vld [vmem:[#allocation44_spill] sm:$0xff] }
 0x5ac   : > { %v3885_v26 = vpop.f32.mrf.mxu1  ;;  %4230 = vmatmul.f32.gmra.mxu2 %v4020_v58  ;;  %v11776_v58 = vld [vmem:[#allocation50_spill] sm:$0xff] }
 0x5ad   : > { %v3953_v0 = vadd.f32 %v3885_v26, %v3759_v37  ;;  %v3760_v15 = vadd.f32 %v11776_v58, %v3566_v7  ;;  %v4186_v37 = vpop.f32.mrf.mxu2  ;;  %v3761_v21 = vadd.f32 %v10099_v2, %v3567_v18  ;;  %v11783_v2 = vld [vmem:[#allocation22_spill] sm:$0xff]  ;;  %v11784_v18 = vld [vmem:[#allocation23_spill] sm:$0xff] }
 0x5ae   : > { %v10344_v14 = vpop.f32.mrf.mxu3 }
 0x5af   : > { %v3989_v9 = vadd.f32 %v10090_v47, %v3953_v0  ;;  %3932 = vmatmul.f32.gmra.mxu1 %v3807_v27  ;;  %v3808_v27 = vld [vmem:[#allocation3 + $0x1a2] sm:$0xff] }
 0x5b0   : > { %v10348_v29 = vpop.f32.mrf.mxu0 }
 0x5b1   : > { %11773 = vst [vmem:[#allocation8_spill] sm:$0xff] %v10348_v29  ;;  %v4021_v38 = vmax.f32 %v3989_v9, 0.0 }
 0x5b2   : > { %v4409_v54 = vld [vmem:[#allocation4 + $0xaa] sm:$0xff]  ;;  %v4410_v29 = vld [vmem:[#allocation4 + $0xb2] sm:$0xff] }
 0x5b3   : > { %4340 = vmatmul.f32.gmra.mxu3 %v10350_v13  ;;  %4054 = vst [vmem:[#allocation4 + $0xc1] sm:$0xff] %v4021_v38  ;;  %4502 = vmatmul.f32.gmra.mxu0 %v4409_v54  ;;  %v10366_v58 = vld [vmem:[#allocation4 + $0xb0] sm:$0xff] }
 0x5b4   : > { %v3888_v26 = vpop.f32.mrf.mxu1  ;;  %4233 = vmatmul.f32.gmra.mxu2 %v4021_v38  ;;  %v3179_v38 = vadd.f32 %v11780_v56, %v11779_v33 }
 0x5b5   : > { %v3954_v0 = vadd.f32 %v3888_v26, %v3760_v15 }
 0x5b6   : > { %v10360_v9 = vpop.f32.mrf.mxu3  ;;  %v3373_v3 = vadd.f32 %v11781_v52, %v3179_v38 }
 0x5b7   : > { %v3990_v54 = vadd.f32 %v10090_v47, %v3954_v0  ;;  %3935 = vmatmul.f32.gmra.mxu1 %v3808_v27  ;;  %v4189_v27 = vpop.f32.mrf.mxu2 }
 0x5b8   : > { %v10364_v7 = vpop.f32.mrf.mxu0  ;;  %v3568_v5 = vadd.f32 %v10118_v41, %v3373_v3  ;;  %v6803_v41 = vld [vmem:[%s11552_s5 + $0x228] sm:$0xff] }
 0x5b9   : > { %11778 = vst [vmem:[#allocation28_spill] sm:$0xff] %v10364_v7  ;;  %v4022_v1 = vmax.f32 %v3990_v54, 0.0  ;;  %4842 = vmatpush.msrb.mxu2 %v6803_v41 }
 0x5ba   : > { %v10378_v54 = vld [vmem:[#allocation4 + $0xc0] sm:$0xff]  ;;  %v3762_v38 = vadd.f32 %v10115_v60, %v3568_v5 }
 0x5bb   : > { %4343 = vmatmul.f32.gmra.mxu3 %v10366_v58  ;;  %4055 = vst [vmem:[#allocation4 + $0xc9] sm:$0xff] %v4022_v1  ;;  %4505 = vmatmul.f32.gmra.mxu0 %v4410_v29 }
 0x5bc   : > { %v3891_v15 = vpop.f32.mrf.mxu1  ;;  %4236 = vmatmul.f32.gmra.mxu2 %v4022_v1  ;;  %11782 = vst [vmem:[#allocation6_spill] sm:$0xff] %v10378_v54  ;;  %v3180_v1 = vadd.f32 %v11784_v18, %v11783_v2 }
 0x5bd   : > { %v3955_v26 = vadd.f32 %v3891_v15, %v3761_v21 }
 0x5be   : > { %v10373_v34 = vpop.f32.mrf.mxu3 }
 0x5bf   : > { %v3991_v0 = vadd.f32 %v10090_v47, %v3955_v26  ;;  %4654 = vmatmul.f32.vlgmr.msrb.gmra.mxu1 %v10127_v62  ;;  %v11785_v62 = vld [vmem:[#allocation46_spill] sm:$0xff] }
 0x5c0   : > { %v4461_v33 = vpop.f32.mrf.mxu0  ;;  %v3374_v15 = vadd.f32 %v11785_v62, %v3180_v1  ;;  %v11787_v1 = vld [vmem:[#allocation25_spill] sm:$0xff] }
 0x5c1   : > { %v4023_v56 = vmax.f32 %v3991_v0, 0.0 }
 0x5c2   : > { %v4411_v29 = vld [vmem:[#allocation4 + $0xc2] sm:$0xff]  ;;  %v3569_v26 = vadd.f32 %v10134_v32, %v3374_v15 }
 0x5c3   : > { %4346 = vmatmul.f32.gmra.mxu3 %v10378_v54  ;;  %4056 = vst [vmem:[#allocation4 + $0xd9] sm:$0xff] %v4023_v56  ;;  %4508 = vmatmul.f32.gmra.mxu0 %v4411_v29  ;;  %v10393_v7 = vld [vmem:[#allocation4 + $0xc8] sm:$0xff] }
 0x5c4   : > { %v3894_v21 = vpop.f32.mrf.mxu1  ;;  %4239 = vmatmul.f32.gmra.mxu2 %v4023_v56  ;;  %v4412_v56 = vld [vmem:[#allocation4 + $0xca] sm:$0xff]  ;;  %v3763_v32 = vadd.f32 %v10123_v35, %v3569_v26  ;;  %v11789_v26 = vld [vmem:[#allocation11_spill] sm:$0xff] }
 0x5c5   : > { %v3956_v52 = vadd.f32 %v3894_v21, %v3762_v38  ;;  %v11786_v54 = vld [vmem:[#allocation32_spill] sm:$0xff] }
 0x5c6   : > { %v4299_v3 = vpop.f32.mrf.mxu3  ;;  %v3181_v38 = vadd.f32 %v11787_v1, %v11786_v54 }
 0x5c7   : > { %v4300_v0 = vadd.f32 %v4299_v3, %v4186_v37  ;;  %v3992_v2 = vadd.f32 %v10090_v47, %v3956_v52  ;;  %4657 = vmatmul.f32.gmra.mxu1 %v10144_v19  ;;  %v4192_v29 = vpop.f32.mrf.mxu2  ;;  %v11788_v19 = vld [vmem:[#allocation48_spill] sm:$0xff] }
 0x5c8   : > { %v4464_v60 = vpop.f32.mrf.mxu0  ;;  %v3375_v41 = vadd.f32 %v11788_v19, %v3181_v38 }
 0x5c9   : > { %v10391_v5 = vadd.f32 %v4461_v33, %v4300_v0  ;;  %v4024_v18 = vmax.f32 %v3992_v2, 0.0 }
 0x5ca   : > { %v3570_v62 = vadd.f32 %v10150_v49, %v3375_v41 }
 0x5cb   : > { %4349 = vmatmul.f32.gmra.mxu3 %v10393_v7  ;;  %4057 = vst [vmem:[#allocation4 + $0xe1] sm:$0xff] %v4024_v18  ;;  %4511 = vmatmul.f32.gmra.mxu0 %v4412_v56  ;;  %v10405_v56 = vld [vmem:[#allocation4 + $0xd8] sm:$0xff] }
 0x5cc   : > { %v3897_v37 = vpop.f32.mrf.mxu1  ;;  %4242 = vmatmul.f32.gmra.mxu2 %v4024_v18  ;;  %v11790_v18 = vld [vmem:[#allocation21_spill] sm:$0xff]  ;;  %v3764_v49 = vadd.f32 %v10142_v44, %v3570_v62 }
 0x5cd   : > { %v3957_v21 = vadd.f32 %v3897_v37, %v3763_v32  ;;  %v3182_v1 = vadd.f32 %v11790_v18, %v11789_v26  ;;  %v11793_v26 = vld [vmem:[#allocation34_spill] sm:$0xff] }
 0x5ce   : > { %v4302_v33 = vpop.f32.mrf.mxu3 }
 0x5cf   : > { %v4303_v15 = vadd.f32 %v4302_v33, %v4189_v27  ;;  %v3993_v52 = vadd.f32 %v10090_v47, %v3957_v21  ;;  %4660 = vmatmul.f32.gmra.mxu1 %v10157_v28  ;;  %v4195_v54 = vpop.f32.mrf.mxu2  ;;  %v6802_v28 = vld [vmem:[%s11552_s5 + $0x220] sm:$0xff] }
 0x5d0   : > { %v4467_v3 = vpop.f32.mrf.mxu0  ;;  %4843 = vmatpush.msrb.mxu2 %v6802_v28 }
 0x5d1   : > { %v10403_v0 = vadd.f32 %v4464_v60, %v4303_v15  ;;  %v4025_v2 = vmax.f32 %v3993_v52, 0.0  ;;  %v11791_v60 = vld [vmem:[#allocation51_spill] sm:$0xff] }
 0x5d2   : > { %v4413_v35 = vld [vmem:[#allocation4 + $0xda] sm:$0xff]  ;;  %v3376_v38 = vadd.f32 %v11791_v60, %v3182_v1 }
 0x5d3   : > { %4352 = vmatmul.f32.gmra.mxu3 %v10405_v56  ;;  %4058 = vst [vmem:[#allocation4 + $0xf1] sm:$0xff] %v4025_v2  ;;  %4514 = vmatmul.f32.gmra.mxu0 %v4413_v35  ;;  %v10420_v52 = vld [vmem:[#allocation4 + $0xe0] sm:$0xff] }
 0x5d4   : > { %v3900_v27 = vpop.f32.mrf.mxu1  ;;  %4245 = vmatmul.f32.gmra.mxu2 %v4025_v2  ;;  %v3571_v19 = vadd.f32 %v10166_v8, %v3376_v38  ;;  %v4414_v2 = vld [vmem:[#allocation4 + $0xe2] sm:$0xff] }
 0x5d5   : > { %v3958_v32 = vadd.f32 %v3900_v27, %v3764_v49  ;;  %v11792_v35 = vld [vmem:[#allocation27_spill] sm:$0xff] }
 0x5d6   : > { %v4305_v37 = vpop.f32.mrf.mxu3  ;;  %v3183_v18 = vadd.f32 %v11793_v26, %v11792_v35  ;;  %v3765_v8 = vadd.f32 %v10155_v22, %v3571_v19  ;;  %v11795_v19 = vld [vmem:[#allocation19_spill] sm:$0xff] }
 0x5d7   : > { %v4306_v41 = vadd.f32 %v4305_v37, %v4192_v29  ;;  %v3994_v21 = vadd.f32 %v10090_v47, %v3958_v32  ;;  %4663 = vmatmul.f32.gmra.mxu1 %v10176_v30  ;;  %v4198_v33 = vpop.f32.mrf.mxu2  ;;  %v11794_v30 = vld [vmem:[#allocation52_spill] sm:$0xff] }
 0x5d8   : > { %v4470_v44 = vpop.f32.mrf.mxu0  ;;  %v3377_v1 = vadd.f32 %v11794_v30, %v3183_v18 }
 0x5d9   : > { %v10418_v62 = vadd.f32 %v4467_v3, %v4306_v41  ;;  %v4026_v15 = vmax.f32 %v3994_v21, 0.0 }
 0x5da   : > { %v3572_v28 = vadd.f32 %v10180_v24, %v3377_v1  ;;  %v10432_v21 = vld [vmem:[#allocation4 + $0xf0] sm:$0xff] }
 0x5db   : > { %4355 = vmatmul.f32.gmra.mxu3 %v10420_v52  ;;  %4059 = vst [vmem:[#allocation4 + $0xf9] sm:$0xff] %v4026_v15  ;;  %4517 = vmatmul.f32.gmra.mxu0 %v4414_v2 }
 0x5dc   : > { %v3903_v29 = vpop.f32.mrf.mxu1  ;;  %4248 = vmatmul.f32.gmra.mxu2 %v4026_v15  ;;  %v11796_v15 = vld [vmem:[#allocation35_spill] sm:$0xff]  ;;  %v3766_v24 = vadd.f32 %v10174_v12, %v3572_v28 }
 0x5dd   : > { %v3959_v49 = vadd.f32 %v3903_v29, %v3765_v8  ;;  %v3184_v2 = vadd.f32 %v11796_v15, %v11795_v19 }
 0x5de   : > { %v4308_v3 = vpop.f32.mrf.mxu3 }
 0x5df   : > { %v4309_v27 = vadd.f32 %v4308_v3, %v4195_v54  ;;  %v3995_v60 = vadd.f32 %v10090_v47, %v3959_v49  ;;  %4666 = vmatmul.f32.gmra.mxu1 %v10189_v43  ;;  %v4201_v38 = vpop.f32.mrf.mxu2  ;;  %v6801_v43 = vld [vmem:[%s11552_s5 + $0x218] sm:$0xff] }
 0x5e0   : > { %v4473_v32 = vpop.f32.mrf.mxu0  ;;  %4844 = vmatpush.msrb.mxu2 %v6801_v43 }
 0x5e1   : > { %v10430_v37 = vadd.f32 %v4470_v44, %v4309_v27  ;;  %v4027_v41 = vmax.f32 %v3995_v60, 0.0  ;;  %v3378_v44 = vadd.f32 %v10125_v23, %v3184_v2  ;;  %v11797_v27 = vld [vmem:[#allocation24_spill] sm:$0xff] }
 0x5e2   : > { %v4415_v22 = vld [vmem:[#allocation4 + $0xf2] sm:$0xff]  ;;  %v4416_v28 = vld [vmem:[#allocation4 + $0xfa] sm:$0xff]  ;;  %v11798_v23 = vld [vmem:[#allocation36_spill] sm:$0xff] }
 0x5e3   : > { %4358 = vmatmul.f32.gmra.mxu3 %v10432_v21  ;;  %4060 = vst [vmem:[#allocation4 + $0x109] sm:$0xff] %v4027_v41  ;;  %4520 = vmatmul.f32.gmra.mxu0 %v4415_v22  ;;  %v3573_v18 = vadd.f32 %v10199_v50, %v3378_v44  ;;  %v10447_v3 = vld [vmem:[#allocation4 + $0xf8] sm:$0xff]  ;;  %v3185_v60 = vadd.f32 %v11798_v23, %v11797_v27 }
 0x5e4   : > { %v3906_v54 = vpop.f32.mrf.mxu1  ;;  %4251 = vmatmul.f32.gmra.mxu2 %v4027_v41 }
 0x5e5   : > { %v3960_v35 = vadd.f32 %v3906_v54, %v3766_v24  ;;  %v3767_v50 = vadd.f32 %v10187_v42, %v3573_v18  ;;  %v11801_v18 = vld [vmem:[#allocation37_spill] sm:$0xff] }
 0x5e6   : > { %v4311_v26 = vpop.f32.mrf.mxu3 }
 0x5e7   : > { %v4312_v8 = vadd.f32 %v4311_v26, %v4198_v33  ;;  %v3996_v29 = vadd.f32 %v10090_v47, %v3960_v35  ;;  %4669 = vmatmul.f32.gmra.mxu1 %v10210_v59  ;;  %v4204_v30 = vpop.f32.mrf.mxu2  ;;  %v11799_v59 = vld [vmem:[#allocation53_spill] sm:$0xff] }
 0x5e8   : > { %v4476_v12 = vpop.f32.mrf.mxu0  ;;  %v3379_v41 = vadd.f32 %v11799_v59, %v3185_v60  ;;  %v11800_v26 = vld [vmem:[#allocation13_spill] sm:$0xff] }
 0x5e9   : > { %v10445_v1 = vadd.f32 %v4473_v32, %v4312_v8  ;;  %v4028_v49 = vmax.f32 %v3996_v29, 0.0  ;;  %v3186_v8 = vadd.f32 %v11801_v18, %v11800_v26  ;;  %v11802_v29 = vld [vmem:[#allocation54_spill] sm:$0xff] }
 0x5ea   : > { %v3574_v19 = vadd.f32 %v10217_v45, %v3379_v41  ;;  %v10459_v35 = vld [vmem:[#allocation4 + $0x108] sm:$0xff] }
 0x5eb   : > { %4361 = vmatmul.f32.gmra.mxu3 %v10447_v3  ;;  %4061 = vst [vmem:[#allocation4 + $0x111] sm:$0xff] %v4028_v49  ;;  %4523 = vmatmul.f32.gmra.mxu0 %v4416_v28 }
 0x5ec   : > { %v3909_v33 = vpop.f32.mrf.mxu1  ;;  %4254 = vmatmul.f32.gmra.mxu2 %v4028_v49  ;;  %v3768_v45 = vadd.f32 %v10206_v31, %v3574_v19  ;;  %v11804_v19 = vld [vmem:[#allocation38_spill] sm:$0xff] }
 0x5ed   : > { %v3961_v22 = vadd.f32 %v3909_v33, %v3767_v50 }
 0x5ee   : > { %v4314_v32 = vpop.f32.mrf.mxu3 }
 0x5ef   : > { %v4315_v15 = vadd.f32 %v4314_v32, %v4201_v38  ;;  %v3997_v2 = vadd.f32 %v10090_v47, %v3961_v22  ;;  %4672 = vmatmul.f32.gmra.mxu1 %v10223_v51  ;;  %v4207_v24 = vpop.f32.mrf.mxu2  ;;  %v6800_v51 = vld [vmem:[%s11552_s5 + $0x210] sm:$0xff]  ;;  %v11803_v32 = vld [vmem:[#allocation30_spill] sm:$0xff] }
 0x5f0   : > { %v4479_v43 = vpop.f32.mrf.mxu0  ;;  %4845 = vmatpush.msrb.mxu2 %v6800_v51 }
 0x5f1   : > { %v10457_v54 = vadd.f32 %v4476_v12, %v4315_v15  ;;  %v4029_v44 = vmax.f32 %v3997_v2, 0.0  ;;  %v3380_v12 = vadd.f32 %v11802_v29, %v3186_v8  ;;  %v3187_v15 = vadd.f32 %v11804_v19, %v11803_v32 }
 0x5f2   : > { %v4417_v42 = vld [vmem:[#allocation4 + $0x10a] sm:$0xff]  ;;  %v4418_v22 = vld [vmem:[#allocation4 + $0x112] sm:$0xff] }
 0x5f3   : > { %4364 = vmatmul.f32.gmra.mxu3 %v10459_v35  ;;  %4062 = vst [vmem:[#allocation4 + $0x121] sm:$0xff] %v4029_v44  ;;  %4526 = vmatmul.f32.gmra.mxu0 %v4417_v42  ;;  %v3575_v27 = vadd.f32 %v10235_v55, %v3380_v12  ;;  %v10474_v41 = vld [vmem:[#allocation4 + $0x110] sm:$0xff] }
 0x5f4   : > { %v3912_v38 = vpop.f32.mrf.mxu1  ;;  %4257 = vmatmul.f32.gmra.mxu2 %v4029_v44  ;;  %v11806_v12 = vld [vmem:[#allocation9_spill] sm:$0xff] }
 0x5f5   : > { %v3962_v49 = vadd.f32 %v3912_v38, %v3768_v45  ;;  %v3769_v55 = vadd.f32 %v10221_v36, %v3575_v27  ;;  %v11808_v27 = vld [vmem:[#allocation31_spill] sm:$0xff] }
 0x5f6   : > { %v4317_v28 = vpop.f32.mrf.mxu3 }
 0x5f7   : > { %v4318_v23 = vadd.f32 %v4317_v28, %v4204_v30  ;;  %v3998_v60 = vadd.f32 %v10090_v47, %v3962_v49  ;;  %4675 = vmatmul.f32.gmra.mxu1 %v10244_v11  ;;  %v4210_v50 = vpop.f32.mrf.mxu2  ;;  %v11805_v11 = vld [vmem:[#allocation55_spill] sm:$0xff]  ;;  %v11807_v49 = vld [vmem:[#allocation40_spill] sm:$0xff] }
 0x5f8   : > { %v4482_v31 = vpop.f32.mrf.mxu0  ;;  %v3381_v2 = vadd.f32 %v11805_v11, %v3187_v15  ;;  %v3188_v28 = vadd.f32 %v11807_v49, %v11806_v12  ;;  %v6828_v15 = vld [vmem:[%s11552_s5 + $0x2f0] sm:$0xff]  ;;  %v6826_v11 = vld [vmem:[%s11552_s5 + $0x2e0] sm:$0xff] }
 0x5f9   : > { %v10472_v33 = vadd.f32 %v4479_v43, %v4318_v23  ;;  %v4030_v59 = vmax.f32 %v3998_v60, 0.0 }
 0x5fa   : > { %v3576_v42 = vadd.f32 %v10253_v10, %v3381_v2  ;;  %v10486_v29 = vld [vmem:[#allocation4 + $0x120] sm:$0xff]  ;;  %v3382_v23 = vadd.f32 %v11808_v27, %v3188_v28 }
 0x5fb   : > { %4367 = vmatmul.f32.gmra.mxu3 %v10474_v41  ;;  %4063 = vst [vmem:[#allocation4 + $0x129] sm:$0xff] %v4030_v59  ;;  %4529 = vmatmul.f32.gmra.mxu0 %v4418_v22 }
 0x5fc   : > { %v3915_v30 = vpop.f32.mrf.mxu1  ;;  %4260 = vmatmul.f32.gmra.mxu2 %v4030_v59  ;;  %v3770_v10 = vadd.f32 %v10242_v57, %v3576_v42  ;;  %v3577_v59 = vadd.f32 %v10269_v6, %v3382_v23  ;;  %v10503_v57 = vld [vmem:[%s11551_s4] ss:$0 sm:$0xff] }
 0x5fd   : > { %v3963_v44 = vadd.f32 %v3915_v30, %v3769_v55  ;;  %v6822_v23 = vld [vmem:[%s11552_s5 + $0x2c0] sm:$0xff] }
 0x5fe   : > { %v4320_v43 = vpop.f32.mrf.mxu3 }
 0x5ff   : > { %v4321_v26 = vadd.f32 %v4320_v43, %v4207_v24  ;;  %v3999_v18 = vadd.f32 %v10090_v47, %v3963_v44  ;;  %4678 = vmatmul.f32.gmra.mxu1 %v10259_v40  ;;  %v4213_v8 = vpop.f32.mrf.mxu2  ;;  %v6799_v47 = vld [vmem:[%s11552_s5 + $0x208] sm:$0xff]  ;;  %v6829_v40 = vld [vmem:[%s11552_s5 + $0x2f8] sm:$0xff]  ;;  %v11810_v43 = vld [vmem:[#allocation41_spill] sm:$0xff] }
 0x600   : > { %v4485_v45 = vpop.f32.mrf.mxu0  ;;  %5026 = vmatpush.msra.mxu3 %v6829_v40  ;;  %4846 = vmatpush.msrb.mxu2 %v6799_v47  ;;  %v11809_v44 = vld [vmem:[#allocation20_spill] sm:$0xff]  ;;  %v6824_v40 = vld [vmem:[%s11552_s5 + $0x2d0] sm:$0xff] }
 0x601   : > { %v10484_v51 = vadd.f32 %v4482_v31, %v4321_v26  ;;  %v4031_v38 = vmax.f32 %v3999_v18, 0.0  ;;  %v3189_v42 = vadd.f32 %v11810_v43, %v11809_v44  ;;  %v3771_v26 = vadd.f32 %v10257_v53, %v3577_v59  ;;  %v6825_v18 = vld [vmem:[%s11552_s5 + $0x2d8] sm:$0xff]  ;;  %v11811_v59 = vld [vmem:[#allocation12_spill] sm:$0xff] }
 0x602   : > { %v4419_v36 = vld [vmem:[#allocation4 + $0x122] sm:$0xff]  ;;  %5027 = vmatpush.msra.mxu3 %v6828_v15  ;;  %v4420_v2 = vld [vmem:[#allocation4 + $0x12a] sm:$0xff] }
 0x603   : > { %4370 = vmatmul.f32.gmra.mxu3 %v10486_v29  ;;  %4064 = vst [vmem:[#allocation4 + $0x139] sm:$0xff] %v4031_v38  ;;  %4532 = vmatmul.f32.gmra.mxu0 %v4419_v36  ;;  %v3383_v36 = vadd.f32 %v10227_v4, %v3189_v42  ;;  %v6844_v4 = vld [vmem:[%s11552_s5 + $0x370] sm:$0xff] }
 0x604   : > { %v3918_v24 = vpop.f32.mrf.mxu1  ;;  %4263 = vmatmul.f32.gmra.mxu2 %v4031_v38 }
 0x605   : > { %v3964_v60 = vadd.f32 %v3918_v24, %v3770_v10  ;;  %v3578_v28 = vadd.f32 %v10296_v17, %v3383_v36 }
 0x606   : > { %v4323_v31 = vpop.f32.mrf.mxu3 }
 0x607   : > { %v4324_v22 = vadd.f32 %v4323_v31, %v4210_v50  ;;  %v4000_v32 = vadd.f32 %v10503_v57, %v3964_v60  ;;  %4681 = vmatmul.f32.gmra.mxu1 %v10286_v46  ;;  %v10507_v19 = vpop.f32.mrf.mxu2  ;;  %v6827_v50 = vld [vmem:[%s11552_s5 + $0x2e8] sm:$0xff]  ;;  %v3772_v15 = vadd.f32 %v10278_v63, %v3578_v28 }
 0x608   : > { %v4488_v55 = vpop.f32.mrf.mxu0  ;;  %v10520_v46 = vld [vmem:[#allocation4 + $0x128] sm:$0xff]  ;;  %5028 = vmatpush.msra.mxu3 %v6827_v50  ;;  %v6821_v50 = vld [vmem:[%s11552_s5 + $0x2b8] sm:$0xff] }
 0x609   : > { %v10512_v30 = vadd.f32 %v4485_v45, %v4324_v22  ;;  %v4032_v6 = vmax.f32 %v4000_v32, 0.0  ;;  %v6845_v45 = vld [vmem:[%s11552_s5 + $0x378] sm:$0xff]  ;;  %v11812_v22 = vld [vmem:[#allocation43_spill] sm:$0xff] }
 0x60a   : > { %5029 = vmatpush.msra.mxu3 %v6826_v11  ;;  %5221 = vmatpush.msra.mxu0 %v6845_v45  ;;  %v10555_v60 = vld [vmem:[#allocation4 + $0x138] sm:$0xff]  ;;  %v3190_v32 = vadd.f32 %v11812_v22, %v11811_v59 }
 0x60b   : > { %4373 = vmatmul.f32.gmra.mxu3 %v10520_v46  ;;  %4065 = vst [vmem:[#allocation4 + $0x141] sm:$0xff] %v4032_v6  ;;  %4535 = vmatmul.f32.gmra.mxu0 %v4420_v2  ;;  %v6841_v2 = vld [vmem:[%s11552_s5 + $0x358] sm:$0xff] }
 0x60c   : > { %v3921_v38 = vpop.f32.mrf.mxu1  ;;  %4266 = vmatmul.f32.gmra.mxu2 %v4032_v6  ;;  %5030 = vmatpush.msra.mxu3 %v6825_v18  ;;  %v6798_v6 = vld [vmem:[%s11552_s5 + $0x200] sm:$0xff]  ;;  %v3384_v63 = vadd.f32 %v10251_v16, %v3190_v32  ;;  %v6820_v16 = vld [vmem:[%s11552_s5 + $0x2b0] sm:$0xff]  ;;  %v6837_v59 = vld [vmem:[%s11552_s5 + $0x338] sm:$0xff] }
 0x60d   : > { %v3965_v12 = vadd.f32 %v3921_v38, %v3771_v26  ;;  %5222 = vmatpush.msra.mxu0 %v6844_v4  ;;  %4847 = vmatpush.msrb.mxu2 %v6798_v6  ;;  %v6840_v38 = vld [vmem:[%s11552_s5 + $0x350] sm:$0xff] }
 0x60e   : > { %v4326_v49 = vpop.f32.mrf.mxu3  ;;  %5031 = vmatpush.msra.mxu3 %v6824_v40  ;;  %v3579_v42 = vadd.f32 %v10326_v39, %v3384_v63  ;;  %v11814_v40 = vld [vmem:[#allocation45_spill] sm:$0xff]  ;;  %v6835_v63 = vld [vmem:[%s11552_s5 + $0x328] sm:$0xff] }
 0x60f   : > { %v4327_v53 = vadd.f32 %v4326_v49, %v4213_v8  ;;  %v4001_v10 = vadd.f32 %v10503_v57, %v3965_v12  ;;  %4684 = vmatmul.f32.gmra.mxu1 %v10313_v61  ;;  %v10536_v47 = vpop.f32.mrf.mxu2  ;;  %v6823_v61 = vld [vmem:[%s11552_s5 + $0x2c8] sm:$0xff]  ;;  %v6836_v6 = vld [vmem:[%s11552_s5 + $0x330] sm:$0xff] }
 0x610   : > { %v4491_v24 = vpop.f32.mrf.mxu0  ;;  %v6843_v8 = vld [vmem:[%s11552_s5 + $0x368] sm:$0xff]  ;;  %5032 = vmatpush.msra.mxu3 %v6823_v61 }
 0x611   : > { %v10544_v27 = vadd.f32 %v4488_v55, %v4327_v53  ;;  %v4033_v17 = vmax.f32 %v4001_v10, 0.0  ;;  %5223 = vmatpush.msra.mxu0 %v6843_v8  ;;  %v6842_v55 = vld [vmem:[%s11552_s5 + $0x360] sm:$0xff]  ;;  %v6839_v12 = vld [vmem:[%s11552_s5 + $0x348] sm:$0xff]  ;;  %v11813_v10 = vld [vmem:[#allocation14_spill] sm:$0xff] }
 0x612   : > { %v4421_v31 = vld [vmem:[#allocation4 + $0x13a] sm:$0xff]  ;;  %5033 = vmatpush.msra.mxu3 %v6822_v23  ;;  %v4422_v28 = vld [vmem:[#allocation4 + $0x142] sm:$0xff]  ;;  %v3191_v4 = vadd.f32 %v11814_v40, %v11813_v10 }
 0x613   : > { %4376 = vmatmul.f32.gmra.mxu3 %v10555_v60  ;;  %4066 = vst [vmem:[#allocation4 + $0x151] sm:$0xff] %v4033_v17  ;;  %4538 = vmatmul.f32.gmra.mxu0 %v4421_v31  ;;  %v10594_v49 = vld [vmem:[#allocation4 + $0x140] sm:$0xff]  ;;  %v6817_v8 = vld [vmem:[%s11552_s5 + $0x298] sm:$0xff] }
 0x614   : > { %v3924_v11 = vpop.f32.mrf.mxu1  ;;  %4269 = vmatmul.f32.gmra.mxu2 %v4033_v17  ;;  %5224 = vmatpush.msra.mxu0 %v6842_v55  ;;  %v6818_v53 = vld [vmem:[%s11552_s5 + $0x2a0] sm:$0xff]  ;;  %v3385_v23 = vadd.f32 %v10272_v48, %v3191_v4  ;;  %v6816_v48 = vld [vmem:[%s11552_s5 + $0x290] sm:$0xff]  ;;  %v6833_v10 = vld [vmem:[%s11552_s5 + $0x318] sm:$0xff] }
 0x615   : > { %v3966_v44 = vadd.f32 %v3924_v11, %v3772_v15  ;;  %5034 = vmatpush.msra.mxu3 %v6821_v50  ;;  %v6838_v17 = vld [vmem:[%s11552_s5 + $0x340] sm:$0xff] }
 0x616   : > { %v4329_v43 = vpop.f32.mrf.mxu3  ;;  %5225 = vmatpush.msra.mxu0 %v6841_v2  ;;  %v3580_v22 = vadd.f32 %v10344_v14, %v3385_v23 }
 0x617   : > { %v4330_v26 = vadd.f32 %v4329_v43, %v10507_v19  ;;  %v4002_v18 = vadd.f32 %v10503_v57, %v3966_v44  ;;  %4687 = vmatmul.f32.gmra.mxu1 %v10335_v25  ;;  %v10578_v45 = vpop.f32.mrf.mxu2  ;;  %5035 = vmatpush.msra.mxu3 %v6820_v16  ;;  %v6819_v25 = vld [vmem:[%s11552_s5 + $0x2a8] sm:$0xff]  ;;  %v11816_v43 = vld [vmem:[#allocation47_spill] sm:$0xff] }
 0x618   : > { %v4494_v36 = vpop.f32.mrf.mxu0  ;;  %5226 = vmatpush.msra.mxu0 %v6840_v38  ;;  %v11815_v44 = vld [vmem:[#allocation16_spill] sm:$0xff]  ;;  %v6814_v16 = vld [vmem:[%s11552_s5 + $0x280] sm:$0xff]  ;;  %v6877_v38 = vld [vmem:[%s11552_s5 + $0x478] sm:$0xff] }
 0x619   : > { %v10586_v39 = vadd.f32 %v4491_v24, %v4330_v26  ;;  %v4034_v19 = vmax.f32 %v4002_v18, 0.0  ;;  %5036 = vmatpush.msra.mxu3 %v6819_v25  ;;  %v3773_v24 = vadd.f32 %v10303_v20, %v3579_v42  ;;  %v3192_v42 = vadd.f32 %v11816_v43, %v11815_v44  ;;  %v11817_v26 = vld [vmem:[#allocation5_spill] sm:$0xff]  ;;  %5609 = vmatpush.msra.mxu2 %v6877_v38 }
 0x61a   : > { %5227 = vmatpush.msra.mxu0 %v6839_v12  ;;  %v3774_v18 = vadd.f32 %v11817_v26, %v3580_v22  ;;  %v11818_v25 = vld [vmem:[#allocation33_spill] sm:$0xff]  ;;  %v11823_v26 = vld [vmem:[#allocation6_spill] sm:$0xff] }
 0x61b   : > { %4379 = vmatmul.f32.gmra.mxu3 %v10594_v49  ;;  %4067 = vst [vmem:[#allocation4 + $0x159] sm:$0xff] %v4034_v19  ;;  %4541 = vmatmul.f32.gmra.mxu0 %v4422_v28  ;;  %v3386_v12 = vadd.f32 %v11818_v25, %v3192_v42 }
 0x61c   : > { %v3927_v61 = vpop.f32.mrf.mxu1  ;;  %4272 = vmatmul.f32.gmra.mxu2 %v4034_v19  ;;  %5037 = vmatpush.msra.mxu3 %v6818_v53  ;;  %v6834_v19 = vld [vmem:[%s11552_s5 + $0x320] sm:$0xff] }
 0x61d   : > { %v3967_v31 = vadd.f32 %v3927_v61, %v3773_v24  ;;  %5228 = vmatpush.msra.mxu0 %v6838_v17  ;;  %v3581_v40 = vadd.f32 %v10360_v9, %v3386_v12  ;;  %v6861_v61 = vld [vmem:[%s11552_s5 + $0x3f8] sm:$0xff]  ;;  %v6832_v9 = vld [vmem:[%s11552_s5 + $0x310] sm:$0xff]  ;;  %v11824_v12 = vld [vmem:[#allocation28_spill] sm:$0xff] }
 0x61e   : > { %v4332_v20 = vpop.f32.mrf.mxu3  ;;  %5038 = vmatpush.msra.mxu3 %v6817_v8  ;;  %5415 = vmatpush.msra.mxu1 %v6861_v61 }
 0x61f   : > { %v4333_v32 = vadd.f32 %v4332_v20, %v10536_v47  ;;  %v4003_v15 = vadd.f32 %v10503_v57, %v3967_v31  ;;  %4690 = vmatmul.f32.gmra.mxu1 %v10350_v13  ;;  %v4225_v55 = vpop.f32.mrf.mxu2  ;;  %5229 = vmatpush.msra.mxu0 %v6837_v59  ;;  %v6815_v13 = vld [vmem:[%s11552_s5 + $0x288] sm:$0xff]  ;;  %v10628_v47 = vld [vmem:[#allocation4 + $0x150] sm:$0xff] }
 0x620   : > { %v4497_v50 = vpop.f32.mrf.mxu0  ;;  %5039 = vmatpush.msra.mxu3 %v6816_v48  ;;  %v11820_v20 = vld [vmem:[#allocation49_spill] sm:$0xff]  ;;  %v6831_v48 = vld [vmem:[%s11552_s5 + $0x308] sm:$0xff] }
 0x621   : > { %v10623_v11 = vadd.f32 %v4494_v36, %v4333_v32  ;;  %v4035_v14 = vmax.f32 %v4003_v15, 0.0  ;;  %5230 = vmatpush.msra.mxu0 %v6836_v6  ;;  %v11821_v32 = vld [vmem:[#allocation8_spill] sm:$0xff] }
 0x622   : > { %v4423_v2 = vld [vmem:[#allocation4 + $0x152] sm:$0xff]  ;;  %5040 = vmatpush.msra.mxu3 %v6815_v13  ;;  %v4424_v59 = vld [vmem:[#allocation4 + $0x15a] sm:$0xff]  ;;  %v3775_v15 = vadd.f32 %v11821_v32, %v3581_v40 }
 0x623   : > { %4382 = vmatmul.f32.gmra.mxu3 %v10628_v47  ;;  %4068 = vst [vmem:[#allocation4 + $0x169] sm:$0xff] %v4035_v14  ;;  %4544 = vmatmul.f32.gmra.mxu0 %v4423_v2  ;;  %v6830_v2 = vld [vmem:[%s11552_s5 + $0x300] sm:$0xff] }
 0x624   : > { %v3930_v36 = vpop.f32.mrf.mxu1  ;;  %4275 = vmatmul.f32.gmra.mxu2 %v4035_v14  ;;  %5231 = vmatpush.msra.mxu0 %v6835_v63 }
 0x625   : > { %v3968_v28 = vadd.f32 %v3930_v36, %v3774_v18  ;;  %5041 = vmatpush.msra.mxu3 %v6814_v16 }
 0x626   : > { %v4335_v53 = vpop.f32.mrf.mxu3  ;;  %5232 = vmatpush.msra.mxu0 %v6834_v19 }
 0x627   : > { %v4336_v4 = vadd.f32 %v4335_v53, %v10578_v45  ;;  %v4004_v24 = vadd.f32 %v10503_v57, %v3968_v28  ;;  %4693 = vmatmul.f32.gmra.mxu1 %v10366_v58  ;;  %v4228_v17 = vpop.f32.mrf.mxu2  ;;  %v10662_v45 = vld [vmem:[#allocation4 + $0x158] sm:$0xff]  ;;  %v11819_v58 = vld [vmem:[#allocation29_spill] sm:$0xff] }
 0x628   : > { %v4500_v8 = vpop.f32.mrf.mxu0  ;;  %5233 = vmatpush.msra.mxu0 %v6833_v10  ;;  %v3193_v22 = vadd.f32 %v11820_v20, %v11819_v58 }
 0x629   : > { %v10657_v23 = vadd.f32 %v4497_v50, %v4336_v4  ;;  %v4036_v31 = vmax.f32 %v4004_v24, 0.0  ;;  %v11822_v50 = vld [vmem:[#allocation15_spill] sm:$0xff] }
 0x62a   : > { %5234 = vmatpush.msra.mxu0 %v6832_v9  ;;  %v3387_v14 = vadd.f32 %v11822_v50, %v3193_v22  ;;  %v10680_v19 = vld [vmem:[#allocation4 + $0x168] sm:$0xff]  ;;  %v5172_v50 = vld [vmem:[#allocation4 + $0x30] sm:$0xff] }
 0x62b   : > { %4385 = vmatmul.f32.gmra.mxu3 %v10662_v45  ;;  %4069 = vst [vmem:[#allocation4 + $0x171] sm:$0xff] %v4036_v31  ;;  %4547 = vmatmul.f32.gmra.mxu0 %v4424_v59 }
 0x62c   : > { %v3933_v6 = vpop.f32.mrf.mxu1  ;;  %4278 = vmatmul.f32.gmra.mxu2 %v4036_v31  ;;  %5235 = vmatpush.msra.mxu0 %v6831_v48  ;;  %v3582_v44 = vadd.f32 %v10373_v34, %v3387_v14  ;;  %v4783_v34 = vld [vmem:[#allocation4 + $0x19] sm:$0xff]  ;;  %v10702_v14 = vld [vmem:[#allocation4 + $0x31] sm:$0xff] }
 0x62d   : > { %v3969_v13 = vadd.f32 %v3933_v6, %v3775_v15  ;;  %v4977_v6 = vld [vmem:[#allocation4 + $0x1a] sm:$0xff] }
 0x62e   : > { %v4338_v63 = vpop.f32.mrf.mxu3  ;;  %5236 = vmatpush.msra.mxu0 %v6830_v2  ;;  %v3776_v28 = vadd.f32 %v11824_v12, %v3582_v44 }
 0x62f   : > { %v4339_v43 = vadd.f32 %v4338_v63, %v4225_v55  ;;  %v4005_v42 = vadd.f32 %v10503_v57, %v3969_v13  ;;  %4696 = vmatmul.f32.gmra.mxu1 %v11823_v26  ;;  %v4231_v18 = vpop.f32.mrf.mxu2  ;;  %v6876_v55 = vld [vmem:[%s11552_s5 + $0x470] sm:$0xff]  ;;  %v6875_v13 = vld [vmem:[%s11552_s5 + $0x468] sm:$0xff] }
 0x630   : > { %v4503_v16 = vpop.f32.mrf.mxu0  ;;  %5610 = vmatpush.msra.mxu2 %v6876_v55 }
 0x631   : > { %v10678_v38 = vadd.f32 %v4500_v8, %v4339_v43  ;;  %v4037_v36 = vmax.f32 %v4005_v42, 0.0  ;;  %v6860_v8 = vld [vmem:[%s11552_s5 + $0x3f0] sm:$0xff]  ;;  %v6859_v43 = vld [vmem:[%s11552_s5 + $0x3e8] sm:$0xff] }
 0x632   : > { %v4425_v25 = vld [vmem:[#allocation4 + $0x16a] sm:$0xff]  ;;  %5416 = vmatpush.msra.mxu1 %v6860_v8  ;;  %v4426_v20 = vld [vmem:[#allocation4 + $0x172] sm:$0xff]  ;;  %5611 = vmatpush.msra.mxu2 %v6875_v13 }
 0x633   : > { %4388 = vmatmul.f32.gmra.mxu3 %v10680_v19  ;;  %4070 = vst [vmem:[#allocation4 + $0x181] sm:$0xff] %v4037_v36  ;;  %4550 = vmatmul.f32.gmra.mxu0 %v4425_v25  ;;  %v10694_v58 = vld [vmem:[#allocation4 + $0x170] sm:$0xff]  ;;  %v10716_v36 = vld [vmem:[#allocation4 + $0x39] sm:$0xff] }
 0x634   : > { %v3936_v53 = vpop.f32.mrf.mxu1  ;;  %4848 = vmatmul.f32.vlgmr.msrb.gmra.mxu2 %v4783_v34  ;;  %5417 = vmatpush.msra.mxu1 %v6859_v43  ;;  %v6873_v43 = vld [vmem:[%s11552_s5 + $0x458] sm:$0xff] }
 0x635   : > { %v3970_v10 = vadd.f32 %v3936_v53, %v3776_v28  ;;  %v4979_v53 = vld [vmem:[#allocation4 + $0x32] sm:$0xff] }
 0x636   : > { %v4341_v40 = vpop.f32.mrf.mxu3 }
 0x637   : > { %v4342_v4 = vadd.f32 %v4341_v40, %v4228_v17  ;;  %v4006_v24 = vadd.f32 %v10503_v57, %v3970_v10  ;;  %4699 = vmatmul.f32.gmra.mxu1 %v10393_v7  ;;  %v4234_v61 = vpop.f32.mrf.mxu2  ;;  %v4784_v57 = vld [vmem:[#allocation4 + $0x21] sm:$0xff]  ;;  %v10724_v40 = vld [vmem:[#allocation4 + $0x49] sm:$0xff] }
 0x638   : > { %v4506_v31 = vpop.f32.mrf.mxu0  ;;  %v5174_v10 = vld [vmem:[#allocation4 + $0x48] sm:$0xff] }
 0x639   : > { %v10692_v9 = vadd.f32 %v4503_v16, %v4342_v4  ;;  %v4038_v59 = vmax.f32 %v4006_v24, 0.0  ;;  %v5173_v16 = vld [vmem:[#allocation4 + $0x38] sm:$0xff]  ;;  %v6874_v4 = vld [vmem:[%s11552_s5 + $0x460] sm:$0xff] }
 0x63a   : > { %5612 = vmatpush.msra.mxu2 %v6874_v4 }
 0x63b   : > { %4391 = vmatmul.f32.gmra.mxu3 %v10694_v58  ;;  %4071 = vst [vmem:[#allocation4 + $0x189] sm:$0xff] %v4038_v59  ;;  %4553 = vmatmul.f32.gmra.mxu0 %v4426_v20 }
 0x63c   : > { %v10697_v17 = vpop.f32.mrf.mxu1  ;;  %4851 = vmatmul.f32.gmra.mxu2 %v4784_v57  ;;  %v4980_v57 = vld [vmem:[#allocation4 + $0x3a] sm:$0xff] }
 0x63d   : > { %5613 = vmatpush.msra.mxu2 %v6873_v43 }
 0x63e   : > { %v4344_v7 = vpop.f32.mrf.mxu3 }
 0x63f   : > { %v4345_v22 = vadd.f32 %v4344_v7, %v4231_v18  ;;  %4702 = vmatmul.f32.gmra.mxu1 %v10405_v56  ;;  %v4237_v32 = vpop.f32.mrf.mxu2  ;;  %v4978_v18 = vld [vmem:[#allocation4 + $0x22] sm:$0xff]  ;;  %v5175_v7 = vld [vmem:[#allocation4 + $0x50] sm:$0xff] }
 0x640   : > { %v4509_v15 = vpop.f32.mrf.mxu0 }
 0x641   : > { %v10700_v48 = vadd.f32 %v4506_v31, %v4345_v22  ;;  %v6858_v31 = vld [vmem:[%s11552_s5 + $0x3e0] sm:$0xff]  ;;  %v10738_v22 = vld [vmem:[#allocation4 + $0x51] sm:$0xff] }
 0x642   : > { %5418 = vmatpush.msra.mxu1 %v6858_v31 }
 0x643   : > { %5042 = vmatmul.f32.vlgmr.msra.gmra.mxu3 %v4977_v6  ;;  %5237 = vmatmul.f32.vlgmr.msra.gmra.mxu0 %v5172_v50 }
 0x644   : > { %v10707_v2 = vpop.f32.mrf.mxu1  ;;  %4854 = vmatmul.f32.gmra.mxu2 %v10702_v14 }
 0x646   : > { %v4347_v56 = vpop.f32.mrf.mxu3 }
 0x647   : > { %v4348_v63 = vadd.f32 %v4347_v56, %v4234_v61  ;;  %4705 = vmatmul.f32.gmra.mxu1 %v10420_v52  ;;  %v4240_v44 = vpop.f32.mrf.mxu2  ;;  %v4981_v56 = vld [vmem:[#allocation4 + $0x4a] sm:$0xff] }
 0x648   : > { %v4512_v42 = vpop.f32.mrf.mxu0 }
 0x649   : > { %v10714_v26 = vadd.f32 %v4509_v15, %v4348_v63  ;;  %v5176_v63 = vld [vmem:[#allocation4 + $0x60] sm:$0xff] }
 0x64b   : > { %5045 = vmatmul.f32.gmra.mxu3 %v4978_v18  ;;  %5240 = vmatmul.f32.gmra.mxu0 %v5173_v16 }
 0x64c   : > { %v10718_v25 = vpop.f32.mrf.mxu1  ;;  %4857 = vmatmul.f32.gmra.mxu2 %v10716_v36 }
 0x64e   : > { %v4350_v52 = vpop.f32.mrf.mxu3 }
 0x64f   : > { %v4351_v12 = vadd.f32 %v4350_v52, %v4237_v32  ;;  %4708 = vmatmul.f32.gmra.mxu1 %v10432_v21  ;;  %v4243_v28 = vpop.f32.mrf.mxu2  ;;  %v6857_v52 = vld [vmem:[%s11552_s5 + $0x3d8] sm:$0xff] }
 0x650   : > { %v4515_v34 = vpop.f32.mrf.mxu0  ;;  %5419 = vmatpush.msra.mxu1 %v6857_v52 }
 0x651   : > { %v10722_v55 = vadd.f32 %v4512_v42, %v4351_v12 }
 0x653   : > { %5048 = vmatmul.f32.gmra.mxu3 %v4979_v53  ;;  %5243 = vmatmul.f32.gmra.mxu0 %v5174_v10  ;;  %v5177_v53 = vld [vmem:[#allocation4 + $0x68] sm:$0xff] }
 0x654   : > { %v10729_v24 = vpop.f32.mrf.mxu1  ;;  %4860 = vmatmul.f32.gmra.mxu2 %v10724_v40  ;;  %v10763_v10 = vld [vmem:[#allocation4 + $0x69] sm:$0xff] }
 0x656   : > { %v4353_v21 = vpop.f32.mrf.mxu3 }
 0x657   : > { %v4354_v61 = vadd.f32 %v4353_v21, %v4240_v44  ;;  %4711 = vmatmul.f32.gmra.mxu1 %v10447_v3  ;;  %v4246_v8 = vpop.f32.mrf.mxu2  ;;  %v10746_v44 = vld [vmem:[#allocation4 + $0x61] sm:$0xff] }
 0x658   : > { %v4518_v59 = vpop.f32.mrf.mxu0 }
 0x659   : > { %v10736_v20 = vadd.f32 %v4515_v34, %v4354_v61  ;;  %v10760_v34 = vld [vmem:[#allocation4 + $0x52] sm:$0xff] }
 0x65b   : > { %5051 = vmatmul.f32.gmra.mxu3 %v4980_v57  ;;  %5246 = vmatmul.f32.gmra.mxu0 %v5175_v7  ;;  %v5178_v57 = vld [vmem:[#allocation4 + $0x78] sm:$0xff] }
 0x65c   : > { %v10740_v32 = vpop.f32.mrf.mxu1  ;;  %4863 = vmatmul.f32.gmra.mxu2 %v10738_v22  ;;  %v10774_v7 = vld [vmem:[#allocation4 + $0x79] sm:$0xff] }
 0x65e   : > { %v4356_v3 = vpop.f32.mrf.mxu3 }
 0x65f   : > { %v4357_v15 = vadd.f32 %v4356_v3, %v4243_v28  ;;  %4714 = vmatmul.f32.gmra.mxu1 %v10459_v35  ;;  %v4249_v6 = vpop.f32.mrf.mxu2  ;;  %v6872_v3 = vld [vmem:[%s11552_s5 + $0x450] sm:$0xff] }
 0x660   : > { %v4521_v50 = vpop.f32.mrf.mxu0  ;;  %5614 = vmatpush.msra.mxu2 %v6872_v3  ;;  %v10802_v3 = vld [vmem:[#allocation4 + $0x91] sm:$0xff] }
 0x661   : > { %v10744_v13 = vadd.f32 %v4518_v59, %v4357_v15  ;;  %v10771_v59 = vld [vmem:[#allocation4 + $0x62] sm:$0xff] }
 0x662   : > { %11828 = vst [vmem:[#allocation18_spill] sm:$0xff] %v10771_v59 }
 0x663   : > { %11825 = vst [vmem:[#allocation10_spill] sm:$0xff] %v10744_v13  ;;  %5054 = vmatmul.f32.gmra.mxu3 %v4981_v56  ;;  %5249 = vmatmul.f32.gmra.mxu0 %v5176_v63  ;;  %v6856_v56 = vld [vmem:[%s11552_s5 + $0x3d0] sm:$0xff]  ;;  %v5187_v13 = vld [vmem:[#allocation4 + $0xe0] sm:$0xff] }
 0x664   : > { %v10751_v42 = vpop.f32.mrf.mxu1  ;;  %4866 = vmatmul.f32.gmra.mxu2 %v10746_v44  ;;  %5420 = vmatpush.msra.mxu1 %v6856_v56  ;;  %v6855_v56 = vld [vmem:[%s11552_s5 + $0x3c8] sm:$0xff] }
 0x666   : > { %v4359_v35 = vpop.f32.mrf.mxu3  ;;  %5421 = vmatpush.msra.mxu1 %v6855_v56 }
 0x667   : > { %v4360_v18 = vadd.f32 %v4359_v35, %v4246_v8  ;;  %4717 = vmatmul.f32.gmra.mxu1 %v10474_v41  ;;  %v4252_v16 = vpop.f32.mrf.mxu2  ;;  %v10788_v35 = vld [vmem:[#allocation4 + $0x6a] sm:$0xff] }
 0x668   : > { %v4524_v12 = vpop.f32.mrf.mxu0  ;;  %11830 = vst [vmem:[#allocation42_spill] sm:$0xff] %v10788_v35 }
 0x669   : > { %v10758_v28 = vadd.f32 %v4521_v50, %v4360_v18  ;;  %v5179_v18 = vld [vmem:[#allocation4 + $0x80] sm:$0xff] }
 0x66b   : > { %11826 = vst [vmem:[#allocation39_spill] sm:$0xff] %v10758_v28  ;;  %5057 = vmatmul.f32.gmra.mxu3 %v10760_v34  ;;  %5252 = vmatmul.f32.gmra.mxu0 %v5177_v53 }
 0x66c   : > { %4869 = vmatmul.f32.gmra.mxu2 %v10763_v10  ;;  %v10766_v41 = vpop.f32.mrf.mxu1 }
 0x66e   : > { %v4362_v4 = vpop.f32.mrf.mxu3 }
 0x66f   : > { %v4363_v21 = vadd.f32 %v4362_v4, %v4249_v6  ;;  %4720 = vmatmul.f32.gmra.mxu1 %v10486_v29  ;;  %v4255_v61 = vpop.f32.mrf.mxu2 }
 0x670   : > { %v4527_v8 = vpop.f32.mrf.mxu0 }
 0x671   : > { %v10769_v31 = vadd.f32 %v4524_v12, %v4363_v21 }
 0x673   : > { %11827 = vst [vmem:[#allocation7_spill] sm:$0xff] %v10769_v31  ;;  %5060 = vmatmul.f32.gmra.mxu3 %v10771_v59  ;;  %5255 = vmatmul.f32.gmra.mxu0 %v5178_v57  ;;  %v5180_v57 = vld [vmem:[#allocation4 + $0x90] sm:$0xff] }
 0x674   : > { %4872 = vmatmul.f32.gmra.mxu2 %v10774_v7  ;;  %v10780_v6 = vpop.f32.mrf.mxu1  ;;  %v10891_v31 = vld [vmem:[#allocation4 + $0xb2] sm:$0xff]  ;;  %v10920_v59 = vld [vmem:[#allocation4 + $0xca] sm:$0xff] }
 0x675   : > { %11842 = vst [vmem:[#allocation51_spill] sm:$0xff] %v10891_v31 }
 0x676   : > { %v4365_v29 = vpop.f32.mrf.mxu3  ;;  %11846 = vst [vmem:[#allocation19_spill] sm:$0xff] %v10920_v59 }
 0x677   : > { %v4366_v15 = vadd.f32 %v4365_v29, %v4252_v16  ;;  %4723 = vmatmul.f32.gmra.mxu1 %v10520_v46  ;;  %v4258_v50 = vpop.f32.mrf.mxu2  ;;  %v10791_v16 = vld [vmem:[#allocation4 + $0x81] sm:$0xff] }
 0x678   : > { %v4530_v63 = vpop.f32.mrf.mxu0 }
 0x679   : > { %v10786_v43 = vadd.f32 %v4527_v8, %v4366_v15  ;;  %v10799_v8 = vld [vmem:[#allocation4 + $0x7a] sm:$0xff] }
 0x67a   : > { %11832 = vst [vmem:[#allocation17_spill] sm:$0xff] %v10799_v8 }
 0x67b   : > { %11829 = vst [vmem:[#allocation50_spill] sm:$0xff] %v10786_v43  ;;  %5063 = vmatmul.f32.gmra.mxu3 %v10788_v35  ;;  %5258 = vmatmul.f32.gmra.mxu0 %v5179_v18 }
 0x67c   : > { %4875 = vmatmul.f32.gmra.mxu2 %v10791_v16  ;;  %v10797_v21 = vpop.f32.mrf.mxu1 }
 0x67e   : > { %v4368_v46 = vpop.f32.mrf.mxu3 }
 0x67f   : > { %v4369_v52 = vadd.f32 %v4368_v46, %v4255_v61  ;;  %4726 = vmatmul.f32.gmra.mxu1 %v10555_v60  ;;  %v4261_v12 = vpop.f32.mrf.mxu2  ;;  %v6871_v61 = vld [vmem:[%s11552_s5 + $0x448] sm:$0xff] }
 0x680   : > { %v4533_v53 = vpop.f32.mrf.mxu0  ;;  %5615 = vmatpush.msra.mxu2 %v6871_v61  ;;  %v10814_v46 = vld [vmem:[#allocation4 + $0x82] sm:$0xff] }
 0x681   : > { %v10795_v4 = vadd.f32 %v4530_v63, %v4369_v52  ;;  %11834 = vst [vmem:[#allocation22_spill] sm:$0xff] %v10814_v46  ;;  %v5181_v52 = vld [vmem:[#allocation4 + $0x98] sm:$0xff] }
 0x683   : > { %11831 = vst [vmem:[#allocation26_spill] sm:$0xff] %v10795_v4  ;;  %5066 = vmatmul.f32.gmra.mxu3 %v10799_v8  ;;  %5261 = vmatmul.f32.gmra.mxu0 %v5180_v57  ;;  %v10828_v4 = vld [vmem:[#allocation4 + $0xa9] sm:$0xff] }
 0x684   : > { %4878 = vmatmul.f32.gmra.mxu2 %v10802_v3  ;;  %v10817_v57 = vpop.f32.mrf.mxu1 }
 0x686   : > { %v4371_v60 = vpop.f32.mrf.mxu3 }
 0x687   : > { %v4372_v29 = vadd.f32 %v4371_v60, %v4258_v50  ;;  %4729 = vmatmul.f32.gmra.mxu1 %v10594_v49  ;;  %v4264_v15 = vpop.f32.mrf.mxu2  ;;  %v10819_v50 = vld [vmem:[#allocation4 + $0x99] sm:$0xff] }
 0x688   : > { %v4536_v63 = vpop.f32.mrf.mxu0 }
 0x689   : > { %v10812_v18 = vadd.f32 %v4533_v53, %v4372_v29  ;;  %v10825_v29 = vld [vmem:[#allocation4 + $0x92] sm:$0xff] }
 0x68a   : > { %11836 = vst [vmem:[#allocation46_spill] sm:$0xff] %v10825_v29 }
 0x68b   : > { %11833 = vst [vmem:[#allocation44_spill] sm:$0xff] %v10812_v18  ;;  %5069 = vmatmul.f32.gmra.mxu3 %v10814_v46  ;;  %5264 = vmatmul.f32.gmra.mxu0 %v5181_v52  ;;  %v5182_v18 = vld [vmem:[#allocation4 + $0xa8] sm:$0xff]  ;;  %v6870_v52 = vld [vmem:[%s11552_s5 + $0x440] sm:$0xff] }
 0x68c   : > { %4881 = vmatmul.f32.gmra.mxu2 %v10819_v50 }
 0x68d   : > { %5616 = vmatpush.msra.mxu2 %v6870_v52  ;;  %v6852_v52 = vld [vmem:[%s11552_s5 + $0x3b0] sm:$0xff] }
 0x68e   : > { %v4374_v49 = vpop.f32.mrf.mxu3 }
 0x68f   : > { %v4375_v61 = vadd.f32 %v4374_v49, %v4261_v12  ;;  %4732 = vmatmul.f32.gmra.mxu1 %v10628_v47  ;;  %v4267_v60 = vpop.f32.mrf.mxu2  ;;  %v10834_v12 = vpop.f32.mrf.mxu1 }
 0x690   : > { %v4539_v56 = vpop.f32.mrf.mxu0 }
 0x691   : > { %v10823_v53 = vadd.f32 %v4536_v63, %v4375_v61 }
 0x693   : > { %11835 = vst [vmem:[#allocation23_spill] sm:$0xff] %v10823_v53  ;;  %5072 = vmatmul.f32.gmra.mxu3 %v10825_v29  ;;  %5267 = vmatmul.f32.gmra.mxu0 %v5182_v18  ;;  %v6854_v18 = vld [vmem:[%s11552_s5 + $0x3c0] sm:$0xff]  ;;  %v6853_v29 = vld [vmem:[%s11552_s5 + $0x3b8] sm:$0xff] }
 0x694   : > { %4884 = vmatmul.f32.gmra.mxu2 %v10828_v4  ;;  %5422 = vmatpush.msra.mxu1 %v6854_v18 }
 0x696   : > { %v4377_v47 = vpop.f32.mrf.mxu3  ;;  %5423 = vmatpush.msra.mxu1 %v6853_v29 }
 0x697   : > { %v4378_v63 = vadd.f32 %v4377_v47, %v4264_v15  ;;  %4735 = vmatmul.f32.gmra.mxu1 %v10662_v45  ;;  %v4270_v49 = vpop.f32.mrf.mxu2  ;;  %v10848_v15 = vld [vmem:[#allocation4 + $0x9a] sm:$0xff]  ;;  %v5183_v45 = vld [vmem:[#allocation4 + $0xb0] sm:$0xff]  ;;  %v10857_v18 = vpop.f32.mrf.mxu1 }
 0x698   : > { %v4542_v61 = vpop.f32.mrf.mxu0  ;;  %11838 = vst [vmem:[#allocation25_spill] sm:$0xff] %v10848_v15  ;;  %v10851_v47 = vld [vmem:[#allocation4 + $0xb1] sm:$0xff]  ;;  %5424 = vmatpush.msra.mxu1 %v6852_v52 }
 0x699   : > { %v10840_v53 = vadd.f32 %v4539_v56, %v4378_v63  ;;  %v6851_v56 = vld [vmem:[%s11552_s5 + $0x3a8] sm:$0xff]  ;;  %v6849_v52 = vld [vmem:[%s11552_s5 + $0x398] sm:$0xff] }
 0x69a   : > { %5425 = vmatpush.msra.mxu1 %v6851_v56  ;;  %v6848_v56 = vld [vmem:[%s11552_s5 + $0x390] sm:$0xff] }
 0x69b   : > { %11837 = vst [vmem:[#allocation32_spill] sm:$0xff] %v10840_v53  ;;  %5075 = vmatmul.f32.gmra.mxu3 %v10848_v15  ;;  %5270 = vmatmul.f32.gmra.mxu0 %v5183_v45  ;;  %v6850_v45 = vld [vmem:[%s11552_s5 + $0x3a0] sm:$0xff] }
 0x69c   : > { %4887 = vmatmul.f32.gmra.mxu2 %v10851_v47  ;;  %5426 = vmatpush.msra.mxu1 %v6850_v45 }
 0x69e   : > { %v4380_v63 = vpop.f32.mrf.mxu3  ;;  %5427 = vmatpush.msra.mxu1 %v6849_v52 }
 0x69f   : > { %v4381_v53 = vadd.f32 %v4380_v63, %v4267_v60  ;;  %4738 = vmatmul.f32.gmra.mxu1 %v10680_v19  ;;  %v4273_v29 = vpop.f32.mrf.mxu2  ;;  %v10871_v60 = vld [vmem:[#allocation4 + $0xaa] sm:$0xff]  ;;  %v5184_v19 = vld [vmem:[#allocation4 + $0xc0] sm:$0xff]  ;;  %v10887_v43 = vpop.f32.mrf.mxu1 }
 0x6a0   : > { %v4545_v15 = vpop.f32.mrf.mxu0  ;;  %11840 = vst [vmem:[#allocation11_spill] sm:$0xff] %v10871_v60  ;;  %v10874_v63 = vld [vmem:[#allocation4 + $0xc1] sm:$0xff]  ;;  %5428 = vmatpush.msra.mxu1 %v6848_v56 }
 0x6a1   : > { %v10863_v46 = vadd.f32 %v4542_v61, %v4381_v53  ;;  %v6869_v53 = vld [vmem:[%s11552_s5 + $0x438] sm:$0xff]  ;;  %v6847_v61 = vld [vmem:[%s11552_s5 + $0x388] sm:$0xff] }
 0x6a2   : > { %5617 = vmatpush.msra.mxu2 %v6869_v53  ;;  %5429 = vmatpush.msra.mxu1 %v6847_v61  ;;  %v5185_v56 = vld [vmem:[#allocation4 + $0xc8] sm:$0xff]  ;;  %v10897_v53 = vld [vmem:[#allocation4 + $0x180] sm:$0xff] }
 0x6a3   : > { %11839 = vst [vmem:[#allocation48_spill] sm:$0xff] %v10863_v46  ;;  %5078 = vmatmul.f32.gmra.mxu3 %v10871_v60  ;;  %5273 = vmatmul.f32.gmra.mxu0 %v5184_v19  ;;  %v6846_v46 = vld [vmem:[%s11552_s5 + $0x380] sm:$0xff] }
 0x6a4   : > { %4890 = vmatmul.f32.gmra.mxu2 %v10874_v63  ;;  %5430 = vmatpush.msra.mxu1 %v6846_v46 }
 0x6a6   : > { %v4383_v45 = vpop.f32.mrf.mxu3 }
 0x6a7   : > { %v4384_v52 = vadd.f32 %v4383_v45, %v4270_v49  ;;  %4741 = vmatmul.f32.gmra.mxu1 %v10694_v58  ;;  %v4276_v19 = vpop.f32.mrf.mxu2  ;;  %v10894_v49 = vld [vmem:[#allocation4 + $0xc9] sm:$0xff]  ;;  %v10904_v35 = vpop.f32.mrf.mxu1 }
 0x6a8   : > { %v4548_v60 = vpop.f32.mrf.mxu0 }
 0x6a9   : > { %v10889_v8 = vadd.f32 %v4545_v15, %v4384_v52  ;;  %v10902_v52 = vld [vmem:[#allocation4 + $0xc2] sm:$0xff] }
 0x6aa   : > { %11844 = vst [vmem:[#allocation34_spill] sm:$0xff] %v10902_v52 }
 0x6ab   : > { %11841 = vst [vmem:[#allocation21_spill] sm:$0xff] %v10889_v8  ;;  %5081 = vmatmul.f32.gmra.mxu3 %v10891_v31  ;;  %5276 = vmatmul.f32.gmra.mxu0 %v5185_v56  ;;  %v5186_v8 = vld [vmem:[#allocation4 + $0xd8] sm:$0xff] }
 0x6ac   : > { %4893 = vmatmul.f32.gmra.mxu2 %v10894_v49  ;;  %v10907_v56 = vld [vmem:[#allocation4 + $0xd9] sm:$0xff] }
 0x6ae   : > { %v4386_v58 = vpop.f32.mrf.mxu3 }
 0x6af   : > { %v4387_v61 = vadd.f32 %v4386_v58, %v4273_v29  ;;  %4744 = vmatmul.f32.gmra.mxu1 %v10897_v53  ;;  %v4279_v46 = vpop.f32.mrf.mxu2  ;;  %v6868_v29 = vld [vmem:[%s11552_s5 + $0x430] sm:$0xff] }
 0x6b0   : > { %v4551_v45 = vpop.f32.mrf.mxu0  ;;  %5618 = vmatpush.msra.mxu2 %v6868_v29  ;;  %v10923_v29 = vld [vmem:[#allocation4 + $0xe1] sm:$0xff] }
 0x6b1   : > { %v10900_v15 = vadd.f32 %v4548_v60, %v4387_v61  ;;  %v4751_v60 = vadd.f32 %v10697_v17, %v10391_v5  ;;  %v10915_v61 = vld [vmem:[#allocation4 + $0x188] sm:$0xff]  ;;  %v10926_v5 = vpop.f32.mrf.mxu1  ;;  %v4752_v17 = vadd.f32 %v10707_v2, %v10403_v0 }
 0x6b2   : > { %v6867_v0 = vld [vmem:[%s11552_s5 + $0x428] sm:$0xff] }
 0x6b3   : > { %11843 = vst [vmem:[#allocation27_spill] sm:$0xff] %v10900_v15  ;;  %5084 = vmatmul.f32.gmra.mxu3 %v10902_v52  ;;  %5279 = vmatmul.f32.gmra.mxu0 %v5186_v8 }
 0x6b4   : > { %4896 = vmatmul.f32.gmra.mxu2 %v10907_v56 }
 0x6b5   : > { %5619 = vmatpush.msra.mxu2 %v6867_v0  ;;  %v10952_v0 = vld [vmem:[#allocation4 + $0xf9] sm:$0xff] }
 0x6b6   : > { %v4389_v58 = vpop.f32.mrf.mxu3 }
 0x6b7   : > { %v4390_v15 = vadd.f32 %v4389_v58, %v4276_v19  ;;  %4747 = vmatmul.f32.gmra.mxu1 %v10915_v61  ;;  %v4849_v52 = vpop.f32.mrf.mxu2 }
 0x6b8   : > { %v4554_v8 = vpop.f32.mrf.mxu0  ;;  %v4945_v31 = vadd.f32 %v4849_v52, %v4751_v60 }
 0x6b9   : > { %v10918_v28 = vadd.f32 %v4551_v45, %v4390_v15 }
 0x6bb   : > { %11845 = vst [vmem:[#allocation52_spill] sm:$0xff] %v10918_v28  ;;  %5087 = vmatmul.f32.gmra.mxu3 %v10920_v59  ;;  %5282 = vmatmul.f32.gmra.mxu0 %v5187_v13  ;;  %v10933_v28 = vld [vmem:[#allocation4 + $0xda] sm:$0xff]  ;;  %v5188_v13 = vld [vmem:[#allocation4 + $0xf0] sm:$0xff] }
 0x6bc   : > { %4899 = vmatmul.f32.gmra.mxu2 %v10923_v29  ;;  %v10936_v59 = vld [vmem:[#allocation4 + $0xf1] sm:$0xff] }
 0x6be   : > { %v4392_v19 = vpop.f32.mrf.mxu3 }
 0x6bf   : > { %v4393_v58 = vadd.f32 %v4392_v19, %v4279_v46  ;;  %5431 = vmatmul.f32.vlgmr.msra.gmra.mxu1 %v10702_v14  ;;  %v4852_v45 = vpop.f32.mrf.mxu2  ;;  %v4753_v14 = vadd.f32 %v10718_v25, %v10418_v62  ;;  %v10944_v46 = vpop.f32.mrf.mxu1  ;;  %v4754_v62 = vadd.f32 %v10729_v24, %v10430_v37  ;;  %v6866_v37 = vld [vmem:[%s11552_s5 + $0x420] sm:$0xff] }
 0x6c0   : > { %v5238_v15 = vpop.f32.mrf.mxu0  ;;  %v4946_v52 = vadd.f32 %v4852_v45, %v4752_v17  ;;  %5620 = vmatpush.msra.mxu2 %v6866_v37  ;;  %v10981_v37 = vld [vmem:[#allocation4 + $0x111] sm:$0xff] }
 0x6c1   : > { %v10931_v60 = vadd.f32 %v4554_v8, %v4393_v58 }
 0x6c3   : > { %11847 = vst [vmem:[#allocation35_spill] sm:$0xff] %v10931_v60  ;;  %5090 = vmatmul.f32.gmra.mxu3 %v10933_v28  ;;  %5285 = vmatmul.f32.gmra.mxu0 %v5188_v13  ;;  %v10949_v13 = vld [vmem:[#allocation4 + $0xe2] sm:$0xff]  ;;  %v5189_v60 = vld [vmem:[#allocation4 + $0xf8] sm:$0xff] }
 0x6c4   : > { %4902 = vmatmul.f32.gmra.mxu2 %v10936_v59 }
 0x6c6   : > { %v5043_v2 = vpop.f32.mrf.mxu3 }
 0x6c7   : > { %v5139_v8 = vadd.f32 %v5043_v2, %v4945_v31  ;;  %5434 = vmatmul.f32.gmra.mxu1 %v10716_v36  ;;  %v4855_v17 = vpop.f32.mrf.mxu2  ;;  %v10958_v2 = vpop.f32.mrf.mxu1 }
 0x6c8   : > { %v5241_v19 = vpop.f32.mrf.mxu0  ;;  %v4947_v58 = vadd.f32 %v4855_v17, %v4753_v14  ;;  %v10962_v17 = vld [vmem:[#allocation4 + $0xf2] sm:$0xff] }
 0x6c9   : > { %v10947_v45 = vadd.f32 %v5238_v15, %v5139_v8 }
 0x6cb   : > { %11848 = vst [vmem:[#allocation24_spill] sm:$0xff] %v10947_v45  ;;  %5093 = vmatmul.f32.gmra.mxu3 %v10949_v13  ;;  %5288 = vmatmul.f32.gmra.mxu0 %v5189_v60  ;;  %v5190_v60 = vld [vmem:[#allocation4 + $0x108] sm:$0xff] }
 0x6cc   : > { %4905 = vmatmul.f32.gmra.mxu2 %v10952_v0  ;;  %v10965_v45 = vld [vmem:[#allocation4 + $0x109] sm:$0xff] }
 0x6ce   : > { %v5046_v25 = vpop.f32.mrf.mxu3 }
 0x6cf   : > { %v5140_v36 = vadd.f32 %v5046_v25, %v4946_v52  ;;  %5437 = vmatmul.f32.gmra.mxu1 %v10724_v40  ;;  %v4858_v31 = vpop.f32.mrf.mxu2  ;;  %v4755_v40 = vadd.f32 %v10740_v32, %v10445_v1  ;;  %v4756_v1 = vadd.f32 %v10751_v42, %v10457_v54  ;;  %v6865_v54 = vld [vmem:[%s11552_s5 + $0x418] sm:$0xff]  ;;  %v4757_v42 = vadd.f32 %v10766_v41, %v10472_v33 }
 0x6d0   : > { %v5244_v15 = vpop.f32.mrf.mxu0  ;;  %v4948_v14 = vadd.f32 %v4858_v31, %v4754_v62  ;;  %v10976_v31 = vld [vmem:[#allocation4 + $0xfa] sm:$0xff]  ;;  %5621 = vmatpush.msra.mxu2 %v6865_v54  ;;  %v4758_v33 = vadd.f32 %v10780_v6, %v10484_v51  ;;  %v6864_v51 = vld [vmem:[%s11552_s5 + $0x410] sm:$0xff] }
 0x6d1   : > { %v10960_v8 = vadd.f32 %v5241_v19, %v5140_v36 }
 0x6d2   : > { %5622 = vmatpush.msra.mxu2 %v6864_v51  ;;  %v11039_v51 = vld [vmem:[#allocation4 + $0x141] sm:$0xff] }
 0x6d3   : > { %11849 = vst [vmem:[#allocation36_spill] sm:$0xff] %v10960_v8  ;;  %5096 = vmatmul.f32.gmra.mxu3 %v10962_v17  ;;  %5291 = vmatmul.f32.gmra.mxu0 %v5190_v60  ;;  %v5191_v60 = vld [vmem:[#allocation4 + $0x110] sm:$0xff]  ;;  %v10978_v8 = vpop.f32.mrf.mxu1 }
 0x6d4   : > { %4908 = vmatmul.f32.gmra.mxu2 %v10965_v45 }
 0x6d6   : > { %v5049_v24 = vpop.f32.mrf.mxu3 }
 0x6d7   : > { %v5141_v52 = vadd.f32 %v5049_v24, %v4947_v58  ;;  %5440 = vmatmul.f32.gmra.mxu1 %v10738_v22  ;;  %v4861_v19 = vpop.f32.mrf.mxu2  ;;  %v10989_v24 = vld [vmem:[#allocation4 + $0x10a] sm:$0xff] }
 0x6d8   : > { %v5247_v62 = vpop.f32.mrf.mxu0  ;;  %v4949_v25 = vadd.f32 %v4861_v19, %v4755_v40  ;;  %v5192_v19 = vld [vmem:[#allocation4 + $0x120] sm:$0xff] }
 0x6d9   : > { %v10974_v36 = vadd.f32 %v5244_v15, %v5141_v52 }
 0x6db   : > { %5099 = vmatmul.f32.gmra.mxu3 %v10976_v31  ;;  %5294 = vmatmul.f32.gmra.mxu0 %v5191_v60  ;;  %v10992_v60 = vld [vmem:[#allocation4 + $0x121] sm:$0xff] }
 0x6dc   : > { %4911 = vmatmul.f32.gmra.mxu2 %v10981_v37 }
 0x6de   : > { %v5052_v22 = vpop.f32.mrf.mxu3 }
 0x6df   : > { %v5142_v32 = vadd.f32 %v5052_v22, %v4948_v14  ;;  %5443 = vmatmul.f32.gmra.mxu1 %v10746_v44  ;;  %v4864_v58 = vpop.f32.mrf.mxu2  ;;  %v10998_v44 = vpop.f32.mrf.mxu1 }
 0x6e0   : > { %v4950_v15 = vadd.f32 %v4864_v58, %v4756_v1  ;;  %v5250_v52 = vpop.f32.mrf.mxu0  ;;  %v11005_v58 = vld [vmem:[#allocation4 + $0x112] sm:$0xff] }
 0x6e1   : > { %v10987_v40 = vadd.f32 %v5247_v62, %v5142_v32 }
 0x6e3   : > { %11850 = vst [vmem:[#allocation53_spill] sm:$0xff] %v10987_v40  ;;  %5102 = vmatmul.f32.gmra.mxu3 %v10989_v24  ;;  %5297 = vmatmul.f32.gmra.mxu0 %v5192_v19  ;;  %v5193_v19 = vld [vmem:[#allocation4 + $0x128] sm:$0xff] }
 0x6e4   : > { %4914 = vmatmul.f32.gmra.mxu2 %v10992_v60  ;;  %v11008_v40 = vld [vmem:[#allocation4 + $0x129] sm:$0xff] }
 0x6e6   : > { %v5055_v14 = vpop.f32.mrf.mxu3 }
 0x6e7   : > { %v5143_v62 = vadd.f32 %v5055_v14, %v4949_v25  ;;  %5446 = vmatmul.f32.gmra.mxu1 %v10763_v10  ;;  %v4867_v1 = vpop.f32.mrf.mxu2  ;;  %v11013_v10 = vpop.f32.mrf.mxu1 }
 0x6e8   : > { %v4951_v22 = vadd.f32 %v4867_v1, %v4757_v42  ;;  %v5253_v54 = vpop.f32.mrf.mxu0  ;;  %v5194_v1 = vld [vmem:[#allocation4 + $0x138] sm:$0xff] }
 0x6e9   : > { %v11003_v32 = vadd.f32 %v5250_v52, %v5143_v62  ;;  %v11018_v62 = vld [vmem:[#allocation4 + $0x122] sm:$0xff] }
 0x6eb   : > { %5105 = vmatmul.f32.gmra.mxu3 %v11005_v58  ;;  %5300 = vmatmul.f32.gmra.mxu0 %v5193_v19  ;;  %v11021_v19 = vld [vmem:[#allocation4 + $0x139] sm:$0xff] }
 0x6ec   : > { %4917 = vmatmul.f32.gmra.mxu2 %v11008_v40 }
 0x6ee   : > { %v5058_v41 = vpop.f32.mrf.mxu3 }
 0x6ef   : > { %v5144_v25 = vadd.f32 %v5058_v41, %v4950_v15  ;;  %5449 = vmatmul.f32.gmra.mxu1 %v10774_v7  ;;  %v4870_v52 = vpop.f32.mrf.mxu2  ;;  %v4759_v7 = vadd.f32 %v10797_v21, %v10512_v30  ;;  %v4760_v30 = vadd.f32 %v10817_v57, %v10544_v27  ;;  %v6863_v27 = vld [vmem:[%s11552_s5 + $0x408] sm:$0xff] }
 0x6f0   : > { %v4952_v42 = vadd.f32 %v4870_v52, %v4758_v33  ;;  %v5256_v15 = vpop.f32.mrf.mxu0  ;;  %5623 = vmatpush.msra.mxu2 %v6863_v27  ;;  %v11081_v27 = vld [vmem:[#allocation4 + $0x169] sm:$0xff] }
 0x6f1   : > { %v11016_v14 = vadd.f32 %v5253_v54, %v5144_v25  ;;  %v11032_v25 = vpop.f32.mrf.mxu1 }
 0x6f3   : > { %11851 = vst [vmem:[#allocation13_spill] sm:$0xff] %v11016_v14  ;;  %5108 = vmatmul.f32.gmra.mxu3 %v11018_v62  ;;  %5303 = vmatmul.f32.gmra.mxu0 %v5194_v1  ;;  %v11036_v1 = vld [vmem:[#allocation4 + $0x12a] sm:$0xff]  ;;  %v5195_v14 = vld [vmem:[#allocation4 + $0x140] sm:$0xff] }
 0x6f4   : > { %4920 = vmatmul.f32.gmra.mxu2 %v11021_v19 }
 0x6f6   : > { %v5061_v6 = vpop.f32.mrf.mxu3 }
 0x6f7   : > { %v5145_v54 = vadd.f32 %v5061_v6, %v4951_v22  ;;  %5452 = vmatmul.f32.gmra.mxu1 %v10791_v16  ;;  %v4873_v33 = vpop.f32.mrf.mxu2 }
 0x6f8   : > { %v11030_v41 = vadd.f32 %v4873_v33, %v4759_v7  ;;  %v5259_v7 = vpop.f32.mrf.mxu0 }
 0x6f9   : > { %v11034_v52 = vadd.f32 %v5256_v15, %v5145_v54  ;;  %v11049_v54 = vld [vmem:[#allocation4 + $0x13a] sm:$0xff]  ;;  %v11051_v33 = vpop.f32.mrf.mxu1 }
 0x6fa   : > { %11852 = vst [vmem:[#allocation37_spill] sm:$0xff] %v11030_v41  ;;  %v11054_v41 = vld [vmem:[#allocation4 + $0x151] sm:$0xff] }
 0x6fb   : > { %5111 = vmatmul.f32.gmra.mxu3 %v11036_v1  ;;  %5306 = vmatmul.f32.gmra.mxu0 %v5195_v14  ;;  %v5196_v14 = vld [vmem:[#allocation4 + $0x150] sm:$0xff] }
 0x6fc   : > { %4923 = vmatmul.f32.gmra.mxu2 %v11039_v51 }
 0x6fe   : > { %v5064_v16 = vpop.f32.mrf.mxu3 }
 0x6ff   : > { %v5146_v21 = vadd.f32 %v5064_v16, %v4952_v42  ;;  %5455 = vmatmul.f32.gmra.mxu1 %v10802_v3  ;;  %v4876_v22 = vpop.f32.mrf.mxu2  ;;  %v4761_v3 = vadd.f32 %v10834_v12, %v10586_v39  ;;  %v5197_v16 = vld [vmem:[#allocation4 + $0x158] sm:$0xff]  ;;  %v4762_v39 = vadd.f32 %v10857_v18, %v10623_v11  ;;  %v4763_v11 = vadd.f32 %v10887_v43, %v10657_v23 }
 0x700   : > { %v11045_v6 = vadd.f32 %v4876_v22, %v4760_v30  ;;  %v11065_v30 = vld [vmem:[#allocation4 + $0x142] sm:$0xff]  ;;  %v4764_v23 = vadd.f32 %v10904_v35, %v10678_v38 }
 0x701   : > { %v11047_v15 = vadd.f32 %v5259_v7, %v5146_v21  ;;  %v11068_v21 = vld [vmem:[#allocation4 + $0x159] sm:$0xff]  ;;  %v11071_v22 = vpop.f32.mrf.mxu1 }
 0x702   : > { %v11078_v7 = vld [vmem:[#allocation4 + $0x152] sm:$0xff] }
 0x703   : > { %5114 = vmatmul.f32.gmra.mxu3 %v11049_v54  ;;  %5309 = vmatmul.f32.gmra.mxu0 %v5196_v14  ;;  %v5198_v14 = vld [vmem:[#allocation4 + $0x168] sm:$0xff] }
 0x704   : > { %4926 = vmatmul.f32.gmra.mxu2 %v11054_v41 }
 0x707   : > { %5458 = vmatmul.f32.gmra.mxu1 %v10819_v50  ;;  %v4879_v57 = vpop.f32.mrf.mxu2 }
 0x708   : > { %v11063_v42 = vadd.f32 %v4879_v57, %v4761_v3  ;;  %v6862_v3 = vld [vmem:[%s11552_s5 + $0x400] sm:$0xff] }
 0x709   : > { %5624 = vmatpush.msra.mxu2 %v6862_v3  ;;  %v5005_v3 = vld [vmem:[#allocation4 + $0x16a] sm:$0xff] }
 0x70b   : > { %5117 = vmatmul.f32.gmra.mxu3 %v11065_v30  ;;  %5312 = vmatmul.f32.gmra.mxu0 %v5197_v16  ;;  %v11094_v16 = vld [vmem:[#allocation4 + $0x15a] sm:$0xff] }
 0x70c   : > { %4929 = vmatmul.f32.gmra.mxu2 %v11068_v21 }
 0x70f   : > { %5461 = vmatmul.f32.gmra.mxu1 %v10828_v4  ;;  %v4882_v50 = vpop.f32.mrf.mxu2  ;;  %v11089_v4 = vpop.f32.mrf.mxu1 }
 0x710   : > { %v11076_v12 = vadd.f32 %v4882_v50, %v4762_v39  ;;  %v5199_v39 = vld [vmem:[#allocation4 + $0x170] sm:$0xff] }
 0x711   : > { %v11097_v50 = vld [vmem:[#allocation4 + $0x171] sm:$0xff] }
 0x713   : > { %5120 = vmatmul.f32.gmra.mxu3 %v11078_v7  ;;  %5315 = vmatmul.f32.gmra.mxu0 %v5198_v14 }
 0x714   : > { %4932 = vmatmul.f32.gmra.mxu2 %v11081_v27 }
 0x717   : > { %5464 = vmatmul.f32.gmra.mxu1 %v10851_v47  ;;  %v4885_v18 = vpop.f32.mrf.mxu2  ;;  %v11105_v14 = vpop.f32.mrf.mxu1 }
 0x718   : > { %v11092_v57 = vadd.f32 %v4885_v18, %v4763_v11  ;;  %v11108_v11 = vld [vmem:[#allocation4 + $0x181] sm:$0xff]  ;;  %v4765_v18 = vadd.f32 %v10926_v5, %v10692_v9 }
 0x719   : > { %v5007_v5 = vld [vmem:[#allocation4 + $0x182] sm:$0xff] }
 0x71b   : > { %5123 = vmatmul.f32.gmra.mxu3 %v11094_v16  ;;  %5318 = vmatmul.f32.gmra.mxu0 %v5199_v39 }
 0x71c   : > { %4935 = vmatmul.f32.gmra.mxu2 %v11097_v50 }
 0x71f   : > { %5467 = vmatmul.f32.gmra.mxu1 %v10874_v63  ;;  %v4888_v43 = vpop.f32.mrf.mxu2  ;;  %v5006_v63 = vld [vmem:[#allocation4 + $0x172] sm:$0xff]  ;;  %v11116_v39 = vpop.f32.mrf.mxu1 }
 0x720   : > { %v11103_v47 = vadd.f32 %v4888_v43, %v4764_v23  ;;  %v11119_v23 = vld [vmem:[#allocation4 + $0x189] sm:$0xff]  ;;  %v7106_v43 = vld [vmem:[#allocation2] sm:$0xff] }
 0x723   : > { %5126 = vmatmul.f32.gmra.mxu3 %v5005_v3  ;;  %5321 = vmatmul.f32.gmra.mxu0 %v10897_v53  ;;  %v4766_v53 = vadd.f32 %v10944_v46, %v10700_v48  ;;  %v5560_v3 = vld [vmem:[#allocation4 + $0x32] sm:$0xff]  ;;  %v5561_v46 = vld [vmem:[#allocation4 + $0x3a] sm:$0xff] }
 0x724   : > { %4938 = vmatmul.f32.gmra.mxu2 %v11108_v11 }
 0x727   : > { %5470 = vmatmul.f32.gmra.mxu1 %v10894_v49  ;;  %v4891_v38 = vpop.f32.mrf.mxu2 }
 0x728   : > { %v11114_v35 = vadd.f32 %v4891_v38, %v4765_v18  ;;  %v11127_v18 = vpop.f32.mrf.mxu1 }
 0x72b   : > { %5129 = vmatmul.f32.gmra.mxu3 %v5006_v63  ;;  %5324 = vmatmul.f32.gmra.mxu0 %v10915_v61  ;;  %v4767_v61 = vadd.f32 %v10958_v2, %v10714_v26  ;;  %v4768_v63 = vadd.f32 %v10978_v8, %v10722_v55  ;;  %v5562_v26 = vld [vmem:[#allocation4 + $0x4a] sm:$0xff]  ;;  %v11853_v55 = vld [vmem:[#allocation10_spill] sm:$0xff] }
 0x72c   : > { %4941 = vmatmul.f32.gmra.mxu2 %v11119_v23  ;;  %v4770_v8 = vadd.f32 %v11013_v10, %v11853_v55  ;;  %v11857_v10 = vld [vmem:[#allocation7_spill] sm:$0xff] }
 0x72f   : > { %5473 = vmatmul.f32.gmra.mxu1 %v10907_v56  ;;  %v4894_v9 = vpop.f32.mrf.mxu2  ;;  %v5008_v56 = vld [vmem:[#allocation4 + $0x18a] sm:$0xff] }
 0x730   : > { %v11125_v49 = vadd.f32 %v4894_v9, %v4766_v53  ;;  %v4736_v53 = vpop.f32.mrf.mxu1 }
 0x733   : > { %5132 = vmatmul.f32.gmra.mxu3 %v5007_v5  ;;  %5327 = vmatmul.f32.gmra.mxu0 %v7106_v43 }
 0x734   : > { %5625 = vmatmul.f32.vlgmr.msra.gmra.mxu2 %v5560_v3 }
 0x737   : > { %5476 = vmatmul.f32.gmra.mxu1 %v10923_v29  ;;  %v4897_v38 = vpop.f32.mrf.mxu2  ;;  %v4769_v29 = vadd.f32 %v10998_v44, %v10736_v20  ;;  %v11855_v20 = vld [vmem:[#allocation39_spill] sm:$0xff] }
 0x738   : > { %v11132_v48 = vadd.f32 %v4897_v38, %v4767_v61  ;;  %v4739_v3 = vpop.f32.mrf.mxu1 }
 0x73b   : > { %5135 = vmatmul.f32.gmra.mxu3 %v5008_v56  ;;  %5330 = vmatmul.f32.gmra.mxu0 %v7106_v43  ;;  %v11854_v56 = vld [vmem:[#allocation18_spill] sm:$0xff] }
 0x73c   : > { %5628 = vmatmul.f32.gmra.mxu2 %v5561_v46 }
 0x73f   : > { %5479 = vmatmul.f32.gmra.mxu1 %v10936_v59  ;;  %v4900_v9 = vpop.f32.mrf.mxu2 }
 0x740   : > { %v11137_v5 = vadd.f32 %v4900_v9, %v4768_v63  ;;  %v4742_v38 = vpop.f32.mrf.mxu1 }
 0x744   : > { %5631 = vmatmul.f32.gmra.mxu2 %v5562_v26 }
 0x747   : > { %5482 = vmatmul.f32.gmra.mxu1 %v10952_v0  ;;  %v4903_v2 = vpop.f32.mrf.mxu2  ;;  %v4771_v0 = vadd.f32 %v11032_v25, %v11855_v20 }
 0x748   : > { %v11142_v43 = vadd.f32 %v4903_v2, %v4769_v29  ;;  %v4745_v63 = vpop.f32.mrf.mxu1  ;;  %v11858_v29 = vld [vmem:[#allocation17_spill] sm:$0xff]  ;;  %v11859_v2 = vld [vmem:[#allocation50_spill] sm:$0xff] }
 0x749   : > { %v4773_v25 = vadd.f32 %v11071_v22, %v11859_v2  ;;  %v11863_v22 = vld [vmem:[#allocation44_spill] sm:$0xff] }
 0x74c   : > { %5634 = vmatmul.f32.gmra.mxu2 %v10760_v34  ;;  %v11856_v34 = vld [vmem:[#allocation42_spill] sm:$0xff] }
 0x74f   : > { %5485 = vmatmul.f32.gmra.mxu1 %v10965_v45  ;;  %v4906_v59 = vpop.f32.mrf.mxu2  ;;  %v4772_v45 = vadd.f32 %v11051_v33, %v11857_v10 }
 0x750   : > { %v11148_v61 = vadd.f32 %v4906_v59, %v4770_v8  ;;  %v11860_v59 = vld [vmem:[#allocation22_spill] sm:$0xff] }
 0x754   : > { %5637 = vmatmul.f32.gmra.mxu2 %v11854_v56  ;;  %v11861_v56 = vld [vmem:[#allocation26_spill] sm:$0xff] }
 0x755   : > { %v4774_v33 = vadd.f32 %v11089_v4, %v11861_v56  ;;  %v11865_v4 = vld [vmem:[#allocation23_spill] sm:$0xff] }
 0x757   : > { %5488 = vmatmul.f32.gmra.mxu1 %v10981_v37  ;;  %v4909_v44 = vpop.f32.mrf.mxu2  ;;  %v4748_v37 = vpop.f32.mrf.mxu1 }
 0x758   : > { %v11154_v46 = vadd.f32 %v4909_v44, %v4771_v0  ;;  %v11862_v44 = vld [vmem:[#allocation46_spill] sm:$0xff] }
 0x75c   : > { %5640 = vmatmul.f32.gmra.mxu2 %v11856_v34  ;;  %v4775_v34 = vadd.f32 %v11105_v14, %v11863_v22  ;;  %v11867_v14 = vld [vmem:[#allocation32_spill] sm:$0xff] }
 0x75f   : > { %5491 = vmatmul.f32.gmra.mxu1 %v10992_v60  ;;  %v4912_v9 = vpop.f32.mrf.mxu2  ;;  %v5432_v0 = vpop.f32.mrf.mxu1 }
 0x760   : > { %v11160_v26 = vadd.f32 %v4912_v9, %v4772_v45  ;;  %v11864_v9 = vld [vmem:[#allocation25_spill] sm:$0xff] }
 0x764   : > { %5643 = vmatmul.f32.gmra.mxu2 %v11858_v29 }
 0x767   : > { %5494 = vmatmul.f32.gmra.mxu1 %v11008_v40  ;;  %v4915_v55 = vpop.f32.mrf.mxu2  ;;  %v5435_v45 = vpop.f32.mrf.mxu1 }
 0x768   : > { %v11166_v8 = vadd.f32 %v4915_v55, %v4773_v25  ;;  %v11866_v25 = vld [vmem:[#allocation11_spill] sm:$0xff] }
 0x76c   : > { %5646 = vmatmul.f32.gmra.mxu2 %v11860_v59 }
 0x76f   : > { %5497 = vmatmul.f32.gmra.mxu1 %v11021_v19  ;;  %v4918_v60 = vpop.f32.mrf.mxu2  ;;  %v4776_v19 = vadd.f32 %v11116_v39, %v11865_v4  ;;  %v5438_v55 = vpop.f32.mrf.mxu1 }
 0x770   : > { %v11172_v20 = vadd.f32 %v4918_v60, %v4774_v33  ;;  %v11868_v33 = vld [vmem:[#allocation51_spill] sm:$0xff]  ;;  %v11869_v60 = vld [vmem:[#allocation48_spill] sm:$0xff] }
 0x771   : > { %v4778_v39 = vadd.f32 %v4736_v53, %v11869_v60  ;;  %v11873_v53 = vld [vmem:[#allocation27_spill] sm:$0xff] }
 0x774   : > { %5649 = vmatmul.f32.gmra.mxu2 %v11862_v44 }
 0x777   : > { %5500 = vmatmul.f32.gmra.mxu1 %v11039_v51  ;;  %v4921_v40 = vpop.f32.mrf.mxu2  ;;  %v4777_v51 = vadd.f32 %v11127_v18, %v11867_v14  ;;  %v11194_v44 = vpop.f32.mrf.mxu1 }
 0x778   : > { %v11178_v10 = vadd.f32 %v4921_v40, %v4775_v34  ;;  %v11870_v34 = vld [vmem:[#allocation34_spill] sm:$0xff]  ;;  %v11871_v40 = vld [vmem:[#allocation21_spill] sm:$0xff] }
 0x779   : > { %v4779_v18 = vadd.f32 %v4739_v3, %v11871_v40  ;;  %v11874_v3 = vld [vmem:[#allocation52_spill] sm:$0xff] }
 0x77c   : > { %5652 = vmatmul.f32.gmra.mxu2 %v11864_v9 }
 0x77f   : > { %5503 = vmatmul.f32.gmra.mxu1 %v11054_v41  ;;  %v4924_v29 = vpop.f32.mrf.mxu2  ;;  %v11204_v4 = vpop.f32.mrf.mxu1 }
 0x780   : > { %v11184_v2 = vadd.f32 %v4924_v29, %v4776_v19  ;;  %v11872_v19 = vld [vmem:[#allocation19_spill] sm:$0xff]  ;;  %v4780_v29 = vadd.f32 %v4742_v38, %v11873_v53 }
 0x784   : > { %5655 = vmatmul.f32.gmra.mxu2 %v11866_v25 }
 0x787   : > { %5506 = vmatmul.f32.gmra.mxu1 %v11068_v21  ;;  %v4927_v59 = vpop.f32.mrf.mxu2  ;;  %v11211_v14 = vpop.f32.mrf.mxu1 }
 0x788   : > { %v11190_v56 = vadd.f32 %v4927_v59, %v4777_v51 }
 0x78c   : > { %5658 = vmatmul.f32.gmra.mxu2 %v11868_v33  ;;  %v5396_v33 = vld [vmem:[#allocation4 + $0x199] sm:$0xff] }
 0x78f   : > { %5509 = vmatmul.f32.gmra.mxu1 %v11081_v27  ;;  %v4930_v41 = vpop.f32.mrf.mxu2  ;;  %v11219_v38 = vpop.f32.mrf.mxu1 }
 0x790   : > { %v11197_v22 = vadd.f32 %v4930_v41, %v4778_v39 }
 0x794   : > { %5661 = vmatmul.f32.gmra.mxu2 %v11870_v34  ;;  %v5397_v34 = vld [vmem:[#allocation4 + $0x1a1] sm:$0xff] }
 0x797   : > { %5512 = vmatmul.f32.gmra.mxu1 %v11097_v50  ;;  %v4933_v21 = vpop.f32.mrf.mxu2  ;;  %v4781_v50 = vadd.f32 %v4745_v63, %v11874_v3  ;;  %v11231_v40 = vpop.f32.mrf.mxu1 }
 0x798   : > { %v11202_v9 = vadd.f32 %v4933_v21, %v4779_v18 }
 0x79c   : > { %5664 = vmatmul.f32.gmra.mxu2 %v11872_v19  ;;  %v11235_v19 = vpop.f32.mrf.mxu3 }
 0x79f   : > { %5515 = vmatmul.f32.gmra.mxu1 %v11108_v11  ;;  %v4936_v27 = vpop.f32.mrf.mxu2  ;;  %v11875_v11 = vld [vmem:[#allocation35_spill] sm:$0xff] }
 0x7a0   : > { %v11209_v25 = vadd.f32 %v4936_v27, %v4780_v29  ;;  %v4782_v60 = vadd.f32 %v4748_v37, %v11875_v11 }
 0x7a4   : > { %5667 = vmatmul.f32.gmra.mxu2 %v10933_v28  ;;  %v11877_v28 = vld [vmem:[#allocation24_spill] sm:$0xff] }
 0x7a5   : > { %v5528_v63 = vadd.f32 %v5432_v0, %v11877_v28 }
 0x7a7   : > { %5518 = vmatmul.f32.gmra.mxu1 %v11119_v23  ;;  %v4939_v51 = vpop.f32.mrf.mxu2  ;;  %v11229_v23 = vld [vmem:[%s11553_s6] ss:$0 sm:$0xff] }
 0x7a8   : > { %v11216_v59 = vadd.f32 %v4939_v51, %v4781_v50  ;;  %v11239_v50 = vpop.f32.mrf.mxu0  ;;  %v11241_v51 = vpop.f32.mrf.mxu1 }
 0x7ac   : > { %5670 = vmatmul.f32.gmra.mxu2 %v10949_v13 }
 0x7af   : > { %5521 = vmatmul.f32.gmra.mxu1 %v5396_v33  ;;  %v4942_v39 = vpop.f32.mrf.mxu2 }
 0x7b0   : > { %v11222_v41 = vadd.f32 %v4942_v39, %v4782_v60 }
 0x7b2   : > { %11876 = vst [vmem:[#allocation54_spill] sm:$0xff] %v11222_v41 }
 0x7b4   : > { %5673 = vmatmul.f32.gmra.mxu2 %v10962_v17  ;;  %v11878_v17 = vld [vmem:[#allocation36_spill] sm:$0xff] }
 0x7b5   : > { %v5529_v53 = vadd.f32 %v5435_v45, %v11878_v17  ;;  %v11245_v45 = vpop.f32.mrf.mxu3 }
 0x7b7   : > { %5524 = vmatmul.f32.gmra.mxu1 %v5397_v34  ;;  %v5626_v13 = vpop.f32.mrf.mxu2 }
 0x7b8   : > { %v5722_v18 = vadd.f32 %v5626_v13, %v5528_v63 }
 0x7ba   : > { %v5758_v37 = vadd.f32 %v11229_v23, %v5722_v18 }
 0x7bc   : > { %v6878_v21 = vmul.f32 -1.442695, %v5758_v37  ;;  %5676 = vmatmul.f32.gmra.mxu2 %v10976_v31  ;;  %v5530_v31 = vadd.f32 %v5438_v55, %v10974_v36  ;;  %v11249_v37 = vpop.f32.mrf.mxu0  ;;  %v11253_v36 = vpop.f32.mrf.mxu1 }
 0x7be   : > { %6974 = vpow2.f32 %v6878_v21 }
 0x7bf   : > { %v5629_v0 = vpop.f32.mrf.mxu2 }
 0x7c0   : > { %v5723_v29 = vadd.f32 %v5629_v0, %v5529_v53 }
 0x7c2   : > { %v5759_v27 = vadd.f32 %v11229_v23, %v5723_v29 }
 0x7c4   : > { %v6975_v3 = vpop.eup %6974  ;;  %v6879_v33 = vmul.f32 -1.442695, %v5759_v27  ;;  %5679 = vmatmul.f32.gmra.mxu2 %v10989_v24  ;;  %v11879_v24 = vld [vmem:[#allocation53_spill] sm:$0xff]  ;;  %v11255_v27 = vpop.f32.mrf.mxu3 }
 0x7c5   : > { %v5886_v11 = vadd.f32 1.0, %v6975_v3  ;;  %v5531_v21 = vadd.f32 %v11194_v44, %v11879_v24 }
 0x7c6   : > { %6976 = vpow2.f32 %v6879_v33 }
 0x7c7   : > { %6978 = vrcp.f32 %v5886_v11  ;;  %v5632_v60 = vpop.f32.mrf.mxu2  ;;  %v5929_v29 = vand.u32 2147483648, %v5886_v11  ;;  %v5927_v3 = vand.u32 2147483647, %v5886_v11  ;;  %vm5923_vm1 = vweird.f32 %v5886_v11 }
 0x7c8   : > { %v5724_v39 = vadd.f32 %v5632_v60, %v5530_v31 }
 0x7c9   : > { %vm5928_vm3 = vcmp.eq.f32.partialorder %v5927_v3, 8.507059e+37 }
 0x7ca   : > { %v5760_v34 = vadd.f32 %v11229_v23, %v5724_v39 }
 0x7cc   : > { %v6977_v28 = vpop.eup %6976  ;;  %v6880_v63 = vmul.f32 -1.442695, %v5760_v34  ;;  %5682 = vmatmul.f32.gmra.mxu2 %v11005_v58  ;;  %v5532_v34 = vadd.f32 %v11204_v4, %v11003_v32  ;;  %v11270_v32 = vpop.f32.mrf.mxu1 }
 0x7cd   : > { %v6979_v13 = vpop.eup %6978  ;;  %v5887_v18 = vadd.f32 1.0, %v6977_v28  ;;  %v5930_v28 = vor.u32 1.1754944e-38, %v5929_v29  ;;  %v11274_v3 = vpop.f32.mrf.mxu3 }
 0x7ce   : > { %v5919_v55 = vmul.f32 %v6979_v13, %v5886_v11  ;;  %6980 = vpow2.f32 %v6880_v63  ;;  %vm5924_vm0 = vweird.f32 %v6979_v13 }
 0x7cf   : > { %6982 = vrcp.f32 %v5887_v18  ;;  %v5635_v17 = vpop.f32.mrf.mxu2  ;;  %vm5925_vm2 = vmor %vm5923_vm1, %vm5924_vm0  ;;  %vm5938_vm5 = vweird.f32 %v5887_v18 }
 0x7d0   : > { %v5920_v53 = vsub.f32 1.0, %v5919_v55  ;;  %v5725_v0 = vadd.f32 %v5635_v17, %v5531_v21  ;;  %v11268_v55 = vpop.f32.mrf.mxu0 }
 0x7d2   : > { %v5921_v58 = vmul.f32 %v6979_v13, %v5920_v53  ;;  %v5761_v33 = vadd.f32 %v11229_v23, %v5725_v0  ;;  %v5944_v53 = vand.u32 2147483648, %v5887_v18 }
 0x7d4   : > { %v6981_v31 = vpop.eup %6980  ;;  %v5922_v60 = vadd.f32 %v6979_v13, %v5921_v58  ;;  %v6881_v44 = vmul.f32 -1.442695, %v5761_v33  ;;  %5685 = vmatmul.f32.gmra.mxu2 %v11018_v62  ;;  %v5942_v58 = vand.u32 2147483647, %v5887_v18 }
 0x7d5   : > { %v6983_v39 = vpop.eup %6982  ;;  %v5888_v63 = vadd.f32 1.0, %v6981_v31 }
 0x7d6   : > { %v5926_v24 = vsel %vm5925_vm2, %v6979_v13, %v5922_v60  ;;  %v5934_v11 = vmul.f32 %v6983_v39, %v5887_v18  ;;  %6984 = vpow2.f32 %v6881_v44  ;;  %vm5939_vm4 = vweird.f32 %v6983_v39  ;;  %v11880_v44 = vld [vmem:[#allocation13_spill] sm:$0xff] }
 0x7d7   : > { %v5931_v21 = vsel %vm5928_vm3, %v5930_v28, %v5926_v24  ;;  %6986 = vrcp.f32 %v5888_v63  ;;  %v5638_v62 = vpop.f32.mrf.mxu2  ;;  %v5533_v28 = vadd.f32 %v11211_v14, %v11880_v44  ;;  %vm5940_vm6 = vmor %vm5938_vm5, %vm5939_vm4  ;;  %vm5943_vm7 = vcmp.eq.f32.partialorder %v5942_v58, 8.507059e+37 }
 0x7d8   : > { %6398 = vst [vmem:[%s11266_s11] sm:$0xff] %v5931_v21  ;;  %v5935_v4 = vsub.f32 1.0, %v5934_v11  ;;  %v5726_v17 = vadd.f32 %v5638_v62, %v5532_v34  ;;  %v5945_v34 = vor.u32 1.1754944e-38, %v5944_v53  ;;  %v5957_v14 = vand.u32 2147483647, %v5888_v63 }
 0x7d9   : > { %vm5953_vm9 = vweird.f32 %v5888_v63 }
 0x7da   : > { %v5936_v0 = vmul.f32 %v6983_v39, %v5935_v4  ;;  %v5762_v29 = vadd.f32 %v11229_v23, %v5726_v17  ;;  %vm5958_vm11 = vcmp.eq.f32.partialorder %v5957_v14, 8.507059e+37 }
 0x7dc   : > { %v6985_v13 = vpop.eup %6984  ;;  %v5937_v33 = vadd.f32 %v6983_v39, %v5936_v0  ;;  %v6882_v31 = vmul.f32 -1.442695, %v5762_v29  ;;  %5688 = vmatmul.f32.gmra.mxu2 %v11036_v1  ;;  %v5959_v0 = vand.u32 2147483648, %v5888_v63  ;;  %v11280_v29 = vpop.f32.mrf.mxu0 }
 0x7dd   : > { %v6987_v60 = vpop.eup %6986  ;;  %v5889_v24 = vadd.f32 1.0, %v6985_v13  ;;  %v11282_v1 = vpop.f32.mrf.mxu1 }
 0x7de   : > { %v5941_v11 = vsel %vm5940_vm6, %v6983_v39, %v5937_v33  ;;  %v5949_v21 = vmul.f32 %v6987_v60, %v5888_v63  ;;  %6988 = vpow2.f32 %v6882_v31  ;;  %vm5954_vm8 = vweird.f32 %v6987_v60 }
 0x7df   : > { %v5946_v62 = vsel %vm5943_vm7, %v5945_v34, %v5941_v11  ;;  %6990 = vrcp.f32 %v5889_v24  ;;  %v5641_v4 = vpop.f32.mrf.mxu2  ;;  %v5534_v31 = vadd.f32 %v11219_v38, %v11034_v52  ;;  %vm5955_vm10 = vmor %vm5953_vm9, %vm5954_vm8  ;;  %v5960_v44 = vor.u32 1.1754944e-38, %v5959_v0  ;;  %v11288_v34 = vpop.f32.mrf.mxu3 }
 0x7e0   : > { %6399 = vst [vmem:[%s11266_s11 + $0x8] sm:$0xff] %v5946_v62  ;;  %v5950_v17 = vsub.f32 1.0, %v5949_v21  ;;  %v5727_v18 = vadd.f32 %v5641_v4, %v5533_v28  ;;  %vm5968_vm13 = vweird.f32 %v5889_v24 }
 0x7e2   : > { %v5951_v41 = vmul.f32 %v6987_v60, %v5950_v17  ;;  %v5763_v53 = vadd.f32 %v11229_v23, %v5727_v18  ;;  %v5972_v18 = vand.u32 2147483647, %v5889_v24 }
 0x7e4   : > { %v6989_v39 = vpop.eup %6988  ;;  %v5952_v58 = vadd.f32 %v6987_v60, %v5951_v41  ;;  %v6883_v13 = vmul.f32 -1.442695, %v5763_v53  ;;  %5691 = vmatmul.f32.gmra.mxu2 %v11049_v54  ;;  %v5974_v54 = vand.u32 2147483648, %v5889_v24  ;;  %v11292_v0 = vpop.f32.mrf.mxu0  ;;  %vm5973_vm15 = vcmp.eq.f32.partialorder %v5972_v18, 8.507059e+37 }
 0x7e5   : > { %v6991_v33 = vpop.eup %6990  ;;  %v5890_v28 = vadd.f32 1.0, %v6989_v39  ;;  %v11294_v53 = vpop.f32.mrf.mxu1 }
 0x7e6   : > { %v5956_v11 = vsel %vm5955_vm10, %v6987_v60, %v5952_v58  ;;  %v5964_v21 = vmul.f32 %v6991_v33, %v5889_v24  ;;  %6992 = vpow2.f32 %v6883_v13  ;;  %vm5969_vm12 = vweird.f32 %v6991_v33 }
 0x7e7   : > { %v5961_v62 = vsel %vm5958_vm11, %v5960_v44, %v5956_v11  ;;  %6994 = vrcp.f32 %v5890_v28  ;;  %v5644_v41 = vpop.f32.mrf.mxu2  ;;  %v5535_v58 = vadd.f32 %v11231_v40, %v11047_v15  ;;  %vm5970_vm14 = vmor %vm5968_vm13, %vm5969_vm12  ;;  %v5975_v13 = vor.u32 1.1754944e-38, %v5974_v54 }
 0x7e8   : > { %6400 = vst [vmem:[%s11266_s11 + $0x10] sm:$0xff] %v5961_v62  ;;  %v5965_v63 = vsub.f32 1.0, %v5964_v21  ;;  %v5728_v4 = vadd.f32 %v5644_v41, %v5534_v31  ;;  %v11881_v21 = vld [vmem:[#allocation37_spill] sm:$0xff]  ;;  %v5987_v40 = vand.u32 2147483647, %v5890_v28  ;;  %vm5983_vm1 = vweird.f32 %v5890_v28 }
 0x7e9   : > { %v5147_v62 = vadd.f32 %v11235_v19, %v11881_v21 }
 0x7ea   : > { %v5966_v17 = vmul.f32 %v6991_v33, %v5965_v63  ;;  %v5764_v52 = vadd.f32 %v11229_v23, %v5728_v4  ;;  %v11301_v63 = vpop.f32.mrf.mxu3  ;;  %vm5988_vm3 = vcmp.eq.f32.partialorder %v5987_v40, 8.507059e+37 }
 0x7eb   : > { %v5342_v54 = vadd.f32 %v11239_v50, %v5147_v62 }
 0x7ec   : > { %v6993_v38 = vpop.eup %6992  ;;  %v5967_v60 = vadd.f32 %v6991_v33, %v5966_v17  ;;  %v6884_v14 = vmul.f32 -1.442695, %v5764_v52  ;;  %5694 = vmatmul.f32.gmra.mxu2 %v11065_v30  ;;  %v5989_v17 = vand.u32 2147483648, %v5890_v28 }
 0x7ed   : > { %v6995_v39 = vpop.eup %6994  ;;  %v5891_v31 = vadd.f32 1.0, %v6993_v38 }
 0x7ee   : > { %v5971_v44 = vsel %vm5970_vm14, %v6991_v33, %v5967_v60  ;;  %v5979_v11 = vmul.f32 %v6995_v39, %v5890_v28  ;;  %6996 = vpow2.f32 %v6884_v14  ;;  %vm5984_vm0 = vweird.f32 %v6995_v39 }
 0x7ef   : > { %v5976_v41 = vsel %vm5973_vm15, %v5975_v13, %v5971_v44  ;;  %6998 = vrcp.f32 %v5891_v31  ;;  %v5647_v24 = vpop.f32.mrf.mxu2  ;;  %v5536_v60 = vadd.f32 %v11241_v51, %v5342_v54  ;;  %vm5985_vm2 = vmor %vm5983_vm1, %vm5984_vm0  ;;  %v5990_v14 = vor.u32 1.1754944e-38, %v5989_v17  ;;  %v11310_v13 = vpop.f32.mrf.mxu0 }
 0x7f0   : > { %6401 = vst [vmem:[%s11266_s11 + $0x18] sm:$0xff] %v5976_v41  ;;  %v5980_v30 = vsub.f32 1.0, %v5979_v11  ;;  %v5729_v4 = vadd.f32 %v5647_v24, %v5535_v58  ;;  %v11312_v44 = vpop.f32.mrf.mxu1  ;;  %v5148_v28 = vadd.f32 %v11245_v45, %v11045_v6  ;;  %v6004_v41 = vand.u32 2147483648, %v5891_v31 }
 0x7f1   : > { %vm5998_vm5 = vweird.f32 %v5891_v31 }
 0x7f2   : > { %v5981_v15 = vmul.f32 %v6995_v39, %v5980_v30  ;;  %v5765_v33 = vadd.f32 %v11229_v23, %v5729_v4  ;;  %v11318_v24 = vpop.f32.mrf.mxu3  ;;  %v6002_v4 = vand.u32 2147483647, %v5891_v31  ;;  %v5343_v17 = vadd.f32 %v11249_v37, %v5148_v28 }
 0x7f3   : > { %v6005_v54 = vor.u32 1.1754944e-38, %v6004_v41  ;;  %v5149_v37 = vadd.f32 %v11255_v27, %v11063_v42  ;;  %v5586_v27 = vld [vmem:[#allocation4 + $0x16a] sm:$0xff] }
 0x7f4   : > { %v6997_v18 = vpop.eup %6996  ;;  %v5982_v52 = vadd.f32 %v6995_v39, %v5981_v15  ;;  %v6885_v19 = vmul.f32 -1.442695, %v5765_v33  ;;  %5697 = vmatmul.f32.gmra.mxu2 %v11078_v7  ;;  %v5537_v33 = vadd.f32 %v11253_v36, %v5343_v17  ;;  %vm6003_vm7 = vcmp.eq.f32.partialorder %v6002_v4, 8.507059e+37 }
 0x7f5   : > { %v6999_v38 = vpop.eup %6998  ;;  %v11308_v58 = vadd.f32 1.0, %v6997_v18  ;;  %v5344_v42 = vadd.f32 %v11268_v55, %v5149_v37 }
 0x7f6   : > { %v5986_v11 = vsel %vm5985_vm2, %v6995_v39, %v5982_v52  ;;  %v5994_v50 = vmul.f32 %v6999_v38, %v5891_v31  ;;  %7000 = vpow2.f32 %v6885_v19  ;;  %vm5999_vm4 = vweird.f32 %v6999_v38 }
 0x7f7   : > { %v5991_v7 = vsel %vm5988_vm3, %v5990_v14, %v5986_v11  ;;  %7002 = vrcp.f32 %v11308_v58  ;;  %v5650_v21 = vpop.f32.mrf.mxu2  ;;  %vm6000_vm6 = vmor %vm5998_vm5, %vm5999_vm4  ;;  %v6017_v28 = vand.u32 2147483647, %v11308_v58  ;;  %vm6013_vm9 = vweird.f32 %v11308_v58 }
 0x7f8   : > { %6402 = vst [vmem:[%s11266_s11 + $0x20] sm:$0xff] %v5991_v7  ;;  %v5995_v51 = vsub.f32 1.0, %v5994_v50  ;;  %v5730_v62 = vadd.f32 %v5650_v21, %v5536_v60  ;;  %v11330_v60 = vpop.f32.mrf.mxu0  ;;  %v11332_v14 = vpop.f32.mrf.mxu1  ;;  %v5538_v4 = vadd.f32 %v11270_v32, %v5344_v42 }
 0x7f9   : > { %vm6018_vm11 = vcmp.eq.f32.partialorder %v6017_v28, 8.507059e+37 }
 0x7fa   : > { %v5996_v30 = vmul.f32 %v6999_v38, %v5995_v51  ;;  %v5766_v39 = vadd.f32 %v11229_v23, %v5730_v62  ;;  %v11339_v51 = vpop.f32.mrf.mxu3 }
 0x7fc   : > { %v7001_v15 = vpop.eup %7000  ;;  %v5997_v40 = vadd.f32 %v6999_v38, %v5996_v30  ;;  %v6886_v6 = vmul.f32 -1.442695, %v5766_v39  ;;  %5700 = vmatmul.f32.gmra.mxu2 %v11094_v16 }
 0x7fd   : > { %v7003_v45 = vpop.eup %7002  ;;  %v11324_v18 = vadd.f32 1.0, %v7001_v15 }
 0x7fe   : > { %v6001_v52 = vsel %vm6000_vm6, %v6999_v38, %v5997_v40  ;;  %v6009_v19 = vmul.f32 %v7003_v45, %v11308_v58  ;;  %7004 = vpow2.f32 %v6886_v6  ;;  %v6019_v38 = vand.u32 2147483648, %v11308_v58 }
 0x7ff   : > { %v6006_v31 = vsel %vm6003_vm7, %v6005_v54, %v6001_v52  ;;  %7006 = vrcp.f32 %v11324_v18  ;;  %v5653_v16 = vpop.f32.mrf.mxu2  ;;  %vm6014_vm8 = vweird.f32 %v7003_v45  ;;  %v5150_v40 = vadd.f32 %v11274_v3, %v11076_v12  ;;  %v5587_v3 = vld [vmem:[#allocation4 + $0x172] sm:$0xff] }
 0x800   : > { %6403 = vst [vmem:[%s11266_s11 + $0x28] sm:$0xff] %v6006_v31  ;;  %v6010_v36 = vsub.f32 1.0, %v6009_v19  ;;  %v5731_v11 = vadd.f32 %v5653_v16, %v5537_v33  ;;  %vm6015_vm10 = vmor %vm6013_vm9, %vm6014_vm8  ;;  %v6020_v39 = vor.u32 1.1754944e-38, %v6019_v38  ;;  %v6034_v32 = vand.u32 2147483648, %v11324_v18  ;;  %v11351_v52 = vpop.f32.mrf.mxu0  ;;  %v11353_v19 = vpop.f32.mrf.mxu1 }
 0x801   : > { %v6032_v37 = vand.u32 2147483647, %v11324_v18  ;;  %v5345_v12 = vadd.f32 %v11280_v29, %v5150_v40  ;;  %vm6028_vm13 = vweird.f32 %v11324_v18  ;;  %v5588_v40 = vld [vmem:[#allocation4 + $0x182] sm:$0xff] }
 0x802   : > { %v6011_v50 = vmul.f32 %v7003_v45, %v6010_v36  ;;  %v5767_v7 = vadd.f32 %v11229_v23, %v5731_v11  ;;  %v6035_v28 = vor.u32 1.1754944e-38, %v6034_v32  ;;  %v11362_v42 = vpop.f32.mrf.mxu3 }
 0x803   : > { %vm6033_vm15 = vcmp.eq.f32.partialorder %v6032_v37, 8.507059e+37 }
 0x804   : > { %v7005_v21 = vpop.eup %7004  ;;  %v6012_v62 = vadd.f32 %v7003_v45, %v6011_v50  ;;  %v6887_v41 = vmul.f32 -1.442695, %v5767_v7  ;;  %5703 = vmatmul.f32.gmra.mxu2 %v5586_v27  ;;  %v5539_v50 = vadd.f32 %v11282_v1, %v5345_v12  ;;  %v5152_v12 = vadd.f32 %v11301_v63, %v11103_v47  ;;  %v5589_v47 = vld [vmem:[#allocation4 + $0x18a] sm:$0xff] }
 0x805   : > { %v7007_v30 = vpop.eup %7006  ;;  %v11343_v17 = vadd.f32 1.0, %v7005_v21 }
 0x806   : > { %v6016_v15 = vsel %vm6015_vm10, %v7003_v45, %v6012_v62  ;;  %v6024_v55 = vmul.f32 %v7007_v30, %v11324_v18  ;;  %7008 = vpow2.f32 %v6887_v41  ;;  %vm6029_vm12 = vweird.f32 %v7007_v30 }
 0x807   : > { %v6021_v6 = vsel %vm6018_vm11, %v6020_v39, %v6016_v15  ;;  %7010 = vrcp.f32 %v11343_v17  ;;  %v5656_v58 = vpop.f32.mrf.mxu2  ;;  %vm6030_vm14 = vmor %vm6028_vm13, %vm6029_vm12  ;;  %v5151_v18 = vadd.f32 %v11288_v34, %v11092_v57  ;;  %vm6043_vm1 = vweird.f32 %v11343_v17 }
 0x808   : > { %6404 = vst [vmem:[%s11266_s11 + $0x30] sm:$0xff] %v6021_v6  ;;  %v6025_v33 = vsub.f32 1.0, %v6024_v55  ;;  %v5732_v54 = vadd.f32 %v5656_v58, %v5538_v4  ;;  %v6049_v4 = vand.u32 2147483648, %v11343_v17  ;;  %v11373_v57 = vpop.f32.mrf.mxu0  ;;  %v11375_v34 = vpop.f32.mrf.mxu1 }
 0x809   : > { %v5346_v55 = vadd.f32 %v11292_v0, %v5151_v18 }
 0x80a   : > { %v6026_v45 = vmul.f32 %v7007_v30, %v6025_v33  ;;  %v5768_v31 = vadd.f32 %v11229_v23, %v5732_v54 }
 0x80b   : > { %v5540_v32 = vadd.f32 %v11294_v53, %v5346_v55 }
 0x80c   : > { %v7009_v16 = vpop.eup %7008  ;;  %v6027_v36 = vadd.f32 %v7007_v30, %v6026_v45  ;;  %v6888_v11 = vmul.f32 -1.442695, %v5768_v31  ;;  %5706 = vmatmul.f32.gmra.mxu2 %v5587_v3  ;;  %v6050_v45 = vor.u32 1.1754944e-38, %v6049_v4 }
 0x80d   : > { %v7011_v38 = vpop.eup %7010  ;;  %v11360_v7 = vadd.f32 1.0, %v7009_v16  ;;  %v11385_v16 = vpop.f32.mrf.mxu3 }
 0x80e   : > { %v6031_v27 = vsel %vm6030_vm14, %v7007_v30, %v6027_v36  ;;  %v6039_v29 = vmul.f32 %v7011_v38, %v11343_v17  ;;  %7012 = vpow2.f32 %v6888_v11  ;;  %vm6044_vm0 = vweird.f32 %v7011_v38 }
 0x80f   : > { %v6036_v21 = vsel %vm6033_vm15, %v6035_v28, %v6031_v27  ;;  %7014 = vrcp.f32 %v11360_v7  ;;  %v5659_v62 = vpop.f32.mrf.mxu2  ;;  %v6047_v30 = vand.u32 2147483647, %v11343_v17  ;;  %vm6045_vm2 = vmor %vm6043_vm1, %vm6044_vm0  ;;  %v6064_v11 = vand.u32 2147483648, %v11360_v7 }
 0x810   : > { %6405 = vst [vmem:[%s11266_s11 + $0x38] sm:$0xff] %v6036_v21  ;;  %v6040_v1 = vsub.f32 1.0, %v6039_v29  ;;  %v5733_v41 = vadd.f32 %v5659_v62, %v5539_v50  ;;  %v5347_v27 = vadd.f32 %v11310_v13, %v5152_v12  ;;  %vm6058_vm5 = vweird.f32 %v11360_v7  ;;  %v11396_v4 = vpop.f32.mrf.mxu0 }
 0x811   : > { %vm6048_vm3 = vcmp.eq.f32.partialorder %v6047_v30, 8.507059e+37 }
 0x812   : > { %v6041_v39 = vmul.f32 %v7011_v38, %v6040_v1  ;;  %v5769_v15 = vadd.f32 %v11229_v23, %v5733_v41  ;;  %v5541_v62 = vadd.f32 %v11312_v44, %v5347_v27  ;;  %v6065_v1 = vor.u32 1.1754944e-38, %v6064_v11 }
 0x814   : > { %v7013_v6 = vpop.eup %7012  ;;  %v6042_v58 = vadd.f32 %v7011_v38, %v6041_v39  ;;  %v6889_v33 = vmul.f32 -1.442695, %v5769_v15  ;;  %5709 = vmatmul.f32.gmra.mxu2 %v5588_v40  ;;  %v11398_v39 = vpop.f32.mrf.mxu1 }
 0x815   : > { %v7015_v54 = vpop.eup %7014  ;;  %v11379_v37 = vadd.f32 1.0, %v7013_v6 }
 0x816   : > { %v6046_v0 = vsel %vm6045_vm2, %v7011_v38, %v6042_v58  ;;  %v6054_v31 = vmul.f32 %v7015_v54, %v11360_v7  ;;  %7016 = vpow2.f32 %v6889_v33  ;;  %vm6059_vm4 = vweird.f32 %v7015_v54  ;;  %v5590_v58 = vld [vmem:[#allocation4 + $0x19a] sm:$0xff]  ;;  %v11406_v33 = vpop.f32.mrf.mxu3 }
 0x817   : > { %v6051_v3 = vsel %vm6048_vm3, %v6050_v45, %v6046_v0  ;;  %7018 = vrcp.f32 %v11379_v37  ;;  %v5662_v17 = vpop.f32.mrf.mxu2  ;;  %v6062_v38 = vand.u32 2147483647, %v11360_v7  ;;  %vm6060_vm6 = vmor %vm6058_vm5, %vm6059_vm4  ;;  %v5153_v7 = vadd.f32 %v11318_v24, %v11114_v35 }
 0x818   : > { %6406 = vst [vmem:[%s11266_s11 + $0x40] sm:$0xff] %v6051_v3  ;;  %v6055_v53 = vsub.f32 1.0, %v6054_v31  ;;  %v5734_v36 = vadd.f32 %v5662_v17, %v5540_v32  ;;  %v6079_v6 = vand.u32 2147483648, %v11379_v37  ;;  %v6077_v32 = vand.u32 2147483647, %v11379_v37 }
 0x819   : > { %vm6063_vm7 = vcmp.eq.f32.partialorder %v6062_v38, 8.507059e+37  ;;  %v5348_v35 = vadd.f32 %v11330_v60, %v5153_v7  ;;  %vm6073_vm9 = vweird.f32 %v11379_v37  ;;  %v5154_v60 = vadd.f32 %v11339_v51, %v11125_v49  ;;  %v11419_v38 = vpop.f32.mrf.mxu0 }
 0x81a   : > { %v6056_v50 = vmul.f32 %v7015_v54, %v6055_v53  ;;  %v5770_v28 = vadd.f32 %v11229_v23, %v5734_v36  ;;  %v6080_v17 = vor.u32 1.1754944e-38, %v6079_v6  ;;  %vm6078_vm11 = vcmp.eq.f32.partialorder %v6077_v32, 8.507059e+37 }
 0x81b   : > { %v5542_v3 = vadd.f32 %v11332_v14, %v5348_v35  ;;  %v5349_v51 = vadd.f32 %v11351_v52, %v5154_v60  ;;  %v5155_v52 = vadd.f32 %v11362_v42, %v11132_v48 }
 0x81c   : > { %v7017_v63 = vpop.eup %7016  ;;  %v6057_v29 = vadd.f32 %v7015_v54, %v6056_v50  ;;  %v6890_v18 = vmul.f32 -1.442695, %v5770_v28  ;;  %5712 = vmatmul.f32.gmra.mxu2 %v5589_v47  ;;  %v11421_v28 = vpop.f32.mrf.mxu1 }
 0x81d   : > { %v7019_v21 = vpop.eup %7018  ;;  %v11394_v41 = vadd.f32 1.0, %v7017_v63  ;;  %v5591_v63 = vld [vmem:[#allocation4 + $0x1a2] sm:$0xff]  ;;  %v5543_v7 = vadd.f32 %v11353_v19, %v5349_v51  ;;  %v5350_v48 = vadd.f32 %v11373_v57, %v5155_v52  ;;  %v5156_v57 = vadd.f32 %v11385_v16, %v11137_v5 }
 0x81e   : > { %v6061_v13 = vsel %vm6060_vm6, %v7015_v54, %v6057_v29  ;;  %v6069_v30 = vmul.f32 %v7019_v21, %v11379_v37  ;;  %7020 = vpow2.f32 %v6890_v18  ;;  %vm6074_vm8 = vweird.f32 %v7019_v21 }
 0x81f   : > { %v6066_v15 = vsel %vm6063_vm7, %v6065_v1, %v6061_v13  ;;  %7022 = vrcp.f32 %v11394_v41  ;;  %v5665_v44 = vpop.f32.mrf.mxu2  ;;  %vm6075_vm10 = vmor %vm6073_vm9, %vm6074_vm8  ;;  %v6094_v47 = vand.u32 2147483648, %v11394_v41  ;;  %v6092_v18 = vand.u32 2147483647, %v11394_v41 }
 0x820   : > { %6407 = vst [vmem:[%s11266_s11 + $0x48] sm:$0xff] %v6066_v15  ;;  %v6070_v55 = vsub.f32 1.0, %v6069_v30  ;;  %v5735_v40 = vadd.f32 %v5665_v44, %v5541_v62  ;;  %v11428_v62 = vpop.f32.mrf.mxu3  ;;  %vm6088_vm13 = vweird.f32 %v11394_v41 }
 0x821   : > { %v6095_v15 = vor.u32 1.1754944e-38, %v6094_v47  ;;  %vm6093_vm15 = vcmp.eq.f32.partialorder %v6092_v18, 8.507059e+37  ;;  %v11437_v19 = vpop.f32.mrf.mxu0 }
 0x822   : > { %v6071_v54 = vmul.f32 %v7019_v21, %v6070_v55  ;;  %v5771_v45 = vadd.f32 %v11229_v23, %v5735_v40 }
 0x824   : > { %v7021_v24 = vpop.eup %7020  ;;  %v6072_v0 = vadd.f32 %v7019_v21, %v6071_v54  ;;  %v6891_v31 = vmul.f32 -1.442695, %v5771_v45  ;;  %5715 = vmatmul.f32.gmra.mxu2 %v5590_v58  ;;  %v11439_v45 = vpop.f32.mrf.mxu1 }
 0x825   : > { %v7023_v12 = vpop.eup %7022  ;;  %v11413_v53 = vadd.f32 1.0, %v7021_v24 }
 0x826   : > { %v6076_v36 = vsel %vm6075_vm10, %v7019_v21, %v6072_v0  ;;  %v6084_v11 = vmul.f32 %v7023_v12, %v11394_v41  ;;  %7024 = vpow2.f32 %v6891_v31  ;;  %vm6089_vm12 = vweird.f32 %v7023_v12 }
 0x827   : > { %v6081_v50 = vsel %vm6078_vm11, %v6080_v17, %v6076_v36  ;;  %7026 = vrcp.f32 %v11413_v53  ;;  %v5668_v37 = vpop.f32.mrf.mxu2  ;;  %vm6090_vm14 = vmor %vm6088_vm13, %vm6089_vm12  ;;  %v6109_v32 = vand.u32 2147483648, %v11413_v53  ;;  %v6107_v24 = vand.u32 2147483647, %v11413_v53 }
 0x828   : > { %6408 = vst [vmem:[%s11266_s11 + $0x50] sm:$0xff] %v6081_v50  ;;  %v6085_v14 = vsub.f32 1.0, %v6084_v11  ;;  %v5736_v27 = vadd.f32 %v5668_v37, %v5542_v3  ;;  %vm6103_vm1 = vweird.f32 %v11413_v53  ;;  %v5544_v17 = vadd.f32 %v11375_v34, %v5350_v48  ;;  %v11446_v60 = vpop.f32.mrf.mxu3 }
 0x829   : > { %v6110_v36 = vor.u32 1.1754944e-38, %v6109_v32  ;;  %vm6108_vm3 = vcmp.eq.f32.partialorder %v6107_v24, 8.507059e+37 }
 0x82a   : > { %v6086_v29 = vmul.f32 %v7023_v12, %v6085_v14  ;;  %v5772_v49 = vadd.f32 %v11229_v23, %v5736_v27 }
 0x82c   : > { %v7025_v21 = vpop.eup %7024  ;;  %v6087_v1 = vadd.f32 %v7023_v12, %v6086_v29  ;;  %v6892_v13 = vmul.f32 -1.442695, %v5772_v49  ;;  %5718 = vmatmul.f32.gmra.mxu2 %v5591_v63  ;;  %v5351_v49 = vadd.f32 %v11396_v4, %v5156_v57  ;;  %v5157_v4 = vadd.f32 %v11406_v33, %v11142_v43 }
 0x82d   : > { %v7027_v30 = vpop.eup %7026  ;;  %v5899_v44 = vadd.f32 1.0, %v7025_v21  ;;  %v11453_v21 = vpop.f32.mrf.mxu0 }
 0x82e   : > { %v6091_v55 = vsel %vm6090_vm14, %v7023_v12, %v6087_v1  ;;  %v6099_v40 = vmul.f32 %v7027_v30, %v11413_v53  ;;  %7028 = vpow2.f32 %v6892_v13  ;;  %vm6104_vm0 = vweird.f32 %v7027_v30  ;;  %v11455_v1 = vpop.f32.mrf.mxu1 }
 0x82f   : > { %v6096_v6 = vsel %vm6093_vm15, %v6095_v15, %v6091_v55  ;;  %7030 = vrcp.f32 %v5899_v44  ;;  %v5671_v41 = vpop.f32.mrf.mxu2  ;;  %vm6105_vm2 = vmor %vm6103_vm1, %vm6104_vm0  ;;  %v6124_v63 = vand.u32 2147483648, %v5899_v44  ;;  %v6122_v29 = vand.u32 2147483647, %v5899_v44 }
 0x830   : > { %6409 = vst [vmem:[%s11266_s11 + $0x58] sm:$0xff] %v6096_v6  ;;  %v6100_v58 = vsub.f32 1.0, %v6099_v40  ;;  %v5737_v54 = vadd.f32 %v5671_v41, %v5543_v7  ;;  %vm6118_vm5 = vweird.f32 %v5899_v44  ;;  %v11460_v41 = vpop.f32.mrf.mxu3  ;;  %v5352_v24 = vadd.f32 %v11419_v38, %v5157_v4 }
 0x831   : > { %v6125_v7 = vor.u32 1.1754944e-38, %v6124_v63  ;;  %vm6123_vm7 = vcmp.eq.f32.partialorder %v6122_v29, 8.507059e+37  ;;  %v5158_v38 = vadd.f32 %v11428_v62, %v11148_v61 }
 0x832   : > { %v6101_v35 = vmul.f32 %v7027_v30, %v6100_v58  ;;  %v5773_v0 = vadd.f32 %v11229_v23, %v5737_v54 }
 0x834   : > { %v7029_v42 = vpop.eup %7028  ;;  %v6102_v31 = vadd.f32 %v7027_v30, %v6101_v35  ;;  %v6893_v12 = vmul.f32 -1.442695, %v5773_v0 }
 0x835   : > { %v7031_v3 = vpop.eup %7030  ;;  %v5900_v11 = vadd.f32 1.0, %v7029_v42  ;;  %v5546_v42 = vadd.f32 %v11421_v28, %v5352_v24 }
 0x836   : > { %v6106_v50 = vsel %vm6105_vm2, %v7027_v30, %v6102_v31  ;;  %v6114_v37 = vmul.f32 %v7031_v3, %v5899_v44  ;;  %7032 = vpow2.f32 %v6893_v12  ;;  %vm6119_vm4 = vweird.f32 %v7031_v3 }
 0x837   : > { %v6111_v14 = vsel %vm6108_vm3, %v6110_v36, %v6106_v50  ;;  %7034 = vrcp.f32 %v5900_v11  ;;  %v5674_v53 = vpop.f32.mrf.mxu2  ;;  %v5545_v30 = vadd.f32 %v11398_v39, %v5351_v49  ;;  %vm6120_vm6 = vmor %vm6118_vm5, %vm6119_vm4  ;;  %v6139_v54 = vand.u32 2147483648, %v5900_v11 }
 0x838   : > { %6410 = vst [vmem:[%s11266_s11 + $0x60] sm:$0xff] %v6111_v14  ;;  %v6115_v27 = vsub.f32 1.0, %v6114_v37  ;;  %v5738_v47 = vadd.f32 %v5674_v53, %v5544_v17  ;;  %v6137_v32 = vand.u32 2147483647, %v5900_v11  ;;  %vm6133_vm9 = vweird.f32 %v5900_v11  ;;  %v11468_v17 = vpop.f32.mrf.mxu1  ;;  %v11473_v53 = vpop.f32.mrf.mxu3 }
 0x839   : > { %v6140_v31 = vor.u32 1.1754944e-38, %v6139_v54 }
 0x83a   : > { %v6116_v34 = vmul.f32 %v7031_v3, %v6115_v27  ;;  %v5774_v18 = vadd.f32 %v11229_v23, %v5738_v47  ;;  %vm6138_vm11 = vcmp.eq.f32.partialorder %v6137_v32, 8.507059e+37 }
 0x83c   : > { %v7033_v51 = vpop.eup %7032  ;;  %v6117_v5 = vadd.f32 %v7031_v3, %v6116_v34  ;;  %v6894_v16 = vmul.f32 -1.442695, %v5774_v18  ;;  %v5353_v34 = vadd.f32 %v11437_v19, %v5158_v38 }
 0x83d   : > { %v7035_v13 = vpop.eup %7034  ;;  %v5901_v15 = vadd.f32 1.0, %v7033_v51 }
 0x83e   : > { %v6121_v55 = vsel %vm6120_vm6, %v7031_v3, %v6117_v5  ;;  %v6129_v40 = vmul.f32 %v7035_v13, %v5900_v11  ;;  %7036 = vpow2.f32 %v6894_v16  ;;  %vm6134_vm8 = vweird.f32 %v7035_v13  ;;  %v11466_v3 = vpop.f32.mrf.mxu0 }
 0x83f   : > { %v6126_v52 = vsel %vm6123_vm7, %v6125_v7, %v6121_v55  ;;  %7038 = vrcp.f32 %v5901_v15  ;;  %v5677_v6 = vpop.f32.mrf.mxu2  ;;  %vm6135_vm10 = vmor %vm6133_vm9, %vm6134_vm8  ;;  %v6154_v14 = vand.u32 2147483648, %v5901_v15  ;;  %v6152_v47 = vand.u32 2147483647, %v5901_v15 }
 0x840   : > { %6411 = vst [vmem:[%s11266_s11 + $0x68] sm:$0xff] %v6126_v52  ;;  %v6130_v44 = vsub.f32 1.0, %v6129_v40  ;;  %v5739_v58 = vadd.f32 %v5677_v6, %v5545_v30  ;;  %vm6148_vm13 = vweird.f32 %v5901_v15  ;;  %v5547_v49 = vadd.f32 %v11439_v45, %v5353_v34  ;;  %v11488_v6 = vld [vmem:[%s11553_s6] ss:$0 sm:$0xff] }
 0x841   : > { %v6155_v51 = vor.u32 1.1754944e-38, %v6154_v14  ;;  %vm6153_vm15 = vcmp.eq.f32.partialorder %v6152_v47, 8.507059e+37 }
 0x842   : > { %v6131_v39 = vmul.f32 %v7035_v13, %v6130_v44  ;;  %v5775_v35 = vadd.f32 %v11229_v23, %v5739_v58  ;;  %v11492_v58 = vpop.f32.mrf.mxu3 }
 0x844   : > { %v7037_v0 = vpop.eup %7036  ;;  %v6132_v48 = vadd.f32 %v7035_v13, %v6131_v39  ;;  %v6895_v43 = vmul.f32 -1.442695, %v5775_v35 }
 0x845   : > { %v7039_v33 = vpop.eup %7038  ;;  %v5902_v12 = vadd.f32 1.0, %v7037_v0 }
 0x846   : > { %v6136_v36 = vsel %vm6135_vm10, %v7035_v13, %v6132_v48  ;;  %v6144_v50 = vmul.f32 %v7039_v33, %v5901_v15  ;;  %7040 = vpow2.f32 %v6895_v43  ;;  %vm6149_vm12 = vweird.f32 %v7039_v33  ;;  %v11480_v7 = vpop.f32.mrf.mxu0  ;;  %v11482_v15 = vpop.f32.mrf.mxu1 }
 0x847   : > { %v6141_v11 = vsel %vm6138_vm11, %v6140_v31, %v6136_v36  ;;  %7042 = vrcp.f32 %v5902_v12  ;;  %v5680_v37 = vpop.f32.mrf.mxu2  ;;  %vm6150_vm14 = vmor %vm6148_vm13, %vm6149_vm12  ;;  %v6169_v40 = vand.u32 2147483648, %v5902_v12  ;;  %v6167_v52 = vand.u32 2147483647, %v5902_v12 }
 0x848   : > { %6412 = vst [vmem:[%s11266_s11 + $0x70] sm:$0xff] %v6141_v11  ;;  %v6145_v57 = vsub.f32 1.0, %v6144_v50  ;;  %v5740_v28 = vadd.f32 %v5680_v37, %v5546_v42  ;;  %vm6163_vm1 = vweird.f32 %v5902_v12 }
 0x849   : > { %v6170_v24 = vor.u32 1.1754944e-38, %v6169_v40  ;;  %vm6168_vm3 = vcmp.eq.f32.partialorder %v6167_v52, 8.507059e+37 }
 0x84a   : > { %v6146_v27 = vmul.f32 %v7039_v33, %v6145_v57  ;;  %v5776_v63 = vadd.f32 %v11229_v23, %v5740_v28  ;;  %v5159_v23 = vadd.f32 %v11446_v60, %v11154_v46  ;;  %v5115_v34 = vpop.f32.mrf.mxu3 }
 0x84c   : > { %v7041_v29 = vpop.eup %7040  ;;  %v6147_v18 = vadd.f32 %v7039_v33, %v6146_v27  ;;  %v6896_v61 = vmul.f32 -1.442695, %v5776_v63  ;;  %v5354_v60 = vadd.f32 %v11453_v21, %v5159_v23  ;;  %v5160_v21 = vadd.f32 %v11460_v41, %v11160_v26 }
 0x84d   : > { %v7043_v62 = vpop.eup %7042  ;;  %v5903_v5 = vadd.f32 1.0, %v7041_v29 }
 0x84e   : > { %v6151_v16 = vsel %vm6150_vm14, %v7039_v33, %v6147_v18  ;;  %v6159_v13 = vmul.f32 %v7043_v62, %v5902_v12  ;;  %7044 = vpow2.f32 %v6896_v61  ;;  %vm6164_vm0 = vweird.f32 %v7043_v62  ;;  %v5307_v50 = vpop.f32.mrf.mxu0  ;;  %v11498_v38 = vpop.f32.mrf.mxu1 }
 0x84f   : > { %v6156_v30 = vsel %vm6153_vm15, %v6155_v51, %v6151_v16  ;;  %7046 = vrcp.f32 %v5903_v5  ;;  %v5683_v19 = vpop.f32.mrf.mxu2  ;;  %v5548_v35 = vadd.f32 %v11455_v1, %v5354_v60  ;;  %vm6165_vm2 = vmor %vm6163_vm1, %vm6164_vm0  ;;  %v6184_v36 = vand.u32 2147483648, %v5903_v5 }
 0x850   : > { %6413 = vst [vmem:[%s11266_s11 + $0x78] sm:$0xff] %v6156_v30  ;;  %v6160_v55 = vsub.f32 1.0, %v6159_v13  ;;  %v5741_v45 = vadd.f32 %v5683_v19, %v5547_v49  ;;  %v6182_v11 = vand.u32 2147483647, %v5903_v5  ;;  %v5355_v57 = vadd.f32 %v11466_v3, %v5160_v21 }
 0x851   : > { %vm6178_vm5 = vweird.f32 %v5903_v5  ;;  %v6185_v47 = vor.u32 1.1754944e-38, %v6184_v36  ;;  %v5161_v61 = vadd.f32 %v11473_v53, %v11166_v8 }
 0x852   : > { %v6161_v4 = vmul.f32 %v7043_v62, %v6160_v55  ;;  %v5777_v46 = vadd.f32 %v11488_v6, %v5741_v45  ;;  %v5549_v27 = vadd.f32 %v11468_v17, %v5355_v57  ;;  %vm6183_vm7 = vcmp.eq.f32.partialorder %v6182_v11, 8.507059e+37 }
 0x853   : > { %v5356_v23 = vadd.f32 %v11480_v7, %v5161_v61  ;;  %v5162_v7 = vadd.f32 %v11492_v58, %v11172_v20  ;;  %v5163_v57 = vadd.f32 %v5115_v34, %v11178_v10 }
 0x854   : > { %v7045_v44 = vpop.eup %7044  ;;  %v6162_v54 = vadd.f32 %v7043_v62, %v6161_v4  ;;  %v6897_v39 = vmul.f32 -1.442695, %v5777_v46 }
 0x855   : > { %v7047_v32 = vpop.eup %7046  ;;  %v5904_v0 = vadd.f32 1.0, %v7045_v44  ;;  %v5550_v40 = vadd.f32 %v11482_v15, %v5356_v23 }
 0x856   : > { %v6166_v48 = vsel %vm6165_vm2, %v7043_v62, %v6162_v54  ;;  %v6174_v43 = vmul.f32 %v7047_v32, %v5903_v5  ;;  %7048 = vpow2.f32 %v6897_v39  ;;  %vm6179_vm4 = vweird.f32 %v7047_v32  ;;  %v5310_v19 = vpop.f32.mrf.mxu0  ;;  %v5504_v55 = vpop.f32.mrf.mxu1 }
 0x857   : > { %v6171_v33 = vsel %vm6168_vm3, %v6170_v24, %v6166_v48  ;;  %7050 = vrcp.f32 %v5904_v0  ;;  %v5686_v42 = vpop.f32.mrf.mxu2  ;;  %vm6180_vm6 = vmor %vm6178_vm5, %vm6179_vm4  ;;  %v6199_v5 = vand.u32 2147483648, %v5904_v0  ;;  %v6197_v17 = vand.u32 2147483647, %v5904_v0  ;;  %v5118_v39 = vpop.f32.mrf.mxu3 }
 0x858   : > { %6414 = vst [vmem:[%s11266_s11 + $0x80] sm:$0xff] %v6171_v33  ;;  %v6175_v31 = vsub.f32 1.0, %v6174_v43  ;;  %v5742_v12 = vadd.f32 %v5686_v42, %v5548_v35  ;;  %vm6193_vm9 = vweird.f32 %v5904_v0  ;;  %v5357_v43 = vadd.f32 %v5307_v50, %v5162_v7 }
 0x859   : > { %v6200_v4 = vor.u32 1.1754944e-38, %v6199_v5  ;;  %vm6198_vm11 = vcmp.eq.f32.partialorder %v6197_v17, 8.507059e+37 }
 0x85a   : > { %v6176_v1 = vmul.f32 %v7047_v32, %v6175_v31  ;;  %v5778_v37 = vadd.f32 %v11488_v6, %v5742_v12  ;;  %v5551_v58 = vadd.f32 %v11498_v38, %v5357_v43 }
 0x85c   : > { %v7049_v28 = vpop.eup %7048  ;;  %v6177_v14 = vadd.f32 %v7047_v32, %v6176_v1  ;;  %v6898_v26 = vmul.f32 -1.442695, %v5778_v37 }
 0x85d   : > { %v7051_v41 = vpop.eup %7050  ;;  %v5905_v63 = vadd.f32 1.0, %v7049_v28 }
 0x85e   : > { %v6181_v29 = vsel %vm6180_vm6, %v7047_v32, %v6177_v14  ;;  %v6189_v18 = vmul.f32 %v7051_v41, %v5904_v0  ;;  %7052 = vpow2.f32 %v6898_v26  ;;  %vm6194_vm8 = vweird.f32 %v7051_v41  ;;  %v5313_v36 = vpop.f32.mrf.mxu0  ;;  %v5507_v1 = vpop.f32.mrf.mxu1 }
 0x85f   : > { %v6186_v3 = vsel %vm6183_vm7, %v6185_v47, %v6181_v29  ;;  %7054 = vrcp.f32 %v5905_v63  ;;  %v5689_v62 = vpop.f32.mrf.mxu2  ;;  %vm6195_vm10 = vmor %vm6193_vm9, %vm6194_vm8  ;;  %v6214_v24 = vand.u32 2147483648, %v5905_v63  ;;  %v6212_v15 = vand.u32 2147483647, %v5905_v63 }
 0x860   : > { %6415 = vst [vmem:[%s11266_s11 + $0x88] sm:$0xff] %v6186_v3  ;;  %v6190_v49 = vsub.f32 1.0, %v6189_v18  ;;  %v5743_v51 = vadd.f32 %v5689_v62, %v5549_v27  ;;  %vm6208_vm13 = vweird.f32 %v5905_v63  ;;  %v5121_v27 = vpop.f32.mrf.mxu3  ;;  %v5358_v29 = vadd.f32 %v5310_v19, %v5163_v57 }
 0x861   : > { %v6215_v31 = vor.u32 1.1754944e-38, %v6214_v24  ;;  %vm6213_vm15 = vcmp.eq.f32.partialorder %v6212_v15, 8.507059e+37  ;;  %v5165_v24 = vadd.f32 %v5121_v27, %v11190_v56 }
 0x862   : > { %v6191_v16 = vmul.f32 %v7051_v41, %v6190_v49  ;;  %v5779_v13 = vadd.f32 %v11488_v6, %v5743_v51  ;;  %v5552_v34 = vadd.f32 %v5504_v55, %v5358_v29 }
 0x864   : > { %v7053_v30 = vpop.eup %7052  ;;  %v6192_v45 = vadd.f32 %v7051_v41, %v6191_v16  ;;  %v6899_v8 = vmul.f32 -1.442695, %v5779_v13  ;;  %v5164_v16 = vadd.f32 %v5118_v39, %v11184_v2 }
 0x865   : > { %v7055_v53 = vpop.eup %7054  ;;  %v5906_v52 = vadd.f32 1.0, %v7053_v30 }
 0x866   : > { %v6196_v46 = vsel %vm6195_vm10, %v7051_v41, %v6192_v45  ;;  %v6204_v60 = vmul.f32 %v7055_v53, %v5905_v63  ;;  %7056 = vpow2.f32 %v6899_v8  ;;  %vm6209_vm12 = vweird.f32 %v7055_v53  ;;  %v5316_v23 = vpop.f32.mrf.mxu0  ;;  %v5510_v30 = vpop.f32.mrf.mxu1 }
 0x867   : > { %v6201_v44 = vsel %vm6198_vm11, %v6200_v4, %v6196_v46  ;;  %7058 = vrcp.f32 %v5906_v52  ;;  %v5692_v54 = vpop.f32.mrf.mxu2  ;;  %vm6210_vm14 = vmor %vm6208_vm13, %vm6209_vm12  ;;  %v6229_v41 = vand.u32 2147483648, %v5906_v52  ;;  %v6227_v47 = vand.u32 2147483647, %v5906_v52 }
 0x868   : > { %6416 = vst [vmem:[%s11266_s11 + $0x90] sm:$0xff] %v6201_v44  ;;  %v6205_v32 = vsub.f32 1.0, %v6204_v60  ;;  %v5744_v35 = vadd.f32 %v5692_v54, %v5550_v40  ;;  %vm6223_vm1 = vweird.f32 %v5906_v52  ;;  %v5359_v4 = vadd.f32 %v5313_v36, %v5164_v16  ;;  %v5124_v46 = vpop.f32.mrf.mxu3 }
 0x869   : > { %v6230_v62 = vor.u32 1.1754944e-38, %v6229_v41  ;;  %vm6228_vm3 = vcmp.eq.f32.partialorder %v6227_v47, 8.507059e+37  ;;  %v5166_v41 = vadd.f32 %v5124_v46, %v11197_v22 }
 0x86a   : > { %v6206_v0 = vmul.f32 %v7055_v53, %v6205_v32  ;;  %v5780_v48 = vadd.f32 %v11488_v6, %v5744_v35  ;;  %v5553_v44 = vadd.f32 %v5507_v1, %v5359_v4 }
 0x86c   : > { %v7057_v21 = vpop.eup %7056  ;;  %v6207_v33 = vadd.f32 %v7055_v53, %v6206_v0  ;;  %v6900_v42 = vmul.f32 -1.442695, %v5780_v48 }
 0x86d   : > { %v7059_v20 = vpop.eup %7058  ;;  %v5907_v12 = vadd.f32 1.0, %v7057_v21 }
 0x86e   : > { %v6211_v11 = vsel %vm6210_vm14, %v7055_v53, %v6207_v33  ;;  %v6219_v37 = vmul.f32 %v7059_v20, %v5906_v52  ;;  %7060 = vpow2.f32 %v6900_v42  ;;  %vm6224_vm0 = vweird.f32 %v7059_v20  ;;  %v5319_v33 = vpop.f32.mrf.mxu0  ;;  %v5513_v42 = vpop.f32.mrf.mxu1 }
 0x86f   : > { %v6216_v50 = vsel %vm6213_vm15, %v6215_v31, %v6211_v11  ;;  %7062 = vrcp.f32 %v5907_v12  ;;  %v5695_v28 = vpop.f32.mrf.mxu2  ;;  %vm6225_vm2 = vmor %vm6223_vm1, %vm6224_vm0  ;;  %v6244_v8 = vand.u32 2147483648, %v5907_v12  ;;  %v6242_v55 = vand.u32 2147483647, %v5907_v12 }
 0x870   : > { %6417 = vst [vmem:[%s11266_s11 + $0x98] sm:$0xff] %v6216_v50  ;;  %v6220_v14 = vsub.f32 1.0, %v6219_v37  ;;  %v5745_v26 = vadd.f32 %v5695_v28, %v5551_v58  ;;  %vm6238_vm5 = vweird.f32 %v5907_v12  ;;  %v5127_v28 = vpop.f32.mrf.mxu3 }
 0x871   : > { %v6245_v54 = vor.u32 1.1754944e-38, %v6244_v8  ;;  %vm6243_vm7 = vcmp.eq.f32.partialorder %v6242_v55, 8.507059e+37 }
 0x872   : > { %v6221_v38 = vmul.f32 %v7059_v20, %v6220_v14  ;;  %v5781_v63 = vadd.f32 %v11488_v6, %v5745_v26 }
 0x874   : > { %v7061_v18 = vpop.eup %7060  ;;  %v6222_v61 = vadd.f32 %v7059_v20, %v6221_v38  ;;  %v6901_v3 = vmul.f32 -1.442695, %v5781_v63 }
 0x875   : > { %v7063_v10 = vpop.eup %7062  ;;  %v5908_v49 = vadd.f32 1.0, %v7061_v18 }
 0x876   : > { %v6226_v51 = vsel %vm6225_vm2, %v7059_v20, %v6222_v61  ;;  %v6234_v5 = vmul.f32 %v7063_v10, %v5907_v12  ;;  %7064 = vpow2.f32 %v6901_v3  ;;  %vm6239_vm4 = vweird.f32 %v7063_v10 }
 0x877   : > { %v6231_v17 = vsel %vm6228_vm3, %v6230_v62, %v6226_v51  ;;  %7066 = vrcp.f32 %v5908_v49  ;;  %v5698_v13 = vpop.f32.mrf.mxu2  ;;  %vm6240_vm6 = vmor %vm6238_vm5, %vm6239_vm4  ;;  %v6259_v21 = vand.u32 2147483648, %v5908_v49  ;;  %v6257_v58 = vand.u32 2147483647, %v5908_v49  ;;  %v5322_v62 = vpop.f32.mrf.mxu0 }
 0x878   : > { %6418 = vst [vmem:[%s11266_s11 + $0xa0] sm:$0xff] %v6231_v17  ;;  %v6235_v19 = vsub.f32 1.0, %v6234_v5  ;;  %v5746_v45 = vadd.f32 %v5698_v13, %v5552_v34  ;;  %v5360_v12 = vadd.f32 %v5316_v23, %v5165_v24  ;;  %vm6253_vm9 = vweird.f32 %v5908_v49 }
 0x879   : > { %v6260_v57 = vor.u32 1.1754944e-38, %v6259_v21  ;;  %vm6258_vm11 = vcmp.eq.f32.partialorder %v6257_v58, 8.507059e+37 }
 0x87a   : > { %v6236_v53 = vmul.f32 %v7063_v10, %v6235_v19  ;;  %v5782_v40 = vadd.f32 %v11488_v6, %v5746_v45  ;;  %v5554_v37 = vadd.f32 %v5510_v30, %v5360_v12  ;;  %v5167_v19 = vadd.f32 %v5127_v28, %v11202_v9 }
 0x87c   : > { %v7065_v52 = vpop.eup %7064  ;;  %v6237_v60 = vadd.f32 %v7063_v10, %v6236_v53  ;;  %v6902_v2 = vmul.f32 -1.442695, %v5782_v40  ;;  %v5130_v53 = vpop.f32.mrf.mxu3 }
 0x87d   : > { %v7067_v7 = vpop.eup %7066  ;;  %v5909_v39 = vadd.f32 1.0, %v7065_v52 }
 0x87e   : > { %v6241_v32 = vsel %vm6240_vm6, %v7063_v10, %v6237_v60  ;;  %v6249_v35 = vmul.f32 %v7067_v7, %v5908_v49  ;;  %7068 = vpow2.f32 %v6902_v2  ;;  %vm6254_vm8 = vweird.f32 %v7067_v7  ;;  %v5516_v49 = vpop.f32.mrf.mxu1 }
 0x87f   : > { %v6246_v0 = vsel %vm6243_vm7, %v6245_v54, %v6241_v32  ;;  %7070 = vrcp.f32 %v5909_v39  ;;  %v5701_v15 = vpop.f32.mrf.mxu2  ;;  %vm6255_vm10 = vmor %vm6253_vm9, %vm6254_vm8  ;;  %v6274_v29 = vand.u32 2147483648, %v5909_v39  ;;  %v6272_v61 = vand.u32 2147483647, %v5909_v39  ;;  %v5325_v24 = vpop.f32.mrf.mxu0 }
 0x880   : > { %6419 = vst [vmem:[%s11266_s11 + $0xa8] sm:$0xff] %v6246_v0  ;;  %v6250_v48 = vsub.f32 1.0, %v6249_v35  ;;  %v5747_v43 = vadd.f32 %v5701_v15, %v5553_v44  ;;  %v5361_v10 = vadd.f32 %v5319_v33, %v5166_v41  ;;  %vm6268_vm13 = vweird.f32 %v5909_v39 }
 0x881   : > { %v6275_v17 = vor.u32 1.1754944e-38, %v6274_v29  ;;  %vm6273_vm15 = vcmp.eq.f32.partialorder %v6272_v61, 8.507059e+37  ;;  %v5362_v2 = vadd.f32 %v5322_v62, %v5167_v19 }
 0x882   : > { %v6251_v20 = vmul.f32 %v7067_v7, %v6250_v48  ;;  %v5783_v31 = vadd.f32 %v11488_v6, %v5747_v43  ;;  %v5555_v16 = vadd.f32 %v5513_v42, %v5361_v10  ;;  %v5168_v43 = vadd.f32 %v5130_v53, %v11209_v25 }
 0x884   : > { %v7069_v36 = vpop.eup %7068  ;;  %v6252_v1 = vadd.f32 %v7067_v7, %v6251_v20  ;;  %v6903_v56 = vmul.f32 -1.442695, %v5783_v31  ;;  %v5133_v31 = vpop.f32.mrf.mxu3 }
 0x885   : > { %v7071_v11 = vpop.eup %7070  ;;  %v5910_v50 = vadd.f32 1.0, %v7069_v36 }
 0x886   : > { %v6256_v14 = vsel %vm6255_vm10, %v7067_v7, %v6252_v1  ;;  %v6264_v26 = vmul.f32 %v7071_v11, %v5909_v39  ;;  %7072 = vpow2.f32 %v6903_v56  ;;  %vm6269_vm12 = vweird.f32 %v7071_v11  ;;  %v5519_v0 = vpop.f32.mrf.mxu1 }
 0x887   : > { %v6261_v27 = vsel %vm6258_vm11, %v6260_v57, %v6256_v14  ;;  %7074 = vrcp.f32 %v5910_v50  ;;  %v5704_v38 = vpop.f32.mrf.mxu2  ;;  %vm6270_vm14 = vmor %vm6268_vm13, %vm6269_vm12  ;;  %v6289_v4 = vand.u32 2147483648, %v5910_v50  ;;  %v6287_v46 = vand.u32 2147483647, %v5910_v50 }
 0x888   : > { %6420 = vst [vmem:[%s11266_s11 + $0xb0] sm:$0xff] %v6261_v27  ;;  %v6265_v47 = vsub.f32 1.0, %v6264_v26  ;;  %v5748_v63 = vadd.f32 %v5704_v38, %v5554_v37  ;;  %vm6283_vm1 = vweird.f32 %v5910_v50  ;;  %v5556_v39 = vadd.f32 %v5516_v49, %v5362_v2  ;;  %v5328_v26 = vpop.f32.mrf.mxu0 }
 0x889   : > { %v6290_v32 = vor.u32 1.1754944e-38, %v6289_v4  ;;  %vm6288_vm3 = vcmp.eq.f32.partialorder %v6287_v46, 8.507059e+37  ;;  %v5363_v56 = vadd.f32 %v5325_v24, %v5168_v43  ;;  %v5169_v38 = vadd.f32 %v5133_v31, %v11216_v59 }
 0x88a   : > { %v6266_v18 = vmul.f32 %v7071_v11, %v6265_v47  ;;  %v5784_v3 = vadd.f32 %v11488_v6, %v5748_v63 }
 0x88b   : > { %v5364_v49 = vadd.f32 %v5328_v26, %v5169_v38 }
 0x88c   : > { %v7073_v34 = vpop.eup %7072  ;;  %v6267_v51 = vadd.f32 %v7071_v11, %v6266_v18  ;;  %v6904_v22 = vmul.f32 -1.442695, %v5784_v3 }
 0x88d   : > { %v7075_v5 = vpop.eup %7074  ;;  %v5911_v13 = vadd.f32 1.0, %v7073_v34 }
 0x88e   : > { %v6271_v23 = vsel %vm6270_vm14, %v7071_v11, %v6267_v51  ;;  %v6279_v30 = vmul.f32 %v7075_v5, %v5910_v50  ;;  %7076 = vpow2.f32 %v6904_v22  ;;  %vm6284_vm0 = vweird.f32 %v7075_v5  ;;  %v5522_v29 = vpop.f32.mrf.mxu1  ;;  %v5136_v22 = vpop.f32.mrf.mxu3 }
 0x88f   : > { %v6276_v45 = vsel %vm6273_vm15, %v6275_v17, %v6271_v23  ;;  %7078 = vrcp.f32 %v5911_v13  ;;  %v5707_v8 = vpop.f32.mrf.mxu2  ;;  %vm6285_vm2 = vmor %vm6283_vm1, %vm6284_vm0  ;;  %v6304_v58 = vand.u32 2147483648, %v5911_v13  ;;  %v6302_v36 = vand.u32 2147483647, %v5911_v13 }
 0x890   : > { %6421 = vst [vmem:[%s11266_s11 + $0xb8] sm:$0xff] %v6276_v45  ;;  %v6280_v55 = vsub.f32 1.0, %v6279_v30  ;;  %v5749_v40 = vadd.f32 %v5707_v8, %v5555_v16  ;;  %vm6298_vm5 = vweird.f32 %v5911_v13  ;;  %v5557_v50 = vadd.f32 %v5519_v0, %v5363_v56  ;;  %v11882_v45 = vld [vmem:[#allocation54_spill] sm:$0xff] }
 0x891   : > { %v6305_v28 = vor.u32 1.1754944e-38, %v6304_v58  ;;  %vm6303_vm7 = vcmp.eq.f32.partialorder %v6302_v36, 8.507059e+37  ;;  %v5558_v17 = vadd.f32 %v5522_v29, %v5364_v49  ;;  %v5170_v8 = vadd.f32 %v5136_v22, %v11882_v45 }
 0x892   : > { %v6281_v52 = vmul.f32 %v7075_v5, %v6280_v55  ;;  %v5785_v60 = vadd.f32 %v11488_v6, %v5749_v40  ;;  %v5331_v40 = vpop.f32.mrf.mxu0 }
 0x894   : > { %v7077_v7 = vpop.eup %7076  ;;  %v6282_v44 = vadd.f32 %v7075_v5, %v6281_v52  ;;  %v6905_v54 = vmul.f32 -1.442695, %v5785_v60 }
 0x895   : > { %v7079_v9 = vpop.eup %7078  ;;  %v5912_v35 = vadd.f32 1.0, %v7077_v7 }
 0x896   : > { %v6286_v15 = vsel %vm6285_vm2, %v7075_v5, %v6282_v44  ;;  %v6294_v48 = vmul.f32 %v7079_v9, %v5911_v13  ;;  %7080 = vpow2.f32 %v6905_v54  ;;  %vm6299_vm4 = vweird.f32 %v7079_v9  ;;  %v5525_v60 = vpop.f32.mrf.mxu1 }
 0x897   : > { %v6291_v21 = vsel %vm6288_vm3, %v6290_v32, %v6286_v15  ;;  %7082 = vrcp.f32 %v5912_v35  ;;  %v5710_v33 = vpop.f32.mrf.mxu2  ;;  %vm6300_vm6 = vmor %vm6298_vm5, %vm6299_vm4  ;;  %v6319_v3 = vand.u32 2147483648, %v5912_v35  ;;  %v6317_v34 = vand.u32 2147483647, %v5912_v35 }
 0x898   : > { %6422 = vst [vmem:[%s11266_s11 + $0xc0] sm:$0xff] %v6291_v21  ;;  %v6295_v42 = vsub.f32 1.0, %v6294_v48  ;;  %v5750_v20 = vadd.f32 %v5710_v33, %v5556_v39  ;;  %vm6313_vm9 = vweird.f32 %v5912_v35  ;;  %v5365_v54 = vadd.f32 %v5331_v40, %v5170_v8 }
 0x899   : > { %v6320_v13 = vor.u32 1.1754944e-38, %v6319_v3  ;;  %vm6318_vm11 = vcmp.eq.f32.partialorder %v6317_v34, 8.507059e+37 }
 0x89a   : > { %v6296_v12 = vmul.f32 %v7079_v9, %v6295_v42  ;;  %v5786_v1 = vadd.f32 %v11488_v6, %v5750_v20  ;;  %v5559_v24 = vadd.f32 %v5525_v60, %v5365_v54 }
 0x89c   : > { %v7081_v11 = vpop.eup %7080  ;;  %v6297_v37 = vadd.f32 %v7079_v9, %v6296_v12  ;;  %v6906_v57 = vmul.f32 -1.442695, %v5786_v1 }
 0x89d   : > { %v7083_v25 = vpop.eup %7082  ;;  %v5913_v14 = vadd.f32 1.0, %v7081_v11 }
 0x89e   : > { %v6301_v41 = vsel %vm6300_vm6, %v7079_v9, %v6297_v37  ;;  %v6309_v27 = vmul.f32 %v7083_v25, %v5912_v35  ;;  %7084 = vpow2.f32 %v6906_v57  ;;  %vm6314_vm8 = vweird.f32 %v7083_v25 }
 0x89f   : > { %v6306_v47 = vsel %vm6303_vm7, %v6305_v28, %v6301_v41  ;;  %7086 = vrcp.f32 %v5913_v14  ;;  %v5713_v63 = vpop.f32.mrf.mxu2  ;;  %vm6315_vm10 = vmor %vm6313_vm9, %vm6314_vm8  ;;  %v6334_v46 = vand.u32 2147483648, %v5913_v14  ;;  %v6332_v7 = vand.u32 2147483647, %v5913_v14 }
 0x8a0   : > { %6423 = vst [vmem:[%s11266_s11 + $0xc8] sm:$0xff] %v6306_v47  ;;  %v6310_v18 = vsub.f32 1.0, %v6309_v27  ;;  %v5751_v61 = vadd.f32 %v5713_v63, %v5557_v50  ;;  %vm6328_vm13 = vweird.f32 %v5913_v14 }
 0x8a1   : > { %v6335_v0 = vor.u32 1.1754944e-38, %v6334_v46  ;;  %vm6333_vm15 = vcmp.eq.f32.partialorder %v6332_v7, 8.507059e+37 }
 0x8a2   : > { %v6311_v10 = vmul.f32 %v7083_v25, %v6310_v18  ;;  %v5787_v62 = vadd.f32 %v11488_v6, %v5751_v61 }
 0x8a4   : > { %v7085_v51 = vpop.eup %7084  ;;  %v6312_v5 = vadd.f32 %v7083_v25, %v6311_v10  ;;  %v6907_v59 = vmul.f32 -1.442695, %v5787_v62 }
 0x8a5   : > { %v7087_v16 = vpop.eup %7086  ;;  %v5914_v23 = vadd.f32 1.0, %v7085_v51 }
 0x8a6   : > { %v6316_v30 = vsel %vm6315_vm10, %v7083_v25, %v6312_v5  ;;  %v6324_v19 = vmul.f32 %v7087_v16, %v5913_v14  ;;  %7088 = vpow2.f32 %v6907_v59  ;;  %vm6329_vm12 = vweird.f32 %v7087_v16 }
 0x8a7   : > { %v6321_v53 = vsel %vm6318_vm11, %v6320_v13, %v6316_v30  ;;  %7090 = vrcp.f32 %v5914_v23  ;;  %v5716_v55 = vpop.f32.mrf.mxu2  ;;  %vm6330_vm14 = vmor %vm6328_vm13, %vm6329_vm12  ;;  %v6349_v58 = vand.u32 2147483648, %v5914_v23  ;;  %v6347_v12 = vand.u32 2147483647, %v5914_v23 }
 0x8a8   : > { %6424 = vst [vmem:[%s11266_s11 + $0xd0] sm:$0xff] %v6321_v53  ;;  %v6325_v4 = vsub.f32 1.0, %v6324_v19  ;;  %v5752_v52 = vadd.f32 %v5716_v55, %v5558_v17  ;;  %vm6343_vm1 = vweird.f32 %v5914_v23 }
 0x8a9   : > { %v6350_v57 = vor.u32 1.1754944e-38, %v6349_v58  ;;  %vm6348_vm3 = vcmp.eq.f32.partialorder %v6347_v12, 8.507059e+37 }
 0x8aa   : > { %v6326_v2 = vmul.f32 %v7087_v16, %v6325_v4  ;;  %v5788_v44 = vadd.f32 %v11488_v6, %v5752_v52 }
 0x8ac   : > { %v7089_v9 = vpop.eup %7088  ;;  %v6327_v39 = vadd.f32 %v7087_v16, %v6326_v2  ;;  %v6908_v32 = vmul.f32 -1.442695, %v5788_v44 }
 0x8ad   : > { %v7091_v35 = vpop.eup %7090  ;;  %v5915_v15 = vadd.f32 1.0, %v7089_v9 }
 0x8ae   : > { %v6331_v48 = vsel %vm6330_vm14, %v7087_v16, %v6327_v39  ;;  %v6339_v43 = vmul.f32 %v7091_v35, %v5914_v23  ;;  %7092 = vpow2.f32 %v6908_v32  ;;  %vm6344_vm0 = vweird.f32 %v7091_v35 }
 0x8af   : > { %v6336_v21 = vsel %vm6333_vm15, %v6335_v0, %v6331_v48  ;;  %7094 = vrcp.f32 %v5915_v15  ;;  %v5719_v33 = vpop.f32.mrf.mxu2  ;;  %vm6345_vm2 = vmor %vm6343_vm1, %vm6344_vm0  ;;  %v6364_v41 = vand.u32 2147483648, %v5915_v15  ;;  %vm6358_vm5 = vweird.f32 %v5915_v15 }
 0x8b0   : > { %6425 = vst [vmem:[%s11266_s11 + $0xd8] sm:$0xff] %v6336_v21  ;;  %v6340_v42 = vsub.f32 1.0, %v6339_v43  ;;  %v5753_v20 = vadd.f32 %v5719_v33, %v5559_v24 }
 0x8b1   : > { %v6365_v29 = vor.u32 1.1754944e-38, %v6364_v41 }
 0x8b2   : > { %v6341_v31 = vmul.f32 %v7091_v35, %v6340_v42  ;;  %v5789_v36 = vadd.f32 %v11488_v6, %v5753_v20  ;;  %v6362_v6 = vand.u32 2147483647, %v5915_v15 }
 0x8b4   : > { %v7093_v1 = vpop.eup %7092  ;;  %v6342_v56 = vadd.f32 %v7091_v35, %v6341_v31  ;;  %v6909_v11 = vmul.f32 -1.442695, %v5789_v36  ;;  %vm6363_vm7 = vcmp.eq.f32.partialorder %v6362_v6, 8.507059e+37 }
 0x8b5   : > { %v7095_v37 = vpop.eup %7094  ;;  %v5916_v25 = vadd.f32 1.0, %v7093_v1 }
 0x8b6   : > { %v6346_v50 = vsel %vm6345_vm2, %v7091_v35, %v6342_v56  ;;  %v6354_v28 = vmul.f32 %v7095_v37, %v5915_v15  ;;  %7096 = vpow2.f32 %v6909_v11  ;;  %vm6359_vm4 = vweird.f32 %v7095_v37 }
 0x8b7   : > { %v6351_v14 = vsel %vm6348_vm3, %v6350_v57, %v6346_v50  ;;  %7098 = vrcp.f32 %v5916_v25  ;;  %vm6360_vm6 = vmor %vm6358_vm5, %vm6359_vm4  ;;  %v6379_v62 = vand.u32 2147483648, %v5916_v25  ;;  %v6377_v51 = vand.u32 2147483647, %v5916_v25 }
 0x8b8   : > { %6426 = vst [vmem:[%s11266_s11 + $0xe0] sm:$0xff] %v6351_v14  ;;  %v6355_v26 = vsub.f32 1.0, %v6354_v28  ;;  %vm6373_vm9 = vweird.f32 %v5916_v25 }
 0x8b9   : > { %v6380_v59 = vor.u32 1.1754944e-38, %v6379_v62  ;;  %vm6378_vm11 = vcmp.eq.f32.partialorder %v6377_v51, 8.507059e+37 }
 0x8ba   : > { %v6356_v27 = vmul.f32 %v7095_v37, %v6355_v26 }
 0x8bc   : > { %v7097_v38 = vpop.eup %7096  ;;  %v6357_v47 = vadd.f32 %v7095_v37, %v6356_v27 }
 0x8bd   : > { %v7099_v63 = vpop.eup %7098  ;;  %v5917_v18 = vadd.f32 1.0, %v7097_v38 }
 0x8be   : > { %v6361_v61 = vsel %vm6360_vm6, %v7095_v37, %v6357_v47  ;;  %v6369_v3 = vmul.f32 %v7099_v63, %v5916_v25  ;;  %vm6374_vm8 = vweird.f32 %v7099_v63 }
 0x8bf   : > { %v6366_v10 = vsel %vm6363_vm7, %v6365_v29, %v6361_v61  ;;  %7100 = vrcp.f32 %v5917_v18  ;;  %vm6375_vm10 = vmor %vm6373_vm9, %vm6374_vm8  ;;  %v6394_v30 = vand.u32 2147483648, %v5917_v18  ;;  %v6392_v45 = vand.u32 2147483647, %v5917_v18 }
 0x8c0   : > { %6427 = vst [vmem:[%s11266_s11 + $0xe8] sm:$0xff] %v6366_v10  ;;  %v6370_v34 = vsub.f32 1.0, %v6369_v3  ;;  %vm6388_vm13 = vweird.f32 %v5917_v18 }
 0x8c1   : > { %v6395_v53 = vor.u32 1.1754944e-38, %v6394_v30  ;;  %vm6393_vm15 = vcmp.eq.f32.partialorder %v6392_v45, 8.507059e+37 }
 0x8c2   : > { %v6371_v49 = vmul.f32 %v7099_v63, %v6370_v34 }
 0x8c4   : > { %v6372_v22 = vadd.f32 %v7099_v63, %v6371_v49 }
 0x8c5   : > { %v7101_v5 = vpop.eup %7100 }
 0x8c6   : > { %v6376_v16 = vsel %vm6375_vm10, %v7099_v63, %v6372_v22  ;;  %v6384_v17 = vmul.f32 %v7101_v5, %v5917_v18  ;;  %vm6389_vm12 = vweird.f32 %v7101_v5 }
 0x8c7   : > { %v6381_v13 = vsel %vm6378_vm11, %v6380_v59, %v6376_v16  ;;  %vm6390_vm14 = vmor %vm6388_vm13, %vm6389_vm12 }
 0x8c8   : > { %6428 = vst [vmem:[%s11266_s11 + $0xf0] sm:$0xff] %v6381_v13  ;;  %v6385_v23 = vsub.f32 1.0, %v6384_v17 }
 0x8ca   : > { %v6386_v19 = vmul.f32 %v7101_v5, %v6385_v23 }
 0x8cc   : > { %v6387_v8 = vadd.f32 %v7101_v5, %v6386_v19 }
 0x8ce   : > { %v6391_v55 = vsel %vm6390_vm14, %v7101_v5, %v6387_v8 }
 0x8cf   : > { %v6396_v40 = vsel %vm6393_vm15, %v6395_v53, %v6391_v55 }
 0x8d0   : > { %6429 = vst [vmem:[%s11266_s11 + $0xf8] sm:$0xff] %v6396_v40 }
 0x8d1 PF: > { %s17_s24 = sadd.s32 1, %s7114_s24  }
 0x8d2   : > { %p14_p4 = scmp.ge.s32.totalorder %s17_s24, 4  }
 0x8d4   :  { %16 = sbr.rel (!%p14_p4) target bundleno = 1 (0x1), region = 108 }

</bundles_post_ra>
